<compile_context>
chip_gen: v7x
topology: tpu7x:2x2x1
jax: 0.10.0
libtpu: 0.0.40
codegen_flags: <defaults>
</compile_context>

<pallas_src>
from functools import partial

import jax
import jax.numpy as jnp
from jax.experimental import pallas as pl
from jax.experimental.pallas import tpu as pltpu


def _round_up(x, m):
    return (x + m - 1) // m * m


def _basic_block_kernel(x_ref, w1_ref, b1_ref, w2_ref, b2_ref, out_ref,
                        xpad_s, y1pad_s, *, pad_left):
    """One (B_tile)-image block per grid step.

    x_ref   : (B, H, W, Cin_p)        input block (also the residual), f32
    w1_ref  : (9*Cin_p, Cmid_p)       conv1 weights, BN1 scale folded, im2col K layout
    b1_ref  : (1, Cmid_p)             folded BN1 bias, f32
    w2_ref  : (9*Cmid_p, Cout_p)      conv2 weights, BN2 scale folded
    b2_ref  : (1, Cout_p)             folded BN2 bias, f32
    out_ref : (B, H*W, Cout_p)        f32
    xpad_s  : (B, H+2, PL+W+1, Cin_p) VMEM halo scratch (matmul dtype)
    y1pad_s : (B, H+2, PL+W+1, Cmid_p)
    """
    B, H, W, Cin = x_ref.shape
    Cmid = w1_ref.shape[1]
    Cout = w2_ref.shape[1]
    W_tot = xpad_s.shape[2]
    PL = pad_left
    mmdt = xpad_s.dtype
    f32 = jnp.float32

    x = x_ref[...]                                      # (B, H, W, Cin) f32

    def stage(pad_s, val):
        """Store `val` into the halo scratch; zero only the top/bottom rows.

        The interior store starts at sublane offset PL (tile-aligned).  The
        left/right border columns are NOT zeroed here; they are masked out on
        the (cheap) loads below.
        """
        C = val.shape[-1]
        zrow = jnp.zeros((B, 1, W_tot, C), mmdt)
        pad_s[:, 0:1, :, :] = zrow
        pad_s[:, H + 1:H + 2, :, :] = zrow
        pad_s[:, 1:H + 1, PL:PL + W, :] = val

    def conv3x3(pad_s, c_in, w_ref, b_ref):
        """3x3 / pad-1 conv as one K = 9*c_in MXU matmul from the halo scratch."""
        col = jax.lax.broadcasted_iota(jnp.int32, (B, H, W, c_in), 2)
        taps = []
        for dy in range(3):                  # leading-dim row slices: free
            for dx in range(3):              # dx=1 is sublane-aligned; 0/2 are loads
                win = pad_s[:, dy:dy + H, PL - 1 + dx:PL - 1 + dx + W, :]
                if dx == 0:                  # reads the (unstored) left border col
                    win = jnp.where(col == 0, jnp.zeros_like(win), win)
                elif dx == 2:                # reads the (unstored) right border col
                    win = jnp.where(col == W - 1, jnp.zeros_like(win), win)
                taps.append(win)
        slab = jnp.concatenate(taps, axis=-1)            # (B,H,W,9*c_in), lane-granular
        slab = slab.reshape(B * H * W, 9 * c_in)
        acc = jnp.dot(slab, w_ref[...], preferred_element_type=f32)
        return acc + b_ref[...]                           # (B*H*W, c_out) f32

    # ---- conv1 + folded BN1 + ReLU ----------------------------------------
    stage(xpad_s, x.astype(mmdt))
    y1 = jnp.maximum(conv3x3(xpad_s, Cin, w1_ref, b1_ref), 0.0)
    y1 = y1.reshape(B, H, W, Cmid)            # reshape while f32 (sublane tile 8)

    # ---- conv2 + folded BN2 ------------------------------------------------
    stage(y1pad_s, y1.astype(mmdt))
    y2 = conv3x3(y1pad_s, Cmid, w2_ref, b2_ref)

    # ---- residual add (downsample=None, Identity shortcut) + final ReLU ----
    res = x.reshape(B, H * W, Cin)
    out = jnp.maximum(y2.reshape(B, H * W, Cout) + res, 0.0)
    out_ref[...] = out.astype(out_ref.dtype)  # lane-dense, unmasked store


def _pick_batch_tile(n, per_img_bytes, budget_bytes, cap=8):
    best = 1
    for d in range(1, min(n, cap) + 1):
        if n % d == 0 and d * per_img_bytes <= budget_bytes:
            best = d
    return best


def basic_block_forward_nhwc(x_nhwc, params, eps=1e-5,
                             matmul_dtype=jnp.bfloat16):
    """x_nhwc: (N, H, W, C) float32. Returns (N, H, W, C) float32."""
    (w1, g1, be1, m1, v1, w2, g2, be2, m2, v2) = params   # w: (3,3,Cin,Cout) HWIO

    x = x_nhwc.astype(jnp.float32)
    N, H, W, Cin = x.shape
    Cmid = w1.shape[3]
    Cout = w2.shape[3]
    assert Cin == Cout, "BasicBlock with downsample=None needs Cin == Cout"

    LANE = 128
    itemsize = jnp.dtype(matmul_dtype).itemsize
    Cin_p = _round_up(Cin, LANE)
    Cmid_p = _round_up(Cmid, LANE)
    Cout_p = _round_up(Cout, LANE)
    pad_left = {4: 8, 2: 16, 1: 32}[itemsize]     # sublane-tile aligned left halo
    W_tot = pad_left + W + 1

    # Fold eval-mode BatchNorm into the convolutions:
    #   bn(conv(x)) = conv(x)*s + (beta - mean*s)  ==  conv_{w*s}(x) + b
    s1 = g1 / jnp.sqrt(v1 + eps)
    b1 = be1 - m1 * s1
    s2 = g2 / jnp.sqrt(v2 + eps)
    b2 = be2 - m2 * s2

    def pack_w(w, s, cin, cin_p, cout, cout_p):
        # (ky,kx,cin,cout) -> zero-pad channels -> (9*cin_p, cout_p); K index
        # = (dy*3+dx)*cin_p + c matches the kernel's tap-concat order.
        wf = (w * s).astype(jnp.float32)
        wf = jnp.pad(wf, ((0, 0), (0, 0), (0, cin_p - cin), (0, cout_p - cout)))
        return wf.reshape(9 * cin_p, cout_p).astype(matmul_dtype)

    w1f = pack_w(w1, s1, Cin, Cin_p, Cmid, Cmid_p)
    w2f = pack_w(w2, s2, Cmid, Cmid_p, Cout, Cout_p)
    b1f = jnp.pad(b1, (0, Cmid_p - Cmid)).reshape(1, Cmid_p).astype(jnp.float32)
    b2f = jnp.pad(b2, (0, Cout_p - Cout)).reshape(1, Cout_p).astype(jnp.float32)

    # Lane-dense channels in HBM (zero-padded); padded channels stay exactly 0
    # through conv/BN/ReLU/residual, so the final slice is exact.
    xp = jnp.pad(x, ((0, 0), (0, 0), (0, 0), (0, Cin_p - Cin))) if Cin_p != Cin else x

    # Batch-tile: largest divisor of N whose per-step footprint fits the budget.
    per_img = (2 * H * W * Cin_p * 4                       # double-buffered input
               + 2 * H * W * Cout_p * 4                    # double-buffered output
               + (H + 2) * W_tot * (Cin_p + Cmid_p) * itemsize   # halo scratches
               + 9 * H * W * (Cin_p + Cmid_p) * itemsize         # im2col slabs
               + 2 * H * W * max(Cmid_p, Cout_p) * 4)            # f32 accumulators
    B_tile = _pick_batch_tile(N, per_img, budget_bytes=20 * 1024 * 1024)

    flops = 2 * N * H * W * 9 * (Cin_p * Cmid_p + Cmid_p * Cout_p)
    bytes_accessed = (xp.size * 4 + N * H * W * Cout_p * 4
                      + (w1f.size + w2f.size) * itemsize
                      + (b1f.size + b2f.size) * 4)

    kernel = partial(_basic_block_kernel, pad_left=pad_left)

    out_flat = pl.pallas_call(
        kernel,
        out_shape=jax.ShapeDtypeStruct((N, H * W, Cout_p), jnp.float32),
        grid=(N // B_tile,),
        in_specs=[
            pl.BlockSpec((B_tile, H, W, Cin_p), lambda n: (n, 0, 0, 0)),
            pl.BlockSpec((9 * Cin_p, Cmid_p), lambda n: (0, 0)),
            pl.BlockSpec((1, Cmid_p), lambda n: (0, 0)),
            pl.BlockSpec((9 * Cmid_p, Cout_p), lambda n: (0, 0)),
            pl.BlockSpec((1, Cout_p), lambda n: (0, 0)),
        ],
        out_specs=pl.BlockSpec((B_tile, H * W, Cout_p), lambda n: (n, 0, 0)),
        scratch_shapes=[
            pltpu.VMEM((B_tile, H + 2, W_tot, Cin_p), matmul_dtype),
            pltpu.VMEM((B_tile, H + 2, W_tot, Cmid_p), matmul_dtype),
        ],
        compiler_params=pltpu.CompilerParams(
            dimension_semantics=("parallel",),
            # 48 MiB: above the 32 MiB scoped default (v5e/v6e) but safely
            # inside v7x's 64 MiB physical VMEM per TensorCore.
            vmem_limit_bytes=48 * 1024 * 1024),
        cost_estimate=pl.CostEstimate(
            flops=flops, transcendentals=0, bytes_accessed=bytes_accessed),
    )(xp, w1f, b1f, w2f, b2f)

    out = out_flat.reshape(N, H, W, Cout_p)
    if Cout_p != Cout:
        out = out[..., :Cout]
    return out


@partial(jax.jit, static_argnames=("eps", "matmul_dtype"))
def basic_block_forward(x_nchw, params, eps=1e-5, matmul_dtype=jnp.bfloat16):
    """PyTorch-parity entry point: x (N, C, H, W) -> (N, C, H, W).

    A full-JAX model should call basic_block_forward_nhwc directly and stay
    NHWC end-to-end; the transposes here exist only for PyTorch parity.
    """
    x = jnp.transpose(x_nchw, (0, 2, 3, 1))                     # NCHW -> NHWC
    out = basic_block_forward_nhwc(x, params, eps=eps, matmul_dtype=matmul_dtype)
    return jnp.transpose(out, (0, 3, 1, 2))                     # NHWC -> NCHW


def _reference_forward(x_nchw, params, eps=1e-5):
    """Pure-JAX reference (XLA conv, f32) for validation."""
    (w1, g1, be1, m1, v1, w2, g2, be2, m2, v2) = params
    x = jnp.transpose(x_nchw, (0, 2, 3, 1)).astype(jnp.float32)

    def conv(inp, w):
        return jax.lax.conv_general_dilated(
            inp, w, window_strides=(1, 1), padding=((1, 1), (1, 1)),
            dimension_numbers=("NHWC", "HWIO", "NHWC"))

    def bn(inp, g, b, m, v):
        return (inp - m) / jnp.sqrt(v + eps) * g + b

    out = jax.nn.relu(bn(conv(x, w1), g1, be1, m1, v1))
    out = bn(conv(out, w2), g2, be2, m2, v2)
    out = jax.nn.relu(out + x + 0.0)
    return jnp.transpose(out, (0, 3, 1, 2))


def _init_params(key, inplanes, planes):
    ks = jax.random.split(key, 10)
    w1 = 0.1 * jax.random.normal(ks[0], (3, 3, inplanes, planes), jnp.float32)
    g1 = 1.0 + 0.1 * jax.random.normal(ks[1], (planes,), jnp.float32)
    be1 = 0.1 * jax.random.normal(ks[2], (planes,), jnp.float32)
    m1 = 0.05 * jax.random.normal(ks[3], (planes,), jnp.float32)
    v1 = 1.0 + 0.1 * jax.random.uniform(ks[4], (planes,), jnp.float32)
    w2 = 0.1 * jax.random.normal(ks[5], (3, 3, planes, planes), jnp.float32)
    g2 = 1.0 + 0.1 * jax.random.normal(ks[6], (planes,), jnp.float32)
    be2 = 0.1 * jax.random.normal(ks[7], (planes,), jnp.float32)
    m2 = 0.05 * jax.random.normal(ks[8], (planes,), jnp.float32)
    v2 = 1.0 + 0.1 * jax.random.uniform(ks[9], (planes,), jnp.float32)
    return (w1, g1, be1, m1, v1, w2, g2, be2, m2, v2)


if __name__ == "__main__":
    key = jax.random.PRNGKey(0)
    k_param, k_x = jax.random.split(key)

    inplanes = planes = 4          # stride=1, downsample=None -> shapes match
    N, H, W = 2, 16, 16

    params = _init_params(k_param, inplanes, planes)
    x = jax.random.normal(k_x, (N, inplanes, H, W), jnp.float32)   # NCHW

    ref = jax.block_until_ready(_reference_forward(x, params))

    # exact-precision path (f32 matmuls) -- tight tolerance
    out_f32 = jax.block_until_ready(
        basic_block_forward(x, params, matmul_dtype=jnp.float32))
    assert out_f32.shape == (N, planes, H, W)
    assert jnp.allclose(out_f32, ref, atol=1e-4, rtol=1e-4), (
        f"f32 max abs err = {float(jnp.max(jnp.abs(out_f32 - ref)))}")

    # fast path (bf16 MXU inputs, f32 accumulation) -- looser tolerance
    out_bf16 = jax.block_until_ready(
        basic_block_forward(x, params, matmul_dtype=jnp.bfloat16))
    assert out_bf16.shape == (N, planes, H, W)
    assert jnp.allclose(out_bf16, ref, atol=5e-2, rtol=5e-2), (
        f"bf16 max abs err = {float(jnp.max(jnp.abs(out_bf16 - ref)))}")

    print("KERNEL_OK")
</pallas_src>

<mosaic_0001>
module attributes {stable_mosaic.version = 11 : i64} {
  func.func @_basic_block_kernel(%arg0: i32, %arg1: memref<2x16x16x128xf32, #tpu.memory_space<vmem>>, %arg2: memref<1152x128xf32, #tpu.memory_space<vmem>>, %arg3: memref<1x128xf32, #tpu.memory_space<vmem>>, %arg4: memref<1152x128xf32, #tpu.memory_space<vmem>>, %arg5: memref<1x128xf32, #tpu.memory_space<vmem>>, %arg6: memref<2x256x128xf32, #tpu.memory_space<vmem>>, %arg7: memref<2x18x25x128xf32, #tpu.memory_space<vmem>>, %arg8: memref<2x18x25x128xf32, #tpu.memory_space<vmem>>) attributes {dimension_semantics = [#tpu.dimension_semantics<parallel>], iteration_bounds = array<i64: 1>, scalar_prefetch = 0 : i64, scratch_operands = 2 : i64, tpu.core_type = #tpu.core_type<tc>, window_params = [{transform_indices = @transform_0, window_bounds = array<i64: 2, 16, 16, 128>}, {pipeline_mode = #tpu.pipeline_mode<synchronous>, transform_indices = @transform_1, window_bounds = array<i64: 1152, 128>}, {pipeline_mode = #tpu.pipeline_mode<synchronous>, transform_indices = @transform_2, window_bounds = array<i64: 1, 128>}, {pipeline_mode = #tpu.pipeline_mode<synchronous>, transform_indices = @transform_3, window_bounds = array<i64: 1152, 128>}, {pipeline_mode = #tpu.pipeline_mode<synchronous>, transform_indices = @transform_4, window_bounds = array<i64: 1, 128>}, {transform_indices = @transform_5, window_bounds = array<i64: 2, 256, 128>}]} {
    %c0 = arith.constant 0 : index
    %c0_0 = arith.constant 0 : index
    %c0_1 = arith.constant 0 : index
    %c0_2 = arith.constant 0 : index
    %0 = vector.load %arg1[%c0, %c0_0, %c0_1, %c0_2] : memref<2x16x16x128xf32, #tpu.memory_space<vmem>>, vector<2x16x16x128xf32>
    %cst = arith.constant 0.000000e+00 : f32
    %1 = vector.broadcast %cst : f32 to vector<2x1x25x128xf32>
    %c0_3 = arith.constant 0 : index
    %c0_4 = arith.constant 0 : index
    %c0_5 = arith.constant 0 : index
    %c0_6 = arith.constant 0 : index
    %2 = vector.load %arg7[%c0_3, %c0_4, %c0_5, %c0_6] : memref<2x18x25x128xf32, #tpu.memory_space<vmem>>, vector<2x1x25x128xf32>
    tpu.vector_store %arg7[%c0_3, %c0_4, %c0_5, %c0_6], %1 {strides = array<i32>} : memref<2x18x25x128xf32, #tpu.memory_space<vmem>>, vector<2x1x25x128xf32>,
    %c0_7 = arith.constant 0 : index
    %c17 = arith.constant 17 : index
    %c0_8 = arith.constant 0 : index
    %c0_9 = arith.constant 0 : index
    %3 = vector.load %arg7[%c0_7, %c17, %c0_8, %c0_9] : memref<2x18x25x128xf32, #tpu.memory_space<vmem>>, vector<2x1x25x128xf32>
    tpu.vector_store %arg7[%c0_7, %c17, %c0_8, %c0_9], %1 {strides = array<i32>} : memref<2x18x25x128xf32, #tpu.memory_space<vmem>>, vector<2x1x25x128xf32>,
    %c0_10 = arith.constant 0 : index
    %c1 = arith.constant 1 : index
    %c8 = arith.constant 8 : index
    %c0_11 = arith.constant 0 : index
    %4 = vector.load %arg7[%c0_10, %c1, %c8, %c0_11] : memref<2x18x25x128xf32, #tpu.memory_space<vmem>>, vector<2x16x16x128xf32>
    tpu.vector_store %arg7[%c0_10, %c1, %c8, %c0_11], %0 {strides = array<i32>} : memref<2x18x25x128xf32, #tpu.memory_space<vmem>>, vector<2x16x16x128xf32>,
    %5 = tpu.iota {dimensions = array<i32: 2>} : vector<2x16x16x128xi32>
    %c0_12 = arith.constant 0 : index
    %c0_13 = arith.constant 0 : index
    %c7 = arith.constant 7 : index
    %c0_14 = arith.constant 0 : index
    %6 = vector.load %arg7[%c0_12, %c0_13, %c7, %c0_14] : memref<2x18x25x128xf32, #tpu.memory_space<vmem>>, vector<2x16x16x128xf32>
    %c0_i32 = arith.constant 0 : i32
    %7 = vector.broadcast %c0_i32 : i32 to vector<2x16x16x128xi32>
    %8 = arith.cmpi eq, %5, %7 : vector<2x16x16x128xi32>
    %cst_15 = arith.constant 0.000000e+00 : f32
    %9 = vector.broadcast %cst_15 : f32 to vector<2x16x16x128xf32>
    %10 = arith.select %8, %9, %6 : vector<2x16x16x128xi1>, vector<2x16x16x128xf32>
    %c0_16 = arith.constant 0 : index
    %c0_17 = arith.constant 0 : index
    %c8_18 = arith.constant 8 : index
    %c0_19 = arith.constant 0 : index
    %11 = vector.load %arg7[%c0_16, %c0_17, %c8_18, %c0_19] : memref<2x18x25x128xf32, #tpu.memory_space<vmem>>, vector<2x16x16x128xf32>
    %c0_20 = arith.constant 0 : index
    %c0_21 = arith.constant 0 : index
    %c9 = arith.constant 9 : index
    %c0_22 = arith.constant 0 : index
    %12 = vector.load %arg7[%c0_20, %c0_21, %c9, %c0_22] : memref<2x18x25x128xf32, #tpu.memory_space<vmem>>, vector<2x16x16x128xf32>
    %c15_i32 = arith.constant 15 : i32
    %13 = vector.broadcast %c15_i32 : i32 to vector<2x16x16x128xi32>
    %14 = arith.cmpi eq, %5, %13 : vector<2x16x16x128xi32>
    %cst_23 = arith.constant 0.000000e+00 : f32
    %15 = vector.broadcast %cst_23 : f32 to vector<2x16x16x128xf32>
    %16 = arith.select %14, %15, %12 : vector<2x16x16x128xi1>, vector<2x16x16x128xf32>
    %c0_24 = arith.constant 0 : index
    %c1_25 = arith.constant 1 : index
    %c7_26 = arith.constant 7 : index
    %c0_27 = arith.constant 0 : index
    %17 = vector.load %arg7[%c0_24, %c1_25, %c7_26, %c0_27] : memref<2x18x25x128xf32, #tpu.memory_space<vmem>>, vector<2x16x16x128xf32>
    %c0_i32_28 = arith.constant 0 : i32
    %18 = vector.broadcast %c0_i32_28 : i32 to vector<2x16x16x128xi32>
    %19 = arith.cmpi eq, %5, %18 : vector<2x16x16x128xi32>
    %cst_29 = arith.constant 0.000000e+00 : f32
    %20 = vector.broadcast %cst_29 : f32 to vector<2x16x16x128xf32>
    %21 = arith.select %19, %20, %17 : vector<2x16x16x128xi1>, vector<2x16x16x128xf32>
    %c0_30 = arith.constant 0 : index
    %c1_31 = arith.constant 1 : index
    %c8_32 = arith.constant 8 : index
    %c0_33 = arith.constant 0 : index
    %22 = vector.load %arg7[%c0_30, %c1_31, %c8_32, %c0_33] : memref<2x18x25x128xf32, #tpu.memory_space<vmem>>, vector<2x16x16x128xf32>
    %c0_34 = arith.constant 0 : index
    %c1_35 = arith.constant 1 : index
    %c9_36 = arith.constant 9 : index
    %c0_37 = arith.constant 0 : index
    %23 = vector.load %arg7[%c0_34, %c1_35, %c9_36, %c0_37] : memref<2x18x25x128xf32, #tpu.memory_space<vmem>>, vector<2x16x16x128xf32>
    %c15_i32_38 = arith.constant 15 : i32
    %24 = vector.broadcast %c15_i32_38 : i32 to vector<2x16x16x128xi32>
    %25 = arith.cmpi eq, %5, %24 : vector<2x16x16x128xi32>
    %cst_39 = arith.constant 0.000000e+00 : f32
    %26 = vector.broadcast %cst_39 : f32 to vector<2x16x16x128xf32>
    %27 = arith.select %25, %26, %23 : vector<2x16x16x128xi1>, vector<2x16x16x128xf32>
    %c0_40 = arith.constant 0 : index
    %c2 = arith.constant 2 : index
    %c7_41 = arith.constant 7 : index
    %c0_42 = arith.constant 0 : index
    %28 = vector.load %arg7[%c0_40, %c2, %c7_41, %c0_42] : memref<2x18x25x128xf32, #tpu.memory_space<vmem>>, vector<2x16x16x128xf32>
    %c0_i32_43 = arith.constant 0 : i32
    %29 = vector.broadcast %c0_i32_43 : i32 to vector<2x16x16x128xi32>
    %30 = arith.cmpi eq, %5, %29 : vector<2x16x16x128xi32>
    %cst_44 = arith.constant 0.000000e+00 : f32
    %31 = vector.broadcast %cst_44 : f32 to vector<2x16x16x128xf32>
    %32 = arith.select %30, %31, %28 : vector<2x16x16x128xi1>, vector<2x16x16x128xf32>
    %c0_45 = arith.constant 0 : index
    %c2_46 = arith.constant 2 : index
    %c8_47 = arith.constant 8 : index
    %c0_48 = arith.constant 0 : index
    %33 = vector.load %arg7[%c0_45, %c2_46, %c8_47, %c0_48] : memref<2x18x25x128xf32, #tpu.memory_space<vmem>>, vector<2x16x16x128xf32>
    %c0_49 = arith.constant 0 : index
    %c2_50 = arith.constant 2 : index
    %c9_51 = arith.constant 9 : index
    %c0_52 = arith.constant 0 : index
    %34 = vector.load %arg7[%c0_49, %c2_50, %c9_51, %c0_52] : memref<2x18x25x128xf32, #tpu.memory_space<vmem>>, vector<2x16x16x128xf32>
    %c15_i32_53 = arith.constant 15 : i32
    %35 = vector.broadcast %c15_i32_53 : i32 to vector<2x16x16x128xi32>
    %36 = arith.cmpi eq, %5, %35 : vector<2x16x16x128xi32>
    %cst_54 = arith.constant 0.000000e+00 : f32
    %37 = vector.broadcast %cst_54 : f32 to vector<2x16x16x128xf32>
    %38 = arith.select %36, %37, %34 : vector<2x16x16x128xi1>, vector<2x16x16x128xf32>
    %39 = tpu.concatenate %10, %11, %16, %21, %22, %27, %32, %33, %38 in 3 : vector<2x16x16x128xf32>, vector<2x16x16x128xf32>, vector<2x16x16x128xf32>, vector<2x16x16x128xf32>, vector<2x16x16x128xf32>, vector<2x16x16x128xf32>, vector<2x16x16x128xf32>, vector<2x16x16x128xf32>, vector<2x16x16x128xf32> -> vector<2x16x16x1152xf32>
    %40 = vector.shape_cast %39 : vector<2x16x16x1152xf32> to vector<512x1152xf32>
    %c0_55 = arith.constant 0 : index
    %c0_56 = arith.constant 0 : index
    %41 = vector.load %arg2[%c0_55, %c0_56] : memref<1152x128xf32, #tpu.memory_space<vmem>>, vector<1152x128xf32>
    %cst_57 = arith.constant dense<0.000000e+00> : vector<512x128xf32>
    %42 = tpu.matmul %40, %41, %cst_57 {dimension_numbers = #tpu.dot_dimension_numbers<[1], [0], [0], [1], [0, 0, 1, 1], [], []>} : vector<512x1152xf32>, vector<1152x128xf32>, vector<512x128xf32> -> vector<512x128xf32>
    %c0_58 = arith.constant 0 : index
    %c0_59 = arith.constant 0 : index
    %43 = vector.load %arg3[%c0_58, %c0_59] : memref<1x128xf32, #tpu.memory_space<vmem>>, vector<1x128xf32>
    %44 = vector.broadcast %43 : vector<1x128xf32> to vector<512x128xf32>
    %45 = arith.addf %42, %44 : vector<512x128xf32>
    %cst_60 = arith.constant 0.000000e+00 : f32
    %46 = vector.broadcast %cst_60 : f32 to vector<512x128xf32>
    %47 = arith.maximumf %45, %46 : vector<512x128xf32>
    %48 = vector.shape_cast %47 : vector<512x128xf32> to vector<2x16x16x128xf32>
    %cst_61 = arith.constant 0.000000e+00 : f32
    %49 = vector.broadcast %cst_61 : f32 to vector<2x1x25x128xf32>
    %c0_62 = arith.constant 0 : index
    %c0_63 = arith.constant 0 : index
    %c0_64 = arith.constant 0 : index
    %c0_65 = arith.constant 0 : index
    %50 = vector.load %arg8[%c0_62, %c0_63, %c0_64, %c0_65] : memref<2x18x25x128xf32, #tpu.memory_space<vmem>>, vector<2x1x25x128xf32>
    tpu.vector_store %arg8[%c0_62, %c0_63, %c0_64, %c0_65], %49 {strides = array<i32>} : memref<2x18x25x128xf32, #tpu.memory_space<vmem>>, vector<2x1x25x128xf32>,
    %c0_66 = arith.constant 0 : index
    %c17_67 = arith.constant 17 : index
    %c0_68 = arith.constant 0 : index
    %c0_69 = arith.constant 0 : index
    %51 = vector.load %arg8[%c0_66, %c17_67, %c0_68, %c0_69] : memref<2x18x25x128xf32, #tpu.memory_space<vmem>>, vector<2x1x25x128xf32>
    tpu.vector_store %arg8[%c0_66, %c17_67, %c0_68, %c0_69], %49 {strides = array<i32>} : memref<2x18x25x128xf32, #tpu.memory_space<vmem>>, vector<2x1x25x128xf32>,
    %c0_70 = arith.constant 0 : index
    %c1_71 = arith.constant 1 : index
    %c8_72 = arith.constant 8 : index
    %c0_73 = arith.constant 0 : index
    %52 = vector.load %arg8[%c0_70, %c1_71, %c8_72, %c0_73] : memref<2x18x25x128xf32, #tpu.memory_space<vmem>>, vector<2x16x16x128xf32>
    tpu.vector_store %arg8[%c0_70, %c1_71, %c8_72, %c0_73], %48 {strides = array<i32>} : memref<2x18x25x128xf32, #tpu.memory_space<vmem>>, vector<2x16x16x128xf32>,
    %53 = tpu.iota {dimensions = array<i32: 2>} : vector<2x16x16x128xi32>
    %c0_74 = arith.constant 0 : index
    %c0_75 = arith.constant 0 : index
    %c7_76 = arith.constant 7 : index
    %c0_77 = arith.constant 0 : index
    %54 = vector.load %arg8[%c0_74, %c0_75, %c7_76, %c0_77] : memref<2x18x25x128xf32, #tpu.memory_space<vmem>>, vector<2x16x16x128xf32>
    %c0_i32_78 = arith.constant 0 : i32
    %55 = vector.broadcast %c0_i32_78 : i32 to vector<2x16x16x128xi32>
    %56 = arith.cmpi eq, %53, %55 : vector<2x16x16x128xi32>
    %cst_79 = arith.constant 0.000000e+00 : f32
    %57 = vector.broadcast %cst_79 : f32 to vector<2x16x16x128xf32>
    %58 = arith.select %56, %57, %54 : vector<2x16x16x128xi1>, vector<2x16x16x128xf32>
    %c0_80 = arith.constant 0 : index
    %c0_81 = arith.constant 0 : index
    %c8_82 = arith.constant 8 : index
    %c0_83 = arith.constant 0 : index
    %59 = vector.load %arg8[%c0_80, %c0_81, %c8_82, %c0_83] : memref<2x18x25x128xf32, #tpu.memory_space<vmem>>, vector<2x16x16x128xf32>
    %c0_84 = arith.constant 0 : index
    %c0_85 = arith.constant 0 : index
    %c9_86 = arith.constant 9 : index
    %c0_87 = arith.constant 0 : index
    %60 = vector.load %arg8[%c0_84, %c0_85, %c9_86, %c0_87] : memref<2x18x25x128xf32, #tpu.memory_space<vmem>>, vector<2x16x16x128xf32>
    %c15_i32_88 = arith.constant 15 : i32
    %61 = vector.broadcast %c15_i32_88 : i32 to vector<2x16x16x128xi32>
    %62 = arith.cmpi eq, %53, %61 : vector<2x16x16x128xi32>
    %cst_89 = arith.constant 0.000000e+00 : f32
    %63 = vector.broadcast %cst_89 : f32 to vector<2x16x16x128xf32>
    %64 = arith.select %62, %63, %60 : vector<2x16x16x128xi1>, vector<2x16x16x128xf32>
    %c0_90 = arith.constant 0 : index
    %c1_91 = arith.constant 1 : index
    %c7_92 = arith.constant 7 : index
    %c0_93 = arith.constant 0 : index
    %65 = vector.load %arg8[%c0_90, %c1_91, %c7_92, %c0_93] : memref<2x18x25x128xf32, #tpu.memory_space<vmem>>, vector<2x16x16x128xf32>
    %c0_i32_94 = arith.constant 0 : i32
    %66 = vector.broadcast %c0_i32_94 : i32 to vector<2x16x16x128xi32>
    %67 = arith.cmpi eq, %53, %66 : vector<2x16x16x128xi32>
    %cst_95 = arith.constant 0.000000e+00 : f32
    %68 = vector.broadcast %cst_95 : f32 to vector<2x16x16x128xf32>
    %69 = arith.select %67, %68, %65 : vector<2x16x16x128xi1>, vector<2x16x16x128xf32>
    %c0_96 = arith.constant 0 : index
    %c1_97 = arith.constant 1 : index
    %c8_98 = arith.constant 8 : index
    %c0_99 = arith.constant 0 : index
    %70 = vector.load %arg8[%c0_96, %c1_97, %c8_98, %c0_99] : memref<2x18x25x128xf32, #tpu.memory_space<vmem>>, vector<2x16x16x128xf32>
    %c0_100 = arith.constant 0 : index
    %c1_101 = arith.constant 1 : index
    %c9_102 = arith.constant 9 : index
    %c0_103 = arith.constant 0 : index
    %71 = vector.load %arg8[%c0_100, %c1_101, %c9_102, %c0_103] : memref<2x18x25x128xf32, #tpu.memory_space<vmem>>, vector<2x16x16x128xf32>
    %c15_i32_104 = arith.constant 15 : i32
    %72 = vector.broadcast %c15_i32_104 : i32 to vector<2x16x16x128xi32>
    %73 = arith.cmpi eq, %53, %72 : vector<2x16x16x128xi32>
    %cst_105 = arith.constant 0.000000e+00 : f32
    %74 = vector.broadcast %cst_105 : f32 to vector<2x16x16x128xf32>
    %75 = arith.select %73, %74, %71 : vector<2x16x16x128xi1>, vector<2x16x16x128xf32>
    %c0_106 = arith.constant 0 : index
    %c2_107 = arith.constant 2 : index
    %c7_108 = arith.constant 7 : index
    %c0_109 = arith.constant 0 : index
    %76 = vector.load %arg8[%c0_106, %c2_107, %c7_108, %c0_109] : memref<2x18x25x128xf32, #tpu.memory_space<vmem>>, vector<2x16x16x128xf32>
    %c0_i32_110 = arith.constant 0 : i32
    %77 = vector.broadcast %c0_i32_110 : i32 to vector<2x16x16x128xi32>
    %78 = arith.cmpi eq, %53, %77 : vector<2x16x16x128xi32>
    %cst_111 = arith.constant 0.000000e+00 : f32
    %79 = vector.broadcast %cst_111 : f32 to vector<2x16x16x128xf32>
    %80 = arith.select %78, %79, %76 : vector<2x16x16x128xi1>, vector<2x16x16x128xf32>
    %c0_112 = arith.constant 0 : index
    %c2_113 = arith.constant 2 : index
    %c8_114 = arith.constant 8 : index
    %c0_115 = arith.constant 0 : index
    %81 = vector.load %arg8[%c0_112, %c2_113, %c8_114, %c0_115] : memref<2x18x25x128xf32, #tpu.memory_space<vmem>>, vector<2x16x16x128xf32>
    %c0_116 = arith.constant 0 : index
    %c2_117 = arith.constant 2 : index
    %c9_118 = arith.constant 9 : index
    %c0_119 = arith.constant 0 : index
    %82 = vector.load %arg8[%c0_116, %c2_117, %c9_118, %c0_119] : memref<2x18x25x128xf32, #tpu.memory_space<vmem>>, vector<2x16x16x128xf32>
    %c15_i32_120 = arith.constant 15 : i32
    %83 = vector.broadcast %c15_i32_120 : i32 to vector<2x16x16x128xi32>
    %84 = arith.cmpi eq, %53, %83 : vector<2x16x16x128xi32>
    %cst_121 = arith.constant 0.000000e+00 : f32
    %85 = vector.broadcast %cst_121 : f32 to vector<2x16x16x128xf32>
    %86 = arith.select %84, %85, %82 : vector<2x16x16x128xi1>, vector<2x16x16x128xf32>
    %87 = tpu.concatenate %58, %59, %64, %69, %70, %75, %80, %81, %86 in 3 : vector<2x16x16x128xf32>, vector<2x16x16x128xf32>, vector<2x16x16x128xf32>, vector<2x16x16x128xf32>, vector<2x16x16x128xf32>, vector<2x16x16x128xf32>, vector<2x16x16x128xf32>, vector<2x16x16x128xf32>, vector<2x16x16x128xf32> -> vector<2x16x16x1152xf32>
    %88 = vector.shape_cast %87 : vector<2x16x16x1152xf32> to vector<512x1152xf32>
    %c0_122 = arith.constant 0 : index
    %c0_123 = arith.constant 0 : index
    %89 = vector.load %arg4[%c0_122, %c0_123] : memref<1152x128xf32, #tpu.memory_space<vmem>>, vector<1152x128xf32>
    %cst_124 = arith.constant dense<0.000000e+00> : vector<512x128xf32>
    %90 = tpu.matmul %88, %89, %cst_124 {dimension_numbers = #tpu.dot_dimension_numbers<[1], [0], [0], [1], [0, 0, 1, 1], [], []>} : vector<512x1152xf32>, vector<1152x128xf32>, vector<512x128xf32> -> vector<512x128xf32>
    %c0_125 = arith.constant 0 : index
    %c0_126 = arith.constant 0 : index
    %91 = vector.load %arg5[%c0_125, %c0_126] : memref<1x128xf32, #tpu.memory_space<vmem>>, vector<1x128xf32>
    %92 = vector.broadcast %91 : vector<1x128xf32> to vector<512x128xf32>
    %93 = arith.addf %90, %92 : vector<512x128xf32>
    %94 = vector.shape_cast %0 : vector<2x16x16x128xf32> to vector<2x256x128xf32>
    %95 = vector.shape_cast %93 : vector<512x128xf32> to vector<2x256x128xf32>
    %96 = arith.addf %95, %94 : vector<2x256x128xf32>
    %cst_127 = arith.constant 0.000000e+00 : f32
    %97 = vector.broadcast %cst_127 : f32 to vector<2x256x128xf32>
    %98 = arith.maximumf %96, %97 : vector<2x256x128xf32>
    %c0_128 = arith.constant 0 : index
    %c0_129 = arith.constant 0 : index
    %c0_130 = arith.constant 0 : index
    %99 = vector.load %arg6[%c0_128, %c0_129, %c0_130] : memref<2x256x128xf32, #tpu.memory_space<vmem>>, vector<2x256x128xf32>
    tpu.vector_store %arg6[%c0_128, %c0_129, %c0_130], %98 {strides = array<i32>} : memref<2x256x128xf32, #tpu.memory_space<vmem>>, vector<2x256x128xf32>,
    return
  }
  func.func @transform_0(%arg0: i32) -> (i32, i32, i32, i32) {
    %c0_i32 = arith.constant 0 : i32
    %c0_i32_0 = arith.constant 0 : i32
    %c0_i32_1 = arith.constant 0 : i32
    %c0_i32_2 = arith.constant 0 : i32
    return %arg0, %c0_i32, %c0_i32_0, %c0_i32_1 : i32, i32, i32, i32
  }
  func.func @transform_1(%arg0: i32) -> (i32, i32) {
    %c0_i32 = arith.constant 0 : i32
    %c0_i32_0 = arith.constant 0 : i32
    %c0_i32_1 = arith.constant 0 : i32
    return %c0_i32, %c0_i32_0 : i32, i32
  }
  func.func @transform_2(%arg0: i32) -> (i32, i32) {
    %c0_i32 = arith.constant 0 : i32
    %c0_i32_0 = arith.constant 0 : i32
    %c0_i32_1 = arith.constant 0 : i32
    return %c0_i32, %c0_i32_0 : i32, i32
  }
  func.func @transform_3(%arg0: i32) -> (i32, i32) {
    %c0_i32 = arith.constant 0 : i32
    %c0_i32_0 = arith.constant 0 : i32
    %c0_i32_1 = arith.constant 0 : i32
    return %c0_i32, %c0_i32_0 : i32, i32
  }
  func.func @transform_4(%arg0: i32) -> (i32, i32) {
    %c0_i32 = arith.constant 0 : i32
    %c0_i32_0 = arith.constant 0 : i32
    %c0_i32_1 = arith.constant 0 : i32
    return %c0_i32, %c0_i32_0 : i32, i32
  }
  func.func @transform_5(%arg0: i32) -> (i32, i32, i32) {
    %c0_i32 = arith.constant 0 : i32
    %c0_i32_0 = arith.constant 0 : i32
    %c0_i32_1 = arith.constant 0 : i32
    return %arg0, %c0_i32, %c0_i32_0 : i32, i32, i32
  }
}

</mosaic_0001>

<bundles_post_ra>
// kernel: basic_block_forward.1
= control target key start
LH: loop header
LB: loop body
LE: loop exit
PB: predicated region body
PF: predicated region fallthrough
CT: control target
= control target key end

     0   :  { %v13515_v0 = vmov 0.0|0.0   ;;  %v13513_v4 = vmov 0.0   ;;  %s13507_s1 = inlined_call_operand.vmem [shape: f32[1152,128], index: 1, kind: input, shape index: {}]   ;;  %s13508_s0 = inlined_call_operand.vmem [shape: f32[2,16,16,128], index: 0, kind: input, shape index: {}]   ;;  %s13509_s3 = inlined_call_operand.vmem [shape: f32[1152,128], index: 3, kind: input, shape index: {}]   ;;  %s13510_s2 = inlined_call_operand.vmem [shape: f32[1,128], index: 2, kind: input, shape index: {}]   ;;  %s13511_s4 = inlined_call_operand.vmem [shape: f32[1,128], index: 4, kind: input, shape index: {}]   ;;  %s13512_s5 = inlined_call_operand.vmem [shape: f32[2,256,128], index: 5, kind: output, shape index: {}]  }
   0x1   :  { %7777 = vmatprep.subr.bf16.mxu0 %v13515_v0  ;;  %v1134_v1 = vld [vmem:[%s13507_s1] sm:$0xff]  ;;  %v1135_v2 = vld [vmem:[%s13507_s1 + $0x8] sm:$0xff]  ;;  %v1136_v3 = vld [vmem:[%s13507_s1 + $0x10] sm:$0xff]  ;;  %85 = vst [vmem:[#allocation2 + $0x8] sm:$0xff] %v13513_v4  ;;  %1349 = vmatprep.mubr.f32.mxu0 %v13513_v4 }
   0x2   :  { %84 = vst [vmem:[#allocation2] sm:$0xff] %v13513_v4  ;;  %86 = vst [vmem:[#allocation2 + $0x10] sm:$0xff] %v13513_v4  ;;  %v7778_v5 = vpack.c.bf16 %v1135_v2, %v1134_v1  ;;  %v1137_v6 = vld [vmem:[%s13507_s1 + $0x18] sm:$0xff]  ;;  %v1138_v8 = vld [vmem:[%s13507_s1 + $0x20] sm:$0xff] }
   0x3   :  { %87 = vst [vmem:[#allocation2 + $0x18] sm:$0x1] %v13513_v4  ;;  %88 = vst [vmem:[#allocation2 + $0x240] sm:$0xff] %v13513_v4  ;;  %v7781_v7 = vpack.c.bf16 %v1137_v6, %v1136_v3  ;;  %v1139_v9 = vld [vmem:[%s13507_s1 + $0x28] sm:$0xff]  ;;  %v1140_v11 = vld [vmem:[%s13507_s1 + $0x30] sm:$0xff] }
   0x4   :  { %89 = vst [vmem:[#allocation2 + $0x248] sm:$0xff] %v13513_v4  ;;  %90 = vst [vmem:[#allocation2 + $0x250] sm:$0xff] %v13513_v4  ;;  %7779 = vmatpush1.bf16.msra.mxu0 %v7778_v5  ;;  %v7784_v10 = vpack.c.bf16 %v1139_v9, %v1138_v8  ;;  %v1141_v12 = vld [vmem:[%s13507_s1 + $0x38] sm:$0xff]  ;;  %v1142_v14 = vld [vmem:[%s13507_s1 + $0x40] sm:$0xff] }
   0x5   :  { %91 = vst [vmem:[#allocation2 + $0x258] sm:$0x1] %v13513_v4  ;;  %93 = vst [vmem:[#allocation2 + $0x220] sm:$0xff] %v13513_v4  ;;  %7780 = vmatprep.subr.bf16.mxu0 %v13515_v0  ;;  %v7787_v13 = vpack.c.bf16 %v1141_v12, %v1140_v11  ;;  %v1143_v15 = vld [vmem:[%s13507_s1 + $0x48] sm:$0xff]  ;;  %v9309_v16 = vld [vmem:[%s13508_s0] sm:$0xff] }
   0x6   :  { %94 = vst [vmem:[#allocation2 + $0x228] sm:$0xff] %v13513_v4  ;;  %95 = vst [vmem:[#allocation2 + $0x230] sm:$0xff] %v13513_v4  ;;  %v9314_v17 = vld [vmem:[%s13508_s0 + $0x8] sm:$0xff]  ;;  %v9319_v18 = vld [vmem:[%s13508_s0 + $0x10] sm:$0xff]  ;;  %v7790_v23 = vpack.c.bf16 %v1143_v15, %v1142_v14  ;;  %v166_v15 = vlaneseq }
   0x7   :  { %96 = vst [vmem:[#allocation2 + $0x238] sm:$0x1] %v13513_v4  ;;  %97 = vst [vmem:[#allocation2 + $0x460] sm:$0xff] %v13513_v4  ;;  %v9327_v19 = vld [vmem:[%s13508_s0 + $0x18] sm:$0xff]  ;;  %v9333_v20 = vld [vmem:[%s13508_s0 + $0x20] sm:$0xff] }
   0x8   :  { %98 = vst [vmem:[#allocation2 + $0x468] sm:$0xff] %v13513_v4  ;;  %99 = vst [vmem:[#allocation2 + $0x470] sm:$0xff] %v13513_v4  ;;  %7782 = vmatpush1.bf16.msra.mxu0 %v7781_v7  ;;  %v9338_v21 = vld [vmem:[%s13508_s0 + $0x28] sm:$0xff]  ;;  %v9343_v22 = vld [vmem:[%s13508_s0 + $0x30] sm:$0xff] }
   0x9   :  { %100 = vst [vmem:[#allocation2 + $0x478] sm:$0x1] %v13513_v4  ;;  %3274 = vst [vmem:[#allocation3] sm:$0xff] %v13513_v4  ;;  %7783 = vmatprep.subr.bf16.mxu0 %v13515_v0  ;;  %v1144_v24 = vld [vmem:[%s13507_s1 + $0x50] sm:$0xff]  ;;  %v1145_v25 = vld [vmem:[%s13507_s1 + $0x58] sm:$0xff] }
   0xa   :  { %3275 = vst [vmem:[#allocation3 + $0x8] sm:$0xff] %v13513_v4  ;;  %3276 = vst [vmem:[#allocation3 + $0x10] sm:$0xff] %v13513_v4  ;;  %v9357_v26 = vld [vmem:[%s13508_s0 + $0x38] sm:$0xff]  ;;  %v9364_v27 = vld [vmem:[%s13508_s0 + $0x40] sm:$0xff]  ;;  %v7793_v34 = vpack.c.bf16 %v1145_v25, %v1144_v24 }
   0xb   :  { %3277 = vst [vmem:[#allocation3 + $0x18] sm:$0x1] %v13513_v4  ;;  %3278 = vst [vmem:[#allocation3 + $0x240] sm:$0xff] %v13513_v4  ;;  %v9369_v28 = vld [vmem:[%s13508_s0 + $0x48] sm:$0xff]  ;;  %v9374_v29 = vld [vmem:[%s13508_s0 + $0x50] sm:$0xff] }
   0xc   :  { %3279 = vst [vmem:[#allocation3 + $0x248] sm:$0xff] %v13513_v4  ;;  %3280 = vst [vmem:[#allocation3 + $0x250] sm:$0xff] %v13513_v4  ;;  %7785 = vmatpush1.bf16.msra.mxu0 %v7784_v10  ;;  %v9382_v30 = vld [vmem:[%s13508_s0 + $0x58] sm:$0xff]  ;;  %v9388_v31 = vld [vmem:[%s13508_s0 + $0x60] sm:$0xff] }
   0xd   :  { %3281 = vst [vmem:[#allocation3 + $0x258] sm:$0x1] %v13513_v4  ;;  %3283 = vst [vmem:[#allocation3 + $0x220] sm:$0xff] %v13513_v4  ;;  %7786 = vmatprep.subr.bf16.mxu0 %v13515_v0  ;;  %v9393_v32 = vld [vmem:[%s13508_s0 + $0x68] sm:$0xff]  ;;  %v9398_v33 = vld [vmem:[%s13508_s0 + $0x70] sm:$0xff] }
   0xe   :  { %3284 = vst [vmem:[#allocation3 + $0x228] sm:$0xff] %v13513_v4  ;;  %3285 = vst [vmem:[#allocation3 + $0x230] sm:$0xff] %v13513_v4  ;;  %v9406_v35 = vld [vmem:[%s13508_s0 + $0x78] sm:$0xff]  ;;  %v1146_v36 = vld [vmem:[%s13507_s1 + $0x60] sm:$0xff] }
   0xf   :  { %3286 = vst [vmem:[#allocation3 + $0x238] sm:$0x1] %v13513_v4  ;;  %3287 = vst [vmem:[#allocation3 + $0x460] sm:$0xff] %v13513_v4  ;;  %v1147_v37 = vld [vmem:[%s13507_s1 + $0x68] sm:$0xff]  ;;  %v9419_v38 = vld [vmem:[%s13508_s0 + $0x80] sm:$0xff] }
  0x10   :  { %3288 = vst [vmem:[#allocation3 + $0x468] sm:$0xff] %v13513_v4  ;;  %3289 = vst [vmem:[#allocation3 + $0x470] sm:$0xff] %v13513_v4  ;;  %7788 = vmatpush1.bf16.msra.mxu0 %v7787_v13  ;;  %v9424_v39 = vld [vmem:[%s13508_s0 + $0x88] sm:$0xff]  ;;  %v7796_v40 = vpack.c.bf16 %v1147_v37, %v1146_v36  ;;  %v9431_v41 = vld [vmem:[%s13508_s0 + $0x90] sm:$0xff] }
  0x11   :  { %3290 = vst [vmem:[#allocation3 + $0x478] sm:$0x1] %v13513_v4  ;;  %102 = vst [vmem:[#allocation2 + $0x28] sm:$0xff] %v9309_v16  ;;  %7789 = vmatprep.subr.bf16.mxu0 %v13515_v0  ;;  %v1148_v42 = vld [vmem:[%s13507_s1 + $0x70] sm:$0xff]  ;;  %v1149_v43 = vld [vmem:[%s13507_s1 + $0x78] sm:$0xff] }
  0x12   :  { %103 = vst [vmem:[#allocation2 + $0x30] sm:$0xff] %v9314_v17  ;;  %104 = vst [vmem:[#allocation2 + $0x48] sm:$0xff] %v9319_v18  ;;  %v9444_v44 = vld [vmem:[%s13508_s0 + $0x98] sm:$0xff]  ;;  %v7799_v45 = vpack.c.bf16 %v1149_v43, %v1148_v42  ;;  %v9450_v46 = vld [vmem:[%s13508_s0 + $0xa0] sm:$0xff] }
  0x13   :  { %105 = vst [vmem:[#allocation2 + $0x50] sm:$0xff] %v9327_v19  ;;  %106 = vst [vmem:[#allocation2 + $0x68] sm:$0xff] %v9333_v20  ;;  %v9455_v47 = vld [vmem:[%s13508_s0 + $0xa8] sm:$0xff]  ;;  %v1150_v48 = vld [vmem:[%s13507_s1 + $0x80] sm:$0xff] }
  0x14   :  { %107 = vst [vmem:[#allocation2 + $0x70] sm:$0xff] %v9338_v21  ;;  %108 = vst [vmem:[#allocation2 + $0x88] sm:$0xff] %v9343_v22  ;;  %7791 = vmatpush1.bf16.msra.mxu0 %v7790_v23  ;;  %v1151_v49 = vld [vmem:[%s13507_s1 + $0x88] sm:$0xff]  ;;  %v9469_v50 = vld [vmem:[%s13508_s0 + $0xb0] sm:$0xff] }
  0x15   :  { %109 = vst [vmem:[#allocation2 + $0x90] sm:$0xff] %v9357_v26  ;;  %110 = vst [vmem:[#allocation2 + $0xa8] sm:$0xff] %v9364_v27  ;;  %7792 = vmatprep.subr.bf16.mxu0 %v13515_v0  ;;  %v9475_v51 = vld [vmem:[%s13508_s0 + $0xb8] sm:$0xff]  ;;  %v7802_v52 = vpack.c.bf16 %v1151_v49, %v1150_v48  ;;  %v1152_v53 = vld [vmem:[%s13507_s1 + $0x90] sm:$0xff] }
  0x16   :  { %111 = vst [vmem:[#allocation2 + $0xb0] sm:$0xff] %v9369_v28  ;;  %112 = vst [vmem:[#allocation2 + $0xc8] sm:$0xff] %v9374_v29  ;;  %v1153_v54 = vld [vmem:[%s13507_s1 + $0x98] sm:$0xff]  ;;  %v9488_v55 = vld [vmem:[%s13508_s0 + $0xc0] sm:$0xff] }
  0x17   :  { %113 = vst [vmem:[#allocation2 + $0xd0] sm:$0xff] %v9382_v30  ;;  %114 = vst [vmem:[#allocation2 + $0xe8] sm:$0xff] %v9388_v31  ;;  %v7805_v56 = vpack.c.bf16 %v1153_v54, %v1152_v53  ;;  %v1154_v57 = vld [vmem:[%s13507_s1 + $0xa0] sm:$0xff]  ;;  %v1155_v58 = vld [vmem:[%s13507_s1 + $0xa8] sm:$0xff] }
  0x18   :  { %115 = vst [vmem:[#allocation2 + $0xf0] sm:$0xff] %v9393_v32  ;;  %116 = vst [vmem:[#allocation2 + $0x108] sm:$0xff] %v9398_v33  ;;  %7794 = vmatpush1.bf16.msra.mxu0 %v7793_v34  ;;  %v9501_v59 = vld [vmem:[%s13508_s0 + $0xc8] sm:$0xff]  ;;  %v7808_v60 = vpack.c.bf16 %v1155_v58, %v1154_v57  ;;  %v1156_v61 = vld [vmem:[%s13507_s1 + $0xb0] sm:$0xff]  ;;  %v9563_v34 = vshrl.u32 %v166_v15, 7 }
  0x19   :  { %117 = vst [vmem:[#allocation2 + $0x110] sm:$0xff] %v9406_v35  ;;  %118 = vst [vmem:[#allocation2 + $0x128] sm:$0xff] %v9419_v38  ;;  %7795 = vmatprep.subr.bf16.mxu0 %v13515_v0  ;;  %v1157_v62 = vld [vmem:[%s13507_s1 + $0xb8] sm:$0xff]  ;;  %v9514_v63 = vld [vmem:[%s13508_s0 + $0xd0] sm:$0xff] }
  0x1a   :  { %119 = vst [vmem:[#allocation2 + $0x130] sm:$0xff] %v9424_v39  ;;  %120 = vst [vmem:[#allocation2 + $0x148] sm:$0xff] %v9431_v41  ;;  %v7811_v1 = vpack.c.bf16 %v1157_v62, %v1156_v61  ;;  %v1158_v2 = vld [vmem:[%s13507_s1 + $0xc0] sm:$0xff]  ;;  %v1159_v3 = vld [vmem:[%s13507_s1 + $0xc8] sm:$0xff]  ;;  %vm7359_vm0 = vcmp.ne.s32.totalorder %v9563_v34, 0 }
  0x1b   :  { %121 = vst [vmem:[#allocation2 + $0x150] sm:$0xff] %v9444_v44  ;;  %122 = vst [vmem:[#allocation2 + $0x168] sm:$0xff] %v9450_v46  ;;  %v9527_v5 = vld [vmem:[%s13508_s0 + $0xd8] sm:$0xff]  ;;  %v7814_v6 = vpack.c.bf16 %v1159_v3, %v1158_v2  ;;  %v1160_v7 = vld [vmem:[%s13507_s1 + $0xd0] sm:$0xff] }
  0x1c   :  { %7797 = vmatpush1.bf16.msra.mxu0 %v7796_v40  ;;  %123 = vst [vmem:[#allocation2 + $0x170] sm:$0xff] %v9455_v47  ;;  %124 = vst [vmem:[#allocation2 + $0x188] sm:$0xff] %v9469_v50  ;;  %v1161_v8 = vld [vmem:[%s13507_s1 + $0xd8] sm:$0xff]  ;;  %v9540_v9 = vld [vmem:[%s13508_s0 + $0xe0] sm:$0xff] }
  0x1d   :  { %7798 = vmatprep.subr.bf16.mxu0 %v13515_v0  ;;  %125 = vst [vmem:[#allocation2 + $0x190] sm:$0xff] %v9475_v51  ;;  %126 = vst [vmem:[#allocation2 + $0x1a8] sm:$0xff] %v9488_v55  ;;  %v7817_v10 = vpack.c.bf16 %v1161_v8, %v1160_v7  ;;  %v1162_v11 = vld [vmem:[%s13507_s1 + $0xe0] sm:$0xff]  ;;  %v1163_v12 = vld [vmem:[%s13507_s1 + $0xe8] sm:$0xff] }
  0x1e   :  { %127 = vst [vmem:[#allocation2 + $0x1b0] sm:$0xff] %v9501_v59  ;;  %128 = vst [vmem:[#allocation2 + $0x1c8] sm:$0xff] %v9514_v63  ;;  %v9553_v13 = vld [vmem:[%s13508_s0 + $0xe8] sm:$0xff]  ;;  %v7820_v14 = vpack.c.bf16 %v1163_v12, %v1162_v11  ;;  %v1164_v23 = vld [vmem:[%s13507_s1 + $0xf0] sm:$0xff] }
  0x1f   :  { %129 = vst [vmem:[#allocation2 + $0x1d0] sm:$0xff] %v9527_v5  ;;  %130 = vst [vmem:[#allocation2 + $0x1e8] sm:$0xff] %v9540_v9  ;;  %v1165_v24 = vld [vmem:[%s13507_s1 + $0xf8] sm:$0xff]  ;;  %v1166_v36 = vld [vmem:[%s13507_s1 + $0x100] sm:$0xff] }
  0x20   :  { %7800 = vmatpush1.bf16.msra.mxu0 %v7799_v45  ;;  %131 = vst [vmem:[#allocation2 + $0x1f0] sm:$0xff] %v9553_v13  ;;  %v7823_v25 = vpack.c.bf16 %v1165_v24, %v1164_v23  ;;  %13573 = vst [vmem:[#allocation4_spill] sm:$0xff] %v9563_v34  ;;  %v1167_v37 = vld [vmem:[%s13507_s1 + $0x108] sm:$0xff]  ;;  %v1168_v43 = vld [vmem:[%s13507_s1 + $0x110] sm:$0xff] }
  0x21   :  { %7801 = vmatprep.subr.bf16.mxu0 %v13515_v0  ;;  %v169_v40 = vld [vmem:[#allocation2 + $0x7] sm:$0xff]  ;;  %v7826_v42 = vpack.c.bf16 %v1167_v37, %v1166_v36  ;;  %v1169_v45 = vld [vmem:[%s13507_s1 + $0x118] sm:$0xff]  ;;  %v170_v49 = vld [vmem:[#allocation2 + $0xf] sm:$0xff] }
  0x22   :  { %v9583_v48 = vld [vmem:[%s13508_s0 + $0x100] sm:$0xff]  ;;  %v1171_v54 = vld [vmem:[%s13507_s1 + $0x128] sm:$0xff]  ;;  %v1173_v61 = vld [vmem:[%s13507_s1 + $0x138] sm:$0xff] }
  0x23   :  { %134 = vst [vmem:[#allocation2 + $0x268] sm:$0xff] %v9583_v48  ;;  %v1170_v53 = vld [vmem:[%s13507_s1 + $0x120] sm:$0xff]  ;;  %v9615_v62 = vld [vmem:[%s13508_s0 + $0x110] sm:$0xff]  ;;  %v1175_v3 = vld [vmem:[%s13507_s1 + $0x148] sm:$0xff] }
  0x24   :  { %7803 = vmatpush1.bf16.msra.mxu0 %v7802_v52  ;;  %v7829_v52 = vpack.c.bf16 %v1169_v45, %v1168_v43  ;;  %v9603_v57 = vld [vmem:[#allocation2 + $0x27] sm:$0xff]  ;;  %v7832_v58 = vpack.c.bf16 %v1171_v54, %v1170_v53  ;;  %136 = vst [vmem:[#allocation2 + $0x288] sm:$0xff] %v9615_v62  ;;  %v1176_v8 = vld [vmem:[%s13507_s1 + $0x150] sm:$0xff]  ;;  %v1181_v36 = vld [vmem:[%s13507_s1 + $0x178] sm:$0xff] }
  0x25   :  { %7804 = vmatprep.subr.bf16.mxu0 %v13515_v0  ;;  %v1174_v2 = vld [vmem:[%s13507_s1 + $0x140] sm:$0xff]  ;;  %v1179_v15 = vld [vmem:[%s13507_s1 + $0x168] sm:$0xff]  ;;  %v9687_v37 = vld [vmem:[%s13508_s0 + $0x130] sm:$0xff] }
  0x26   :  { %v7838_v7 = vpack.c.bf16 %v1175_v3, %v1174_v2  ;;  %v9651_v11 = vld [vmem:[%s13508_s0 + $0x120] sm:$0xff]  ;;  %v9670_v23 = vld [vmem:[%s13508_s0 + $0x128] sm:$0xff]  ;;  %140 = vst [vmem:[#allocation2 + $0x2c8] sm:$0xff] %v9687_v37  ;;  %v9706_v45 = vld [vmem:[%s13508_s0 + $0x138] sm:$0xff] }
  0x27   :  { %138 = vst [vmem:[#allocation2 + $0x2a8] sm:$0xff] %v9651_v11  ;;  %139 = vst [vmem:[#allocation2 + $0x2b0] sm:$0xff] %v9670_v23  ;;  %v1183_v43 = vld [vmem:[%s13507_s1 + $0x188] sm:$0xff]  ;;  %v1185_v53 = vld [vmem:[%s13507_s1 + $0x198] sm:$0xff] }
  0x28   :  { %7806 = vmatpush1.bf16.msra.mxu0 %v7805_v56  ;;  %v9599_v56 = vld [vmem:[%s13508_s0 + $0x108] sm:$0xff]  ;;  %141 = vst [vmem:[#allocation2 + $0x2d0] sm:$0xff] %v9706_v45  ;;  %v9723_v54 = vld [vmem:[%s13508_s0 + $0x140] sm:$0xff]  ;;  %v9753_v3 = vld [vmem:[%s13508_s0 + $0x150] sm:$0xff] }
  0x29   :  { %7807 = vmatprep.subr.bf16.mxu0 %v13515_v0  ;;  %135 = vst [vmem:[#allocation2 + $0x270] sm:$0xff] %v9599_v56  ;;  %142 = vst [vmem:[#allocation2 + $0x2e8] sm:$0xff] %v9723_v54 }
  0x2a   :  { %144 = vst [vmem:[#allocation2 + $0x308] sm:$0xff] %v9753_v3 }
  0x2c   :  { %7809 = vmatpush1.bf16.msra.mxu0 %v7808_v60  ;;  %v1172_v60 = vld [vmem:[%s13507_s1 + $0x130] sm:$0xff] }
  0x2d   :  { %7810 = vmatprep.subr.bf16.mxu0 %v13515_v0 }
  0x30   :  { %7812 = vmatpush1.bf16.msra.mxu0 %v7811_v1  ;;  %v7835_v1 = vpack.c.bf16 %v1173_v61, %v1172_v60  ;;  %v1186_v60 = vld [vmem:[%s13507_s1 + $0x1a0] sm:$0xff]  ;;  %v1187_v61 = vld [vmem:[%s13507_s1 + $0x1a8] sm:$0xff] }
  0x31   :  { %7813 = vmatprep.subr.bf16.mxu0 %v13515_v0  ;;  %v7856_v2 = vpack.c.bf16 %v1187_v61, %v1186_v60  ;;  %v9878_v60 = vld [vmem:[%s13508_s0 + $0x1a0] sm:$0xff]  ;;  %v1193_v61 = vld [vmem:[%s13507_s1 + $0x1d8] sm:$0xff] }
  0x32   :  { %154 = vst [vmem:[#allocation2 + $0x3a8] sm:$0xff] %v9878_v60 }
  0x34   :  { %7815 = vmatpush1.bf16.msra.mxu0 %v7814_v6  ;;  %v9634_v6 = vld [vmem:[%s13508_s0 + $0x118] sm:$0xff] }
  0x35   :  { %7816 = vmatprep.subr.bf16.mxu0 %v13515_v0  ;;  %137 = vst [vmem:[#allocation2 + $0x290] sm:$0xff] %v9634_v6 }
  0x38   :  { %7818 = vmatpush1.bf16.msra.mxu0 %v7817_v10  ;;  %v1177_v10 = vld [vmem:[%s13507_s1 + $0x158] sm:$0xff] }
  0x39   :  { %7819 = vmatprep.subr.bf16.mxu0 %v13515_v0  ;;  %v7841_v12 = vpack.c.bf16 %v1177_v10, %v1176_v8  ;;  %v9771_v8 = vld [vmem:[#allocation2 + $0xc7] sm:$0xff]  ;;  %v1188_v10 = vld [vmem:[%s13507_s1 + $0x1b0] sm:$0xff] }
  0x3c   :  { %7821 = vmatpush1.bf16.msra.mxu0 %v7820_v14  ;;  %v1178_v14 = vld [vmem:[%s13507_s1 + $0x160] sm:$0xff] }
  0x3d   :  { %7822 = vmatprep.subr.bf16.mxu0 %v13515_v0  ;;  %v7844_v24 = vpack.c.bf16 %v1179_v15, %v1178_v14  ;;  %v9794_v15 = vld [vmem:[%s13508_s0 + $0x168] sm:$0xff] }
  0x3e   :  { %147 = vst [vmem:[#allocation2 + $0x330] sm:$0xff] %v9794_v15 }
  0x40   :  { %7824 = vmatpush1.bf16.msra.mxu0 %v7823_v25  ;;  %v1180_v25 = vld [vmem:[%s13507_s1 + $0x170] sm:$0xff] }
  0x41   :  { %7825 = vmatprep.subr.bf16.mxu0 %v13515_v0 }
  0x43   :  { %6591 = vmatmul.mubr.msk.f32.vlgmr.msra.gmra.mrb[0].mxu0 %vm7359_vm0, %v169_v40  ;;  %v7847_v40 = vpack.c.bf16 %v1181_v36, %v1180_v25  ;;  %v9812_v25 = vld [vmem:[#allocation2 + $0xef] sm:$0xff]  ;;  %v9822_v36 = vld [vmem:[#allocation2 + $0x107] sm:$0xff] }
  0x44   :  { %7827 = vmatpush1.bf16.msra.mxu0 %v7826_v42  ;;  %1354 = vmatprep.mubr.f32.mxu0 %v13513_v4  ;;  %v1182_v42 = vld [vmem:[%s13507_s1 + $0x180] sm:$0xff]  ;;  %v1197_v4 = vld [vmem:[%s13507_s1 + $0x1f8] sm:$0xff] }
  0x45   :  { %7828 = vmatprep.subr.bf16.mxu0 %v13515_v0 }
  0x47   :  { %1355 = vmatmul.mubr.f32.gmra.mrb[2].mxu0 %v170_v49  ;;  %v7850_v49 = vpack.c.bf16 %v1183_v43, %v1182_v42  ;;  %v1191_v42 = vld [vmem:[%s13507_s1 + $0x1c8] sm:$0xff] }
  0x48   :  { %1359 = vmatprep.mubr.f32.mxu0 %v9309_v16  ;;  %7830 = vmatpush1.bf16.msra.mxu0 %v7829_v52  ;;  %v9622_v16 = vld [vmem:[#allocation2 + $0x2f] sm:$0xff] }
  0x49   :  { %7831 = vmatprep.subr.bf16.mxu0 %v13515_v0  ;;  %v1184_v52 = vld [vmem:[%s13507_s1 + $0x190] sm:$0xff] }
  0x4b   :  { %6593 = vmatmul.mubr.msk.f32.gmra.mrb[4].mxu0 %vm7359_vm0, %v9603_v57 }
  0x4c   :  { %1364 = vmatprep.mubr.f32.mxu0 %v9314_v17  ;;  %7833 = vmatpush1.bf16.msra.mxu0 %v7832_v58  ;;  %v9639_v17 = vld [vmem:[#allocation2 + $0x47] sm:$0xff]  ;;  %v7853_v58 = vpack.c.bf16 %v1185_v53, %v1184_v52  ;;  %v9863_v53 = vld [vmem:[#allocation2 + $0x12f] sm:$0xff] }
  0x4d   :  { %7834 = vmatprep.subr.bf16.mxu0 %v13515_v0  ;;  %v9851_v52 = vld [vmem:[#allocation2 + $0x127] sm:$0xff] }
  0x4f   :  { %1365 = vmatmul.mubr.f32.gmra.mrb[6].mxu0 %v9622_v16 }
  0x50   :  { %1369 = vmatprep.mubr.f32.mxu0 %v9319_v18  ;;  %7836 = vmatpush1.bf16.msra.mxu0 %v7835_v1  ;;  %v9658_v18 = vld [vmem:[#allocation2 + $0x4f] sm:$0xff] }
  0x51   :  { %7837 = vmatprep.subr.bf16.mxu0 %v13515_v0  ;;  %v9742_v1 = vld [vmem:[%s13508_s0 + $0x148] sm:$0xff] }
  0x52   :  { %143 = vst [vmem:[#allocation2 + $0x2f0] sm:$0xff] %v9742_v1 }
  0x53   :  { %6595 = vmatmul.mubr.msk.f32.gmra.mrb[8].mxu0 %vm7359_vm0, %v9639_v17 }
  0x54   :  { %1374 = vmatprep.mubr.f32.mxu0 %v9327_v19  ;;  %7839 = vmatpush1.bf16.msra.mxu0 %v7838_v7  ;;  %v9675_v19 = vld [vmem:[#allocation2 + $0x67] sm:$0xff]  ;;  %v9766_v7 = vld [vmem:[%s13508_s0 + $0x158] sm:$0xff] }
  0x55   :  { %7840 = vmatprep.subr.bf16.mxu0 %v13515_v0  ;;  %145 = vst [vmem:[#allocation2 + $0x310] sm:$0xff] %v9766_v7 }
  0x57   :  { %1375 = vmatmul.mubr.f32.gmra.mrb[10].mxu0 %v9658_v18 }
  0x58   :  { %1379 = vmatprep.mubr.f32.mxu0 %v9333_v20  ;;  %7842 = vmatpush1.bf16.msra.mxu0 %v7841_v12  ;;  %v9694_v20 = vld [vmem:[#allocation2 + $0x6f] sm:$0xff]  ;;  %v1189_v12 = vld [vmem:[%s13507_s1 + $0x1b8] sm:$0xff] }
  0x59   :  { %7843 = vmatprep.subr.bf16.mxu0 %v13515_v0  ;;  %v7859_v14 = vpack.c.bf16 %v1189_v12, %v1188_v10  ;;  %v9896_v10 = vld [vmem:[%s13508_s0 + $0x1a8] sm:$0xff] }
  0x5a   :  { %155 = vst [vmem:[#allocation2 + $0x3b0] sm:$0xff] %v9896_v10  ;;  %v9902_v12 = vld [vmem:[#allocation2 + $0x167] sm:$0xff] }
  0x5b   :  { %6597 = vmatmul.mubr.msk.f32.gmra.mrb[12].mxu0 %vm7359_vm0, %v9675_v19 }
  0x5c   :  { %1384 = vmatprep.mubr.f32.mxu0 %v9338_v21  ;;  %7845 = vmatpush1.bf16.msra.mxu0 %v7844_v24  ;;  %v9711_v21 = vld [vmem:[#allocation2 + $0x87] sm:$0xff] }
  0x5d   :  { %7846 = vmatprep.subr.bf16.mxu0 %v13515_v0  ;;  %v9800_v24 = vld [vmem:[#allocation2 + $0xe7] sm:$0xff] }
  0x5f   :  { %1385 = vmatmul.mubr.f32.gmra.mrb[14].mxu0 %v9694_v20 }
  0x60   :  { %1389 = vmatprep.mubr.f32.mxu0 %v9343_v22  ;;  %7848 = vmatpush1.bf16.msra.mxu0 %v7847_v40  ;;  %v9730_v22 = vld [vmem:[#allocation2 + $0x8f] sm:$0xff]  ;;  %v9827_v40 = vld [vmem:[%s13508_s0 + $0x180] sm:$0xff] }
  0x61   :  { %7849 = vmatprep.subr.bf16.mxu0 %v13515_v0  ;;  %150 = vst [vmem:[#allocation2 + $0x368] sm:$0xff] %v9827_v40 }
  0x63   :  { %6599 = vmatmul.mubr.msk.f32.gmra.mrb[16].mxu0 %vm7359_vm0, %v9711_v21 }
  0x64   :  { %1394 = vmatprep.mubr.f32.mxu0 %v9357_v26  ;;  %7851 = vmatpush1.bf16.msra.mxu0 %v7850_v49  ;;  %v9747_v26 = vld [vmem:[#allocation2 + $0xa7] sm:$0xff] }
  0x65   :  { %7852 = vmatprep.subr.bf16.mxu0 %v13515_v0  ;;  %v9845_v49 = vld [vmem:[%s13508_s0 + $0x188] sm:$0xff] }
  0x66   :  { %151 = vst [vmem:[#allocation2 + $0x370] sm:$0xff] %v9845_v49 }
  0x67   :  { %1395 = vmatmul.mubr.f32.gmra.mrb[18].mxu0 %v9730_v22 }
  0x68   :  { %1399 = vmatprep.mubr.f32.mxu0 %v9364_v27  ;;  %7854 = vmatpush1.bf16.msra.mxu0 %v7853_v58  ;;  %v9760_v27 = vld [vmem:[#allocation2 + $0xaf] sm:$0xff]  ;;  %v9873_v58 = vld [vmem:[#allocation2 + $0x147] sm:$0xff] }
  0x69   :  { %7855 = vmatprep.subr.bf16.mxu0 %v13515_v0 }
  0x6b   :  { %6601 = vmatmul.mubr.msk.f32.gmra.mrb[20].mxu0 %vm7359_vm0, %v9747_v26 }
  0x6c   :  { %1404 = vmatprep.mubr.f32.mxu0 %v9369_v28  ;;  %7857 = vmatpush1.bf16.msra.mxu0 %v7856_v2  ;;  %v9776_v28 = vld [vmem:[%s13508_s0 + $0x160] sm:$0xff] }
  0x6d   :  { %7858 = vmatprep.subr.bf16.mxu0 %v13515_v0  ;;  %146 = vst [vmem:[#allocation2 + $0x328] sm:$0xff] %v9776_v28 }
  0x6f   :  { %1405 = vmatmul.mubr.f32.gmra.mrb[22].mxu0 %v9760_v27 }
  0x70   :  { %1409 = vmatprep.mubr.f32.mxu0 %v9374_v29  ;;  %v9789_v29 = vld [vmem:[#allocation2 + $0xcf] sm:$0xff]  ;;  %7860 = vmatpush1.bf16.msra.mxu0 %v7859_v14 }
  0x71   :  { %7861 = vmatprep.subr.bf16.mxu0 %v13515_v0  ;;  %v9914_v14 = vld [vmem:[#allocation2 + $0x16f] sm:$0xff] }
  0x73   :  { %6603 = vmatmul.mubr.msk.f32.gmra.mrb[24].mxu0 %vm7359_vm0, %v9771_v8 }
  0x74   :  { %1414 = vmatprep.mubr.f32.mxu0 %v9382_v30  ;;  %v9805_v30 = vld [vmem:[%s13508_s0 + $0x170] sm:$0xff] }
  0x75   :  { %148 = vst [vmem:[#allocation2 + $0x348] sm:$0xff] %v9805_v30 }
  0x77   :  { %1415 = vmatmul.mubr.f32.gmra.mrb[26].mxu0 %v9789_v29 }
  0x78   :  { %1419 = vmatprep.mubr.f32.mxu0 %v9388_v31  ;;  %v9817_v31 = vld [vmem:[%s13508_s0 + $0x178] sm:$0xff] }
  0x79   :  { %149 = vst [vmem:[#allocation2 + $0x350] sm:$0xff] %v9817_v31 }
  0x7b   :  { %6605 = vmatmul.mubr.msk.f32.gmra.mrb[28].mxu0 %vm7359_vm0, %v9800_v24 }
  0x7c   :  { %1424 = vmatprep.mubr.f32.mxu0 %v9393_v32  ;;  %v1190_v32 = vld [vmem:[%s13507_s1 + $0x1c0] sm:$0xff] }
  0x7d   :  { %v7862_v43 = vpack.c.bf16 %v1191_v42, %v1190_v32  ;;  %v9924_v32 = vld [vmem:[#allocation2 + $0x187] sm:$0xff] }
  0x7e   :  { %v9929_v42 = vld [vmem:[%s13508_s0 + $0x1c0] sm:$0xff] }
  0x7f   :  { %1425 = vmatmul.mubr.f32.gmra.mrb[30].mxu0 %v9812_v25  ;;  %158 = vst [vmem:[#allocation2 + $0x3e8] sm:$0xff] %v9929_v42 }
  0x80   :  { %1429 = vmatprep.mubr.f32.mxu0 %v9398_v33  ;;  %v9840_v33 = vld [vmem:[#allocation2 + $0x10f] sm:$0xff]  ;;  %7863 = vmatpush1.bf16.msra.mxu0 %v7862_v43 }
  0x81   :  { %7864 = vmatprep.subr.bf16.mxu0 %v13515_v0  ;;  %v1195_v43 = vld [vmem:[%s13507_s1 + $0x1e8] sm:$0xff] }
  0x83   :  { %6607 = vmatmul.mubr.msk.f32.gmra.mrb[32].mxu0 %vm7359_vm0, %v9822_v36 }
  0x84   :  { %1434 = vmatprep.mubr.f32.mxu0 %v9406_v35  ;;  %v9856_v35 = vld [vmem:[%s13508_s0 + $0x190] sm:$0xff] }
  0x85   :  { %152 = vst [vmem:[#allocation2 + $0x388] sm:$0xff] %v9856_v35 }
  0x87   :  { %1435 = vmatmul.mubr.f32.gmra.mrb[34].mxu0 %v9840_v33 }
  0x88   :  { %1439 = vmatprep.mubr.f32.mxu0 %v9419_v38  ;;  %v9868_v38 = vld [vmem:[%s13508_s0 + $0x198] sm:$0xff] }
  0x89   :  { %153 = vst [vmem:[#allocation2 + $0x390] sm:$0xff] %v9868_v38 }
  0x8b   :  { %6609 = vmatmul.mubr.msk.f32.gmra.mrb[36].mxu0 %vm7359_vm0, %v9851_v52 }
  0x8c   :  { %1444 = vmatprep.mubr.f32.mxu0 %v9424_v39  ;;  %v1192_v39 = vld [vmem:[%s13507_s1 + $0x1d0] sm:$0xff] }
  0x8d   :  { %v7865_v2 = vpack.c.bf16 %v1193_v61, %v1192_v39  ;;  %v9947_v61 = vld [vmem:[%s13508_s0 + $0x1c8] sm:$0xff] }
  0x8e   :  { %159 = vst [vmem:[#allocation2 + $0x3f0] sm:$0xff] %v9947_v61 }
  0x8f   :  { %1445 = vmatmul.mubr.f32.gmra.mrb[38].mxu0 %v9863_v53 }
  0x90   :  { %1449 = vmatprep.mubr.f32.mxu0 %v9431_v41  ;;  %v9891_v41 = vld [vmem:[#allocation2 + $0x14f] sm:$0xff]  ;;  %7866 = vmatpush1.bf16.msra.mxu0 %v7865_v2  ;;  %v9953_v2 = vld [vmem:[#allocation2 + $0x1a7] sm:$0xff] }
  0x91   :  { %7867 = vmatprep.subr.bf16.mxu0 %v13515_v0  ;;  %13574 = vst [vmem:[#allocation5_spill] sm:$0xff] %v9953_v2 }
  0x93   :  { %6611 = vmatmul.mubr.msk.f32.gmra.mrb[40].mxu0 %vm7359_vm0, %v9873_v58 }
  0x94   :  { %1454 = vmatprep.mubr.f32.mxu0 %v9444_v44  ;;  %v9907_v44 = vld [vmem:[%s13508_s0 + $0x1b0] sm:$0xff] }
  0x95   :  { %156 = vst [vmem:[#allocation2 + $0x3c8] sm:$0xff] %v9907_v44 }
  0x97   :  { %1455 = vmatmul.mubr.f32.gmra.mrb[42].mxu0 %v9891_v41 }
  0x98   :  { %1459 = vmatprep.mubr.f32.mxu0 %v9450_v46  ;;  %v9919_v46 = vld [vmem:[%s13508_s0 + $0x1b8] sm:$0xff] }
  0x99   :  { %157 = vst [vmem:[#allocation2 + $0x3d0] sm:$0xff] %v9919_v46 }
  0x9b   :  { %6613 = vmatmul.mubr.msk.f32.gmra.mrb[44].mxu0 %vm7359_vm0, %v9902_v12 }
  0x9c   :  { %1464 = vmatprep.mubr.f32.mxu0 %v9455_v47  ;;  %v1194_v47 = vld [vmem:[%s13507_s1 + $0x1e0] sm:$0xff] }
  0x9d   :  { %v7868_v39 = vpack.c.bf16 %v1195_v43, %v1194_v47  ;;  %v9965_v47 = vld [vmem:[#allocation2 + $0x1af] sm:$0xff]  ;;  %v9975_v43 = vld [vmem:[#allocation2 + $0x1c7] sm:$0xff] }
  0x9e   :  { %13575 = vst [vmem:[#allocation6_spill] sm:$0xff] %v9965_v47  ;;  %13576 = vst [vmem:[#allocation7_spill] sm:$0xff] %v9975_v43 }
  0x9f   :  { %1465 = vmatmul.mubr.f32.gmra.mrb[46].mxu0 %v9914_v14 }
  0xa0   :  { %1469 = vmatprep.mubr.f32.mxu0 %v9469_v50  ;;  %v9942_v50 = vld [vmem:[#allocation2 + $0x18f] sm:$0xff]  ;;  %7869 = vmatpush1.bf16.msra.mxu0 %v7868_v39  ;;  %v9980_v39 = vld [vmem:[%s13508_s0 + $0x1e0] sm:$0xff] }
  0xa1   :  { %7870 = vmatprep.subr.bf16.mxu0 %v13515_v0  ;;  %162 = vst [vmem:[#allocation2 + $0x428] sm:$0xff] %v9980_v39 }
  0xa3   :  { %6615 = vmatmul.mubr.msk.f32.gmra.mrb[48].mxu0 %vm7359_vm0, %v9924_v32 }
  0xa4   :  { %1474 = vmatprep.mubr.f32.mxu0 %v9475_v51  ;;  %v9958_v51 = vld [vmem:[%s13508_s0 + $0x1d0] sm:$0xff] }
  0xa5   :  { %160 = vst [vmem:[#allocation2 + $0x408] sm:$0xff] %v9958_v51 }
  0xa7   :  { %1475 = vmatmul.mubr.f32.gmra.mrb[50].mxu0 %v9942_v50 }
  0xa8   :  { %1479 = vmatprep.mubr.f32.mxu0 %v9488_v55  ;;  %v9970_v55 = vld [vmem:[%s13508_s0 + $0x1d8] sm:$0xff] }
  0xa9   :  { %161 = vst [vmem:[#allocation2 + $0x410] sm:$0xff] %v9970_v55 }
  0xab   :  { %6617 = vmatmul.mubr.msk.f32.gmra.mrb[52].mxu0 %vm7359_vm0, %v9953_v2  ;;  %v10004_v2 = vld [vmem:[#allocation2 + $0x1e7] sm:$0xff] }
  0xac   :  { %1484 = vmatprep.mubr.f32.mxu0 %v9501_v59  ;;  %v1196_v59 = vld [vmem:[%s13507_s1 + $0x1f0] sm:$0xff] }
  0xad   :  { %v7871_v0 = vpack.c.bf16 %v1197_v4, %v1196_v59  ;;  %v13578_v4 = vmov 0.0   ;;  %v10018_v59 = vld [vmem:[#allocation2 + $0x267] sm:$0xff] }
  0xaf   :  { %1485 = vmatmul.mubr.f32.gmra.mrb[54].mxu0 %v9965_v47  ;;  %v13577_v47 = vmov 0.0|0.0  }
  0xb0   :  { %1489 = vmatprep.mubr.f32.mxu0 %v9514_v63  ;;  %v9993_v63 = vld [vmem:[#allocation2 + $0x1cf] sm:$0xff]  ;;  %7872 = vmatpush1.bf16.msra.mxu0 %v7871_v0 }
  0xb1   :  { %7873 = vmatprep.subr.bf16.mxu0 %v13577_v47  ;;  %v10010_v0 = vld [vmem:[#allocation2 + $0x1ef] sm:$0xff] }
  0xb3   :  { %6619 = vmatmul.mubr.msk.f32.gmra.mrb[56].mxu0 %vm7359_vm0, %v9975_v43  ;;  %v9998_v43 = vld [vmem:[%s13508_s0 + $0x1e8] sm:$0xff] }
  0xb4   :  { %1494 = vmatprep.mubr.f32.mxu0 %v9527_v5  ;;  %163 = vst [vmem:[#allocation2 + $0x430] sm:$0xff] %v9998_v43  ;;  %v201_v5 = vld [vmem:[#allocation2 + $0x247] sm:$0xff] }
  0xb7   :  { %1495 = vmatmul.mubr.f32.gmra.mrb[58].mxu0 %v9993_v63 }
  0xb8   :  { %1499 = vmatprep.mubr.f32.mxu0 %v9540_v9  ;;  %v202_v9 = vld [vmem:[#allocation2 + $0x24f] sm:$0xff] }
  0xbb   :  { %6621 = vmatmul.mubr.msk.f32.gmra.mrb[60].mxu0 %vm7359_vm0, %v10004_v2 }
  0xbc   :  { %1504 = vmatprep.mubr.f32.mxu0 %v9553_v13  ;;  %v10024_v13 = vld [vmem:[#allocation2 + $0x26f] sm:$0xff] }
  0xbf   :  { %1505 = vmatmul.mubr.f32.gmra.mrb[62].mxu0 %v10010_v0 }
  0xc0   :  { %1509 = vmatprep.mubr.f32.mxu0 %v13578_v4 }
  0xc3   :  { %6623 = vmatmul.mubr.msk.f32.gmra.mrb[64].mxu0 %vm7359_vm0, %v201_v5  ;;  %v10028_v5 = vld [vmem:[#allocation2 + $0x287] sm:$0xff] }
  0xc4   :  { %1514 = vmatprep.mubr.f32.mxu0 %v13578_v4  ;;  %v10170_v4 = vld [vmem:[#allocation2 + $0x427] sm:$0xff] }
  0xc5   :  { %13582 = vst [vmem:[#allocation11_spill] sm:$0xff] %v10170_v4 }
  0xc7   :  { %1515 = vmatmul.mubr.f32.gmra.mrb[66].mxu0 %v202_v9  ;;  %v1198_v9 = vld [vmem:[%s13507_s1 + $0x200] sm:$0xff] }
  0xc8   :  { %1519 = vmatprep.mubr.f32.mxu0 %v9583_v48  ;;  %v10034_v48 = vld [vmem:[#allocation2 + $0x28f] sm:$0xff] }
  0xcb   :  { %6625 = vmatmul.mubr.msk.f32.gmra.mrb[68].mxu0 %vm7359_vm0, %v10018_v59 }
  0xcc   :  { %1524 = vmatprep.mubr.f32.mxu0 %v9599_v56  ;;  %v10038_v56 = vld [vmem:[#allocation2 + $0x2a7] sm:$0xff] }
  0xcf   :  { %1525 = vmatmul.mubr.f32.gmra.mrb[70].mxu0 %v10024_v13 }
  0xd0   :  { %1529 = vmatprep.mubr.f32.mxu0 %v9615_v62  ;;  %v10044_v62 = vld [vmem:[#allocation2 + $0x2af] sm:$0xff] }
  0xd3   :  { %6627 = vmatmul.mubr.msk.f32.gmra.mrb[72].mxu0 %vm7359_vm0, %v10028_v5 }
  0xd4   :  { %1534 = vmatprep.mubr.f32.mxu0 %v9634_v6  ;;  %v10048_v6 = vld [vmem:[#allocation2 + $0x2c7] sm:$0xff] }
  0xd7   :  { %1535 = vmatmul.mubr.f32.gmra.mrb[74].mxu0 %v10034_v48 }
  0xd8   :  { %1539 = vmatprep.mubr.f32.mxu0 %v9651_v11  ;;  %v10054_v11 = vld [vmem:[#allocation2 + $0x2cf] sm:$0xff] }
  0xdb   :  { %6629 = vmatmul.mubr.msk.f32.gmra.mrb[76].mxu0 %vm7359_vm0, %v10038_v56 }
  0xdc   :  { %1544 = vmatprep.mubr.f32.mxu0 %v9670_v23  ;;  %v10058_v23 = vld [vmem:[#allocation2 + $0x2e7] sm:$0xff] }
  0xdf   :  { %1545 = vmatmul.mubr.f32.gmra.mrb[78].mxu0 %v10044_v62 }
  0xe0   :  { %1549 = vmatprep.mubr.f32.mxu0 %v9687_v37  ;;  %v10064_v37 = vld [vmem:[#allocation2 + $0x2ef] sm:$0xff] }
  0xe3   :  { %6631 = vmatmul.mubr.msk.f32.gmra.mrb[80].mxu0 %vm7359_vm0, %v10048_v6 }
  0xe4   :  { %1554 = vmatprep.mubr.f32.mxu0 %v9706_v45  ;;  %v10068_v45 = vld [vmem:[#allocation2 + $0x307] sm:$0xff] }
  0xe7   :  { %1555 = vmatmul.mubr.f32.gmra.mrb[82].mxu0 %v10054_v11 }
  0xe8   :  { %1559 = vmatprep.mubr.f32.mxu0 %v9723_v54  ;;  %v10074_v54 = vld [vmem:[#allocation2 + $0x30f] sm:$0xff] }
  0xeb   :  { %6633 = vmatmul.mubr.msk.f32.gmra.mrb[84].mxu0 %vm7359_vm0, %v10058_v23 }
  0xec   :  { %1564 = vmatprep.mubr.f32.mxu0 %v9742_v1  ;;  %v10078_v1 = vld [vmem:[#allocation2 + $0x327] sm:$0xff] }
  0xef   :  { %1565 = vmatmul.mubr.f32.gmra.mrb[86].mxu0 %v10064_v37 }
  0xf0   :  { %1569 = vmatprep.mubr.f32.mxu0 %v9753_v3  ;;  %v10084_v3 = vld [vmem:[#allocation2 + $0x32f] sm:$0xff] }
  0xf3   :  { %6635 = vmatmul.mubr.msk.f32.gmra.mrb[88].mxu0 %vm7359_vm0, %v10068_v45 }
  0xf4   :  { %1574 = vmatprep.mubr.f32.mxu0 %v9766_v7  ;;  %v10088_v7 = vld [vmem:[#allocation2 + $0x347] sm:$0xff] }
  0xf7   :  { %1575 = vmatmul.mubr.f32.gmra.mrb[90].mxu0 %v10074_v54 }
  0xf8   :  { %1579 = vmatprep.mubr.f32.mxu0 %v9776_v28  ;;  %v10094_v28 = vld [vmem:[#allocation2 + $0x34f] sm:$0xff] }
  0xfb   :  { %6637 = vmatmul.mubr.msk.f32.gmra.mrb[92].mxu0 %vm7359_vm0, %v10078_v1 }
  0xfc   :  { %1584 = vmatprep.mubr.f32.mxu0 %v9794_v15  ;;  %v10098_v15 = vld [vmem:[#allocation2 + $0x367] sm:$0xff] }
  0xff   :  { %1585 = vmatmul.mubr.f32.gmra.mrb[94].mxu0 %v10084_v3 }
 0x100   :  { %1589 = vmatprep.mubr.f32.mxu0 %v9805_v30  ;;  %v10104_v30 = vld [vmem:[#allocation2 + $0x36f] sm:$0xff] }
 0x103   :  { %6639 = vmatmul.mubr.msk.f32.gmra.mrb[96].mxu0 %vm7359_vm0, %v10088_v7 }
 0x104   :  { %1594 = vmatprep.mubr.f32.mxu0 %v9817_v31  ;;  %v10108_v31 = vld [vmem:[#allocation2 + $0x387] sm:$0xff] }
 0x107   :  { %1595 = vmatmul.mubr.f32.gmra.mrb[98].mxu0 %v10094_v28 }
 0x108   :  { %1599 = vmatprep.mubr.f32.mxu0 %v9827_v40  ;;  %v10114_v40 = vld [vmem:[#allocation2 + $0x38f] sm:$0xff] }
 0x10b   :  { %6641 = vmatmul.mubr.msk.f32.gmra.mrb[100].mxu0 %vm7359_vm0, %v10098_v15 }
 0x10c   :  { %1604 = vmatprep.mubr.f32.mxu0 %v9845_v49  ;;  %v10118_v49 = vld [vmem:[#allocation2 + $0x3a7] sm:$0xff] }
 0x10f   :  { %1605 = vmatmul.mubr.f32.gmra.mrb[102].mxu0 %v10104_v30 }
 0x110   :  { %1609 = vmatprep.mubr.f32.mxu0 %v9856_v35  ;;  %v10124_v35 = vld [vmem:[#allocation2 + $0x3af] sm:$0xff] }
 0x113   :  { %6643 = vmatmul.mubr.msk.f32.gmra.mrb[104].mxu0 %vm7359_vm0, %v10108_v31 }
 0x114   :  { %1614 = vmatprep.mubr.f32.mxu0 %v9868_v38  ;;  %v10128_v38 = vld [vmem:[#allocation2 + $0x3c7] sm:$0xff] }
 0x117   :  { %1615 = vmatmul.mubr.f32.gmra.mrb[106].mxu0 %v10114_v40 }
 0x118   :  { %1619 = vmatprep.mubr.f32.mxu0 %v9878_v60  ;;  %v10134_v60 = vld [vmem:[#allocation2 + $0x3cf] sm:$0xff] }
 0x11b   :  { %6645 = vmatmul.mubr.msk.f32.gmra.mrb[108].mxu0 %vm7359_vm0, %v10118_v49 }
 0x11c   :  { %1624 = vmatprep.mubr.f32.mxu0 %v9896_v10  ;;  %v10138_v10 = vld [vmem:[#allocation2 + $0x3e7] sm:$0xff] }
 0x11f   :  { %1625 = vmatmul.mubr.f32.gmra.mrb[110].mxu0 %v10124_v35 }
 0x120   :  { %1629 = vmatprep.mubr.f32.mxu0 %v9907_v44  ;;  %v10144_v44 = vld [vmem:[#allocation2 + $0x3ef] sm:$0xff] }
 0x123   :  { %6647 = vmatmul.mubr.msk.f32.gmra.mrb[112].mxu0 %vm7359_vm0, %v10128_v38 }
 0x124   :  { %1634 = vmatprep.mubr.f32.mxu0 %v9919_v46  ;;  %v10148_v46 = vld [vmem:[#allocation2 + $0x407] sm:$0xff] }
 0x127   :  { %1635 = vmatmul.mubr.f32.gmra.mrb[114].mxu0 %v10134_v60 }
 0x128   :  { %1639 = vmatprep.mubr.f32.mxu0 %v9929_v42  ;;  %v10153_v42 = vld [vmem:[%s13508_s0 + $0xf0] sm:$0xff] }
 0x129   :  { %13579 = vst [vmem:[#allocation8_spill] sm:$0xff] %v10153_v42  ;;  %132 = vst [vmem:[#allocation2 + $0x208] sm:$0xff] %v10153_v42 }
 0x12b   :  { %6649 = vmatmul.mubr.msk.f32.gmra.mrb[116].mxu0 %vm7359_vm0, %v10138_v10 }
 0x12c   :  { %1644 = vmatprep.mubr.f32.mxu0 %v9947_v61  ;;  %v10160_v61 = vld [vmem:[#allocation2 + $0x40f] sm:$0xff] }
 0x12d   :  { %13580 = vst [vmem:[#allocation9_spill] sm:$0xff] %v10160_v61 }
 0x12f   :  { %1645 = vmatmul.mubr.f32.gmra.mrb[118].mxu0 %v10144_v44 }
 0x130   :  { %1649 = vmatprep.mubr.f32.mxu0 %v9958_v51  ;;  %v10165_v51 = vld [vmem:[%s13508_s0 + $0xf8] sm:$0xff] }
 0x131   :  { %13581 = vst [vmem:[#allocation10_spill] sm:$0xff] %v10165_v51  ;;  %133 = vst [vmem:[#allocation2 + $0x210] sm:$0xff] %v10165_v51  ;;  %v1199_v51 = vld [vmem:[%s13507_s1 + $0x208] sm:$0xff] }
 0x132   :  { %v7874_v42 = vpack.c.bf16 %v1199_v51, %v1198_v9  ;;  %v1202_v51 = vld [vmem:[%s13507_s1 + $0x220] sm:$0xff]  ;;  %v1203_v9 = vld [vmem:[%s13507_s1 + $0x228] sm:$0xff] }
 0x133   :  { %6651 = vmatmul.mubr.msk.f32.gmra.mrb[120].mxu0 %vm7359_vm0, %v10148_v46 }
 0x134   :  { %1654 = vmatprep.mubr.f32.mxu0 %v9970_v55  ;;  %v10176_v55 = vld [vmem:[#allocation2 + $0x42f] sm:$0xff] }
 0x135   :  { %13583 = vst [vmem:[#allocation12_spill] sm:$0xff] %v10176_v55 }
 0x137   :  { %1655 = vmatmul.mubr.f32.gmra.mrb[122].mxu0 %v10160_v61  ;;  %v1201_v61 = vld [vmem:[%s13507_s1 + $0x218] sm:$0xff] }
 0x138   :  { %1659 = vmatprep.mubr.f32.mxu0 %v9980_v39  ;;  %v363_v39 = vld [vmem:[#allocation2 + $0x9] sm:$0xff] }
 0x13b   :  { %6653 = vmatmul.mubr.msk.f32.gmra.mrb[124].mxu0 %vm7359_vm0, %v10170_v4  ;;  %v1200_v4 = vld [vmem:[%s13507_s1 + $0x210] sm:$0xff] }
 0x13c   :  { %1664 = vmatprep.mubr.f32.mxu0 %v9998_v43  ;;  %v10189_v43 = vadd.s32 8, %v9563_v34 }
 0x13e   :  { %13584 = vst [vmem:[#allocation13_spill] sm:$0xff] %v10189_v43  ;;  %vm7360_vm1 = vcmp.ne.s32.totalorder %v10189_v43, 15 }
 0x13f   :  { %1665 = vmatmul.mubr.f32.gmra.mrb[126].mxu0 %v10176_v55  ;;  %v364_v55 = vld [vmem:[#allocation2 + $0x11] sm:$0xff] }
 0x140   :  { %6655 = vmatprep.mubr.msk.f32.mxu0 %vm7359_vm0, %v9603_v57  ;;  %v7877_v57 = vpack.c.bf16 %v1201_v61, %v1200_v4  ;;  %v1204_v61 = vld [vmem:[%s13507_s1 + $0x230] sm:$0xff]  ;;  %v1205_v4 = vld [vmem:[%s13507_s1 + $0x238] sm:$0xff] }
 0x143   :  { %1735 = vmatmul.mubr.f32.vlgmr.msra.gmra.mrb[0].mxu0 %v363_v39  ;;  %v1206_v39 = vld [vmem:[%s13507_s1 + $0x240] sm:$0xff] }
 0x144   :  { %7875 = vmatpush1.bf16.msra.mxu0 %v7874_v42  ;;  %1739 = vmatprep.mubr.f32.mxu0 %v9622_v16  ;;  %v10211_v16 = vld [vmem:[#allocation2 + $0x29] sm:$0xff]  ;;  %v7880_v42 = vpack.c.bf16 %v1203_v9, %v1202_v51 }
 0x145   :  { %7876 = vmatprep.subr.bf16.mxu0 %v13577_v47  ;;  %v1208_v9 = vld [vmem:[%s13507_s1 + $0x250] sm:$0xff] }
 0x147   :  { %6657 = vmatmul.mubr.msk.f32.gmra.mrb[2].mxu0 %vm7360_vm1, %v364_v55  ;;  %v10222_v55 = vld [vmem:[#allocation2 + $0x31] sm:$0xff] }
 0x148   :  { %6659 = vmatprep.mubr.msk.f32.mxu0 %vm7359_vm0, %v9639_v17  ;;  %7878 = vmatpush1.bf16.msra.mxu0 %v7877_v57  ;;  %v7883_v17 = vpack.c.bf16 %v1205_v4, %v1204_v61  ;;  %v1207_v57 = vld [vmem:[%s13507_s1 + $0x248] sm:$0xff]  ;;  %v10248_v61 = vld [vmem:[#allocation2 + $0x51] sm:$0xff]  ;;  %v1210_v4 = vld [vmem:[%s13507_s1 + $0x260] sm:$0xff] }
 0x149   :  { %7879 = vmatprep.subr.bf16.mxu0 %v13577_v47  ;;  %v7886_v51 = vpack.c.bf16 %v1207_v57, %v1206_v39  ;;  %v1212_v57 = vld [vmem:[%s13507_s1 + $0x270] sm:$0xff] }
 0x14b   :  { %1745 = vmatmul.mubr.f32.gmra.mrb[4].mxu0 %v10211_v16 }
 0x14c   :  { %1749 = vmatprep.mubr.f32.mxu0 %v9658_v18  ;;  %7881 = vmatpush1.bf16.msra.mxu0 %v7880_v42  ;;  %v10237_v18 = vld [vmem:[#allocation2 + $0x49] sm:$0xff]  ;;  %v1209_v42 = vld [vmem:[%s13507_s1 + $0x258] sm:$0xff] }
 0x14d   :  { %7882 = vmatprep.subr.bf16.mxu0 %v13577_v47 }
 0x14f   :  { %6661 = vmatmul.mubr.msk.f32.gmra.mrb[6].mxu0 %vm7360_vm1, %v10222_v55 }
 0x150   :  { %6663 = vmatprep.mubr.msk.f32.mxu0 %vm7359_vm0, %v9675_v19  ;;  %7884 = vmatpush1.bf16.msra.mxu0 %v7883_v17  ;;  %v7889_v19 = vpack.c.bf16 %v1209_v42, %v1208_v9  ;;  %v1211_v17 = vld [vmem:[%s13507_s1 + $0x268] sm:$0xff]  ;;  %v10274_v9 = vld [vmem:[#allocation2 + $0x71] sm:$0xff]  ;;  %v1214_v42 = vld [vmem:[%s13507_s1 + $0x280] sm:$0xff] }
 0x151   :  { %7885 = vmatprep.subr.bf16.mxu0 %v13577_v47  ;;  %v7892_v39 = vpack.c.bf16 %v1211_v17, %v1210_v4  ;;  %v1216_v17 = vld [vmem:[%s13507_s1 + $0x290] sm:$0xff] }
 0x153   :  { %1755 = vmatmul.mubr.f32.gmra.mrb[8].mxu0 %v10237_v18 }
 0x154   :  { %1759 = vmatprep.mubr.f32.mxu0 %v9694_v20  ;;  %7887 = vmatpush1.bf16.msra.mxu0 %v7886_v51  ;;  %v10263_v20 = vld [vmem:[#allocation2 + $0x69] sm:$0xff]  ;;  %v1213_v51 = vld [vmem:[%s13507_s1 + $0x278] sm:$0xff] }
 0x155   :  { %7888 = vmatprep.subr.bf16.mxu0 %v13577_v47 }
 0x157   :  { %6665 = vmatmul.mubr.msk.f32.gmra.mrb[10].mxu0 %vm7360_vm1, %v10248_v61 }
 0x158   :  { %6667 = vmatprep.mubr.msk.f32.mxu0 %vm7359_vm0, %v9711_v21  ;;  %7890 = vmatpush1.bf16.msra.mxu0 %v7889_v19  ;;  %v7895_v21 = vpack.c.bf16 %v1213_v51, %v1212_v57  ;;  %v1215_v19 = vld [vmem:[%s13507_s1 + $0x288] sm:$0xff]  ;;  %v10300_v57 = vld [vmem:[#allocation2 + $0x91] sm:$0xff]  ;;  %v1218_v51 = vld [vmem:[%s13507_s1 + $0x2a0] sm:$0xff] }
 0x159   :  { %7891 = vmatprep.subr.bf16.mxu0 %v13577_v47  ;;  %v7898_v4 = vpack.c.bf16 %v1215_v19, %v1214_v42  ;;  %v10320_v19 = vld [vmem:[#allocation2 + $0xb1] sm:$0xff] }
 0x15b   :  { %1765 = vmatmul.mubr.f32.gmra.mrb[12].mxu0 %v10263_v20 }
 0x15c   :  { %1769 = vmatprep.mubr.f32.mxu0 %v9730_v22  ;;  %7893 = vmatpush1.bf16.msra.mxu0 %v7892_v39  ;;  %v10289_v22 = vld [vmem:[#allocation2 + $0x89] sm:$0xff]  ;;  %v1217_v39 = vld [vmem:[%s13507_s1 + $0x298] sm:$0xff] }
 0x15d   :  { %7894 = vmatprep.subr.bf16.mxu0 %v13577_v47 }
 0x15f   :  { %6669 = vmatmul.mubr.msk.f32.gmra.mrb[14].mxu0 %vm7360_vm1, %v10274_v9 }
 0x160   :  { %6671 = vmatprep.mubr.msk.f32.mxu0 %vm7359_vm0, %v9747_v26  ;;  %7896 = vmatpush1.bf16.msra.mxu0 %v7895_v21  ;;  %v7901_v26 = vpack.c.bf16 %v1217_v39, %v1216_v17  ;;  %v1219_v21 = vld [vmem:[%s13507_s1 + $0x2a8] sm:$0xff]  ;;  %v10339_v17 = vld [vmem:[#allocation2 + $0xd1] sm:$0xff] }
 0x161   :  { %7897 = vmatprep.subr.bf16.mxu0 %v13577_v47  ;;  %v7904_v42 = vpack.c.bf16 %v1219_v21, %v1218_v51  ;;  %v10370_v51 = vld [vmem:[#allocation2 + $0x111] sm:$0xff] }
 0x163   :  { %1775 = vmatmul.mubr.f32.gmra.mrb[16].mxu0 %v10289_v22 }
 0x164   :  { %1779 = vmatprep.mubr.f32.mxu0 %v9760_v27  ;;  %7899 = vmatpush1.bf16.msra.mxu0 %v7898_v4  ;;  %v10315_v27 = vld [vmem:[#allocation2 + $0xa9] sm:$0xff]  ;;  %v1221_v4 = vld [vmem:[%s13507_s1 + $0x2b8] sm:$0xff] }
 0x165   :  { %7900 = vmatprep.subr.bf16.mxu0 %v13577_v47 }
 0x167   :  { %6673 = vmatmul.mubr.msk.f32.gmra.mrb[18].mxu0 %vm7360_vm1, %v10300_v57 }
 0x168   :  { %6675 = vmatprep.mubr.msk.f32.mxu0 %vm7359_vm0, %v9771_v8  ;;  %7902 = vmatpush1.bf16.msra.mxu0 %v7901_v26  ;;  %v10329_v8 = vld [vmem:[#allocation2 + $0xc9] sm:$0xff] }
 0x169   :  { %7903 = vmatprep.subr.bf16.mxu0 %v13577_v47  ;;  %v10360_v26 = vld [vmem:[#allocation2 + $0x109] sm:$0xff] }
 0x16b   :  { %1785 = vmatmul.mubr.f32.gmra.mrb[20].mxu0 %v10315_v27 }
 0x16c   :  { %1789 = vmatprep.mubr.f32.mxu0 %v9789_v29  ;;  %7905 = vmatpush1.bf16.msra.mxu0 %v7904_v42  ;;  %v1220_v29 = vld [vmem:[%s13507_s1 + $0x2b0] sm:$0xff] }
 0x16d   :  { %7906 = vmatprep.subr.bf16.mxu0 %v13577_v47  ;;  %v7907_v39 = vpack.c.bf16 %v1221_v4, %v1220_v29  ;;  %v10391_v42 = vld [vmem:[#allocation2 + $0x149] sm:$0xff]  ;;  %v10401_v29 = vld [vmem:[#allocation2 + $0x151] sm:$0xff] }
 0x16f   :  { %6677 = vmatmul.mubr.msk.f32.gmra.mrb[22].mxu0 %vm7360_vm1, %v10320_v19 }
 0x170   :  { %6679 = vmatprep.mubr.msk.f32.mxu0 %vm7359_vm0, %v9800_v24  ;;  %7908 = vmatpush1.bf16.msra.mxu0 %v7907_v39  ;;  %v10348_v24 = vld [vmem:[#allocation2 + $0xe9] sm:$0xff] }
 0x171   :  { %7909 = vmatprep.subr.bf16.mxu0 %v13577_v47  ;;  %v13585_v39 = vld [vmem:[#allocation5_spill] sm:$0xff] }
 0x173   :  { %1795 = vmatmul.mubr.f32.gmra.mrb[24].mxu0 %v10329_v8 }
 0x174   :  { %1799 = vmatprep.mubr.f32.mxu0 %v9812_v25  ;;  %v10352_v25 = vld [vmem:[#allocation2 + $0xf1] sm:$0xff] }
 0x177   :  { %6681 = vmatmul.mubr.msk.f32.gmra.mrb[26].mxu0 %vm7360_vm1, %v10339_v17 }
 0x178   :  { %6683 = vmatprep.mubr.msk.f32.mxu0 %vm7359_vm0, %v9822_v36  ;;  %v1222_v36 = vld [vmem:[%s13507_s1 + $0x2c0] sm:$0xff] }
 0x17b   :  { %1805 = vmatmul.mubr.f32.gmra.mrb[28].mxu0 %v10348_v24 }
 0x17c   :  { %1809 = vmatprep.mubr.f32.mxu0 %v9840_v33  ;;  %v1223_v33 = vld [vmem:[%s13507_s1 + $0x2c8] sm:$0xff] }
 0x17d   :  { %v7910_v21 = vpack.c.bf16 %v1223_v33, %v1222_v36  ;;  %v10422_v36 = vld [vmem:[#allocation2 + $0x189] sm:$0xff] }
 0x17e   :  { %v13586_v33 = vld [vmem:[#allocation6_spill] sm:$0xff] }
 0x17f   :  { %6685 = vmatmul.mubr.msk.f32.gmra.mrb[30].mxu0 %vm7360_vm1, %v10352_v25 }
 0x180   :  { %6687 = vmatprep.mubr.msk.f32.mxu0 %vm7359_vm0, %v9851_v52  ;;  %7911 = vmatpush1.bf16.msra.mxu0 %v7910_v21  ;;  %v10379_v52 = vld [vmem:[#allocation2 + $0x129] sm:$0xff]  ;;  %v10432_v21 = vld [vmem:[#allocation2 + $0x191] sm:$0xff] }
 0x181   :  { %7912 = vmatprep.subr.bf16.mxu0 %v13577_v47 }
 0x183   :  { %1815 = vmatmul.mubr.f32.gmra.mrb[32].mxu0 %v10360_v26 }
 0x184   :  { %1819 = vmatprep.mubr.f32.mxu0 %v9863_v53  ;;  %v10383_v53 = vld [vmem:[#allocation2 + $0x131] sm:$0xff] }
 0x187   :  { %6689 = vmatmul.mubr.msk.f32.gmra.mrb[34].mxu0 %vm7360_vm1, %v10370_v51 }
 0x188   :  { %6691 = vmatprep.mubr.msk.f32.mxu0 %vm7359_vm0, %v9873_v58  ;;  %v1224_v58 = vld [vmem:[%s13507_s1 + $0x2d0] sm:$0xff] }
 0x18b   :  { %1825 = vmatmul.mubr.f32.gmra.mrb[36].mxu0 %v10379_v52 }
 0x18c   :  { %1829 = vmatprep.mubr.f32.mxu0 %v9891_v41  ;;  %v1225_v41 = vld [vmem:[%s13507_s1 + $0x2d8] sm:$0xff] }
 0x18d   :  { %v7913_v4 = vpack.c.bf16 %v1225_v41, %v1224_v58  ;;  %v13587_v41 = vld [vmem:[#allocation7_spill] sm:$0xff] }
 0x18f   :  { %6693 = vmatmul.mubr.msk.f32.gmra.mrb[38].mxu0 %vm7360_vm1, %v10383_v53 }
 0x190   :  { %6695 = vmatprep.mubr.msk.f32.mxu0 %vm7359_vm0, %v9902_v12  ;;  %7914 = vmatpush1.bf16.msra.mxu0 %v7913_v4  ;;  %v10410_v12 = vld [vmem:[#allocation2 + $0x169] sm:$0xff] }
 0x191   :  { %7915 = vmatprep.subr.bf16.mxu0 %v13577_v47  ;;  %v10441_v4 = vld [vmem:[#allocation2 + $0x1a9] sm:$0xff] }
 0x193   :  { %1835 = vmatmul.mubr.f32.gmra.mrb[40].mxu0 %v10391_v42 }
 0x194   :  { %1839 = vmatprep.mubr.f32.mxu0 %v9914_v14  ;;  %v10414_v14 = vld [vmem:[#allocation2 + $0x171] sm:$0xff] }
 0x197   :  { %6697 = vmatmul.mubr.msk.f32.gmra.mrb[42].mxu0 %vm7360_vm1, %v10401_v29 }
 0x198   :  { %6699 = vmatprep.mubr.msk.f32.mxu0 %vm7359_vm0, %v9924_v32  ;;  %v1226_v32 = vld [vmem:[%s13507_s1 + $0x2e0] sm:$0xff] }
 0x19b   :  { %1845 = vmatmul.mubr.f32.gmra.mrb[44].mxu0 %v10410_v12 }
 0x19c   :  { %1849 = vmatprep.mubr.f32.mxu0 %v9942_v50  ;;  %v1227_v50 = vld [vmem:[%s13507_s1 + $0x2e8] sm:$0xff] }
 0x19d   :  { %v7916_v58 = vpack.c.bf16 %v1227_v50, %v1226_v32  ;;  %v10453_v32 = vld [vmem:[#allocation2 + $0x1c9] sm:$0xff] }
 0x19e   :  { %v10458_v50 = vld [vmem:[%s13508_s0 + $0x1f0] sm:$0xff] }
 0x19f   :  { %6701 = vmatmul.mubr.msk.f32.gmra.mrb[46].mxu0 %vm7360_vm1, %v10414_v14  ;;  %13588 = vst [vmem:[#allocation5_spill] sm:$0xff] %v10458_v50  ;;  %164 = vst [vmem:[#allocation2 + $0x448] sm:$0xff] %v10458_v50  ;;  %v10474_v50 = vld [vmem:[%s13508_s0 + $0x1f8] sm:$0xff] }
 0x1a0   :  { %6703 = vmatprep.mubr.msk.f32.mxu0 %vm7359_vm0, %v13585_v39  ;;  %7917 = vmatpush1.bf16.msra.mxu0 %v7916_v58  ;;  %v10445_v39 = vld [vmem:[#allocation2 + $0x1b1] sm:$0xff]  ;;  %13589 = vst [vmem:[#allocation6_spill] sm:$0xff] %v10474_v50  ;;  %165 = vst [vmem:[#allocation2 + $0x450] sm:$0xff] %v10474_v50 }
 0x1a1   :  { %7918 = vmatprep.subr.bf16.mxu0 %v13577_v47  ;;  %v10504_v50 = vld [vmem:[#allocation2 + $0x271] sm:$0xff] }
 0x1a3   :  { %1855 = vmatmul.mubr.f32.gmra.mrb[48].mxu0 %v10422_v36 }
 0x1a4   :  { %1859 = vmatprep.mubr.f32.mxu0 %v13586_v33  ;;  %v1229_v33 = vld [vmem:[%s13507_s1 + $0x2f8] sm:$0xff] }
 0x1a7   :  { %6705 = vmatmul.mubr.msk.f32.gmra.mrb[50].mxu0 %vm7360_vm1, %v10432_v21 }
 0x1a8   :  { %6707 = vmatprep.mubr.msk.f32.mxu0 %vm7359_vm0, %v13587_v41  ;;  %v523_v41 = vld [vmem:[#allocation2 + $0x207] sm:$0xff] }
 0x1ab   :  { %1865 = vmatmul.mubr.f32.gmra.mrb[52].mxu0 %v10441_v4 }
 0x1ac   :  { %1869 = vmatprep.mubr.f32.mxu0 %v9993_v63  ;;  %v1228_v63 = vld [vmem:[%s13507_s1 + $0x2f0] sm:$0xff] }
 0x1ad   :  { %v7919_v58 = vpack.c.bf16 %v1229_v33, %v1228_v63  ;;  %v524_v63 = vld [vmem:[#allocation2 + $0x20f] sm:$0xff] }
 0x1ae   :  { %v10486_v33 = vld [vmem:[#allocation2 + $0x1f1] sm:$0xff] }
 0x1af   :  { %6709 = vmatmul.mubr.msk.f32.gmra.mrb[54].mxu0 %vm7360_vm1, %v10445_v39 }
 0x1b0   :  { %6711 = vmatprep.mubr.msk.f32.mxu0 %vm7359_vm0, %v10004_v2  ;;  %v10469_v2 = vld [vmem:[#allocation2 + $0x1d1] sm:$0xff]  ;;  %7920 = vmatpush1.bf16.msra.mxu0 %v7919_v58  ;;  %v395_v58 = vld [vmem:[#allocation2 + $0x249] sm:$0xff] }
 0x1b1   :  { %7921 = vmatprep.subr.bf16.mxu0 %v13577_v47 }
 0x1b3   :  { %1875 = vmatmul.mubr.f32.gmra.mrb[56].mxu0 %v10453_v32 }
 0x1b4   :  { %1879 = vmatprep.mubr.f32.mxu0 %v10010_v0  ;;  %v10483_v0 = vld [vmem:[#allocation2 + $0x1e9] sm:$0xff] }
 0x1b7   :  { %6713 = vmatmul.mubr.msk.f32.gmra.mrb[58].mxu0 %vm7360_vm1, %v10469_v2 }
 0x1b8   :  { %6715 = vmatprep.mubr.msk.f32.mxu0 %vm7359_vm0, %v523_v41  ;;  %v396_v41 = vld [vmem:[#allocation2 + $0x251] sm:$0xff] }
 0x1bb   :  { %1885 = vmatmul.mubr.f32.gmra.mrb[60].mxu0 %v10483_v0 }
 0x1bc   :  { %1889 = vmatprep.mubr.f32.mxu0 %v524_v63  ;;  %v10500_v63 = vld [vmem:[#allocation2 + $0x269] sm:$0xff] }
 0x1bf   :  { %6717 = vmatmul.mubr.msk.f32.gmra.mrb[62].mxu0 %vm7360_vm1, %v10486_v33 }
 0x1c0   :  { %6719 = vmatprep.mubr.msk.f32.mxu0 %vm7359_vm0, %v10018_v59  ;;  %v10512_v59 = vld [vmem:[#allocation2 + $0x289] sm:$0xff] }
 0x1c3   :  { %1895 = vmatmul.mubr.f32.gmra.mrb[64].mxu0 %v395_v58  ;;  %v10656_v58 = vld [vmem:[#allocation2 + $0x409] sm:$0xff] }
 0x1c4   :  { %1899 = vmatprep.mubr.f32.mxu0 %v10024_v13  ;;  %v10516_v13 = vld [vmem:[#allocation2 + $0x291] sm:$0xff] }
 0x1c7   :  { %6721 = vmatmul.mubr.msk.f32.gmra.mrb[66].mxu0 %vm7360_vm1, %v396_v41  ;;  %v10660_v41 = vld [vmem:[#allocation2 + $0x411] sm:$0xff] }
 0x1c8   :  { %6723 = vmatprep.mubr.msk.f32.mxu0 %vm7359_vm0, %v10028_v5  ;;  %v10524_v5 = vld [vmem:[#allocation2 + $0x2a9] sm:$0xff] }
 0x1cb   :  { %1905 = vmatmul.mubr.f32.gmra.mrb[68].mxu0 %v10500_v63 }
 0x1cc   :  { %1909 = vmatprep.mubr.f32.mxu0 %v10034_v48  ;;  %v10528_v48 = vld [vmem:[#allocation2 + $0x2b1] sm:$0xff] }
 0x1cf   :  { %6725 = vmatmul.mubr.msk.f32.gmra.mrb[70].mxu0 %vm7360_vm1, %v10504_v50 }
 0x1d0   :  { %6727 = vmatprep.mubr.msk.f32.mxu0 %vm7359_vm0, %v10038_v56  ;;  %v10536_v56 = vld [vmem:[#allocation2 + $0x2c9] sm:$0xff] }
 0x1d3   :  { %1915 = vmatmul.mubr.f32.gmra.mrb[72].mxu0 %v10512_v59 }
 0x1d4   :  { %1919 = vmatprep.mubr.f32.mxu0 %v10044_v62  ;;  %v10540_v62 = vld [vmem:[#allocation2 + $0x2d1] sm:$0xff] }
 0x1d7   :  { %6729 = vmatmul.mubr.msk.f32.gmra.mrb[74].mxu0 %vm7360_vm1, %v10516_v13 }
 0x1d8   :  { %6731 = vmatprep.mubr.msk.f32.mxu0 %vm7359_vm0, %v10048_v6  ;;  %v10548_v6 = vld [vmem:[#allocation2 + $0x2e9] sm:$0xff] }
 0x1db   :  { %1925 = vmatmul.mubr.f32.gmra.mrb[76].mxu0 %v10524_v5 }
 0x1dc   :  { %1929 = vmatprep.mubr.f32.mxu0 %v10054_v11  ;;  %v10552_v11 = vld [vmem:[#allocation2 + $0x2f1] sm:$0xff] }
 0x1df   :  { %6733 = vmatmul.mubr.msk.f32.gmra.mrb[78].mxu0 %vm7360_vm1, %v10528_v48 }
 0x1e0   :  { %6735 = vmatprep.mubr.msk.f32.mxu0 %vm7359_vm0, %v10058_v23  ;;  %v10560_v23 = vld [vmem:[#allocation2 + $0x309] sm:$0xff] }
 0x1e3   :  { %1935 = vmatmul.mubr.f32.gmra.mrb[80].mxu0 %v10536_v56 }
 0x1e4   :  { %1939 = vmatprep.mubr.f32.mxu0 %v10064_v37  ;;  %v10564_v37 = vld [vmem:[#allocation2 + $0x311] sm:$0xff] }
 0x1e7   :  { %6737 = vmatmul.mubr.msk.f32.gmra.mrb[82].mxu0 %vm7360_vm1, %v10540_v62 }
 0x1e8   :  { %6739 = vmatprep.mubr.msk.f32.mxu0 %vm7359_vm0, %v10068_v45  ;;  %v10572_v45 = vld [vmem:[#allocation2 + $0x329] sm:$0xff] }
 0x1eb   :  { %1945 = vmatmul.mubr.f32.gmra.mrb[84].mxu0 %v10548_v6 }
 0x1ec   :  { %1949 = vmatprep.mubr.f32.mxu0 %v10074_v54  ;;  %v10576_v54 = vld [vmem:[#allocation2 + $0x331] sm:$0xff] }
 0x1ef   :  { %6741 = vmatmul.mubr.msk.f32.gmra.mrb[86].mxu0 %vm7360_vm1, %v10552_v11 }
 0x1f0   :  { %6743 = vmatprep.mubr.msk.f32.mxu0 %vm7359_vm0, %v10078_v1  ;;  %v10584_v1 = vld [vmem:[#allocation2 + $0x349] sm:$0xff] }
 0x1f3   :  { %1955 = vmatmul.mubr.f32.gmra.mrb[88].mxu0 %v10560_v23 }
 0x1f4   :  { %1959 = vmatprep.mubr.f32.mxu0 %v10084_v3  ;;  %v10588_v3 = vld [vmem:[#allocation2 + $0x351] sm:$0xff] }
 0x1f7   :  { %6745 = vmatmul.mubr.msk.f32.gmra.mrb[90].mxu0 %vm7360_vm1, %v10564_v37 }
 0x1f8   :  { %6747 = vmatprep.mubr.msk.f32.mxu0 %vm7359_vm0, %v10088_v7  ;;  %v10596_v7 = vld [vmem:[#allocation2 + $0x369] sm:$0xff] }
 0x1fb   :  { %1965 = vmatmul.mubr.f32.gmra.mrb[92].mxu0 %v10572_v45 }
 0x1fc   :  { %1969 = vmatprep.mubr.f32.mxu0 %v10094_v28  ;;  %v10600_v28 = vld [vmem:[#allocation2 + $0x371] sm:$0xff] }
 0x1ff   :  { %6749 = vmatmul.mubr.msk.f32.gmra.mrb[94].mxu0 %vm7360_vm1, %v10576_v54 }
 0x200   :  { %6751 = vmatprep.mubr.msk.f32.mxu0 %vm7359_vm0, %v10098_v15  ;;  %v10608_v15 = vld [vmem:[#allocation2 + $0x389] sm:$0xff] }
 0x203   :  { %1975 = vmatmul.mubr.f32.gmra.mrb[96].mxu0 %v10584_v1 }
 0x204   :  { %1979 = vmatprep.mubr.f32.mxu0 %v10104_v30  ;;  %v10612_v30 = vld [vmem:[#allocation2 + $0x391] sm:$0xff] }
 0x207   :  { %6753 = vmatmul.mubr.msk.f32.gmra.mrb[98].mxu0 %vm7360_vm1, %v10588_v3 }
 0x208   :  { %6755 = vmatprep.mubr.msk.f32.mxu0 %vm7359_vm0, %v10108_v31  ;;  %v10620_v31 = vld [vmem:[#allocation2 + $0x3a9] sm:$0xff] }
 0x20b   :  { %1985 = vmatmul.mubr.f32.gmra.mrb[100].mxu0 %v10596_v7 }
 0x20c   :  { %1989 = vmatprep.mubr.f32.mxu0 %v10114_v40  ;;  %v10624_v40 = vld [vmem:[#allocation2 + $0x3b1] sm:$0xff] }
 0x20f   :  { %6757 = vmatmul.mubr.msk.f32.gmra.mrb[102].mxu0 %vm7360_vm1, %v10600_v28 }
 0x210   :  { %6759 = vmatprep.mubr.msk.f32.mxu0 %vm7359_vm0, %v10118_v49  ;;  %v10632_v49 = vld [vmem:[#allocation2 + $0x3c9] sm:$0xff] }
 0x213   :  { %1995 = vmatmul.mubr.f32.gmra.mrb[104].mxu0 %v10608_v15 }
 0x214   :  { %1999 = vmatprep.mubr.f32.mxu0 %v10124_v35  ;;  %v10636_v35 = vld [vmem:[#allocation2 + $0x3d1] sm:$0xff] }
 0x217   :  { %6761 = vmatmul.mubr.msk.f32.gmra.mrb[106].mxu0 %vm7360_vm1, %v10612_v30 }
 0x218   :  { %6763 = vmatprep.mubr.msk.f32.mxu0 %vm7359_vm0, %v10128_v38  ;;  %v10644_v38 = vld [vmem:[#allocation2 + $0x3e9] sm:$0xff] }
 0x219   :  { %13590 = vst [vmem:[#allocation7_spill] sm:$0xff] %v10644_v38 }
 0x21b   :  { %2005 = vmatmul.mubr.f32.gmra.mrb[108].mxu0 %v10620_v31 }
 0x21c   :  { %2009 = vmatprep.mubr.f32.mxu0 %v10134_v60  ;;  %v13591_v60 = vld [vmem:[#allocation9_spill] sm:$0xff] }
 0x21f   :  { %6765 = vmatmul.mubr.msk.f32.gmra.mrb[110].mxu0 %vm7360_vm1, %v10624_v40 }
 0x220   :  { %6767 = vmatprep.mubr.msk.f32.mxu0 %vm7359_vm0, %v10138_v10  ;;  %v10648_v10 = vld [vmem:[#allocation2 + $0x3f1] sm:$0xff] }
 0x221   :  { %13592 = vst [vmem:[#allocation9_spill] sm:$0xff] %v10648_v10 }
 0x223   :  { %2015 = vmatmul.mubr.f32.gmra.mrb[112].mxu0 %v10632_v49 }
 0x224   :  { %2019 = vmatprep.mubr.f32.mxu0 %v10144_v44  ;;  %v13593_v44 = vld [vmem:[#allocation11_spill] sm:$0xff] }
 0x225   :  { %13594 = vst [vmem:[#allocation11_spill] sm:$0xff] %v10656_v58 }
 0x227   :  { %6769 = vmatmul.mubr.msk.f32.gmra.mrb[114].mxu0 %vm7360_vm1, %v10636_v35 }
 0x228   :  { %6771 = vmatprep.mubr.msk.f32.mxu0 %vm7359_vm0, %v10148_v46  ;;  %v13595_v46 = vld [vmem:[#allocation12_spill] sm:$0xff] }
 0x229   :  { %13596 = vst [vmem:[#allocation12_spill] sm:$0xff] %v10660_v41 }
 0x22b   :  { %2025 = vmatmul.mubr.f32.gmra.mrb[116].mxu0 %v10644_v38  ;;  %v555_v38 = vld [vmem:[#allocation2 + $0x447] sm:$0xff] }
 0x22c   :  { %2029 = vmatprep.mubr.f32.mxu0 %v13591_v60  ;;  %v10667_v60 = vld [vmem:[#allocation2 + $0x429] sm:$0xff] }
 0x22d   :  { %13597 = vst [vmem:[#allocation14_spill] sm:$0xff] %v10667_v60 }
 0x22f   :  { %6773 = vmatmul.mubr.msk.f32.gmra.mrb[118].mxu0 %vm7360_vm1, %v10648_v10  ;;  %v556_v10 = vld [vmem:[#allocation2 + $0x44f] sm:$0xff] }
 0x230   :  { %6775 = vmatprep.mubr.msk.f32.mxu0 %vm7359_vm0, %v13593_v44  ;;  %v10670_v44 = vld [vmem:[#allocation2 + $0x431] sm:$0xff] }
 0x231   :  { %13598 = vst [vmem:[#allocation15_spill] sm:$0xff] %v10670_v44 }
 0x233   :  { %2035 = vmatmul.mubr.f32.gmra.mrb[120].mxu0 %v10656_v58  ;;  %v1231_v58 = vld [vmem:[%s13507_s1 + $0x308] sm:$0xff] }
 0x234   :  { %2039 = vmatprep.mubr.f32.mxu0 %v13595_v46  ;;  %v1230_v46 = vld [vmem:[%s13507_s1 + $0x300] sm:$0xff] }
 0x235   :  { %v7922_v34 = vpack.c.bf16 %v1231_v58, %v1230_v46  ;;  %v1235_v58 = vld [vmem:[%s13507_s1 + $0x328] sm:$0xff] }
 0x237   :  { %6777 = vmatmul.mubr.msk.f32.gmra.mrb[122].mxu0 %vm7360_vm1, %v10660_v41  ;;  %v622_v41 = vld [vmem:[#allocation2 + $0x30] sm:$0xff] }
 0x238   :  { %6779 = vmatprep.mubr.msk.f32.mxu0 %vm7359_vm0, %v555_v38  ;;  %v621_v38 = vld [vmem:[#allocation2 + $0x28] sm:$0xff] }
 0x23b   :  { %2045 = vmatmul.mubr.f32.gmra.mrb[124].mxu0 %v10667_v60  ;;  %v1233_v60 = vld [vmem:[%s13507_s1 + $0x318] sm:$0xff] }
 0x23c   :  { %2049 = vmatprep.mubr.f32.mxu0 %v556_v10  ;;  %v1232_v10 = vld [vmem:[%s13507_s1 + $0x310] sm:$0xff] }
 0x23f   :  { %6781 = vmatmul.mubr.msk.f32.gmra.mrb[126].mxu0 %vm7360_vm1, %v10670_v44  ;;  %v7925_v44 = vpack.c.bf16 %v1233_v60, %v1232_v10  ;;  %v1237_v60 = vld [vmem:[%s13507_s1 + $0x338] sm:$0xff]  ;;  %v10723_v10 = vld [vmem:[#allocation2 + $0x68] sm:$0xff] }
 0x240   :  { %2119 = vmatprep.mubr.f32.mxu0 %v10211_v16  ;;  %v1234_v16 = vld [vmem:[%s13507_s1 + $0x320] sm:$0xff] }
 0x241   :  { %v7928_v46 = vpack.c.bf16 %v1235_v58, %v1234_v16  ;;  %v1240_v16 = vld [vmem:[%s13507_s1 + $0x350] sm:$0xff]  ;;  %v1241_v58 = vld [vmem:[%s13507_s1 + $0x358] sm:$0xff] }
 0x243   :  { %2120 = vmatmul.mubr.f32.vlgmr.msra.gmra.mrb[0].mxu0 %v621_v38  ;;  %v1239_v38 = vld [vmem:[%s13507_s1 + $0x348] sm:$0xff] }
 0x244   :  { %7923 = vmatpush1.bf16.msra.mxu0 %v7922_v34  ;;  %6783 = vmatprep.mubr.msk.f32.mxu0 %vm7360_vm1, %v10222_v55  ;;  %v10699_v34 = vld [vmem:[#allocation2 + $0x48] sm:$0xff]  ;;  %v1236_v55 = vld [vmem:[%s13507_s1 + $0x330] sm:$0xff] }
 0x245   :  { %7924 = vmatprep.subr.bf16.mxu0 %v13577_v47 }
 0x247   :  { %2125 = vmatmul.mubr.f32.gmra.mrb[2].mxu0 %v622_v41  ;;  %v7931_v41 = vpack.c.bf16 %v1237_v60, %v1236_v55  ;;  %v1242_v55 = vld [vmem:[%s13507_s1 + $0x360] sm:$0xff]  ;;  %v1243_v60 = vld [vmem:[%s13507_s1 + $0x368] sm:$0xff] }
 0x248   :  { %2129 = vmatprep.mubr.f32.mxu0 %v10237_v18  ;;  %7926 = vmatpush1.bf16.msra.mxu0 %v7925_v44  ;;  %v10712_v18 = vld [vmem:[#allocation2 + $0x50] sm:$0xff]  ;;  %v1238_v44 = vld [vmem:[%s13507_s1 + $0x340] sm:$0xff] }
 0x249   :  { %7927 = vmatprep.subr.bf16.mxu0 %v13577_v47 }
 0x24b   :  { %2130 = vmatmul.mubr.f32.gmra.mrb[4].mxu0 %v10699_v34 }
 0x24c   :  { %6785 = vmatprep.mubr.msk.f32.mxu0 %vm7360_vm1, %v10248_v61  ;;  %7929 = vmatpush1.bf16.msra.mxu0 %v7928_v46  ;;  %v7934_v61 = vpack.c.bf16 %v1239_v38, %v1238_v44  ;;  %v7937_v46 = vpack.c.bf16 %v1241_v58, %v1240_v16  ;;  %v1244_v44 = vld [vmem:[%s13507_s1 + $0x370] sm:$0xff]  ;;  %v1245_v38 = vld [vmem:[%s13507_s1 + $0x378] sm:$0xff]  ;;  %v1246_v16 = vld [vmem:[%s13507_s1 + $0x380] sm:$0xff] }
 0x24d   :  { %7930 = vmatprep.subr.bf16.mxu0 %v13577_v47  ;;  %v1247_v58 = vld [vmem:[%s13507_s1 + $0x388] sm:$0xff] }
 0x24f   :  { %2135 = vmatmul.mubr.f32.gmra.mrb[6].mxu0 %v10712_v18 }
 0x250   :  { %2139 = vmatprep.mubr.f32.mxu0 %v10263_v20  ;;  %7932 = vmatpush1.bf16.msra.mxu0 %v7931_v41  ;;  %v10736_v20 = vld [vmem:[#allocation2 + $0x70] sm:$0xff]  ;;  %v10747_v41 = vld [vmem:[#allocation2 + $0x88] sm:$0xff] }
 0x251   :  { %7933 = vmatprep.subr.bf16.mxu0 %v13577_v47 }
 0x253   :  { %2140 = vmatmul.mubr.f32.gmra.mrb[8].mxu0 %v10723_v10 }
 0x254   :  { %6787 = vmatprep.mubr.msk.f32.mxu0 %vm7360_vm1, %v10274_v9  ;;  %7935 = vmatpush1.bf16.msra.mxu0 %v7934_v61  ;;  %v7940_v9 = vpack.c.bf16 %v1243_v60, %v1242_v55  ;;  %v7943_v61 = vpack.c.bf16 %v1245_v38, %v1244_v44  ;;  %v1248_v55 = vld [vmem:[%s13507_s1 + $0x390] sm:$0xff]  ;;  %v1249_v60 = vld [vmem:[%s13507_s1 + $0x398] sm:$0xff]  ;;  %v1250_v44 = vld [vmem:[%s13507_s1 + $0x3a0] sm:$0xff] }
 0x255   :  { %7936 = vmatprep.subr.bf16.mxu0 %v13577_v47  ;;  %v1251_v38 = vld [vmem:[%s13507_s1 + $0x3a8] sm:$0xff] }
 0x257   :  { %2145 = vmatmul.mubr.f32.gmra.mrb[10].mxu0 %v10736_v20 }
 0x258   :  { %2149 = vmatprep.mubr.f32.mxu0 %v10289_v22  ;;  %7938 = vmatpush1.bf16.msra.mxu0 %v7937_v46  ;;  %v10760_v22 = vld [vmem:[#allocation2 + $0x90] sm:$0xff]  ;;  %v10771_v46 = vld [vmem:[#allocation2 + $0xa8] sm:$0xff] }
 0x259   :  { %7939 = vmatprep.subr.bf16.mxu0 %v13577_v47 }
 0x25b   :  { %2150 = vmatmul.mubr.f32.gmra.mrb[12].mxu0 %v10747_v41 }
 0x25c   :  { %6789 = vmatprep.mubr.msk.f32.mxu0 %vm7360_vm1, %v10300_v57  ;;  %7941 = vmatpush1.bf16.msra.mxu0 %v7940_v9  ;;  %v7946_v57 = vpack.c.bf16 %v1247_v58, %v1246_v16  ;;  %v7949_v9 = vpack.c.bf16 %v1249_v60, %v1248_v55  ;;  %v10802_v16 = vld [vmem:[#allocation2 + $0xd0] sm:$0xff] }
 0x25d   :  { %7942 = vmatprep.subr.bf16.mxu0 %v13577_v47  ;;  %v1252_v58 = vld [vmem:[%s13507_s1 + $0x3b0] sm:$0xff] }
 0x25e   :  { %v10830_v60 = vld [vmem:[#allocation2 + $0x110] sm:$0xff] }
 0x25f   :  { %2155 = vmatmul.mubr.f32.gmra.mrb[14].mxu0 %v10760_v22 }
 0x260   :  { %2159 = vmatprep.mubr.f32.mxu0 %v10315_v27  ;;  %7944 = vmatpush1.bf16.msra.mxu0 %v7943_v61  ;;  %v10784_v27 = vld [vmem:[#allocation2 + $0xb0] sm:$0xff]  ;;  %v10795_v61 = vld [vmem:[#allocation2 + $0xc8] sm:$0xff] }
 0x261   :  { %7945 = vmatprep.subr.bf16.mxu0 %v13577_v47 }
 0x263   :  { %2160 = vmatmul.mubr.f32.gmra.mrb[16].mxu0 %v10771_v46 }
 0x264   :  { %6791 = vmatprep.mubr.msk.f32.mxu0 %vm7360_vm1, %v10320_v19  ;;  %7947 = vmatpush1.bf16.msra.mxu0 %v7946_v57  ;;  %v7952_v19 = vpack.c.bf16 %v1251_v38, %v1250_v44  ;;  %v10819_v57 = vld [vmem:[#allocation2 + $0xf0] sm:$0xff] }
 0x265   :  { %7948 = vmatprep.subr.bf16.mxu0 %v13577_v47  ;;  %v10857_v38 = vld [vmem:[#allocation2 + $0x150] sm:$0xff] }
 0x267   :  { %2165 = vmatmul.mubr.f32.gmra.mrb[18].mxu0 %v10784_v27 }
 0x268   :  { %2169 = vmatprep.mubr.f32.mxu0 %v10329_v8  ;;  %7950 = vmatpush1.bf16.msra.mxu0 %v7949_v9  ;;  %v10807_v8 = vld [vmem:[#allocation2 + $0xe8] sm:$0xff] }
 0x269   :  { %7951 = vmatprep.subr.bf16.mxu0 %v13577_v47  ;;  %v1255_v9 = vld [vmem:[%s13507_s1 + $0x3c8] sm:$0xff] }
 0x26b   :  { %2170 = vmatmul.mubr.f32.gmra.mrb[20].mxu0 %v10795_v61 }
 0x26c   :  { %6793 = vmatprep.mubr.msk.f32.mxu0 %vm7360_vm1, %v10339_v17  ;;  %7953 = vmatpush1.bf16.msra.mxu0 %v7952_v19  ;;  %v1253_v17 = vld [vmem:[%s13507_s1 + $0x3b8] sm:$0xff] }
 0x26d   :  { %7954 = vmatprep.subr.bf16.mxu0 %v13577_v47  ;;  %v7955_v55 = vpack.c.bf16 %v1253_v17, %v1252_v58  ;;  %v1257_v19 = vld [vmem:[%s13507_s1 + $0x3d8] sm:$0xff]  ;;  %v10884_v17 = vld [vmem:[#allocation2 + $0x190] sm:$0xff] }
 0x26f   :  { %2175 = vmatmul.mubr.f32.gmra.mrb[22].mxu0 %v10802_v16 }
 0x270   :  { %2179 = vmatprep.mubr.f32.mxu0 %v10348_v24  ;;  %7956 = vmatpush1.bf16.msra.mxu0 %v7955_v55  ;;  %v10824_v24 = vld [vmem:[#allocation2 + $0x108] sm:$0xff] }
 0x271   :  { %7957 = vmatprep.subr.bf16.mxu0 %v13577_v47  ;;  %v1263_v55 = vld [vmem:[%s13507_s1 + $0x408] sm:$0xff] }
 0x273   :  { %2180 = vmatmul.mubr.f32.gmra.mrb[24].mxu0 %v10807_v8 }
 0x274   :  { %6795 = vmatprep.mubr.msk.f32.mxu0 %vm7360_vm1, %v10352_v25  ;;  %v10834_v25 = vld [vmem:[#allocation2 + $0x128] sm:$0xff] }
 0x277   :  { %2185 = vmatmul.mubr.f32.gmra.mrb[26].mxu0 %v10819_v57 }
 0x278   :  { %2189 = vmatprep.mubr.f32.mxu0 %v10360_v26  ;;  %v1254_v26 = vld [vmem:[%s13507_s1 + $0x3c0] sm:$0xff] }
 0x279   :  { %v7958_v44 = vpack.c.bf16 %v1255_v9, %v1254_v26  ;;  %v10906_v9 = vld [vmem:[#allocation2 + $0x1b0] sm:$0xff] }
 0x27b   :  { %2190 = vmatmul.mubr.f32.gmra.mrb[28].mxu0 %v10824_v24 }
 0x27c   :  { %6797 = vmatprep.mubr.msk.f32.mxu0 %vm7360_vm1, %v10370_v51  ;;  %v10846_v51 = vld [vmem:[#allocation2 + $0x130] sm:$0xff]  ;;  %7959 = vmatpush1.bf16.msra.mxu0 %v7958_v44 }
 0x27d   :  { %7960 = vmatprep.subr.bf16.mxu0 %v13577_v47 }
 0x27f   :  { %2195 = vmatmul.mubr.f32.gmra.mrb[30].mxu0 %v10830_v60 }
 0x280   :  { %2199 = vmatprep.mubr.f32.mxu0 %v10379_v52  ;;  %v10851_v52 = vld [vmem:[#allocation2 + $0x148] sm:$0xff] }
 0x283   :  { %2200 = vmatmul.mubr.f32.gmra.mrb[32].mxu0 %v10834_v25 }
 0x284   :  { %6799 = vmatprep.mubr.msk.f32.mxu0 %vm7360_vm1, %v10383_v53  ;;  %v10861_v53 = vld [vmem:[#allocation2 + $0x168] sm:$0xff] }
 0x287   :  { %2205 = vmatmul.mubr.f32.gmra.mrb[34].mxu0 %v10846_v51 }
 0x288   :  { %2209 = vmatprep.mubr.f32.mxu0 %v10391_v42  ;;  %v1256_v42 = vld [vmem:[%s13507_s1 + $0x3d0] sm:$0xff] }
 0x289   :  { %v7961_v58 = vpack.c.bf16 %v1257_v19, %v1256_v42  ;;  %v1264_v42 = vld [vmem:[%s13507_s1 + $0x410] sm:$0xff]  ;;  %v1265_v19 = vld [vmem:[%s13507_s1 + $0x418] sm:$0xff] }
 0x28b   :  { %2210 = vmatmul.mubr.f32.gmra.mrb[36].mxu0 %v10851_v52 }
 0x28c   :  { %6801 = vmatprep.mubr.msk.f32.mxu0 %vm7360_vm1, %v10401_v29  ;;  %v10873_v29 = vld [vmem:[#allocation2 + $0x170] sm:$0xff]  ;;  %7962 = vmatpush1.bf16.msra.mxu0 %v7961_v58  ;;  %v7973_v58 = vpack.c.bf16 %v1265_v19, %v1264_v42  ;;  %v10939_v42 = vld [vmem:[#allocation2 + $0x1e8] sm:$0xff] }
 0x28d   :  { %7963 = vmatprep.subr.bf16.mxu0 %v13577_v47  ;;  %v1271_v19 = vld [vmem:[%s13507_s1 + $0x448] sm:$0xff] }
 0x28f   :  { %2215 = vmatmul.mubr.f32.gmra.mrb[38].mxu0 %v10857_v38 }
 0x290   :  { %2219 = vmatprep.mubr.f32.mxu0 %v10410_v12  ;;  %v10878_v12 = vld [vmem:[#allocation2 + $0x188] sm:$0xff] }
 0x293   :  { %2220 = vmatmul.mubr.f32.gmra.mrb[40].mxu0 %v10861_v53 }
 0x294   :  { %6803 = vmatprep.mubr.msk.f32.mxu0 %vm7360_vm1, %v10414_v14  ;;  %v10888_v14 = vld [vmem:[#allocation2 + $0x1a8] sm:$0xff] }
 0x297   :  { %2225 = vmatmul.mubr.f32.gmra.mrb[42].mxu0 %v10873_v29 }
 0x298   :  { %2229 = vmatprep.mubr.f32.mxu0 %v10422_v36  ;;  %v1262_v36 = vld [vmem:[%s13507_s1 + $0x400] sm:$0xff] }
 0x299   :  { %v7969_v26 = vpack.c.bf16 %v1263_v55, %v1262_v36  ;;  %v1266_v36 = vld [vmem:[%s13507_s1 + $0x420] sm:$0xff]  ;;  %v1267_v55 = vld [vmem:[%s13507_s1 + $0x428] sm:$0xff] }
 0x29b   :  { %2230 = vmatmul.mubr.f32.gmra.mrb[44].mxu0 %v10878_v12  ;;  %7970 = vmatprep.subr.bf16.mxu1 %v7969_v26 }
 0x29c   :  { %6805 = vmatprep.mubr.msk.f32.mxu0 %vm7360_vm1, %v10432_v21  ;;  %v1258_v21 = vld [vmem:[%s13507_s1 + $0x3e0] sm:$0xff]  ;;  %7972 = vmatpush3.bf16.msra.mxu1 %v7969_v26  ;;  %v7977_v26 = vpack.c.bf16 %v1267_v55, %v1266_v36  ;;  %v1260_v36 = vld [vmem:[%s13507_s1 + $0x3f0] sm:$0xff] }
 0x29d   :  { %7974 = vmatprep.subr.bf16.mxu1 %v7973_v58  ;;  %v10957_v55 = vld [vmem:[#allocation2 + $0x1f0] sm:$0xff] }
 0x29f   :  { %2235 = vmatmul.mubr.f32.gmra.mrb[46].mxu0 %v10884_v17 }
 0x2a0   :  { %2239 = vmatprep.mubr.f32.mxu0 %v10441_v4  ;;  %v1259_v4 = vld [vmem:[%s13507_s1 + $0x3e8] sm:$0xff]  ;;  %7976 = vmatpush3.bf16.msra.mxu1 %v7973_v58 }
 0x2a1   :  { %v7964_v44 = vpack.c.bf16 %v1259_v4, %v1258_v21  ;;  %7978 = vmatprep.subr.bf16.mxu1 %v7977_v26  ;;  %v1268_v21 = vld [vmem:[%s13507_s1 + $0x430] sm:$0xff]  ;;  %v1269_v4 = vld [vmem:[%s13507_s1 + $0x438] sm:$0xff] }
 0x2a3   :  { %2240 = vmatmul.mubr.f32.gmra.mrb[48].mxu0 %v10888_v14 }
 0x2a4   :  { %6807 = vmatprep.mubr.msk.f32.mxu0 %vm7360_vm1, %v10445_v39  ;;  %7965 = vmatpush1.bf16.msra.mxu0 %v7964_v44  ;;  %v10916_v39 = vld [vmem:[#allocation2 + $0x1c8] sm:$0xff]  ;;  %v7981_v44 = vpack.c.bf16 %v1269_v4, %v1268_v21  ;;  %v1272_v21 = vld [vmem:[%s13507_s1 + $0x450] sm:$0xff]  ;;  %v1273_v4 = vld [vmem:[%s13507_s1 + $0x458] sm:$0xff] }
 0x2a5   :  { %7966 = vmatprep.subr.bf16.mxu0 %v13577_v47  ;;  %7980 = vmatpush3.bf16.msra.mxu1 %v7977_v26 }
 0x2a6   :  { %7982 = vmatprep.subr.bf16.mxu1 %v7981_v44 }
 0x2a7   :  { %2245 = vmatmul.mubr.f32.gmra.mrb[50].mxu0 %v10906_v9 }
 0x2a8   :  { %2249 = vmatprep.mubr.f32.mxu0 %v10453_v32  ;;  %v10929_v32 = vld [vmem:[#allocation2 + $0x1d0] sm:$0xff] }
 0x2a9   :  { %7984 = vmatpush3.bf16.msra.mxu1 %v7981_v44  ;;  %v10965_v44 = vld [vmem:[#allocation2 + $0x209] sm:$0xff] }
 0x2ab   :  { %2250 = vmatmul.mubr.f32.gmra.mrb[52].mxu0 %v10916_v39 }
 0x2ac   :  { %6809 = vmatprep.mubr.msk.f32.mxu0 %vm7360_vm1, %v10469_v2  ;;  %v1270_v2 = vld [vmem:[%s13507_s1 + $0x440] sm:$0xff] }
 0x2ad   :  { %v7985_v58 = vpack.c.bf16 %v1271_v19, %v1270_v2  ;;  %v7989_v2 = vpack.c.bf16 %v1273_v4, %v1272_v21  ;;  %v1275_v19 = vld [vmem:[%s13507_s1 + $0x468] sm:$0xff]  ;;  %v1277_v21 = vld [vmem:[%s13507_s1 + $0x478] sm:$0xff] }
 0x2af   :  { %2255 = vmatmul.mubr.f32.gmra.mrb[54].mxu0 %v10929_v32  ;;  %7986 = vmatprep.subr.bf16.mxu1 %v7985_v58 }
 0x2b0   :  { %2259 = vmatprep.mubr.f32.mxu0 %v10483_v0  ;;  %v1261_v0 = vld [vmem:[%s13507_s1 + $0x3f8] sm:$0xff]  ;;  %7988 = vmatpush3.bf16.msra.mxu1 %v7985_v58 }
 0x2b1   :  { %v7967_v26 = vpack.c.bf16 %v1261_v0, %v1260_v36  ;;  %7990 = vmatprep.subr.bf16.mxu1 %v7989_v2  ;;  %v10975_v58 = vld [vmem:[#allocation2 + $0x211] sm:$0xff]  ;;  %v13599_v0 = vld [vmem:[#allocation8_spill] sm:$0xff] }
 0x2b3   :  { %2260 = vmatmul.mubr.f32.gmra.mrb[56].mxu0 %v10939_v42 }
 0x2b4   :  { %6811 = vmatprep.mubr.msk.f32.mxu0 %vm7360_vm1, %v10486_v33  ;;  %7968 = vmatpush1.bf16.msra.mxu0 %v7967_v26  ;;  %v1274_v33 = vld [vmem:[%s13507_s1 + $0x460] sm:$0xff]  ;;  %v1276_v26 = vld [vmem:[%s13507_s1 + $0x470] sm:$0xff] }
 0x2b5   :  { %7992 = vmatpush3.bf16.msra.mxu1 %v7989_v2  ;;  %v7993_v36 = vpack.c.bf16 %v1275_v19, %v1274_v33  ;;  %v7997_v4 = vpack.c.bf16 %v1277_v21, %v1276_v26  ;;  %v13600_v2 = vld [vmem:[#allocation10_spill] sm:$0xff]  ;;  %v653_v33 = vld [vmem:[#allocation2 + $0x268] sm:$0xff] }
 0x2b6   :  { %v1006_v19 = vld [vmem:[#allocation2 + $0x49] sm:$0xff]  ;;  %v1009_v21 = vld [vmem:[#allocation2 + $0x71] sm:$0xff] }
 0x2b7   :  { %2265 = vmatmul.mubr.f32.gmra.mrb[58].mxu0 %v10957_v55  ;;  %7994 = vmatprep.subr.bf16.mxu1 %v7993_v36  ;;  %v1008_v26 = vld [vmem:[#allocation2 + $0x69] sm:$0xff] }
 0x2b8   :  { %2269 = vmatprep.mubr.f32.mxu0 %v10965_v44  ;;  %7553 = vmatprep.mubr.f32.mxu1 %v1006_v19  ;;  %v1013_v19 = vld [vmem:[#allocation2 + $0xb1] sm:$0xff] }
 0x2b9   :  { %7996 = vmatpush3.bf16.msra.mxu1 %v7993_v36  ;;  %v1007_v36 = vld [vmem:[#allocation2 + $0x51] sm:$0xff] }
 0x2ba   :  { %7998 = vmatprep.subr.bf16.mxu1 %v7997_v4 }
 0x2bb   :  { %2270 = vmatmul.mubr.f32.gmra.mrb[60].mxu0 %v13599_v0  ;;  %v654_v0 = vld [vmem:[#allocation2 + $0x270] sm:$0xff] }
 0x2bc   :  { %6813 = vmatprep.mubr.msk.f32.mxu0 %vm7360_vm1, %v10975_v58 }
 0x2bd   :  { %8000 = vmatpush3.bf16.msra.mxu1 %v7997_v4  ;;  %v11004_v4 = vld [vmem:[#allocation2 + $0x290] sm:$0xff] }
 0x2be   :  { %8001 = vmatprep.subr.bf16.mxu1 %v13577_v47 }
 0x2bf   :  { %2275 = vmatmul.mubr.f32.gmra.mrb[62].mxu0 %v13600_v2  ;;  %v1011_v2 = vld [vmem:[#allocation2 + $0x91] sm:$0xff] }
 0x2c0   :  { %2279 = vmatprep.mubr.f32.mxu0 %v10500_v63  ;;  %7554 = vmatmul.mubr.msk.f32.vlgmr.msra.gmra.mrb[0].mxu1 %vm7360_vm1, %v1007_v36  ;;  %v10996_v63 = vld [vmem:[#allocation2 + $0x288] sm:$0xff] }
 0x2c1   :  { %7556 = vmatprep.mubr.f32.mxu1 %v1008_v26  ;;  %v1014_v36 = vld [vmem:[#allocation2 + $0xc9] sm:$0xff] }
 0x2c2   :  { %v1016_v26 = vld [vmem:[#allocation2 + $0xe9] sm:$0xff] }
 0x2c3   :  { %2280 = vmatmul.mubr.f32.gmra.mrb[64].mxu0 %v653_v33  ;;  %v1012_v33 = vld [vmem:[#allocation2 + $0xa9] sm:$0xff] }
 0x2c4   :  { %6815 = vmatprep.mubr.msk.f32.mxu0 %vm7360_vm1, %v10504_v50  ;;  %7557 = vmatmul.mubr.msk.f32.gmra.mrb[2].mxu1 %vm7360_vm1, %v1009_v21  ;;  %v11008_v50 = vld [vmem:[#allocation2 + $0x2a8] sm:$0xff]  ;;  %v1017_v21 = vld [vmem:[#allocation2 + $0xf1] sm:$0xff] }
 0x2c7   :  { %2285 = vmatmul.mubr.f32.gmra.mrb[66].mxu0 %v654_v0  ;;  %v1015_v0 = vld [vmem:[#allocation2 + $0xd1] sm:$0xff] }
 0x2c8   :  { %2289 = vmatprep.mubr.f32.mxu0 %v10512_v59  ;;  %v1010_v59 = vld [vmem:[#allocation2 + $0x89] sm:$0xff] }
 0x2c9   :  { %7559 = vmatprep.mubr.f32.mxu1 %v1010_v59  ;;  %v1018_v59 = vld [vmem:[#allocation2 + $0x109] sm:$0xff] }
 0x2ca   :  { %7560 = vmatmul.mubr.msk.f32.gmra.mrb[4].mxu1 %vm7360_vm1, %v1011_v2  ;;  %v1019_v2 = vld [vmem:[#allocation2 + $0x111] sm:$0xff] }
 0x2cb   :  { %2290 = vmatmul.mubr.f32.gmra.mrb[68].mxu0 %v10996_v63  ;;  %7562 = vmatprep.mubr.f32.mxu1 %v1012_v33  ;;  %v1020_v33 = vld [vmem:[#allocation2 + $0x129] sm:$0xff] }
 0x2cc   :  { %6817 = vmatprep.mubr.msk.f32.mxu0 %vm7360_vm1, %v10516_v13  ;;  %v11016_v13 = vld [vmem:[#allocation2 + $0x2b0] sm:$0xff] }
 0x2ce   :  { %7563 = vmatmul.mubr.msk.f32.gmra.mrb[6].mxu1 %vm7360_vm1, %v1013_v19  ;;  %v1021_v19 = vld [vmem:[#allocation2 + $0x131] sm:$0xff] }
 0x2cf   :  { %2295 = vmatmul.mubr.f32.gmra.mrb[70].mxu0 %v11004_v4  ;;  %7565 = vmatprep.mubr.f32.mxu1 %v1014_v36  ;;  %v1022_v36 = vld [vmem:[#allocation2 + $0x149] sm:$0xff] }
 0x2d0   :  { %2299 = vmatprep.mubr.f32.mxu0 %v10524_v5  ;;  %v11020_v5 = vld [vmem:[#allocation2 + $0x2c8] sm:$0xff] }
 0x2d2   :  { %7566 = vmatmul.mubr.msk.f32.gmra.mrb[8].mxu1 %vm7360_vm1, %v1015_v0  ;;  %v1023_v0 = vld [vmem:[#allocation2 + $0x151] sm:$0xff] }
 0x2d3   :  { %2300 = vmatmul.mubr.f32.gmra.mrb[72].mxu0 %v11008_v50  ;;  %7568 = vmatprep.mubr.f32.mxu1 %v1016_v26  ;;  %v1024_v26 = vld [vmem:[#allocation2 + $0x169] sm:$0xff] }
 0x2d4   :  { %6819 = vmatprep.mubr.msk.f32.mxu0 %vm7360_vm1, %v10528_v48  ;;  %v11028_v48 = vld [vmem:[#allocation2 + $0x2d0] sm:$0xff] }
 0x2d6   :  { %7569 = vmatmul.mubr.msk.f32.gmra.mrb[10].mxu1 %vm7360_vm1, %v1017_v21  ;;  %v1025_v21 = vld [vmem:[#allocation2 + $0x171] sm:$0xff] }
 0x2d7   :  { %2305 = vmatmul.mubr.f32.gmra.mrb[74].mxu0 %v11016_v13  ;;  %7571 = vmatprep.mubr.f32.mxu1 %v1018_v59  ;;  %v1026_v59 = vld [vmem:[#allocation2 + $0x189] sm:$0xff] }
 0x2d8   :  { %2309 = vmatprep.mubr.f32.mxu0 %v10536_v56  ;;  %v11032_v56 = vld [vmem:[#allocation2 + $0x2e8] sm:$0xff] }
 0x2da   :  { %7572 = vmatmul.mubr.msk.f32.gmra.mrb[12].mxu1 %vm7360_vm1, %v1019_v2  ;;  %v1027_v2 = vld [vmem:[#allocation2 + $0x191] sm:$0xff] }
 0x2db   :  { %2310 = vmatmul.mubr.f32.gmra.mrb[76].mxu0 %v11020_v5  ;;  %7574 = vmatprep.mubr.f32.mxu1 %v1020_v33  ;;  %v1028_v33 = vld [vmem:[#allocation2 + $0x1a9] sm:$0xff] }
 0x2dc   :  { %6821 = vmatprep.mubr.msk.f32.mxu0 %vm7360_vm1, %v10540_v62  ;;  %v11040_v62 = vld [vmem:[#allocation2 + $0x2f0] sm:$0xff] }
 0x2de   :  { %7575 = vmatmul.mubr.msk.f32.gmra.mrb[14].mxu1 %vm7360_vm1, %v1021_v19  ;;  %v1029_v19 = vld [vmem:[#allocation2 + $0x1b1] sm:$0xff] }
 0x2df   :  { %2315 = vmatmul.mubr.f32.gmra.mrb[78].mxu0 %v11028_v48  ;;  %7577 = vmatprep.mubr.f32.mxu1 %v1022_v36  ;;  %v13601_v36 = vld [vmem:[#allocation7_spill] sm:$0xff] }
 0x2e0   :  { %2319 = vmatprep.mubr.f32.mxu0 %v10548_v6  ;;  %v11044_v6 = vld [vmem:[#allocation2 + $0x308] sm:$0xff] }
 0x2e2   :  { %7578 = vmatmul.mubr.msk.f32.gmra.mrb[16].mxu1 %vm7360_vm1, %v1023_v0  ;;  %v4317_v0 = vld [vmem:[%s13509_s3] sm:$0xff] }
 0x2e3   :  { %2320 = vmatmul.mubr.f32.gmra.mrb[80].mxu0 %v11032_v56  ;;  %7580 = vmatprep.mubr.f32.mxu1 %v1024_v26  ;;  %v4318_v26 = vld [vmem:[%s13509_s3 + $0x8] sm:$0xff] }
 0x2e4   :  { %6823 = vmatprep.mubr.msk.f32.mxu0 %vm7360_vm1, %v10552_v11  ;;  %v11052_v11 = vld [vmem:[#allocation2 + $0x310] sm:$0xff] }
 0x2e6   :  { %7581 = vmatmul.mubr.msk.f32.gmra.mrb[18].mxu1 %vm7360_vm1, %v1025_v21  ;;  %v8002_v21 = vpack.c.bf16 %v4318_v26, %v4317_v0  ;;  %v679_v0 = vld [vmem:[#allocation2 + $0x408] sm:$0xff] }
 0x2e7   :  { %2325 = vmatmul.mubr.f32.gmra.mrb[82].mxu0 %v11040_v62  ;;  %7583 = vmatprep.mubr.f32.mxu1 %v1026_v59  ;;  %v1030_v59 = vld [vmem:[#allocation2 + $0x1c9] sm:$0xff] }
 0x2e8   :  { %2329 = vmatprep.mubr.f32.mxu0 %v10560_v23  ;;  %v11056_v23 = vld [vmem:[#allocation2 + $0x328] sm:$0xff]  ;;  %8003 = vmatpush1.bf16.msra.mxu1 %v8002_v21 }
 0x2e9   :  { %8004 = vmatprep.subr.bf16.mxu1 %v13577_v47  ;;  %v1032_v21 = vld [vmem:[#allocation2 + $0x1e9] sm:$0xff] }
 0x2ea   :  { %7584 = vmatmul.mubr.msk.f32.gmra.mrb[20].mxu1 %vm7360_vm1, %v1027_v2  ;;  %v1031_v2 = vld [vmem:[#allocation2 + $0x1d1] sm:$0xff] }
 0x2eb   :  { %2330 = vmatmul.mubr.f32.gmra.mrb[84].mxu0 %v11044_v6  ;;  %7586 = vmatprep.mubr.f32.mxu1 %v1028_v33  ;;  %v678_v33 = vld [vmem:[#allocation2 + $0x3f0] sm:$0xff] }
 0x2ec   :  { %6825 = vmatprep.mubr.msk.f32.mxu0 %vm7360_vm1, %v10564_v37  ;;  %v11064_v37 = vld [vmem:[#allocation2 + $0x330] sm:$0xff] }
 0x2ee   :  { %7587 = vmatmul.mubr.msk.f32.gmra.mrb[22].mxu1 %vm7360_vm1, %v1029_v19  ;;  %v4319_v19 = vld [vmem:[%s13509_s3 + $0x10] sm:$0xff] }
 0x2ef   :  { %2335 = vmatmul.mubr.f32.gmra.mrb[86].mxu0 %v11052_v11  ;;  %7589 = vmatprep.mubr.f32.mxu1 %v1030_v59  ;;  %v1033_v59 = vld [vmem:[#allocation2 + $0x1f1] sm:$0xff] }
 0x2f0   :  { %2339 = vmatprep.mubr.f32.mxu0 %v10572_v45  ;;  %v11068_v45 = vld [vmem:[#allocation2 + $0x348] sm:$0xff] }
 0x2f2   :  { %7590 = vmatmul.mubr.msk.f32.gmra.mrb[24].mxu1 %vm7360_vm1, %v1031_v2  ;;  %v13604_v2 = vld [vmem:[#allocation12_spill] sm:$0xff] }
 0x2f3   :  { %2340 = vmatmul.mubr.f32.gmra.mrb[88].mxu0 %v11056_v23  ;;  %7592 = vmatprep.mubr.f32.mxu1 %v1032_v21  ;;  %v11168_v21 = vld [vmem:[#allocation2 + $0x449] sm:$0xff] }
 0x2f4   :  { %6827 = vmatprep.mubr.msk.f32.mxu0 %vm7360_vm1, %v10576_v54  ;;  %v11076_v54 = vld [vmem:[#allocation2 + $0x350] sm:$0xff] }
 0x2f6   :  { %7593 = vmatmul.mubr.msk.f32.gmra.mrb[26].mxu1 %vm7360_vm1, %v1033_v59  ;;  %v4324_v59 = vld [vmem:[%s13509_s3 + $0x38] sm:$0xff] }
 0x2f7   :  { %2345 = vmatmul.mubr.f32.gmra.mrb[90].mxu0 %v11064_v37  ;;  %7595 = vmatprep.mubr.f32.mxu1 %v10965_v44  ;;  %v13606_v44 = vld [vmem:[#allocation15_spill] sm:$0xff] }
 0x2f8   :  { %2349 = vmatprep.mubr.f32.mxu0 %v10584_v1  ;;  %v11080_v1 = vld [vmem:[#allocation2 + $0x368] sm:$0xff] }
 0x2fa   :  { %7596 = vmatmul.mubr.msk.f32.gmra.mrb[28].mxu1 %vm7360_vm1, %v10975_v58  ;;  %v4323_v58 = vld [vmem:[%s13509_s3 + $0x30] sm:$0xff] }
 0x2fb   :  { %2350 = vmatmul.mubr.f32.gmra.mrb[92].mxu0 %v11068_v45 }
 0x2fc   :  { %6829 = vmatprep.mubr.msk.f32.mxu0 %vm7360_vm1, %v10588_v3  ;;  %v11088_v3 = vld [vmem:[#allocation2 + $0x370] sm:$0xff] }
 0x2ff   :  { %2355 = vmatmul.mubr.f32.gmra.mrb[94].mxu0 %v11076_v54 }
 0x300   :  { %2359 = vmatprep.mubr.f32.mxu0 %v10596_v7  ;;  %v11092_v7 = vld [vmem:[#allocation2 + $0x388] sm:$0xff] }
 0x303   :  { %2360 = vmatmul.mubr.f32.gmra.mrb[96].mxu0 %v11080_v1 }
 0x304   :  { %6831 = vmatprep.mubr.msk.f32.mxu0 %vm7360_vm1, %v10600_v28  ;;  %v11100_v28 = vld [vmem:[#allocation2 + $0x390] sm:$0xff] }
 0x307   :  { %2365 = vmatmul.mubr.f32.gmra.mrb[98].mxu0 %v11088_v3 }
 0x308   :  { %2369 = vmatprep.mubr.f32.mxu0 %v10608_v15  ;;  %v11104_v15 = vld [vmem:[#allocation2 + $0x3a8] sm:$0xff] }
 0x30b   :  { %2370 = vmatmul.mubr.f32.gmra.mrb[100].mxu0 %v11092_v7 }
 0x30c   :  { %6833 = vmatprep.mubr.msk.f32.mxu0 %vm7360_vm1, %v10612_v30  ;;  %v11112_v30 = vld [vmem:[#allocation2 + $0x3b0] sm:$0xff] }
 0x30f   :  { %2375 = vmatmul.mubr.f32.gmra.mrb[102].mxu0 %v11100_v28 }
 0x310   :  { %2379 = vmatprep.mubr.f32.mxu0 %v10620_v31  ;;  %v11116_v31 = vld [vmem:[#allocation2 + $0x3c8] sm:$0xff] }
 0x313   :  { %2380 = vmatmul.mubr.f32.gmra.mrb[104].mxu0 %v11104_v15 }
 0x314   :  { %6835 = vmatprep.mubr.msk.f32.mxu0 %vm7360_vm1, %v10624_v40  ;;  %v11124_v40 = vld [vmem:[#allocation2 + $0x3d0] sm:$0xff] }
 0x317   :  { %2385 = vmatmul.mubr.f32.gmra.mrb[106].mxu0 %v11112_v30 }
 0x318   :  { %2389 = vmatprep.mubr.f32.mxu0 %v10632_v49  ;;  %v677_v49 = vld [vmem:[#allocation2 + $0x3e8] sm:$0xff] }
 0x31b   :  { %2390 = vmatmul.mubr.f32.gmra.mrb[108].mxu0 %v11116_v31 }
 0x31c   :  { %6837 = vmatprep.mubr.msk.f32.mxu0 %vm7360_vm1, %v10636_v35  ;;  %v13602_v35 = vld [vmem:[#allocation9_spill] sm:$0xff] }
 0x31f   :  { %2395 = vmatmul.mubr.f32.gmra.mrb[110].mxu0 %v11124_v40 }
 0x320   :  { %2399 = vmatprep.mubr.f32.mxu0 %v13601_v36  ;;  %v4320_v36 = vld [vmem:[%s13509_s3 + $0x18] sm:$0xff] }
 0x321   :  { %v8005_v26 = vpack.c.bf16 %v4320_v36, %v4319_v19  ;;  %v4322_v19 = vld [vmem:[%s13509_s3 + $0x28] sm:$0xff]  ;;  %v13605_v36 = vld [vmem:[#allocation14_spill] sm:$0xff] }
 0x323   :  { %2400 = vmatmul.mubr.f32.gmra.mrb[112].mxu0 %v677_v49  ;;  %v13603_v49 = vld [vmem:[#allocation11_spill] sm:$0xff]  ;;  %8006 = vmatpush1.bf16.msra.mxu1 %v8005_v26  ;;  %v682_v26 = vld [vmem:[#allocation2 + $0x430] sm:$0xff] }
 0x324   :  { %6839 = vmatprep.mubr.msk.f32.mxu0 %vm7360_vm1, %v13602_v35  ;;  %v680_v35 = vld [vmem:[#allocation2 + $0x410] sm:$0xff]  ;;  %8007 = vmatprep.subr.bf16.mxu1 %v13577_v47 }
 0x327   :  { %2405 = vmatmul.mubr.f32.gmra.mrb[114].mxu0 %v678_v33  ;;  %v4321_v33 = vld [vmem:[%s13509_s3 + $0x20] sm:$0xff] }
 0x328   :  { %2409 = vmatprep.mubr.f32.mxu0 %v13603_v49  ;;  %v681_v49 = vld [vmem:[#allocation2 + $0x428] sm:$0xff] }
 0x32b   :  { %2410 = vmatmul.mubr.f32.gmra.mrb[116].mxu0 %v679_v0  ;;  %v8008_v0 = vpack.c.bf16 %v4322_v19, %v4321_v33  ;;  %v1036_v33 = vld [vmem:[#allocation2 + $0x229] sm:$0xff] }
 0x32c   :  { %6841 = vmatprep.mubr.msk.f32.mxu0 %vm7360_vm1, %v13604_v2  ;;  %v8011_v2 = vpack.c.bf16 %v4324_v59, %v4323_v58  ;;  %v13607_v19 = vld [vmem:[#allocation5_spill] sm:$0xff]  ;;  %7598 = vmatprep.mubr.f32.mxu1 %v1036_v33 }
 0x32d   :  { %8009 = vmatpush1.bf16.msra.mxu1 %v8008_v0  ;;  %v4325_v0 = vld [vmem:[%s13509_s3 + $0x40] sm:$0xff]  ;;  %v1038_v59 = vld [vmem:[#allocation2 + $0x289] sm:$0xff] }
 0x32e   :  { %8010 = vmatprep.subr.bf16.mxu1 %v13577_v47 }
 0x32f   :  { %2415 = vmatmul.mubr.f32.gmra.mrb[118].mxu0 %v680_v35  ;;  %v11177_v35 = vld [vmem:[#allocation2 + $0x451] sm:$0xff] }
 0x330   :  { %2419 = vmatprep.mubr.f32.mxu0 %v13605_v36  ;;  %v1037_v36 = vld [vmem:[#allocation2 + $0x231] sm:$0xff] }
 0x331   :  { %8012 = vmatpush1.bf16.msra.mxu1 %v8011_v2  ;;  %v1039_v2 = vld [vmem:[#allocation2 + $0x291] sm:$0xff] }
 0x332   :  { %7599 = vmatmul.mubr.msk.f32.gmra.mrb[30].mxu1 %vm7360_vm1, %v1037_v36  ;;  %8013 = vmatprep.subr.bf16.mxu1 %v13577_v47  ;;  %v4328_v36 = vld [vmem:[%s13509_s3 + $0x58] sm:$0xff] }
 0x333   :  { %2420 = vmatmul.mubr.f32.gmra.mrb[120].mxu0 %v681_v49  ;;  %v13608_v49 = vld [vmem:[#allocation6_spill] sm:$0xff]  ;;  %7601 = vmatprep.mubr.f32.mxu1 %v1038_v59  ;;  %v818_v59 = vld [vmem:[#allocation2 + $0x87] sm:$0xff] }
 0x334   :  { %6843 = vmatprep.mubr.msk.f32.mxu0 %vm7360_vm1, %v13606_v44  ;;  %v4326_v44 = vld [vmem:[%s13509_s3 + $0x48] sm:$0xff] }
 0x335   :  { %v8014_v58 = vpack.c.bf16 %v4326_v44, %v4325_v0  ;;  %v1040_v44 = vld [vmem:[#allocation2 + $0x2a9] sm:$0xff] }
 0x336   :  { %7602 = vmatmul.mubr.msk.f32.gmra.mrb[32].mxu1 %vm7360_vm1, %v1039_v2 }
 0x337   :  { %2425 = vmatmul.mubr.f32.gmra.mrb[122].mxu0 %v682_v26  ;;  %v814_v26 = vld [vmem:[#allocation2 + $0x47] sm:$0xff]  ;;  %8015 = vmatpush1.bf16.msra.mxu1 %v8014_v58 }
 0x338   :  { %2429 = vmatprep.mubr.f32.mxu0 %v11168_v21  ;;  %8016 = vmatprep.subr.bf16.mxu1 %v13577_v47  ;;  %v4330_v58 = vld [vmem:[%s13509_s3 + $0x68] sm:$0xff] }
 0x339   :  { %7604 = vmatprep.mubr.f32.mxu1 %v1040_v44  ;;  %v1044_v44 = vld [vmem:[#allocation2 + $0x2e9] sm:$0xff] }
 0x33b   :  { %2430 = vmatmul.mubr.f32.gmra.mrb[124].mxu0 %v13607_v19  ;;  %v815_v19 = vld [vmem:[#allocation2 + $0x4f] sm:$0xff] }
 0x33c   :  { %6845 = vmatprep.mubr.msk.f32.mxu0 %vm7360_vm1, %v11177_v35 }
 0x33f   :  { %2435 = vmatmul.mubr.f32.gmra.mrb[126].mxu0 %v13608_v49  ;;  %v816_v49 = vld [vmem:[#allocation2 + $0x67] sm:$0xff] }
 0x340   :  { %2504 = vmatprep.mubr.f32.mxu0 %v10699_v34  ;;  %v4327_v34 = vld [vmem:[%s13509_s3 + $0x50] sm:$0xff] }
 0x341   :  { %v8017_v0 = vpack.c.bf16 %v4328_v36, %v4327_v34  ;;  %v819_v34 = vld [vmem:[#allocation2 + $0x8f] sm:$0xff]  ;;  %v4332_v36 = vld [vmem:[%s13509_s3 + $0x78] sm:$0xff] }
 0x343   :  { %6847 = vmatmul.mubr.msk.f32.vlgmr.msra.gmra.mrb[0].mxu0 %vm7359_vm0, %v814_v26  ;;  %8018 = vmatpush1.bf16.msra.mxu1 %v8017_v0  ;;  %v817_v26 = vld [vmem:[#allocation2 + $0x6f] sm:$0xff] }
 0x344   :  { %2509 = vmatprep.mubr.f32.mxu0 %v10712_v18  ;;  %v1041_v18 = vld [vmem:[#allocation2 + $0x2b1] sm:$0xff]  ;;  %8019 = vmatprep.subr.bf16.mxu1 %v13577_v47 }
 0x345   :  { %7605 = vmatmul.mubr.msk.f32.gmra.mrb[34].mxu1 %vm7360_vm1, %v1041_v18  ;;  %v821_v18 = vld [vmem:[#allocation2 + $0xaf] sm:$0xff] }
 0x347   :  { %2510 = vmatmul.mubr.f32.gmra.mrb[2].mxu0 %v815_v19  ;;  %v1042_v19 = vld [vmem:[#allocation2 + $0x2c9] sm:$0xff] }
 0x348   :  { %2514 = vmatprep.mubr.f32.mxu0 %v10723_v10  ;;  %v4329_v10 = vld [vmem:[%s13509_s3 + $0x60] sm:$0xff]  ;;  %7607 = vmatprep.mubr.f32.mxu1 %v1042_v19  ;;  %v4336_v19 = vld [vmem:[%s13509_s3 + $0x98] sm:$0xff] }
 0x349   :  { %v8020_v2 = vpack.c.bf16 %v4330_v58, %v4329_v10  ;;  %v822_v10 = vld [vmem:[#allocation2 + $0xc7] sm:$0xff] }
 0x34b   :  { %6849 = vmatmul.mubr.msk.f32.gmra.mrb[4].mxu0 %vm7359_vm0, %v816_v49  ;;  %8021 = vmatpush1.bf16.msra.mxu1 %v8020_v2  ;;  %v820_v49 = vld [vmem:[#allocation2 + $0xa7] sm:$0xff]  ;;  %v823_v2 = vld [vmem:[#allocation2 + $0xcf] sm:$0xff] }
 0x34c   :  { %2519 = vmatprep.mubr.f32.mxu0 %v10736_v20  ;;  %v1043_v20 = vld [vmem:[#allocation2 + $0x2d1] sm:$0xff]  ;;  %8022 = vmatprep.subr.bf16.mxu1 %v13577_v47 }
 0x34d   :  { %7608 = vmatmul.mubr.msk.f32.gmra.mrb[36].mxu1 %vm7360_vm1, %v1043_v20  ;;  %v824_v20 = vld [vmem:[#allocation2 + $0xe7] sm:$0xff] }
 0x34e   :  { %7610 = vmatprep.mubr.f32.mxu1 %v1044_v44  ;;  %v1051_v44 = vld [vmem:[#allocation2 + $0x351] sm:$0xff] }
 0x34f   :  { %2520 = vmatmul.mubr.f32.gmra.mrb[6].mxu0 %v817_v26  ;;  %v4334_v26 = vld [vmem:[%s13509_s3 + $0x88] sm:$0xff] }
 0x350   :  { %2524 = vmatprep.mubr.f32.mxu0 %v10747_v41  ;;  %v4331_v41 = vld [vmem:[%s13509_s3 + $0x70] sm:$0xff] }
 0x351   :  { %v8023_v0 = vpack.c.bf16 %v4332_v36, %v4331_v41  ;;  %v1048_v41 = vld [vmem:[#allocation2 + $0x329] sm:$0xff] }
 0x352   :  { %v825_v36 = vld [vmem:[#allocation2 + $0xef] sm:$0xff] }
 0x353   :  { %6851 = vmatmul.mubr.msk.f32.gmra.mrb[8].mxu0 %vm7359_vm0, %v818_v59  ;;  %8024 = vmatpush1.bf16.msra.mxu1 %v8023_v0  ;;  %v1046_v59 = vld [vmem:[#allocation2 + $0x309] sm:$0xff] }
 0x354   :  { %2529 = vmatprep.mubr.f32.mxu0 %v10760_v22  ;;  %v1045_v22 = vld [vmem:[#allocation2 + $0x2f1] sm:$0xff]  ;;  %8025 = vmatprep.subr.bf16.mxu1 %v13577_v47  ;;  %v4338_v0 = vld [vmem:[%s13509_s3 + $0xa8] sm:$0xff] }
 0x355   :  { %7611 = vmatmul.mubr.msk.f32.gmra.mrb[38].mxu1 %vm7360_vm1, %v1045_v22  ;;  %v826_v22 = vld [vmem:[#allocation2 + $0x107] sm:$0xff] }
 0x356   :  { %7613 = vmatprep.mubr.f32.mxu1 %v1046_v59  ;;  %v1055_v59 = vld [vmem:[#allocation2 + $0x391] sm:$0xff] }
 0x357   :  { %2530 = vmatmul.mubr.f32.gmra.mrb[10].mxu0 %v819_v34 }
 0x358   :  { %2534 = vmatprep.mubr.f32.mxu0 %v10771_v46  ;;  %v4333_v46 = vld [vmem:[%s13509_s3 + $0x80] sm:$0xff] }
 0x359   :  { %v8026_v58 = vpack.c.bf16 %v4334_v26, %v4333_v46  ;;  %v1053_v46 = vld [vmem:[#allocation2 + $0x371] sm:$0xff] }
 0x35a   :  { %v827_v26 = vld [vmem:[#allocation2 + $0x10f] sm:$0xff] }
 0x35b   :  { %6853 = vmatmul.mubr.msk.f32.gmra.mrb[12].mxu0 %vm7359_vm0, %v820_v49  ;;  %8027 = vmatpush1.bf16.msra.mxu1 %v8026_v58  ;;  %v1050_v49 = vld [vmem:[#allocation2 + $0x349] sm:$0xff]  ;;  %v4340_v58 = vld [vmem:[%s13509_s3 + $0xb8] sm:$0xff] }
 0x35c   :  { %2539 = vmatprep.mubr.f32.mxu0 %v10784_v27  ;;  %v1047_v27 = vld [vmem:[#allocation2 + $0x311] sm:$0xff]  ;;  %8028 = vmatprep.subr.bf16.mxu1 %v13577_v47 }
 0x35d   :  { %7614 = vmatmul.mubr.msk.f32.gmra.mrb[40].mxu1 %vm7360_vm1, %v1047_v27 }
 0x35e   :  { %7616 = vmatprep.mubr.f32.mxu1 %v1048_v41  ;;  %v1059_v41 = vld [vmem:[#allocation2 + $0x3d1] sm:$0xff] }
 0x35f   :  { %2540 = vmatmul.mubr.f32.gmra.mrb[14].mxu0 %v821_v18 }
 0x360   :  { %2544 = vmatprep.mubr.f32.mxu0 %v10795_v61  ;;  %v4335_v61 = vld [vmem:[%s13509_s3 + $0x90] sm:$0xff] }
 0x361   :  { %v8029_v34 = vpack.c.bf16 %v4336_v19, %v4335_v61  ;;  %v1057_v61 = vld [vmem:[#allocation2 + $0x3b1] sm:$0xff] }
 0x362   :  { %v829_v19 = vld [vmem:[#allocation2 + $0x12f] sm:$0xff] }
 0x363   :  { %6855 = vmatmul.mubr.msk.f32.gmra.mrb[16].mxu0 %vm7359_vm0, %v822_v10  ;;  %8030 = vmatpush1.bf16.msra.mxu1 %v8029_v34  ;;  %v4339_v10 = vld [vmem:[%s13509_s3 + $0xb0] sm:$0xff]  ;;  %v4342_v34 = vld [vmem:[%s13509_s3 + $0xc8] sm:$0xff] }
 0x364   :  { %2549 = vmatprep.mubr.f32.mxu0 %v10802_v16  ;;  %v1049_v16 = vld [vmem:[#allocation2 + $0x331] sm:$0xff]  ;;  %8031 = vmatprep.subr.bf16.mxu1 %v13577_v47  ;;  %v8035_v27 = vpack.c.bf16 %v4340_v58, %v4339_v10 }
 0x365   :  { %7617 = vmatmul.mubr.msk.f32.gmra.mrb[42].mxu1 %vm7360_vm1, %v1049_v16  ;;  %v4347_v58 = vld [vmem:[%s13509_s3 + $0xf0] sm:$0xff] }
 0x366   :  { %7619 = vmatprep.mubr.f32.mxu1 %v1050_v49  ;;  %v1061_v49 = vld [vmem:[#allocation2 + $0x3f1] sm:$0xff] }
 0x367   :  { %2550 = vmatmul.mubr.f32.gmra.mrb[18].mxu0 %v823_v2  ;;  %v1056_v2 = vld [vmem:[#allocation2 + $0x3a9] sm:$0xff] }
 0x368   :  { %2554 = vmatprep.mubr.f32.mxu0 %v10807_v8  ;;  %v4337_v8 = vld [vmem:[%s13509_s3 + $0xa0] sm:$0xff] }
 0x369   :  { %v8032_v18 = vpack.c.bf16 %v4338_v0, %v4337_v8  ;;  %7620 = vmatmul.mubr.msk.f32.gmra.mrb[44].mxu1 %vm7360_vm1, %v1051_v44  ;;  %v831_v8 = vld [vmem:[#allocation2 + $0x14f] sm:$0xff]  ;;  %v4344_v44 = vld [vmem:[%s13509_s3 + $0xd8] sm:$0xff] }
 0x36a   :  { %v4343_v0 = vld [vmem:[%s13509_s3 + $0xd0] sm:$0xff] }
 0x36b   :  { %6857 = vmatmul.mubr.msk.f32.gmra.mrb[20].mxu0 %vm7359_vm0, %v824_v20  ;;  %8033 = vmatpush1.bf16.msra.mxu1 %v8032_v18  ;;  %v4341_v20 = vld [vmem:[%s13509_s3 + $0xc0] sm:$0xff]  ;;  %v8041_v18 = vpack.c.bf16 %v4344_v44, %v4343_v0  ;;  %v4448_v0 = vld [vmem:[%s13509_s3 + $0x418] sm:$0xff] }
 0x36c   :  { %2559 = vmatprep.mubr.f32.mxu0 %v10819_v57  ;;  %v1052_v57 = vld [vmem:[#allocation2 + $0x369] sm:$0xff]  ;;  %8034 = vmatprep.subr.bf16.mxu1 %v13577_v47  ;;  %v8038_v16 = vpack.c.bf16 %v4342_v34, %v4341_v20 }
 0x36d   :  { %7622 = vmatprep.mubr.f32.mxu1 %v1052_v57  ;;  %v1064_v57 = vld [vmem:[#allocation2 + $0x429] sm:$0xff] }
 0x36e   :  { %7623 = vmatmul.mubr.msk.f32.gmra.mrb[46].mxu1 %vm7360_vm1, %v1053_v46  ;;  %v1065_v46 = vld [vmem:[#allocation2 + $0x431] sm:$0xff] }
 0x36f   :  { %2560 = vmatmul.mubr.f32.gmra.mrb[22].mxu0 %v825_v36  ;;  %8036 = vmatpush1.bf16.msra.mxu1 %v8035_v27  ;;  %v1060_v36 = vld [vmem:[#allocation2 + $0x3e9] sm:$0xff] }
 0x370   :  { %2564 = vmatprep.mubr.f32.mxu0 %v10824_v24  ;;  %v1054_v24 = vld [vmem:[#allocation2 + $0x389] sm:$0xff]  ;;  %8037 = vmatprep.subr.bf16.mxu1 %v13577_v47 }
 0x371   :  { %7625 = vmatprep.mubr.f32.mxu1 %v1054_v24  ;;  %v4346_v24 = vld [vmem:[%s13509_s3 + $0xe8] sm:$0xff] }
 0x372   :  { %7626 = vmatmul.mubr.msk.f32.gmra.mrb[48].mxu1 %vm7360_vm1, %v1055_v59  ;;  %v1068_v59 = vld [vmem:[#allocation2 + $0x469] sm:$0xff] }
 0x373   :  { %6859 = vmatmul.mubr.msk.f32.gmra.mrb[24].mxu0 %vm7359_vm0, %v826_v22  ;;  %7628 = vmatprep.mubr.f32.mxu1 %v1056_v2  ;;  %v1063_v22 = vld [vmem:[#allocation2 + $0x411] sm:$0xff] }
 0x374   :  { %2569 = vmatprep.mubr.f32.mxu0 %v10830_v60  ;;  %v828_v60 = vld [vmem:[#allocation2 + $0x127] sm:$0xff]  ;;  %8039 = vmatpush1.bf16.msra.mxu1 %v8038_v16  ;;  %v837_v20 = vld [vmem:[#allocation2 + $0x1af] sm:$0xff] }
 0x375   :  { %8040 = vmatprep.subr.bf16.mxu1 %v13577_v47  ;;  %v4446_v16 = vld [vmem:[%s13509_s3 + $0x408] sm:$0xff] }
 0x376   :  { %7629 = vmatmul.mubr.msk.f32.gmra.mrb[50].mxu1 %vm7360_vm1, %v1057_v61  ;;  %v11353_v61 = vld [vmem:[#allocation2 + $0x8] sm:$0xff] }
 0x377   :  { %2570 = vmatmul.mubr.f32.gmra.mrb[26].mxu0 %v827_v26  ;;  %v833_v26 = vld [vmem:[#allocation2 + $0x16f] sm:$0xff] }
 0x378   :  { %2574 = vmatprep.mubr.f32.mxu0 %v10834_v25  ;;  %v1058_v25 = vld [vmem:[#allocation2 + $0x3c9] sm:$0xff]  ;;  %8042 = vmatpush1.bf16.msra.mxu1 %v8041_v18  ;;  %v4449_v18 = vld [vmem:[%s13509_s3 + $0x420] sm:$0xff] }
 0x379   :  { %7631 = vmatprep.mubr.f32.mxu1 %v1058_v25  ;;  %8043 = vmatprep.subr.bf16.mxu1 %v13577_v47  ;;  %v3357_v25 = vld [vmem:[#allocation3 + $0xf] sm:$0xff] }
 0x37a   :  { %7632 = vmatmul.mubr.msk.f32.gmra.mrb[52].mxu1 %vm7360_vm1, %v1059_v41 }
 0x37b   :  { %6861 = vmatmul.mubr.msk.f32.gmra.mrb[28].mxu0 %vm7359_vm0, %v828_v60  ;;  %7634 = vmatprep.mubr.f32.mxu1 %v1060_v36  ;;  %v1069_v60 = vld [vmem:[#allocation2 + $0x471] sm:$0xff]  ;;  %v4350_v36 = vld [vmem:[%s13509_s3 + $0x108] sm:$0xff] }
 0x37c   :  { %2579 = vmatprep.mubr.f32.mxu0 %v10846_v51  ;;  %v830_v51 = vld [vmem:[#allocation2 + $0x147] sm:$0xff] }
 0x37e   :  { %7635 = vmatmul.mubr.msk.f32.gmra.mrb[54].mxu1 %vm7360_vm1, %v1061_v49 }
 0x37f   :  { %2580 = vmatmul.mubr.f32.gmra.mrb[30].mxu0 %v829_v19  ;;  %v3356_v19 = vld [vmem:[#allocation3 + $0x7] sm:$0xff] }
 0x380   :  { %2584 = vmatprep.mubr.f32.mxu0 %v10851_v52  ;;  %v1062_v52 = vld [vmem:[#allocation2 + $0x409] sm:$0xff] }
 0x381   :  { %7637 = vmatprep.mubr.f32.mxu1 %v1062_v52  ;;  %v4447_v52 = vld [vmem:[%s13509_s3 + $0x410] sm:$0xff] }
 0x382   :  { %7638 = vmatmul.mubr.msk.f32.gmra.mrb[56].mxu1 %vm7360_vm1, %v1063_v22  ;;  %v11393_v44 = vpack.c.bf16 %v4448_v0, %v4447_v52  ;;  %v845_v0 = vld [vmem:[#allocation2 + $0x22f] sm:$0xff] }
 0x383   :  { %6863 = vmatmul.mubr.msk.f32.gmra.mrb[32].mxu0 %vm7359_vm0, %v830_v51  ;;  %7640 = vmatprep.mubr.f32.mxu1 %v1064_v57  ;;  %v4445_v51 = vld [vmem:[%s13509_s3 + $0x400] sm:$0xff]  ;;  %v4450_v57 = vld [vmem:[%s13509_s3 + $0x428] sm:$0xff] }
 0x384   :  { %2589 = vmatprep.mubr.f32.mxu0 %v10857_v38  ;;  %v832_v38 = vld [vmem:[#allocation2 + $0x167] sm:$0xff]  ;;  %v11380_v49 = vpack.c.bf16 %v4446_v16, %v4445_v51  ;;  %13611 = vst [vmem:[#allocation10_spill] sm:$0xff] %v11393_v44 }
 0x386   :  { %7641 = vmatmul.mubr.msk.f32.gmra.mrb[58].mxu1 %vm7360_vm1, %v1065_v46  ;;  %13610 = vst [vmem:[#allocation8_spill] sm:$0xff] %v11380_v49  ;;  %8194 = vmatprep.subr.bf16.mxu0 %v11380_v49  ;;  %v11409_v46 = vpack.c.bf16 %v4450_v57, %v4449_v18  ;;  %v4460_v18 = vld [vmem:[%s13509_s3 + $0x478] sm:$0xff] }
 0x387   :  { %2590 = vmatmul.mubr.f32.gmra.mrb[34].mxu0 %v831_v8  ;;  %7643 = vmatprep.mubr.f32.mxu1 %v11168_v21  ;;  %v4348_v21 = vld [vmem:[%s13509_s3 + $0xf8] sm:$0xff]  ;;  %v839_v8 = vld [vmem:[#allocation2 + $0x1cf] sm:$0xff] }
 0x388   :  { %2594 = vmatprep.mubr.f32.mxu0 %v10861_v53  ;;  %v4345_v53 = vld [vmem:[%s13509_s3 + $0xe0] sm:$0xff]  ;;  %8196 = vmatpush3.bf16.msra.mxu0 %v11380_v49  ;;  %13612 = vst [vmem:[#allocation7_spill] sm:$0xff] %v11409_v46  ;;  %v4410_v49 = vld [vmem:[%s13509_s3 + $0x2e8] sm:$0xff] }
 0x389   :  { %v8044_v10 = vpack.c.bf16 %v4346_v24, %v4345_v53  ;;  %8198 = vmatprep.subr.bf16.mxu0 %v11393_v44  ;;  %v4452_v53 = vld [vmem:[%s13509_s3 + $0x438] sm:$0xff]  ;;  %v970_v24 = vld [vmem:[#allocation2 + $0x208] sm:$0xff] }
 0x38a   :  { %7644 = vmatmul.mubr.msk.f32.gmra.mrb[60].mxu1 %vm7360_vm1, %v11177_v35  ;;  %v835_v35 = vld [vmem:[#allocation2 + $0x18f] sm:$0xff] }
 0x38b   :  { %6865 = vmatmul.mubr.msk.f32.gmra.mrb[36].mxu0 %vm7359_vm0, %v832_v38  ;;  %8045 = vmatpush1.bf16.msra.mxu1 %v8044_v10  ;;  %v840_v38 = vld [vmem:[#allocation2 + $0x1e7] sm:$0xff] }
 0x38c   :  { %2599 = vmatprep.mubr.f32.mxu0 %v10873_v29  ;;  %v834_v29 = vld [vmem:[#allocation2 + $0x187] sm:$0xff]  ;;  %8046 = vmatprep.subr.bf16.mxu1 %v13577_v47 }
 0x38d   :  { %7646 = vmatprep.mubr.f32.mxu1 %v1068_v59  ;;  %8200 = vmatpush3.bf16.msra.mxu0 %v11393_v44  ;;  %v4454_v59 = vld [vmem:[%s13509_s3 + $0x448] sm:$0xff] }
 0x38e   :  { %7647 = vmatmul.mubr.msk.f32.gmra.mrb[62].mxu1 %vm7360_vm1, %v1069_v60  ;;  %8202 = vmatprep.subr.bf16.mxu0 %v11409_v46  ;;  %v4351_v60 = vld [vmem:[%s13509_s3 + $0x110] sm:$0xff] }
 0x38f   :  { %2600 = vmatmul.mubr.f32.gmra.mrb[38].mxu0 %v833_v26  ;;  %4532 = vmatprep.mubr.f32.mxu1 %v11353_v61  ;;  %v4451_v26 = vld [vmem:[%s13509_s3 + $0x430] sm:$0xff] }
 0x390   :  { %2604 = vmatprep.mubr.f32.mxu0 %v10878_v12  ;;  %v8047_v12 = vpack.c.bf16 %v4348_v21, %v4347_v58  ;;  %v11422_v10 = vpack.c.bf16 %v4452_v53, %v4451_v26  ;;  %v842_v58 = vld [vmem:[#allocation2 + $0x207] sm:$0xff] }
 0x391   :  { %8204 = vmatpush3.bf16.msra.mxu0 %v11409_v46  ;;  %v4453_v21 = vld [vmem:[%s13509_s3 + $0x440] sm:$0xff] }
 0x392   :  { %8048 = vmatpush1.bf16.msra.mxu1 %v8047_v12  ;;  %13613 = vst [vmem:[#allocation9_spill] sm:$0xff] %v11422_v10  ;;  %8206 = vmatprep.subr.bf16.mxu0 %v11422_v10  ;;  %v971_v12 = vld [vmem:[#allocation2 + $0x210] sm:$0xff]  ;;  %v846_v53 = vld [vmem:[#allocation2 + $0x287] sm:$0xff] }
 0x393   :  { %6867 = vmatmul.mubr.msk.f32.gmra.mrb[40].mxu0 %vm7359_vm0, %v834_v29  ;;  %v11346_v27 = vpop.f32.mrb[0].mxu1  ;;  %8049 = vmatprep.subr.bf16.mxu1 %v13577_v47 }
 0x394   :  { %2609 = vmatprep.mubr.f32.mxu0 %v10884_v17  ;;  %v11351_v2 = vpop.f32.mrb[1].mxu1  ;;  %v836_v17 = vld [vmem:[#allocation2 + $0x1a7] sm:$0xff] }
 0x395   :  { %6976 = vmatmul.mubr.msk.f32.vlgmr.msra.gmra.mrb[64].mxu1 %vm7359_vm0, %v3356_v19  ;;  %8208 = vmatpush3.bf16.msra.mxu0 %v11422_v10  ;;  %v11442_v19 = vpack.c.bf16 %v4454_v59, %v4453_v21  ;;  %v847_v59 = vld [vmem:[#allocation2 + $0x28f] sm:$0xff] }
 0x396   :  { %4537 = vmatprep.mubr.f32.mxu1 %v11353_v61 }
 0x397   :  { %2610 = vmatmul.mubr.f32.gmra.mrb[42].mxu0 %v835_v35  ;;  %v11363_v34 = vpop.f32.mrb[2].mxu1  ;;  %v4352_v35 = vld [vmem:[%s13509_s3 + $0x118] sm:$0xff]  ;;  %13614 = vst [vmem:[#allocation11_spill] sm:$0xff] %v11442_v19  ;;  %8210 = vmatprep.subr.bf16.mxu0 %v11442_v19 }
 0x398   :  { %2614 = vmatprep.mubr.f32.mxu0 %v10888_v14  ;;  %v11365_v41 = vpop.f32.mrb[3].mxu1  ;;  %v838_v14 = vld [vmem:[#allocation2 + $0x1c7] sm:$0xff] }
 0x399   :  { %4538 = vmatmul.mubr.f32.gmra.mrb[66].mxu1 %v3357_v25  ;;  %v843_v25 = vld [vmem:[#allocation2 + $0x20f] sm:$0xff]  ;;  %8212 = vmatpush3.bf16.msra.mxu0 %v11442_v19 }
 0x39b   :  { %6869 = vmatmul.mubr.msk.f32.gmra.mrb[44].mxu0 %vm7359_vm0, %v836_v17  ;;  %v8053_v17 = vpack.c.bf16 %v4352_v35, %v4351_v60  ;;  %v848_v60 = vld [vmem:[#allocation2 + $0x2a7] sm:$0xff]  ;;  %v849_v35 = vld [vmem:[#allocation2 + $0x2af] sm:$0xff] }
 0x39c   :  { %2619 = vmatprep.mubr.f32.mxu0 %v10906_v9  ;;  %v4349_v9 = vld [vmem:[%s13509_s3 + $0x100] sm:$0xff] }
 0x39d   :  { %v11396_v22 = vpop.f32.mrb[4].mxu1 }
 0x39f   :  { %2620 = vmatmul.mubr.f32.gmra.mrb[46].mxu0 %v837_v20  ;;  %v4455_v20 = vld [vmem:[%s13509_s3 + $0x450] sm:$0xff] }
 0x3a0   :  { %2624 = vmatprep.mubr.f32.mxu0 %v10916_v39  ;;  %v8050_v39 = vpack.c.bf16 %v4350_v36, %v4349_v9  ;;  %v844_v36 = vld [vmem:[#allocation2 + $0x227] sm:$0xff] }
 0x3a2   :  { %8051 = vmatpush1.bf16.msra.mxu1 %v8050_v39  ;;  %v4457_v39 = vld [vmem:[%s13509_s3 + $0x460] sm:$0xff] }
 0x3a3   :  { %6871 = vmatmul.mubr.msk.f32.gmra.mrb[48].mxu0 %vm7359_vm0, %v838_v14  ;;  %8052 = vmatprep.subr.bf16.mxu1 %v13577_v47  ;;  %v4456_v14 = vld [vmem:[%s13509_s3 + $0x458] sm:$0xff] }
 0x3a4   :  { %2629 = vmatprep.mubr.f32.mxu0 %v10929_v32  ;;  %v11399_v32 = vpop.f32.mrb[5].mxu1  ;;  %v11454_v51 = vpack.c.bf16 %v4456_v14, %v4455_v20  ;;  %v4355_v20 = vld [vmem:[%s13509_s3 + $0x130] sm:$0xff] }
 0x3a5   :  { %v11424_v29 = vpop.f32.mrb[6].mxu1 }
 0x3a6   :  { %8054 = vmatpush1.bf16.msra.mxu1 %v8053_v17  ;;  %13615 = vst [vmem:[#allocation12_spill] sm:$0xff] %v11454_v51  ;;  %8214 = vmatprep.subr.bf16.mxu0 %v11454_v51 }
 0x3a7   :  { %2630 = vmatmul.mubr.f32.gmra.mrb[50].mxu0 %v839_v8  ;;  %8055 = vmatprep.subr.bf16.mxu1 %v13577_v47  ;;  %v4458_v8 = vld [vmem:[%s13509_s3 + $0x468] sm:$0xff] }
 0x3a8   :  { %2634 = vmatprep.mubr.f32.mxu0 %v10939_v42  ;;  %v841_v42 = vld [vmem:[#allocation2 + $0x1ef] sm:$0xff]  ;;  %8216 = vmatpush3.bf16.msra.mxu0 %v11454_v51  ;;  %v11470_v52 = vpack.c.bf16 %v4458_v8, %v4457_v39  ;;  %v852_v39 = vld [vmem:[#allocation2 + $0x2e7] sm:$0xff] }
 0x3a9   :  { %v853_v8 = vld [vmem:[#allocation2 + $0x2ef] sm:$0xff] }
 0x3aa   :  { %13616 = vst [vmem:[#allocation14_spill] sm:$0xff] %v11470_v52  ;;  %8218 = vmatprep.subr.bf16.mxu0 %v11470_v52 }
 0x3ab   :  { %6873 = vmatmul.mubr.msk.f32.gmra.mrb[52].mxu0 %vm7359_vm0, %v840_v38  ;;  %v4459_v38 = vld [vmem:[%s13509_s3 + $0x470] sm:$0xff] }
 0x3ac   :  { %2639 = vmatprep.mubr.f32.mxu0 %v10957_v55  ;;  %v11427_v55 = vpop.f32.mrb[7].mxu1  ;;  %8220 = vmatpush3.bf16.msra.mxu0 %v11470_v52  ;;  %v11483_v57 = vpack.c.bf16 %v4460_v18, %v4459_v38  ;;  %v854_v38 = vld [vmem:[#allocation2 + $0x307] sm:$0xff] }
 0x3ad   :  { %v11457_v16 = vpop.f32.mrb[8].mxu1  ;;  %v4357_v18 = vld [vmem:[%s13509_s3 + $0x140] sm:$0xff] }
 0x3ae   :  { %v11460_v9 = vpop.f32.mrb[9].mxu1  ;;  %13617 = vst [vmem:[#allocation15_spill] sm:$0xff] %v11483_v57  ;;  %8222 = vmatprep.subr.bf16.mxu0 %v11483_v57 }
 0x3af   :  { %2640 = vmatmul.mubr.f32.gmra.mrb[54].mxu0 %v841_v42  ;;  %v11485_v42 = vpop.f32.mrb[10].mxu1 }
 0x3b0   :  { %2644 = vmatprep.mubr.f32.mxu0 %v970_v24  ;;  %v11488_v26 = vpop.f32.mrb[11].mxu1  ;;  %v4353_v24 = vld [vmem:[%s13509_s3 + $0x120] sm:$0xff]  ;;  %8224 = vmatpush3.bf16.msra.mxu0 %v11483_v57 }
 0x3b3   :  { %6875 = vmatmul.mubr.msk.f32.gmra.mrb[56].mxu0 %vm7359_vm0, %v842_v58  ;;  %v4354_v58 = vld [vmem:[%s13509_s3 + $0x128] sm:$0xff] }
 0x3b4   :  { %2649 = vmatprep.mubr.f32.mxu0 %v971_v12  ;;  %v8056_v21 = vpack.c.bf16 %v4354_v58, %v4353_v24  ;;  %v856_v58 = vld [vmem:[#allocation2 + $0x327] sm:$0xff] }
 0x3b6   :  { %8057 = vmatpush1.bf16.msra.mxu1 %v8056_v21  ;;  %v857_v21 = vld [vmem:[#allocation2 + $0x32f] sm:$0xff] }
 0x3b7   :  { %2650 = vmatmul.mubr.f32.gmra.mrb[58].mxu0 %v843_v25  ;;  %8058 = vmatprep.subr.bf16.mxu1 %v13577_v47  ;;  %v850_v25 = vld [vmem:[#allocation2 + $0x2c7] sm:$0xff] }
 0x3b8   :  { %2654 = vmatprep.mubr.f32.mxu0 %v11353_v61 }
 0x3bb   :  { %6877 = vmatmul.mubr.msk.f32.gmra.mrb[60].mxu0 %vm7359_vm0, %v844_v36 }
 0x3bc   :  { %2659 = vmatprep.mubr.f32.mxu0 %v11353_v61 }
 0x3bf   :  { %2660 = vmatmul.mubr.f32.gmra.mrb[62].mxu0 %v845_v0 }
 0x3c0   :  { %2664 = vmatprep.mubr.f32.mxu0 %v10996_v63  ;;  %v11502_v63 = vpop.f32.mrb[12].mxu1 }
 0x3c1   :  { %v11504_v12 = vpop.f32.mrb[13].mxu1 }
 0x3c2   :  { %v11510_v17 = vpop.f32.mrb[14].mxu1 }
 0x3c3   :  { %6879 = vmatmul.mubr.msk.f32.gmra.mrb[64].mxu0 %vm7359_vm0, %v846_v53 }
 0x3c4   :  { %2669 = vmatprep.mubr.f32.mxu0 %v11004_v4  ;;  %v11512_v4 = vpop.f32.mrb[15].mxu1 }
 0x3c7   :  { %2670 = vmatmul.mubr.f32.gmra.mrb[66].mxu0 %v847_v59 }
 0x3c8   :  { %2674 = vmatprep.mubr.f32.mxu0 %v11008_v50  ;;  %v4356_v50 = vld [vmem:[%s13509_s3 + $0x138] sm:$0xff] }
 0x3c9   :  { %v8059_v14 = vpack.c.bf16 %v4356_v50, %v4355_v20  ;;  %v860_v20 = vld [vmem:[#allocation2 + $0x367] sm:$0xff] }
 0x3cb   :  { %6881 = vmatmul.mubr.msk.f32.gmra.mrb[68].mxu0 %vm7359_vm0, %v848_v60  ;;  %8060 = vmatpush1.bf16.msra.mxu1 %v8059_v14  ;;  %v858_v60 = vld [vmem:[#allocation2 + $0x347] sm:$0xff]  ;;  %v861_v14 = vld [vmem:[#allocation2 + $0x36f] sm:$0xff] }
 0x3cc   :  { %2679 = vmatprep.mubr.f32.mxu0 %v11016_v13  ;;  %v851_v13 = vld [vmem:[#allocation2 + $0x2cf] sm:$0xff]  ;;  %8061 = vmatprep.subr.bf16.mxu1 %v13577_v47 }
 0x3cf   :  { %2680 = vmatmul.mubr.f32.gmra.mrb[70].mxu0 %v849_v35  ;;  %v4359_v35 = vld [vmem:[%s13509_s3 + $0x150] sm:$0xff] }
 0x3d0   :  { %2684 = vmatprep.mubr.f32.mxu0 %v11020_v5  ;;  %v11525_v5 = vpop.f32.mrb[16].mxu1 }
 0x3d1   :  { %v11527_v36 = vpop.f32.mrb[17].mxu1 }
 0x3d2   :  { %v11533_v0 = vpop.f32.mrb[18].mxu1 }
 0x3d3   :  { %6883 = vmatmul.mubr.msk.f32.gmra.mrb[72].mxu0 %vm7359_vm0, %v850_v25 }
 0x3d4   :  { %2689 = vmatprep.mubr.f32.mxu0 %v11028_v48  ;;  %v11535_v48 = vpop.f32.mrb[19].mxu1 }
 0x3d7   :  { %2690 = vmatmul.mubr.f32.gmra.mrb[74].mxu0 %v851_v13 }
 0x3d8   :  { %2694 = vmatprep.mubr.f32.mxu0 %v11032_v56  ;;  %v4358_v56 = vld [vmem:[%s13509_s3 + $0x148] sm:$0xff] }
 0x3d9   :  { %v8062_v53 = vpack.c.bf16 %v4358_v56, %v4357_v18  ;;  %v864_v56 = vld [vmem:[#allocation2 + $0x3a7] sm:$0xff] }
 0x3db   :  { %6885 = vmatmul.mubr.msk.f32.gmra.mrb[76].mxu0 %vm7359_vm0, %v852_v39  ;;  %8063 = vmatpush1.bf16.msra.mxu1 %v8062_v53  ;;  %v862_v39 = vld [vmem:[#allocation2 + $0x387] sm:$0xff]  ;;  %v865_v53 = vld [vmem:[#allocation2 + $0x3af] sm:$0xff] }
 0x3dc   :  { %2699 = vmatprep.mubr.f32.mxu0 %v11040_v62  ;;  %v855_v62 = vld [vmem:[#allocation2 + $0x30f] sm:$0xff]  ;;  %8064 = vmatprep.subr.bf16.mxu1 %v13577_v47 }
 0x3df   :  { %2700 = vmatmul.mubr.f32.gmra.mrb[78].mxu0 %v853_v8  ;;  %v4362_v8 = vld [vmem:[%s13509_s3 + $0x168] sm:$0xff] }
 0x3e0   :  { %2704 = vmatprep.mubr.f32.mxu0 %v11044_v6  ;;  %v11548_v6 = vpop.f32.mrb[20].mxu1 }
 0x3e1   :  { %v11550_v24 = vpop.f32.mrb[21].mxu1 }
 0x3e2   :  { %v11556_v59 = vpop.f32.mrb[22].mxu1 }
 0x3e3   :  { %6887 = vmatmul.mubr.msk.f32.gmra.mrb[80].mxu0 %vm7359_vm0, %v854_v38 }
 0x3e4   :  { %2709 = vmatprep.mubr.f32.mxu0 %v11052_v11  ;;  %v11558_v11 = vpop.f32.mrb[23].mxu1 }
 0x3e7   :  { %2710 = vmatmul.mubr.f32.gmra.mrb[82].mxu0 %v855_v62  ;;  %v866_v62 = vld [vmem:[#allocation2 + $0x3c7] sm:$0xff] }
 0x3e8   :  { %2714 = vmatprep.mubr.f32.mxu0 %v11056_v23  ;;  %v4360_v23 = vld [vmem:[%s13509_s3 + $0x158] sm:$0xff] }
 0x3e9   :  { %v8065_v25 = vpack.c.bf16 %v4360_v23, %v4359_v35  ;;  %v996_v35 = vld [vmem:[#allocation2 + $0x3e8] sm:$0xff] }
 0x3eb   :  { %6889 = vmatmul.mubr.msk.f32.gmra.mrb[84].mxu0 %vm7359_vm0, %v856_v58  ;;  %8066 = vmatpush1.bf16.msra.mxu1 %v8065_v25 }
 0x3ec   :  { %2719 = vmatprep.mubr.f32.mxu0 %v11064_v37  ;;  %v859_v37 = vld [vmem:[#allocation2 + $0x34f] sm:$0xff]  ;;  %8067 = vmatprep.subr.bf16.mxu1 %v13577_v47 }
 0x3ef   :  { %2720 = vmatmul.mubr.f32.gmra.mrb[86].mxu0 %v857_v21  ;;  %v4363_v21 = vld [vmem:[%s13509_s3 + $0x170] sm:$0xff] }
 0x3f0   :  { %2724 = vmatprep.mubr.f32.mxu0 %v11068_v45  ;;  %v11571_v45 = vpop.f32.mrb[24].mxu1 }
 0x3f1   :  { %v11574_v50 = vpop.f32.mrb[25].mxu1 }
 0x3f2   :  { %v11579_v13 = vpop.f32.mrb[26].mxu1 }
 0x3f3   :  { %6891 = vmatmul.mubr.msk.f32.gmra.mrb[88].mxu0 %vm7359_vm0, %v858_v60 }
 0x3f4   :  { %2729 = vmatprep.mubr.f32.mxu0 %v11076_v54  ;;  %v11581_v54 = vpop.f32.mrb[27].mxu1 }
 0x3f7   :  { %2730 = vmatmul.mubr.f32.gmra.mrb[90].mxu0 %v859_v37 }
 0x3f8   :  { %2734 = vmatprep.mubr.f32.mxu0 %v11080_v1  ;;  %v4361_v1 = vld [vmem:[%s13509_s3 + $0x160] sm:$0xff] }
 0x3f9   :  { %v8068_v38 = vpack.c.bf16 %v4362_v8, %v4361_v1  ;;  %v997_v8 = vld [vmem:[#allocation2 + $0x3f0] sm:$0xff] }
 0x3fb   :  { %6893 = vmatmul.mubr.msk.f32.gmra.mrb[92].mxu0 %vm7359_vm0, %v860_v20  ;;  %8069 = vmatpush1.bf16.msra.mxu1 %v8068_v38 }
 0x3fc   :  { %2739 = vmatprep.mubr.f32.mxu0 %v11088_v3  ;;  %v863_v3 = vld [vmem:[#allocation2 + $0x38f] sm:$0xff]  ;;  %8070 = vmatprep.subr.bf16.mxu1 %v13577_v47 }
 0x3ff   :  { %2740 = vmatmul.mubr.f32.gmra.mrb[94].mxu0 %v861_v14 }
 0x400   :  { %2744 = vmatprep.mubr.f32.mxu0 %v11092_v7  ;;  %v11594_v7 = vpop.f32.mrb[28].mxu1 }
 0x401   :  { %v11596_v18 = vpop.f32.mrb[29].mxu1 }
 0x403   :  { %6895 = vmatmul.mubr.msk.f32.gmra.mrb[96].mxu0 %vm7359_vm0, %v862_v39  ;;  %v868_v39 = vld [vmem:[#allocation2 + $0x3e7] sm:$0xff] }
 0x404   :  { %2749 = vmatprep.mubr.f32.mxu0 %v11100_v28 }
 0x405   :  { %v11602_v28 = vpop.f32.mrb[30].mxu1 }
 0x406   :  { %v11605_v58 = vpop.f32.mrb[31].mxu1 }
 0x407   :  { %2750 = vmatmul.mubr.f32.gmra.mrb[98].mxu0 %v863_v3 }
 0x408   :  { %2754 = vmatprep.mubr.f32.mxu0 %v11104_v15  ;;  %v4364_v15 = vld [vmem:[%s13509_s3 + $0x178] sm:$0xff] }
 0x409   :  { %v8071_v60 = vpack.c.bf16 %v4364_v15, %v4363_v21  ;;  %v11622_v25 = vpop.f32.mrb[32].mxu1  ;;  %v998_v21 = vld [vmem:[#allocation2 + $0x408] sm:$0xff] }
 0x40a   :  { %v11625_v14 = vpop.f32.mrb[33].mxu1 }
 0x40b   :  { %6897 = vmatmul.mubr.msk.f32.gmra.mrb[100].mxu0 %vm7359_vm0, %v864_v56  ;;  %8072 = vmatpush1.bf16.msra.mxu1 %v8071_v60 }
 0x40c   :  { %2759 = vmatprep.mubr.f32.mxu0 %v11112_v30  ;;  %v11618_v30 = vld [vmem:[%s13510_s2] ss:$0 sm:$0xff]  ;;  %8073 = vmatprep.subr.bf16.mxu1 %v13577_v47 }
 0x40f   :  { %2760 = vmatmul.mubr.f32.gmra.mrb[102].mxu0 %v865_v53  ;;  %v869_v53 = vld [vmem:[#allocation2 + $0x3ef] sm:$0xff] }
 0x410   :  { %2764 = vmatprep.mubr.f32.mxu0 %v11116_v31  ;;  %v867_v31 = vld [vmem:[#allocation2 + $0x3cf] sm:$0xff] }
 0x413   :  { %6899 = vmatmul.mubr.msk.f32.gmra.mrb[104].mxu0 %vm7359_vm0, %v866_v62 }
 0x414   :  { %2769 = vmatprep.mubr.f32.mxu0 %v11124_v40 }
 0x416   :  { %v2506_v23 = vpop.f32.mrb[0].mxu0 }
 0x417   :  { %v8241_v37 = vadd.f32 %v11618_v30, %v2506_v23  ;;  %v2508_v20 = vpop.f32.mrb[1].mxu0  ;;  %2770 = vmatmul.mubr.f32.gmra.mrb[106].mxu0 %v867_v31 }
 0x418   :  { %2774 = vmatprep.mubr.f32.mxu0 %v996_v35  ;;  %v11632_v60 = vpop.f32.mrb[34].mxu1 }
 0x419   :  { %v2892_v1 = vadd.f32 %v8241_v37, %v11351_v2  ;;  %v11635_v23 = vpop.f32.mrb[35].mxu1  ;;  %v870_v37 = vld [vmem:[#allocation2 + $0x407] sm:$0xff] }
 0x41a   :  { %v2511_v40 = vpop.f32.mrb[2].mxu0 }
 0x41b   :  { %v3210_v38 = vmax.f32 %v2892_v1, 0.0  ;;  %v8242_v3 = vadd.f32 %v11618_v30, %v2511_v40  ;;  %v2513_v56 = vpop.f32.mrb[3].mxu0  ;;  %6901 = vmatmul.mubr.msk.f32.gmra.mrb[108].mxu0 %vm7359_vm0, %v868_v39  ;;  %v999_v39 = vld [vmem:[#allocation2 + $0x410] sm:$0xff]  ;;  %v4366_v1 = vld [vmem:[%s13509_s3 + $0x188] sm:$0xff] }
 0x41c   :  { %2779 = vmatprep.mubr.f32.mxu0 %v997_v8 }
 0x41d   :  { %3292 = vst [vmem:[#allocation3 + $0x28] sm:$0xff] %v3210_v38  ;;  %v2897_v62 = vadd.f32 %v8242_v3, %v11346_v27  ;;  %4542 = vmatprep.mubr.f32.mxu1 %v3210_v38  ;;  %v4365_v27 = vld [vmem:[%s13509_s3 + $0x180] sm:$0xff] }
 0x41e   :  { %v2516_v15 = vpop.f32.mrb[4].mxu0  ;;  %v8074_v40 = vpack.c.bf16 %v4366_v1, %v4365_v27 }
 0x41f   :  { %v3211_v2 = vmax.f32 %v2897_v62, 0.0  ;;  %v8243_v31 = vadd.f32 %v11618_v30, %v2516_v15  ;;  %v2518_v35 = vpop.f32.mrb[5].mxu0  ;;  %2780 = vmatmul.mubr.f32.gmra.mrb[110].mxu0 %v869_v53  ;;  %v871_v53 = vld [vmem:[#allocation2 + $0x40f] sm:$0xff] }
 0x420   :  { %2784 = vmatprep.mubr.f32.mxu0 %v998_v21  ;;  %8075 = vmatpush1.bf16.msra.mxu1 %v8074_v40  ;;  %v1000_v21 = vld [vmem:[#allocation2 + $0x428] sm:$0xff] }
 0x421   :  { %3293 = vst [vmem:[#allocation3 + $0x30] sm:$0xff] %v3211_v2  ;;  %v2902_v20 = vadd.f32 %v8243_v31, %v11365_v41  ;;  %8076 = vmatprep.subr.bf16.mxu1 %v13577_v47  ;;  %v11651_v31 = vpop.f32.mrb[36].mxu1 }
 0x422   :  { %v2521_v8 = vpop.f32.mrb[6].mxu0 }
 0x423   :  { %v3212_v38 = vmax.f32 %v2902_v20, 0.0  ;;  %v8244_v3 = vadd.f32 %v11618_v30, %v2521_v8  ;;  %v2523_v56 = vpop.f32.mrb[7].mxu0  ;;  %6903 = vmatmul.mubr.msk.f32.gmra.mrb[112].mxu0 %vm7359_vm0, %v870_v37  ;;  %v1001_v8 = vld [vmem:[#allocation2 + $0x430] sm:$0xff] }
 0x424   :  { %2789 = vmatprep.mubr.f32.mxu0 %v999_v39  ;;  %v3358_v41 = vld [vmem:[#allocation3 + $0x27] sm:$0xff]  ;;  %v11654_v39 = vpop.f32.mrb[37].mxu1 }
 0x425   :  { %3294 = vst [vmem:[#allocation3 + $0x48] sm:$0xff] %v3212_v38  ;;  %v2907_v62 = vadd.f32 %v8244_v3, %v11363_v34  ;;  %6978 = vmatmul.mubr.msk.f32.gmra.mrb[68].mxu1 %vm7359_vm0, %v3358_v41  ;;  %v872_v34 = vld [vmem:[#allocation2 + $0x427] sm:$0xff] }
 0x426   :  { %v2526_v15 = vpop.f32.mrb[8].mxu0  ;;  %4547 = vmatprep.mubr.f32.mxu1 %v3211_v2 }
 0x427   :  { %v3213_v35 = vmax.f32 %v2907_v62, 0.0  ;;  %v8245_v37 = vadd.f32 %v11618_v30, %v2526_v15  ;;  %v2528_v20 = vpop.f32.mrb[9].mxu0  ;;  %2790 = vmatmul.mubr.f32.gmra.mrb[114].mxu0 %v871_v53  ;;  %v873_v53 = vld [vmem:[#allocation2 + $0x42f] sm:$0xff] }
 0x428   :  { %2794 = vmatprep.mubr.f32.mxu0 %v1000_v21  ;;  %v3359_v27 = vld [vmem:[#allocation3 + $0x2f] sm:$0xff] }
 0x429   :  { %3295 = vst [vmem:[#allocation3 + $0x50] sm:$0xff] %v3213_v35  ;;  %v2912_v1 = vadd.f32 %v8245_v37, %v11399_v32  ;;  %4548 = vmatmul.mubr.f32.gmra.mrb[70].mxu1 %v3359_v27  ;;  %v1002_v32 = vld [vmem:[#allocation2 + $0x448] sm:$0xff] }
 0x42a   :  { %v2531_v40 = vpop.f32.mrb[10].mxu0  ;;  %4552 = vmatprep.mubr.f32.mxu1 %v3212_v38  ;;  %v11663_v38 = vpop.f32.mrb[38].mxu1 }
 0x42b   :  { %v3214_v2 = vmax.f32 %v2912_v1, 0.0  ;;  %v8246_v3 = vadd.f32 %v11618_v30, %v2531_v40  ;;  %v2533_v56 = vpop.f32.mrb[11].mxu0  ;;  %6905 = vmatmul.mubr.msk.f32.gmra.mrb[116].mxu0 %vm7359_vm0, %v872_v34  ;;  %v11666_v27 = vpop.f32.mrb[39].mxu1  ;;  %v874_v1 = vld [vmem:[#allocation2 + $0x447] sm:$0xff]  ;;  %v4368_v40 = vld [vmem:[%s13509_s3 + $0x198] sm:$0xff] }
 0x42c   :  { %2799 = vmatprep.mubr.f32.mxu0 %v1001_v8  ;;  %v3360_v41 = vld [vmem:[#allocation3 + $0x47] sm:$0xff]  ;;  %v1003_v8 = vld [vmem:[#allocation2 + $0x450] sm:$0xff] }
 0x42d   :  { %3296 = vst [vmem:[#allocation3 + $0x68] sm:$0xff] %v3214_v2  ;;  %v2917_v62 = vadd.f32 %v8246_v3, %v11396_v22  ;;  %6980 = vmatmul.mubr.msk.f32.gmra.mrb[72].mxu1 %vm7359_vm0, %v3360_v41 }
 0x42e   :  { %v2536_v21 = vpop.f32.mrb[12].mxu0  ;;  %4557 = vmatprep.mubr.f32.mxu1 %v3213_v35  ;;  %v4367_v35 = vld [vmem:[%s13509_s3 + $0x190] sm:$0xff] }
 0x42f   :  { %v3215_v15 = vmax.f32 %v2917_v62, 0.0  ;;  %v8247_v37 = vadd.f32 %v11618_v30, %v2536_v21  ;;  %v2538_v20 = vpop.f32.mrb[13].mxu0  ;;  %2800 = vmatmul.mubr.f32.gmra.mrb[118].mxu0 %v873_v53  ;;  %v8077_v56 = vpack.c.bf16 %v4368_v40, %v4367_v35 }
 0x430   :  { %2804 = vmatprep.mubr.f32.mxu0 %v1002_v32  ;;  %v3361_v34 = vld [vmem:[#allocation3 + $0x4f] sm:$0xff] }
 0x431   :  { %3297 = vst [vmem:[#allocation3 + $0x70] sm:$0xff] %v3215_v15  ;;  %v2922_v22 = vadd.f32 %v8247_v37, %v11427_v55  ;;  %4558 = vmatmul.mubr.f32.gmra.mrb[74].mxu1 %v3361_v34  ;;  %v875_v32 = vld [vmem:[#allocation2 + $0x44f] sm:$0xff]  ;;  %v11682_v37 = vpop.f32.mrb[40].mxu1 }
 0x432   :  { %v2541_v3 = vpop.f32.mrb[14].mxu0  ;;  %4562 = vmatprep.mubr.f32.mxu1 %v3214_v2  ;;  %8078 = vmatpush1.bf16.msra.mxu1 %v8077_v56 }
 0x433   :  { %v3216_v41 = vmax.f32 %v2922_v22, 0.0  ;;  %v8248_v53 = vadd.f32 %v11618_v30, %v2541_v3  ;;  %v2543_v62 = vpop.f32.mrb[15].mxu0  ;;  %6907 = vmatmul.mubr.msk.f32.gmra.mrb[120].mxu0 %vm7359_vm0, %v874_v1  ;;  %8079 = vmatprep.subr.bf16.mxu1 %v13577_v47  ;;  %v11685_v22 = vpop.f32.mrb[41].mxu1 }
 0x434   :  { %2809 = vmatprep.mubr.f32.mxu0 %v1003_v8  ;;  %v3362_v55 = vld [vmem:[#allocation3 + $0x67] sm:$0xff]  ;;  %v877_v62 = vld [vmem:[#allocation2 + $0x46f] sm:$0xff] }
 0x435   :  { %3298 = vst [vmem:[#allocation3 + $0x88] sm:$0xff] %v3216_v41  ;;  %v2927_v21 = vadd.f32 %v8248_v53, %v11424_v29  ;;  %6982 = vmatmul.mubr.msk.f32.gmra.mrb[76].mxu1 %vm7359_vm0, %v3362_v55  ;;  %v876_v29 = vld [vmem:[#allocation2 + $0x467] sm:$0xff] }
 0x436   :  { %v2546_v2 = vpop.f32.mrb[16].mxu0  ;;  %4567 = vmatprep.mubr.f32.mxu1 %v3215_v15  ;;  %v3999_v43 = vld [vmem:[#allocation3 + $0x67] sm:$0xff] }
 0x437   :  { %v3217_v20 = vmax.f32 %v2927_v21, 0.0  ;;  %v8249_v34 = vadd.f32 %v11618_v30, %v2546_v2  ;;  %v2548_v1 = vpop.f32.mrb[17].mxu0  ;;  %2810 = vmatmul.mubr.f32.gmra.mrb[122].mxu0 %v875_v32 }
 0x438   :  { %2814 = vmatprep.mubr.f32.mxu0 %v11353_v61  ;;  %v3363_v8 = vld [vmem:[#allocation3 + $0x6f] sm:$0xff] }
 0x439   :  { %3299 = vst [vmem:[#allocation3 + $0x90] sm:$0xff] %v3217_v20  ;;  %v2932_v35 = vadd.f32 %v8249_v34, %v11460_v9  ;;  %4568 = vmatmul.mubr.f32.gmra.mrb[78].mxu1 %v3363_v8  ;;  %v4189_v34 = vld [vmem:[#allocation3 + $0x49] sm:$0xff] }
 0x43a   :  { %v2551_v40 = vpop.f32.mrb[18].mxu0  ;;  %4572 = vmatprep.mubr.f32.mxu1 %v3216_v41  ;;  %v11696_v41 = vpop.f32.mrb[42].mxu1  ;;  %v4370_v8 = vld [vmem:[%s13509_s3 + $0x1a8] sm:$0xff] }
 0x43b   :  { %v3218_v15 = vmax.f32 %v2932_v35, 0.0  ;;  %v8250_v3 = vadd.f32 %v11618_v30, %v2551_v40  ;;  %v2553_v56 = vpop.f32.mrb[19].mxu0  ;;  %6909 = vmatmul.mubr.msk.f32.gmra.mrb[124].mxu0 %vm7359_vm0, %v876_v29  ;;  %v11699_v1 = vpop.f32.mrb[43].mxu1  ;;  %v4190_v35 = vld [vmem:[#allocation3 + $0x51] sm:$0xff] }
 0x43c   :  { %2819 = vmatprep.mubr.f32.mxu0 %v11353_v61  ;;  %v3364_v53 = vld [vmem:[#allocation3 + $0x87] sm:$0xff] }
 0x43d   :  { %3300 = vst [vmem:[#allocation3 + $0xa8] sm:$0xff] %v3218_v15  ;;  %v2937_v55 = vadd.f32 %v8250_v3, %v11457_v16  ;;  %6984 = vmatmul.mubr.msk.f32.gmra.mrb[80].mxu1 %vm7359_vm0, %v3364_v53 }
 0x43e   :  { %v2556_v9 = vpop.f32.mrb[20].mxu0  ;;  %4577 = vmatprep.mubr.f32.mxu1 %v3217_v20  ;;  %v4369_v20 = vld [vmem:[%s13509_s3 + $0x1a0] sm:$0xff] }
 0x43f   :  { %v3219_v32 = vmax.f32 %v2937_v55, 0.0  ;;  %v8251_v21 = vadd.f32 %v11618_v30, %v2556_v9  ;;  %v2558_v2 = vpop.f32.mrb[21].mxu0  ;;  %2820 = vmatmul.mubr.f32.gmra.mrb[126].mxu0 %v877_v62  ;;  %v8080_v40 = vpack.c.bf16 %v4370_v8, %v4369_v20  ;;  %v4192_v9 = vld [vmem:[#allocation3 + $0x71] sm:$0xff] }
 0x440   :  { %7681 = vmatprep.mubr.f32.mxu0 %v4189_v34  ;;  %v3365_v61 = vld [vmem:[#allocation3 + $0x8f] sm:$0xff] }
 0x441   :  { %3301 = vst [vmem:[#allocation3 + $0xb0] sm:$0xff] %v3219_v32  ;;  %v2942_v16 = vadd.f32 %v8251_v21, %v11488_v26  ;;  %4578 = vmatmul.mubr.f32.gmra.mrb[82].mxu1 %v3365_v61  ;;  %v4191_v26 = vld [vmem:[#allocation3 + $0x69] sm:$0xff]  ;;  %v11715_v21 = vpop.f32.mrb[44].mxu1 }
 0x442   :  { %v2561_v29 = vpop.f32.mrb[22].mxu0  ;;  %4582 = vmatprep.mubr.f32.mxu1 %v3218_v15  ;;  %8081 = vmatpush1.bf16.msra.mxu1 %v8080_v40  ;;  %v11720_v20 = vpop.f32.mrb[45].mxu1 }
 0x443   :  { %v3220_v3 = vmax.f32 %v2942_v16, 0.0  ;;  %v8252_v56 = vadd.f32 %v11618_v30, %v2561_v29  ;;  %v2563_v53 = vpop.f32.mrb[23].mxu0  ;;  %7682 = vmatmul.mubr.msk.f32.vlgmr.msra.gmra.mrb[128].mxu0 %vm7360_vm1, %v4190_v35  ;;  %8082 = vmatprep.subr.bf16.mxu1 %v13577_v47  ;;  %v4193_v16 = vld [vmem:[#allocation3 + $0x89] sm:$0xff] }
 0x444   :  { %7684 = vmatprep.mubr.f32.mxu0 %v4191_v26  ;;  %v3366_v62 = vld [vmem:[#allocation3 + $0xa7] sm:$0xff]  ;;  %v11726_v26 = vpop.f32.mrb[46].mxu1 }
 0x445   :  { %3302 = vst [vmem:[#allocation3 + $0xc8] sm:$0xff] %v3220_v3  ;;  %v2947_v55 = vadd.f32 %v8252_v56, %v11485_v42  ;;  %6986 = vmatmul.mubr.msk.f32.gmra.mrb[84].mxu1 %vm7359_vm0, %v3366_v62 }
 0x446   :  { %v2566_v15 = vpop.f32.mrb[24].mxu0  ;;  %4587 = vmatprep.mubr.f32.mxu1 %v3219_v32  ;;  %v4194_v32 = vld [vmem:[#allocation3 + $0x91] sm:$0xff] }
 0x447   :  { %v3221_v2 = vmax.f32 %v2947_v55, 0.0  ;;  %v8253_v34 = vadd.f32 %v11618_v30, %v2566_v15  ;;  %v2568_v61 = vpop.f32.mrb[25].mxu0  ;;  %7685 = vmatmul.mubr.msk.f32.gmra.mrb[130].mxu0 %vm7360_vm1, %v4192_v9  ;;  %v11728_v55 = vpop.f32.mrb[47].mxu1 }
 0x448   :  { %7687 = vmatprep.mubr.f32.mxu0 %v4193_v16  ;;  %v3367_v42 = vld [vmem:[#allocation3 + $0xaf] sm:$0xff]  ;;  %v11736_v16 = vpop.f32.mrb[48].mxu1 }
 0x449   :  { %3303 = vst [vmem:[#allocation3 + $0xd0] sm:$0xff] %v3221_v2  ;;  %v2952_v8 = vadd.f32 %v8253_v34, %v11504_v12  ;;  %4588 = vmatmul.mubr.f32.gmra.mrb[86].mxu1 %v3367_v42  ;;  %v4195_v53 = vld [vmem:[#allocation3 + $0xa9] sm:$0xff]  ;;  %v4196_v15 = vld [vmem:[#allocation3 + $0xb1] sm:$0xff] }
 0x44a   :  { %v2571_v29 = vpop.f32.mrb[26].mxu0  ;;  %4592 = vmatprep.mubr.f32.mxu1 %v3220_v3 }
 0x44b   :  { %v3222_v35 = vmax.f32 %v2952_v8, 0.0  ;;  %v8254_v40 = vadd.f32 %v11618_v30, %v2571_v29  ;;  %v2573_v56 = vpop.f32.mrb[27].mxu0  ;;  %7688 = vmatmul.mubr.msk.f32.gmra.mrb[132].mxu0 %vm7360_vm1, %v4194_v32  ;;  %v11738_v29 = vpop.f32.mrb[49].mxu1 }
 0x44c   :  { %7690 = vmatprep.mubr.f32.mxu0 %v4195_v53  ;;  %v3368_v62 = vld [vmem:[#allocation3 + $0xc7] sm:$0xff] }
 0x44d   :  { %3304 = vst [vmem:[#allocation3 + $0xe8] sm:$0xff] %v3222_v35  ;;  %v2957_v12 = vadd.f32 %v8254_v40, %v11502_v63  ;;  %6988 = vmatmul.mubr.msk.f32.gmra.mrb[88].mxu1 %vm7359_vm0, %v3368_v62  ;;  %v11744_v62 = vpop.f32.mrb[50].mxu1 }
 0x44e   :  { %v2576_v3 = vpop.f32.mrb[28].mxu0  ;;  %4597 = vmatprep.mubr.f32.mxu1 %v3221_v2 }
 0x44f   :  { %v3223_v9 = vmax.f32 %v2957_v12, 0.0  ;;  %v8255_v34 = vadd.f32 %v11618_v30, %v2576_v3  ;;  %v2578_v61 = vpop.f32.mrb[29].mxu0  ;;  %7691 = vmatmul.mubr.msk.f32.gmra.mrb[134].mxu0 %vm7360_vm1, %v4196_v15  ;;  %v11746_v3 = vpop.f32.mrb[51].mxu1  ;;  %v4372_v15 = vld [vmem:[%s13509_s3 + $0x1b8] sm:$0xff] }
 0x450   :  { %v4197_v42 = vld [vmem:[#allocation3 + $0xc9] sm:$0xff]  ;;  %v4198_v2 = vld [vmem:[#allocation3 + $0xd1] sm:$0xff] }
 0x451   :  { %v3369_v8 = vld [vmem:[#allocation3 + $0xcf] sm:$0xff]  ;;  %3305 = vst [vmem:[#allocation3 + $0xf0] sm:$0xff] %v3223_v9  ;;  %v2962_v63 = vadd.f32 %v8255_v34, %v11512_v4  ;;  %7693 = vmatprep.mubr.f32.mxu0 %v4197_v42 }
 0x452   :  { %4598 = vmatmul.mubr.f32.gmra.mrb[90].mxu1 %v3369_v8  ;;  %v2581_v32 = vpop.f32.mrb[30].mxu0 }
 0x453   :  { %4602 = vmatprep.mubr.f32.mxu1 %v3222_v35  ;;  %v3224_v40 = vmax.f32 %v2962_v63, 0.0  ;;  %v8256_v56 = vadd.f32 %v11618_v30, %v2581_v32  ;;  %v2583_v53 = vpop.f32.mrb[31].mxu0  ;;  %7694 = vmatmul.mubr.msk.f32.gmra.mrb[136].mxu0 %vm7360_vm1, %v4198_v2  ;;  %v4371_v35 = vld [vmem:[%s13509_s3 + $0x1b0] sm:$0xff]  ;;  %v11758_v32 = vpop.f32.mrb[52].mxu1 }
 0x454   :  { %v3370_v12 = vld [vmem:[#allocation3 + $0xe7] sm:$0xff]  ;;  %v8083_v61 = vpack.c.bf16 %v4372_v15, %v4371_v35  ;;  %v11760_v53 = vpop.f32.mrb[53].mxu1 }
 0x455   :  { %3306 = vst [vmem:[#allocation3 + $0x108] sm:$0xff] %v3224_v40  ;;  %v2967_v4 = vadd.f32 %v8256_v56, %v11510_v17  ;;  %v11766_v15 = vpop.f32.mrb[54].mxu1 }
 0x456   :  { %6990 = vmatmul.mubr.msk.f32.gmra.mrb[92].mxu1 %vm7359_vm0, %v3370_v12  ;;  %v2586_v34 = vpop.f32.mrb[32].mxu0 }
 0x457   :  { %4607 = vmatprep.mubr.f32.mxu1 %v3223_v9  ;;  %v3225_v42 = vmax.f32 %v2967_v4, 0.0  ;;  %v8257_v8 = vadd.f32 %v11618_v30, %v2586_v34  ;;  %v2588_v63 = vpop.f32.mrb[33].mxu0  ;;  %8084 = vmatpush1.bf16.msra.mxu1 %v8083_v61  ;;  %v11769_v61 = vpop.f32.mrb[55].mxu1 }
 0x458   :  { %v4199_v17 = vld [vmem:[#allocation3 + $0xe9] sm:$0xff]  ;;  %v4200_v56 = vld [vmem:[#allocation3 + $0xf1] sm:$0xff]  ;;  %8085 = vmatprep.subr.bf16.mxu1 %v13577_v47 }
 0x459   :  { %v3371_v2 = vld [vmem:[#allocation3 + $0xef] sm:$0xff]  ;;  %3307 = vst [vmem:[#allocation3 + $0x110] sm:$0xff] %v3225_v42  ;;  %v2972_v12 = vadd.f32 %v8257_v8, %v11527_v36  ;;  %7696 = vmatprep.mubr.f32.mxu0 %v4199_v17  ;;  %v11775_v17 = vpop.f32.mrb[56].mxu1 }
 0x45a   :  { %4608 = vmatmul.mubr.f32.gmra.mrb[94].mxu1 %v3371_v2  ;;  %v2591_v57 = vpop.f32.mrb[34].mxu0  ;;  %7697 = vmatmul.mubr.msk.f32.gmra.mrb[138].mxu0 %vm7360_vm1, %v4200_v56 }
 0x45b   :  { %4612 = vmatprep.mubr.f32.mxu1 %v3224_v40  ;;  %v3226_v9 = vmax.f32 %v2972_v12, 0.0  ;;  %v8258_v4 = vadd.f32 %v11618_v30, %v2591_v57  ;;  %v2593_v35 = vpop.f32.mrb[35].mxu0 }
 0x45c   :  { %v3372_v34 = vld [vmem:[#allocation3 + $0x107] sm:$0xff]  ;;  %v11777_v35 = vpop.f32.mrb[57].mxu1 }
 0x45d   :  { %3308 = vst [vmem:[#allocation3 + $0x128] sm:$0xff] %v3226_v9  ;;  %v2977_v36 = vadd.f32 %v8258_v4, %v11525_v5 }
 0x45e   :  { %6992 = vmatmul.mubr.msk.f32.gmra.mrb[96].mxu1 %vm7359_vm0, %v3372_v34  ;;  %v2596_v8 = vpop.f32.mrb[36].mxu0 }
 0x45f   :  { %4617 = vmatprep.mubr.f32.mxu1 %v3225_v42  ;;  %v3227_v40 = vmax.f32 %v2977_v36, 0.0  ;;  %v8259_v63 = vadd.f32 %v11618_v30, %v2596_v8  ;;  %v2598_v57 = vpop.f32.mrb[37].mxu0  ;;  %v11783_v36 = vpop.f32.mrb[58].mxu1 }
 0x460   :  { %v4201_v2 = vld [vmem:[#allocation3 + $0x109] sm:$0xff]  ;;  %v4202_v12 = vld [vmem:[#allocation3 + $0x111] sm:$0xff]  ;;  %v11785_v57 = vpop.f32.mrb[59].mxu1 }
 0x461   :  { %v3373_v56 = vld [vmem:[#allocation3 + $0x10f] sm:$0xff]  ;;  %3309 = vst [vmem:[#allocation3 + $0x130] sm:$0xff] %v3227_v40  ;;  %v2982_v52 = vadd.f32 %v8259_v63, %v11535_v48  ;;  %7699 = vmatprep.mubr.f32.mxu0 %v4201_v2  ;;  %v4373_v48 = vld [vmem:[%s13509_s3 + $0x1c0] sm:$0xff] }
 0x462   :  { %4618 = vmatmul.mubr.f32.gmra.mrb[98].mxu1 %v3373_v56  ;;  %v2601_v5 = vpop.f32.mrb[38].mxu0  ;;  %7700 = vmatmul.mubr.msk.f32.gmra.mrb[140].mxu0 %vm7360_vm1, %v4202_v12 }
 0x463   :  { %4622 = vmatprep.mubr.f32.mxu1 %v3226_v9  ;;  %v3228_v42 = vmax.f32 %v2982_v52, 0.0  ;;  %v8260_v4 = vadd.f32 %v11618_v30, %v2601_v5  ;;  %v2603_v34 = vpop.f32.mrb[39].mxu0  ;;  %v4374_v52 = vld [vmem:[%s13509_s3 + $0x1c8] sm:$0xff]  ;;  %v11797_v5 = vpop.f32.mrb[60].mxu1 }
 0x464   :  { %v3374_v8 = vld [vmem:[#allocation3 + $0x127] sm:$0xff]  ;;  %v8086_v63 = vpack.c.bf16 %v4374_v52, %v4373_v48 }
 0x465   :  { %3310 = vst [vmem:[#allocation3 + $0x148] sm:$0xff] %v3228_v42  ;;  %v2987_v51 = vadd.f32 %v8260_v4, %v11533_v0 }
 0x466   :  { %6994 = vmatmul.mubr.msk.f32.gmra.mrb[100].mxu1 %vm7359_vm0, %v3374_v8  ;;  %v2606_v9 = vpop.f32.mrb[40].mxu0  ;;  %v11799_v8 = vpop.f32.mrb[61].mxu1 }
 0x467   :  { %4627 = vmatprep.mubr.f32.mxu1 %v3227_v40  ;;  %v3229_v2 = vmax.f32 %v2987_v51, 0.0  ;;  %v8261_v56 = vadd.f32 %v11618_v30, %v2606_v9  ;;  %v2608_v12 = vpop.f32.mrb[41].mxu0  ;;  %8087 = vmatpush1.bf16.msra.mxu1 %v8086_v63  ;;  %v11805_v52 = vpop.f32.mrb[62].mxu1 }
 0x468   :  { %v4203_v0 = vld [vmem:[#allocation3 + $0x129] sm:$0xff]  ;;  %v4204_v34 = vld [vmem:[#allocation3 + $0x131] sm:$0xff]  ;;  %8088 = vmatprep.subr.bf16.mxu1 %v13577_v47  ;;  %v11808_v63 = vpop.f32.mrb[63].mxu1 }
 0x469   :  { %v3375_v4 = vld [vmem:[#allocation3 + $0x12f] sm:$0xff]  ;;  %3311 = vst [vmem:[#allocation3 + $0x150] sm:$0xff] %v3229_v2  ;;  %v2992_v19 = vadd.f32 %v8261_v56, %v11550_v24  ;;  %7702 = vmatprep.mubr.f32.mxu0 %v4203_v0 }
 0x46a   :  { %4628 = vmatmul.mubr.f32.gmra.mrb[102].mxu1 %v3375_v4  ;;  %v2611_v10 = vpop.f32.mrb[42].mxu0  ;;  %7703 = vmatmul.mubr.msk.f32.gmra.mrb[142].mxu0 %vm7360_vm1, %v4204_v34 }
 0x46b   :  { %4632 = vmatprep.mubr.f32.mxu1 %v3228_v42  ;;  %v3230_v51 = vmax.f32 %v2992_v19, 0.0  ;;  %v8262_v40 = vadd.f32 %v11618_v30, %v2611_v10  ;;  %v2613_v48 = vpop.f32.mrb[43].mxu0 }
 0x46c   :  { %v3376_v9 = vld [vmem:[#allocation3 + $0x147] sm:$0xff] }
 0x46d   :  { %3312 = vst [vmem:[#allocation3 + $0x168] sm:$0xff] %v3230_v51  ;;  %v2997_v24 = vadd.f32 %v8262_v40, %v11548_v6 }
 0x46e   :  { %6996 = vmatmul.mubr.msk.f32.gmra.mrb[104].mxu1 %vm7359_vm0, %v3376_v9  ;;  %v2616_v56 = vpop.f32.mrb[44].mxu0 }
 0x46f   :  { %4637 = vmatprep.mubr.f32.mxu1 %v3229_v2  ;;  %v3231_v42 = vmax.f32 %v2997_v24, 0.0  ;;  %v8263_v19 = vadd.f32 %v11618_v30, %v2616_v56  ;;  %v2618_v10 = vpop.f32.mrb[45].mxu0  ;;  %v4376_v56 = vld [vmem:[%s13509_s3 + $0x1d8] sm:$0xff] }
 0x470   :  { %v4205_v12 = vld [vmem:[#allocation3 + $0x149] sm:$0xff]  ;;  %v4206_v4 = vld [vmem:[#allocation3 + $0x151] sm:$0xff] }
 0x471   :  { %v3377_v0 = vld [vmem:[#allocation3 + $0x14f] sm:$0xff]  ;;  %3313 = vst [vmem:[#allocation3 + $0x170] sm:$0xff] %v3231_v42  ;;  %v3002_v34 = vadd.f32 %v8263_v19, %v11558_v11  ;;  %7705 = vmatprep.mubr.f32.mxu0 %v4205_v12 }
 0x472   :  { %4638 = vmatmul.mubr.f32.gmra.mrb[106].mxu1 %v3377_v0  ;;  %v2621_v48 = vpop.f32.mrb[46].mxu0  ;;  %7706 = vmatmul.mubr.msk.f32.gmra.mrb[144].mxu0 %vm7360_vm1, %v4206_v4  ;;  %v4375_v11 = vld [vmem:[%s13509_s3 + $0x1d0] sm:$0xff] }
 0x473   :  { %4642 = vmatprep.mubr.f32.mxu1 %v3230_v51  ;;  %v3232_v6 = vmax.f32 %v3002_v34, 0.0  ;;  %v8264_v2 = vadd.f32 %v11618_v30, %v2621_v48  ;;  %v2623_v40 = vpop.f32.mrb[47].mxu0  ;;  %v8089_v19 = vpack.c.bf16 %v4376_v56, %v4375_v11 }
 0x474   :  { %v3378_v9 = vld [vmem:[#allocation3 + $0x167] sm:$0xff] }
 0x475   :  { %3314 = vst [vmem:[#allocation3 + $0x188] sm:$0xff] %v3232_v6  ;;  %v3007_v24 = vadd.f32 %v8264_v2, %v11556_v59  ;;  %8090 = vmatpush1.bf16.msra.mxu1 %v8089_v19 }
 0x476   :  { %6998 = vmatmul.mubr.msk.f32.gmra.mrb[108].mxu1 %vm7359_vm0, %v3378_v9  ;;  %v2626_v51 = vpop.f32.mrb[48].mxu0  ;;  %8091 = vmatprep.subr.bf16.mxu1 %v13577_v47 }
 0x477   :  { %4647 = vmatprep.mubr.f32.mxu1 %v3231_v42  ;;  %v3233_v10 = vmax.f32 %v3007_v24, 0.0  ;;  %v8265_v12 = vadd.f32 %v11618_v30, %v2626_v51  ;;  %v2628_v0 = vpop.f32.mrb[49].mxu0 }
 0x478   :  { %v4207_v4 = vld [vmem:[#allocation3 + $0x169] sm:$0xff]  ;;  %v4208_v34 = vld [vmem:[#allocation3 + $0x171] sm:$0xff] }
 0x479   :  { %v3379_v59 = vld [vmem:[#allocation3 + $0x16f] sm:$0xff]  ;;  %3315 = vst [vmem:[#allocation3 + $0x190] sm:$0xff] %v3233_v10  ;;  %v3012_v48 = vadd.f32 %v8265_v12, %v11574_v50  ;;  %7708 = vmatprep.mubr.f32.mxu0 %v4207_v4 }
 0x47a   :  { %4648 = vmatmul.mubr.f32.gmra.mrb[110].mxu1 %v3379_v59  ;;  %v2631_v2 = vpop.f32.mrb[50].mxu0  ;;  %7709 = vmatmul.mubr.msk.f32.gmra.mrb[146].mxu0 %vm7360_vm1, %v4208_v34  ;;  %v12368_v46 = vld [vmem:[#allocation3 + $0x171] sm:$0xff] }
 0x47b   :  { %4652 = vmatprep.mubr.f32.mxu1 %v3232_v6  ;;  %v3234_v42 = vmax.f32 %v3012_v48, 0.0  ;;  %v8266_v40 = vadd.f32 %v11618_v30, %v2631_v2  ;;  %v2633_v9 = vpop.f32.mrb[51].mxu0  ;;  %13649 = vst [vmem:[#allocation44_spill] sm:$0xff] %v12368_v46 }
 0x47c   :  { %v3380_v24 = vld [vmem:[#allocation3 + $0x187] sm:$0xff] }
 0x47d   :  { %3316 = vst [vmem:[#allocation3 + $0x1a8] sm:$0xff] %v3234_v42  ;;  %v3017_v11 = vadd.f32 %v8266_v40, %v11571_v45  ;;  %v4378_v40 = vld [vmem:[%s13509_s3 + $0x1e8] sm:$0xff] }
 0x47e   :  { %7000 = vmatmul.mubr.msk.f32.gmra.mrb[112].mxu1 %vm7359_vm0, %v3380_v24  ;;  %v2636_v50 = vpop.f32.mrb[52].mxu0 }
 0x47f   :  { %4657 = vmatprep.mubr.f32.mxu1 %v3233_v10  ;;  %v3235_v56 = vmax.f32 %v3017_v11, 0.0  ;;  %v8267_v51 = vadd.f32 %v11618_v30, %v2636_v50  ;;  %v2638_v19 = vpop.f32.mrb[53].mxu0 }
 0x480   :  { %v4209_v6 = vld [vmem:[#allocation3 + $0x189] sm:$0xff]  ;;  %v4210_v0 = vld [vmem:[#allocation3 + $0x191] sm:$0xff] }
 0x481   :  { %v3381_v12 = vld [vmem:[#allocation3 + $0x18f] sm:$0xff]  ;;  %3317 = vst [vmem:[#allocation3 + $0x1b0] sm:$0xff] %v3235_v56  ;;  %v3022_v4 = vadd.f32 %v8267_v51, %v11581_v54  ;;  %7711 = vmatprep.mubr.f32.mxu0 %v4209_v6  ;;  %v4377_v54 = vld [vmem:[%s13509_s3 + $0x1e0] sm:$0xff] }
 0x482   :  { %4658 = vmatmul.mubr.f32.gmra.mrb[114].mxu1 %v3381_v12  ;;  %v2641_v59 = vpop.f32.mrb[54].mxu0  ;;  %7712 = vmatmul.mubr.msk.f32.gmra.mrb[148].mxu0 %vm7360_vm1, %v4210_v0  ;;  %v8092_v9 = vpack.c.bf16 %v4378_v40, %v4377_v54 }
 0x483   :  { %4662 = vmatprep.mubr.f32.mxu1 %v3234_v42  ;;  %v3236_v45 = vmax.f32 %v3022_v4, 0.0  ;;  %v8268_v10 = vadd.f32 %v11618_v30, %v2641_v59  ;;  %v2643_v34 = vpop.f32.mrb[55].mxu0 }
 0x484   :  { %v3382_v48 = vld [vmem:[#allocation3 + $0x1a7] sm:$0xff]  ;;  %8093 = vmatpush1.bf16.msra.mxu1 %v8092_v9 }
 0x485   :  { %3318 = vst [vmem:[#allocation3 + $0x1c8] sm:$0xff] %v3236_v45  ;;  %v3027_v2 = vadd.f32 %v8268_v10, %v11579_v13  ;;  %8094 = vmatprep.subr.bf16.mxu1 %v13577_v47 }
 0x486   :  { %7002 = vmatmul.mubr.msk.f32.gmra.mrb[116].mxu1 %vm7359_vm0, %v3382_v48  ;;  %v2646_v42 = vpop.f32.mrb[56].mxu0 }
 0x487   :  { %4667 = vmatprep.mubr.f32.mxu1 %v3235_v56  ;;  %v3237_v24 = vmax.f32 %v3027_v2, 0.0  ;;  %v8269_v11 = vadd.f32 %v11618_v30, %v2646_v42  ;;  %v2648_v50 = vpop.f32.mrb[57].mxu0 }
 0x488   :  { %v4211_v51 = vld [vmem:[#allocation3 + $0x1a9] sm:$0xff]  ;;  %v4212_v19 = vld [vmem:[#allocation3 + $0x1b1] sm:$0xff] }
 0x489   :  { %v3383_v13 = vld [vmem:[#allocation3 + $0x1af] sm:$0xff]  ;;  %3319 = vst [vmem:[#allocation3 + $0x1d0] sm:$0xff] %v3237_v24  ;;  %v3032_v6 = vadd.f32 %v8269_v11, %v11596_v18  ;;  %7714 = vmatprep.mubr.f32.mxu0 %v4211_v51 }
 0x48a   :  { %4668 = vmatmul.mubr.f32.gmra.mrb[118].mxu1 %v3383_v13  ;;  %v2651_v12 = vpop.f32.mrb[58].mxu0  ;;  %7715 = vmatmul.mubr.msk.f32.gmra.mrb[150].mxu0 %vm7360_vm1, %v4212_v19  ;;  %v4380_v13 = vld [vmem:[%s13509_s3 + $0x1f8] sm:$0xff] }
 0x48b   :  { %4672 = vmatprep.mubr.f32.mxu1 %v3236_v45  ;;  %v3238_v56 = vmax.f32 %v3032_v6, 0.0  ;;  %v8270_v0 = vadd.f32 %v11618_v30, %v2651_v12  ;;  %v2653_v4 = vpop.f32.mrb[59].mxu0 }
 0x48c   :  { %v3384_v59 = vld [vmem:[#allocation3 + $0x1c7] sm:$0xff] }
 0x48d   :  { %3320 = vst [vmem:[#allocation3 + $0x1e8] sm:$0xff] %v3238_v56  ;;  %v3037_v10 = vadd.f32 %v8270_v0, %v11594_v7 }
 0x48e   :  { %7004 = vmatmul.mubr.msk.f32.gmra.mrb[120].mxu1 %vm7359_vm0, %v3384_v59  ;;  %v2656_v18 = vpop.f32.mrb[60].mxu0 }
 0x48f   :  { %4677 = vmatprep.mubr.f32.mxu1 %v3237_v24  ;;  %v3239_v34 = vmax.f32 %v3037_v10, 0.0  ;;  %v8271_v48 = vadd.f32 %v11618_v30, %v2656_v18  ;;  %v2658_v2 = vpop.f32.mrb[61].mxu0 }
 0x490   :  { %v4213_v45 = vld [vmem:[#allocation3 + $0x1c9] sm:$0xff]  ;;  %v4214_v40 = vld [vmem:[#allocation3 + $0x1d1] sm:$0xff] }
 0x491   :  { %v3385_v54 = vld [vmem:[#allocation3 + $0x1cf] sm:$0xff]  ;;  %3321 = vst [vmem:[#allocation3 + $0x1f0] sm:$0xff] %v3239_v34  ;;  %v3042_v42 = vadd.f32 %v8271_v48, %v11605_v58  ;;  %7717 = vmatprep.mubr.f32.mxu0 %v4213_v45 }
 0x492   :  { %4678 = vmatmul.mubr.f32.gmra.mrb[122].mxu1 %v3385_v54  ;;  %v2661_v9 = vpop.f32.mrb[62].mxu0  ;;  %7718 = vmatmul.mubr.msk.f32.gmra.mrb[152].mxu0 %vm7360_vm1, %v4214_v40  ;;  %v4379_v58 = vld [vmem:[%s13509_s3 + $0x1f0] sm:$0xff]  ;;  %v9140_v48 = vld [vmem:[#allocation2 + $0x8] sm:$0xff] }
 0x493   :  { %4682 = vmatprep.mubr.f32.mxu1 %v3238_v56  ;;  %v3240_v7 = vmax.f32 %v3042_v42, 0.0  ;;  %v8272_v24 = vadd.f32 %v11618_v30, %v2661_v9  ;;  %v2663_v11 = vpop.f32.mrb[63].mxu0  ;;  %v8095_v6 = vpack.c.bf16 %v4380_v13, %v4379_v58  ;;  %v3389_v42 = vld [vmem:[#allocation3 + $0x24f] sm:$0xff] }
 0x494   :  { %v3386_v50 = vld [vmem:[#allocation3 + $0x1e7] sm:$0xff] }
 0x495   :  { %3322 = vst [vmem:[#allocation3 + $0x208] sm:$0xff] %v3240_v7  ;;  %v3047_v51 = vadd.f32 %v8272_v24, %v11602_v28  ;;  %8096 = vmatpush1.bf16.msra.mxu1 %v8095_v6 }
 0x496   :  { %7006 = vmatmul.mubr.msk.f32.gmra.mrb[124].mxu1 %vm7359_vm0, %v3386_v50  ;;  %v2666_v19 = vpop.f32.mrb[64].mxu0  ;;  %8097 = vmatprep.subr.bf16.mxu1 %v13577_v47 }
 0x497   :  { %4687 = vmatprep.mubr.f32.mxu1 %v3239_v34  ;;  %v3241_v12 = vmax.f32 %v3047_v51, 0.0  ;;  %v8273_v56 = vadd.f32 %v11618_v30, %v2666_v19  ;;  %v2668_v0 = vpop.f32.mrb[65].mxu0  ;;  %v3388_v34 = vld [vmem:[#allocation3 + $0x247] sm:$0xff] }
 0x498   :  { %v4215_v4 = vld [vmem:[#allocation3 + $0x1e9] sm:$0xff]  ;;  %v4216_v59 = vld [vmem:[#allocation3 + $0x1f1] sm:$0xff] }
 0x499   :  { %v3387_v28 = vld [vmem:[#allocation3 + $0x1ef] sm:$0xff]  ;;  %3323 = vst [vmem:[#allocation3 + $0x210] sm:$0xff] %v3241_v12  ;;  %v3052_v10 = vadd.f32 %v8273_v56, %v11625_v14  ;;  %7720 = vmatprep.mubr.f32.mxu0 %v4215_v4 }
 0x49a   :  { %4688 = vmatmul.mubr.f32.gmra.mrb[126].mxu1 %v3387_v28  ;;  %v2671_v18 = vpop.f32.mrb[66].mxu0  ;;  %7721 = vmatmul.mubr.msk.f32.gmra.mrb[154].mxu0 %vm7360_vm1, %v4216_v59  ;;  %v4219_v51 = vld [vmem:[#allocation3 + $0x229] sm:$0xff]  ;;  %v4220_v12 = vld [vmem:[#allocation3 + $0x231] sm:$0xff] }
 0x49b   :  { %4692 = vmatprep.mubr.f32.mxu1 %v9140_v48  ;;  %v3242_v2 = vmax.f32 %v3052_v10, 0.0  ;;  %v8274_v45 = vadd.f32 %v11618_v30, %v2671_v18  ;;  %v2673_v54 = vpop.f32.mrb[67].mxu0 }
 0x49d   :  { %3324 = vst [vmem:[#allocation3 + $0x268] sm:$0xff] %v3242_v2  ;;  %v3057_v40 = vadd.f32 %v8274_v45, %v11622_v25 }
 0x49e   :  { %7008 = vmatmul.mubr.msk.f32.gmra.mrb[128].mxu1 %vm7359_vm0, %v3388_v34  ;;  %v2676_v14 = vpop.f32.mrb[68].mxu0 }
 0x49f   :  { %4697 = vmatprep.mubr.f32.mxu1 %v9140_v48  ;;  %v3243_v9 = vmax.f32 %v3057_v40, 0.0  ;;  %v8275_v7 = vadd.f32 %v11618_v30, %v2676_v14  ;;  %v2678_v24 = vpop.f32.mrb[69].mxu0 }
 0x4a0   :  { %v4217_v11 = vld [vmem:[#allocation3 + $0x209] sm:$0xff]  ;;  %v4218_v50 = vld [vmem:[#allocation3 + $0x211] sm:$0xff] }
 0x4a1   :  { %3325 = vst [vmem:[#allocation3 + $0x270] sm:$0xff] %v3243_v9  ;;  %v3062_v58 = vadd.f32 %v8275_v7, %v11635_v23  ;;  %7723 = vmatprep.mubr.f32.mxu0 %v4217_v11 }
 0x4a2   :  { %4698 = vmatmul.mubr.f32.gmra.mrb[130].mxu1 %v3389_v42  ;;  %v2681_v13 = vpop.f32.mrb[70].mxu0  ;;  %7724 = vmatmul.mubr.msk.f32.gmra.mrb[156].mxu0 %vm7360_vm1, %v4218_v50 }
 0x4a3   :  { %4702 = vmatprep.mubr.f32.mxu1 %v3242_v2  ;;  %v3244_v25 = vmax.f32 %v3062_v58, 0.0  ;;  %v8276_v19 = vadd.f32 %v11618_v30, %v2681_v13  ;;  %v2683_v6 = vpop.f32.mrb[71].mxu0  ;;  %7726 = vmatprep.mubr.f32.mxu0 %v4219_v51 }
 0x4a4   :  { %v3390_v56 = vld [vmem:[#allocation3 + $0x267] sm:$0xff] }
 0x4a5   :  { %3326 = vst [vmem:[#allocation3 + $0x288] sm:$0xff] %v3244_v25  ;;  %v3067_v0 = vadd.f32 %v8276_v19, %v11632_v60 }
 0x4a6   :  { %7010 = vmatmul.mubr.msk.f32.gmra.mrb[132].mxu1 %vm7359_vm0, %v3390_v56  ;;  %v2686_v23 = vpop.f32.mrb[72].mxu0  ;;  %7727 = vmatmul.mubr.msk.f32.gmra.mrb[158].mxu0 %vm7360_vm1, %v4220_v12 }
 0x4a7   :  { %4707 = vmatprep.mubr.f32.mxu1 %v3243_v9  ;;  %v3245_v4 = vmax.f32 %v3067_v0, 0.0  ;;  %v8277_v28 = vadd.f32 %v11618_v30, %v2686_v23  ;;  %v2688_v59 = vpop.f32.mrb[73].mxu0 }
 0x4a8   :  { %v3391_v10 = vld [vmem:[#allocation3 + $0x26f] sm:$0xff] }
 0x4a9   :  { %3327 = vst [vmem:[#allocation3 + $0x290] sm:$0xff] %v3245_v4  ;;  %v3072_v18 = vadd.f32 %v8277_v28, %v11654_v39  ;;  %v11901_v39 = vld [vmem:[%s13510_s2] ss:$0 sm:$0xff] }
 0x4aa   :  { %4708 = vmatmul.mubr.f32.gmra.mrb[134].mxu1 %v3391_v10  ;;  %v2691_v48 = vpop.f32.mrb[74].mxu0 }
 0x4ab   :  { %4712 = vmatprep.mubr.f32.mxu1 %v3244_v25  ;;  %v3246_v60 = vmax.f32 %v3072_v18, 0.0  ;;  %v8278_v34 = vadd.f32 %v11618_v30, %v2691_v48  ;;  %v2693_v2 = vpop.f32.mrb[75].mxu0 }
 0x4ac   :  { %v3392_v45 = vld [vmem:[#allocation3 + $0x287] sm:$0xff] }
 0x4ad   :  { %3328 = vst [vmem:[#allocation3 + $0x2a8] sm:$0xff] %v3246_v60  ;;  %v3077_v54 = vadd.f32 %v8278_v34, %v11651_v31 }
 0x4ae   :  { %7012 = vmatmul.mubr.msk.f32.gmra.mrb[136].mxu1 %vm7359_vm0, %v3392_v45  ;;  %v2696_v40 = vpop.f32.mrb[76].mxu0 }
 0x4af   :  { %4717 = vmatprep.mubr.f32.mxu1 %v3245_v4  ;;  %v3247_v14 = vmax.f32 %v3077_v54, 0.0  ;;  %v8279_v42 = vadd.f32 %v11901_v39, %v2696_v40  ;;  %v2698_v9 = vpop.f32.mrb[77].mxu0 }
 0x4b0   :  { %v4221_v30 = vld [vmem:[#allocation3 + $0x289] sm:$0xff]  ;;  %v4222_v24 = vld [vmem:[#allocation3 + $0x291] sm:$0xff] }
 0x4b1   :  { %v3393_v7 = vld [vmem:[#allocation3 + $0x28f] sm:$0xff]  ;;  %3329 = vst [vmem:[#allocation3 + $0x2b0] sm:$0xff] %v3247_v14  ;;  %v3082_v31 = vadd.f32 %v8279_v42, %v11666_v27  ;;  %7729 = vmatprep.mubr.f32.mxu0 %v4221_v30 }
 0x4b2   :  { %4718 = vmatmul.mubr.f32.gmra.mrb[138].mxu1 %v3393_v7  ;;  %v2701_v11 = vpop.f32.mrb[78].mxu0  ;;  %7730 = vmatmul.mubr.msk.f32.gmra.mrb[160].mxu0 %vm7360_vm1, %v4222_v24 }
 0x4b3   :  { %4722 = vmatprep.mubr.f32.mxu1 %v3246_v60  ;;  %v3248_v50 = vmax.f32 %v3082_v31, 0.0  ;;  %v8280_v51 = vadd.f32 %v11901_v39, %v2701_v11  ;;  %v2703_v58 = vpop.f32.mrb[79].mxu0 }
 0x4b4   :  { %v3394_v13 = vld [vmem:[#allocation3 + $0x2a7] sm:$0xff] }
 0x4b5   :  { %3330 = vst [vmem:[#allocation3 + $0x2c8] sm:$0xff] %v3248_v50  ;;  %v3087_v25 = vadd.f32 %v8280_v51, %v11663_v38 }
 0x4b6   :  { %7014 = vmatmul.mubr.msk.f32.gmra.mrb[140].mxu1 %vm7359_vm0, %v3394_v13  ;;  %v2706_v19 = vpop.f32.mrb[80].mxu0 }
 0x4b7   :  { %4727 = vmatprep.mubr.f32.mxu1 %v3247_v14  ;;  %v3249_v27 = vmax.f32 %v3087_v25, 0.0  ;;  %v8281_v6 = vadd.f32 %v11901_v39, %v2706_v19  ;;  %v2708_v12 = vpop.f32.mrb[81].mxu0 }
 0x4b8   :  { %v4223_v56 = vld [vmem:[#allocation3 + $0x2a9] sm:$0xff]  ;;  %v4224_v23 = vld [vmem:[#allocation3 + $0x2b1] sm:$0xff] }
 0x4b9   :  { %v3395_v0 = vld [vmem:[#allocation3 + $0x2af] sm:$0xff]  ;;  %3331 = vst [vmem:[#allocation3 + $0x2d0] sm:$0xff] %v3249_v27  ;;  %v3092_v4 = vadd.f32 %v8281_v6, %v11685_v22  ;;  %7732 = vmatprep.mubr.f32.mxu0 %v4223_v56 }
 0x4ba   :  { %4728 = vmatmul.mubr.f32.gmra.mrb[142].mxu1 %v3395_v0  ;;  %v2711_v28 = vpop.f32.mrb[82].mxu0  ;;  %7733 = vmatmul.mubr.msk.f32.gmra.mrb[162].mxu0 %vm7360_vm1, %v4224_v23 }
 0x4bb   :  { %4732 = vmatprep.mubr.f32.mxu1 %v3248_v50  ;;  %v3250_v38 = vmax.f32 %v3092_v4, 0.0  ;;  %v8282_v59 = vadd.f32 %v11901_v39, %v2711_v28  ;;  %v2713_v10 = vpop.f32.mrb[83].mxu0 }
 0x4bc   :  { %v3396_v18 = vld [vmem:[#allocation3 + $0x2c7] sm:$0xff] }
 0x4bd   :  { %3332 = vst [vmem:[#allocation3 + $0x2e8] sm:$0xff] %v3250_v38  ;;  %v3097_v48 = vadd.f32 %v8282_v59, %v11682_v37 }
 0x4be   :  { %7016 = vmatmul.mubr.msk.f32.gmra.mrb[144].mxu1 %vm7359_vm0, %v3396_v18  ;;  %v2716_v60 = vpop.f32.mrb[84].mxu0 }
 0x4bf   :  { %4737 = vmatprep.mubr.f32.mxu1 %v3249_v27  ;;  %v3251_v22 = vmax.f32 %v3097_v48, 0.0  ;;  %v8283_v34 = vadd.f32 %v11901_v39, %v2716_v60  ;;  %v2718_v2 = vpop.f32.mrb[85].mxu0 }
 0x4c0   :  { %v4225_v45 = vld [vmem:[#allocation3 + $0x2c9] sm:$0xff]  ;;  %v4226_v40 = vld [vmem:[#allocation3 + $0x2d1] sm:$0xff] }
 0x4c1   :  { %v3397_v54 = vld [vmem:[#allocation3 + $0x2cf] sm:$0xff]  ;;  %3333 = vst [vmem:[#allocation3 + $0x2f0] sm:$0xff] %v3251_v22  ;;  %v3102_v14 = vadd.f32 %v8283_v34, %v11699_v1  ;;  %7735 = vmatprep.mubr.f32.mxu0 %v4225_v45 }
 0x4c2   :  { %4738 = vmatmul.mubr.f32.gmra.mrb[146].mxu1 %v3397_v54  ;;  %v2721_v42 = vpop.f32.mrb[86].mxu0  ;;  %7736 = vmatmul.mubr.msk.f32.gmra.mrb[164].mxu0 %vm7360_vm1, %v4226_v40 }
 0x4c3   :  { %4742 = vmatprep.mubr.f32.mxu1 %v3250_v38  ;;  %v3252_v37 = vmax.f32 %v3102_v14, 0.0  ;;  %v8284_v9 = vadd.f32 %v11901_v39, %v2721_v42  ;;  %v2723_v30 = vpop.f32.mrb[87].mxu0 }
 0x4c4   :  { %v3398_v7 = vld [vmem:[#allocation3 + $0x2e7] sm:$0xff] }
 0x4c5   :  { %3334 = vst [vmem:[#allocation3 + $0x308] sm:$0xff] %v3252_v37  ;;  %v3107_v24 = vadd.f32 %v8284_v9, %v11696_v41 }
 0x4c6   :  { %7018 = vmatmul.mubr.msk.f32.gmra.mrb[148].mxu1 %vm7359_vm0, %v3398_v7  ;;  %v2726_v31 = vpop.f32.mrb[88].mxu0 }
 0x4c7   :  { %4747 = vmatprep.mubr.f32.mxu1 %v3251_v22  ;;  %v3253_v1 = vmax.f32 %v3107_v24, 0.0  ;;  %v8285_v11 = vadd.f32 %v11901_v39, %v2726_v31  ;;  %v2728_v50 = vpop.f32.mrb[89].mxu0 }
 0x4c8   :  { %v4227_v51 = vld [vmem:[#allocation3 + $0x2e9] sm:$0xff]  ;;  %v4228_v13 = vld [vmem:[#allocation3 + $0x2f1] sm:$0xff] }
 0x4c9   :  { %v3399_v58 = vld [vmem:[#allocation3 + $0x2ef] sm:$0xff]  ;;  %3335 = vst [vmem:[#allocation3 + $0x310] sm:$0xff] %v3253_v1  ;;  %v3112_v25 = vadd.f32 %v8285_v11, %v11720_v20  ;;  %7738 = vmatprep.mubr.f32.mxu0 %v4227_v51 }
 0x4ca   :  { %4748 = vmatmul.mubr.f32.gmra.mrb[150].mxu1 %v3399_v58  ;;  %v2731_v19 = vpop.f32.mrb[90].mxu0  ;;  %7739 = vmatmul.mubr.msk.f32.gmra.mrb[166].mxu0 %vm7360_vm1, %v4228_v13 }
 0x4cb   :  { %4752 = vmatprep.mubr.f32.mxu1 %v3252_v37  ;;  %v3254_v41 = vmax.f32 %v3112_v25, 0.0  ;;  %v8286_v27 = vadd.f32 %v11901_v39, %v2731_v19  ;;  %v2733_v6 = vpop.f32.mrb[91].mxu0 }
 0x4cc   :  { %v3400_v12 = vld [vmem:[#allocation3 + $0x307] sm:$0xff] }
 0x4cd   :  { %3336 = vst [vmem:[#allocation3 + $0x328] sm:$0xff] %v3254_v41  ;;  %v3117_v56 = vadd.f32 %v8286_v27, %v11715_v21 }
 0x4ce   :  { %7020 = vmatmul.mubr.msk.f32.gmra.mrb[152].mxu1 %vm7359_vm0, %v3400_v12  ;;  %v2736_v0 = vpop.f32.mrb[92].mxu0 }
 0x4cf   :  { %4757 = vmatprep.mubr.f32.mxu1 %v3253_v1  ;;  %v3255_v20 = vmax.f32 %v3117_v56, 0.0  ;;  %v8287_v23 = vadd.f32 %v11901_v39, %v2736_v0  ;;  %v2738_v4 = vpop.f32.mrb[93].mxu0 }
 0x4d0   :  { %v4229_v28 = vld [vmem:[#allocation3 + $0x309] sm:$0xff]  ;;  %v4230_v59 = vld [vmem:[#allocation3 + $0x311] sm:$0xff] }
 0x4d1   :  { %v11936_v38 = vld [vmem:[#allocation3 + $0x30f] sm:$0xff]  ;;  %3337 = vst [vmem:[#allocation3 + $0x330] sm:$0xff] %v3255_v20  ;;  %v3122_v10 = vadd.f32 %v8287_v23, %v11728_v55  ;;  %7741 = vmatprep.mubr.f32.mxu0 %v4229_v28 }
 0x4d2   :  { %4758 = vmatmul.mubr.f32.gmra.mrb[154].mxu1 %v11936_v38  ;;  %v2741_v21 = vpop.f32.mrb[94].mxu0  ;;  %7742 = vmatmul.mubr.msk.f32.gmra.mrb[168].mxu0 %vm7360_vm1, %v4230_v59 }
 0x4d3   :  { %4762 = vmatprep.mubr.f32.mxu1 %v3254_v41  ;;  %v3256_v18 = vmax.f32 %v3122_v10, 0.0  ;;  %v8288_v48 = vadd.f32 %v11901_v39, %v2741_v21  ;;  %v2743_v60 = vpop.f32.mrb[95].mxu0 }
 0x4d4   :  { %v11943_v22 = vld [vmem:[#allocation3 + $0x327] sm:$0xff] }
 0x4d5   :  { %3338 = vst [vmem:[#allocation3 + $0x348] sm:$0xff] %v3256_v18  ;;  %v3127_v34 = vadd.f32 %v8288_v48, %v11726_v26 }
 0x4d6   :  { %7022 = vmatmul.mubr.msk.f32.gmra.mrb[156].mxu1 %vm7359_vm0, %v11943_v22  ;;  %v2746_v55 = vpop.f32.mrb[96].mxu0 }
 0x4d7   :  { %4767 = vmatprep.mubr.f32.mxu1 %v3255_v20  ;;  %v3257_v2 = vmax.f32 %v3127_v34, 0.0  ;;  %v8289_v45 = vadd.f32 %v11901_v39, %v2746_v55  ;;  %v2748_v54 = vpop.f32.mrb[97].mxu0 }
 0x4d8   :  { %v4231_v40 = vld [vmem:[#allocation3 + $0x329] sm:$0xff]  ;;  %v11952_v42 = vld [vmem:[#allocation3 + $0x331] sm:$0xff] }
 0x4d9   :  { %v11950_v14 = vld [vmem:[#allocation3 + $0x32f] sm:$0xff]  ;;  %3339 = vst [vmem:[#allocation3 + $0x350] sm:$0xff] %v3257_v2  ;;  %v3132_v37 = vadd.f32 %v8289_v45, %v11738_v29  ;;  %7744 = vmatprep.mubr.f32.mxu0 %v4231_v40 }
 0x4da   :  { %4768 = vmatmul.mubr.f32.gmra.mrb[158].mxu1 %v11950_v14  ;;  %v2751_v26 = vpop.f32.mrb[98].mxu0  ;;  %7745 = vmatmul.mubr.msk.f32.gmra.mrb[170].mxu0 %vm7360_vm1, %v11952_v42 }
 0x4db   :  { %4772 = vmatprep.mubr.f32.mxu1 %v3256_v18  ;;  %v3258_v9 = vmax.f32 %v3132_v37, 0.0  ;;  %v8290_v30 = vadd.f32 %v11901_v39, %v2751_v26  ;;  %v2753_v7 = vpop.f32.mrb[99].mxu0 }
 0x4dc   :  { %v11960_v24 = vld [vmem:[#allocation3 + $0x347] sm:$0xff] }
 0x4dd   :  { %3340 = vst [vmem:[#allocation3 + $0x368] sm:$0xff] %v3258_v9  ;;  %v3137_v31 = vadd.f32 %v8290_v30, %v11736_v16 }
 0x4de   :  { %7024 = vmatmul.mubr.msk.f32.gmra.mrb[160].mxu1 %vm7359_vm0, %v11960_v24  ;;  %v2756_v29 = vpop.f32.mrb[100].mxu0 }
 0x4df   :  { %4777 = vmatprep.mubr.f32.mxu1 %v3257_v2  ;;  %v3259_v1 = vmax.f32 %v3137_v31, 0.0  ;;  %v8291_v11 = vadd.f32 %v11901_v39, %v2756_v29  ;;  %v2758_v50 = vpop.f32.mrb[101].mxu0 }
 0x4e0   :  { %v11967_v51 = vld [vmem:[#allocation3 + $0x349] sm:$0xff]  ;;  %v11971_v13 = vld [vmem:[#allocation3 + $0x351] sm:$0xff] }
 0x4e1   :  { %v11969_v58 = vld [vmem:[#allocation3 + $0x34f] sm:$0xff]  ;;  %3341 = vst [vmem:[#allocation3 + $0x370] sm:$0xff] %v3259_v1  ;;  %v3142_v25 = vadd.f32 %v8291_v11, %v11746_v3  ;;  %7747 = vmatprep.mubr.f32.mxu0 %v11967_v51 }
 0x4e2   :  { %4778 = vmatmul.mubr.f32.gmra.mrb[162].mxu1 %v11969_v58  ;;  %v2761_v16 = vpop.f32.mrb[102].mxu0  ;;  %7748 = vmatmul.mubr.msk.f32.gmra.mrb[172].mxu0 %vm7360_vm1, %v11971_v13 }
 0x4e3   :  { %4782 = vmatprep.mubr.f32.mxu1 %v3258_v9  ;;  %v3260_v19 = vmax.f32 %v3142_v25, 0.0  ;;  %v8292_v41 = vadd.f32 %v11901_v39, %v2761_v16  ;;  %v2763_v27 = vpop.f32.mrb[103].mxu0 }
 0x4e4   :  { %v11980_v6 = vld [vmem:[#allocation3 + $0x367] sm:$0xff] }
 0x4e5   :  { %3342 = vst [vmem:[#allocation3 + $0x388] sm:$0xff] %v3260_v19  ;;  %v3147_v12 = vadd.f32 %v8292_v41, %v11744_v62 }
 0x4e6   :  { %7026 = vmatmul.mubr.msk.f32.gmra.mrb[164].mxu1 %vm7359_vm0, %v11980_v6  ;;  %v2766_v3 = vpop.f32.mrb[104].mxu0 }
 0x4e7   :  { %4787 = vmatprep.mubr.f32.mxu1 %v3259_v1  ;;  %v3261_v56 = vmax.f32 %v3147_v12, 0.0  ;;  %v8293_v0 = vadd.f32 %v11901_v39, %v2766_v3  ;;  %v2768_v20 = vpop.f32.mrb[105].mxu0 }
 0x4e8   :  { %v11987_v23 = vld [vmem:[#allocation3 + $0x369] sm:$0xff]  ;;  %v11991_v28 = vld [vmem:[#allocation3 + $0x371] sm:$0xff] }
 0x4e9   :  { %v11989_v4 = vld [vmem:[#allocation3 + $0x36f] sm:$0xff]  ;;  %3343 = vst [vmem:[#allocation3 + $0x390] sm:$0xff] %v3261_v56  ;;  %v3152_v59 = vadd.f32 %v8293_v0, %v11760_v53  ;;  %7750 = vmatprep.mubr.f32.mxu0 %v11987_v23 }
 0x4ea   :  { %4788 = vmatmul.mubr.f32.gmra.mrb[166].mxu1 %v11989_v4  ;;  %v2771_v62 = vpop.f32.mrb[106].mxu0  ;;  %7751 = vmatmul.mubr.msk.f32.gmra.mrb[174].mxu0 %vm7360_vm1, %v11991_v28 }
 0x4eb   :  { %4792 = vmatprep.mubr.f32.mxu1 %v3260_v19  ;;  %v3262_v10 = vmax.f32 %v3152_v59, 0.0  ;;  %v8294_v21 = vadd.f32 %v11901_v39, %v2771_v62  ;;  %v2773_v18 = vpop.f32.mrb[107].mxu0 }
 0x4ec   :  { %v12000_v48 = vld [vmem:[#allocation3 + $0x387] sm:$0xff] }
 0x4ed   :  { %3344 = vst [vmem:[#allocation3 + $0x3a8] sm:$0xff] %v3262_v10  ;;  %v3157_v60 = vadd.f32 %v8294_v21, %v11758_v32 }
 0x4ee   :  { %7028 = vmatmul.mubr.msk.f32.gmra.mrb[168].mxu1 %vm7359_vm0, %v12000_v48  ;;  %v2776_v53 = vpop.f32.mrb[108].mxu0 }
 0x4ef   :  { %4797 = vmatprep.mubr.f32.mxu1 %v3261_v56  ;;  %v3263_v34 = vmax.f32 %v3157_v60, 0.0  ;;  %v8295_v55 = vadd.f32 %v11901_v39, %v2776_v53  ;;  %v2778_v2 = vpop.f32.mrb[109].mxu0 }
 0x4f0   :  { %v12007_v45 = vld [vmem:[#allocation3 + $0x389] sm:$0xff]  ;;  %v12011_v40 = vld [vmem:[#allocation3 + $0x391] sm:$0xff] }
 0x4f1   :  { %v12009_v54 = vld [vmem:[#allocation3 + $0x38f] sm:$0xff]  ;;  %3345 = vst [vmem:[#allocation3 + $0x3b0] sm:$0xff] %v3263_v34  ;;  %v3162_v37 = vadd.f32 %v8295_v55, %v11769_v61  ;;  %7753 = vmatprep.mubr.f32.mxu0 %v12007_v45 }
 0x4f2   :  { %4798 = vmatmul.mubr.f32.gmra.mrb[170].mxu1 %v12009_v54  ;;  %v2781_v32 = vpop.f32.mrb[110].mxu0  ;;  %7754 = vmatmul.mubr.msk.f32.gmra.mrb[176].mxu0 %vm7360_vm1, %v12011_v40 }
 0x4f3   :  { %4802 = vmatprep.mubr.f32.mxu1 %v3262_v10  ;;  %v3264_v26 = vmax.f32 %v3162_v37, 0.0  ;;  %v8296_v9 = vadd.f32 %v11901_v39, %v2781_v32  ;;  %v2783_v30 = vpop.f32.mrb[111].mxu0 }
 0x4f4   :  { %v12020_v7 = vld [vmem:[#allocation3 + $0x3a7] sm:$0xff] }
 0x4f5   :  { %3346 = vst [vmem:[#allocation3 + $0x3c8] sm:$0xff] %v3264_v26  ;;  %v3167_v31 = vadd.f32 %v8296_v9, %v11766_v15 }
 0x4f6   :  { %7030 = vmatmul.mubr.msk.f32.gmra.mrb[172].mxu1 %vm7359_vm0, %v12020_v7  ;;  %v2786_v61 = vpop.f32.mrb[112].mxu0 }
 0x4f7   :  { %4807 = vmatprep.mubr.f32.mxu1 %v3263_v34  ;;  %v3265_v29 = vmax.f32 %v3167_v31, 0.0  ;;  %v8297_v1 = vadd.f32 %v11901_v39, %v2786_v61  ;;  %v2788_v11 = vpop.f32.mrb[113].mxu0 }
 0x4f8   :  { %v12027_v50 = vld [vmem:[#allocation3 + $0x3a9] sm:$0xff]  ;;  %v12031_v16 = vld [vmem:[#allocation3 + $0x3b1] sm:$0xff] }
 0x4f9   :  { %v12029_v25 = vld [vmem:[#allocation3 + $0x3af] sm:$0xff]  ;;  %3347 = vst [vmem:[#allocation3 + $0x3d0] sm:$0xff] %v3265_v29  ;;  %v3172_v19 = vadd.f32 %v8297_v1, %v11777_v35  ;;  %7756 = vmatprep.mubr.f32.mxu0 %v12027_v50 }
 0x4fa   :  { %4808 = vmatmul.mubr.f32.gmra.mrb[174].mxu1 %v12029_v25  ;;  %v2791_v15 = vpop.f32.mrb[114].mxu0  ;;  %7757 = vmatmul.mubr.msk.f32.gmra.mrb[178].mxu0 %vm7360_vm1, %v12031_v16 }
 0x4fb   :  { %4812 = vmatprep.mubr.f32.mxu1 %v3264_v26  ;;  %v3266_v41 = vmax.f32 %v3172_v19, 0.0  ;;  %v8298_v27 = vadd.f32 %v11901_v39, %v2791_v15  ;;  %v2793_v12 = vpop.f32.mrb[115].mxu0 }
 0x4fc   :  { %v12040_v3 = vld [vmem:[#allocation3 + $0x3c7] sm:$0xff] }
 0x4fd   :  { %3348 = vst [vmem:[#allocation3 + $0x3e8] sm:$0xff] %v3266_v41  ;;  %v3177_v56 = vadd.f32 %v8298_v27, %v11775_v17 }
 0x4fe   :  { %7032 = vmatmul.mubr.msk.f32.gmra.mrb[176].mxu1 %vm7359_vm0, %v12040_v3  ;;  %v2796_v35 = vpop.f32.mrb[116].mxu0 }
 0x4ff   :  { %4817 = vmatprep.mubr.f32.mxu1 %v3265_v29  ;;  %v3267_v0 = vmax.f32 %v3177_v56, 0.0  ;;  %v8299_v20 = vadd.f32 %v11901_v39, %v2796_v35  ;;  %v2798_v59 = vpop.f32.mrb[117].mxu0 }
 0x500   :  { %v12047_v62 = vld [vmem:[#allocation3 + $0x3c9] sm:$0xff]  ;;  %v12051_v21 = vld [vmem:[#allocation3 + $0x3d1] sm:$0xff] }
 0x501   :  { %v12049_v10 = vld [vmem:[#allocation3 + $0x3cf] sm:$0xff]  ;;  %3349 = vst [vmem:[#allocation3 + $0x3f0] sm:$0xff] %v3267_v0  ;;  %v3182_v18 = vadd.f32 %v8299_v20, %v11785_v57  ;;  %7759 = vmatprep.mubr.f32.mxu0 %v12047_v62 }
 0x502   :  { %4818 = vmatmul.mubr.f32.gmra.mrb[178].mxu1 %v12049_v10  ;;  %v2801_v17 = vpop.f32.mrb[118].mxu0  ;;  %7760 = vmatmul.mubr.msk.f32.gmra.mrb[180].mxu0 %vm7360_vm1, %v12051_v21 }
 0x503   :  { %4822 = vmatprep.mubr.f32.mxu1 %v3266_v41  ;;  %v3268_v60 = vmax.f32 %v3182_v18, 0.0  ;;  %v8300_v53 = vadd.f32 %v11901_v39, %v2801_v17  ;;  %v2803_v34 = vpop.f32.mrb[119].mxu0 }
 0x504   :  { %v12060_v55 = vld [vmem:[#allocation3 + $0x3e7] sm:$0xff] }
 0x505   :  { %3350 = vst [vmem:[#allocation3 + $0x408] sm:$0xff] %v3268_v60  ;;  %v3187_v2 = vadd.f32 %v8300_v53, %v11783_v36  ;;  %v4382_v34 = vld [vmem:[%s13509_s3 + $0x208] sm:$0xff] }
 0x506   :  { %7034 = vmatmul.mubr.msk.f32.gmra.mrb[180].mxu1 %vm7359_vm0, %v12060_v55  ;;  %v2806_v57 = vpop.f32.mrb[120].mxu0 }
 0x507   :  { %4827 = vmatprep.mubr.f32.mxu1 %v3267_v0  ;;  %v3269_v37 = vmax.f32 %v3187_v2, 0.0  ;;  %v8301_v32 = vadd.f32 %v11901_v39, %v2806_v57  ;;  %v2808_v26 = vpop.f32.mrb[121].mxu0 }
 0x508   :  { %v12067_v9 = vld [vmem:[#allocation3 + $0x3e9] sm:$0xff]  ;;  %v12071_v31 = vld [vmem:[#allocation3 + $0x3f1] sm:$0xff] }
 0x509   :  { %v12069_v30 = vld [vmem:[#allocation3 + $0x3ef] sm:$0xff]  ;;  %3351 = vst [vmem:[#allocation3 + $0x410] sm:$0xff] %v3269_v37  ;;  %v3192_v61 = vadd.f32 %v8301_v32, %v11799_v8  ;;  %7762 = vmatprep.mubr.f32.mxu0 %v12067_v9 }
 0x50a   :  { %4828 = vmatmul.mubr.f32.gmra.mrb[182].mxu1 %v12069_v30  ;;  %v2811_v36 = vpop.f32.mrb[122].mxu0  ;;  %7763 = vmatmul.mubr.msk.f32.gmra.mrb[182].mxu0 %vm7360_vm1, %v12071_v31 }
 0x50b   :  { %4832 = vmatprep.mubr.f32.mxu1 %v3268_v60  ;;  %v3270_v29 = vmax.f32 %v3192_v61, 0.0  ;;  %v8302_v1 = vadd.f32 %v11901_v39, %v2811_v36  ;;  %v2813_v11 = vpop.f32.mrb[123].mxu0  ;;  %v4383_v61 = vld [vmem:[%s13509_s3 + $0x210] sm:$0xff]  ;;  %v4384_v36 = vld [vmem:[%s13509_s3 + $0x218] sm:$0xff] }
 0x50c   :  { %v12080_v19 = vld [vmem:[#allocation3 + $0x407] sm:$0xff]  ;;  %v3549_v11 = vld [vmem:[#allocation3 + $0x11] sm:$0xff] }
 0x50d   :  { %3352 = vst [vmem:[#allocation3 + $0x428] sm:$0xff] %v3270_v29  ;;  %v3197_v15 = vadd.f32 %v8302_v1, %v11797_v5 }
 0x50e   :  { %7036 = vmatmul.mubr.msk.f32.gmra.mrb[184].mxu1 %vm7359_vm0, %v12080_v19  ;;  %v2816_v8 = vpop.f32.mrb[124].mxu0 }
 0x50f   :  { %4837 = vmatprep.mubr.f32.mxu1 %v3269_v37  ;;  %v3271_v41 = vmax.f32 %v3197_v15, 0.0  ;;  %v8303_v27 = vadd.f32 %v11901_v39, %v2816_v8  ;;  %v2818_v12 = vpop.f32.mrb[125].mxu0  ;;  %v3548_v37 = vld [vmem:[#allocation3 + $0x9] sm:$0xff]  ;;  %v8101_v15 = vpack.c.bf16 %v4384_v36, %v4383_v61  ;;  %v12163_v61 = vld [vmem:[#allocation3 + $0x31] sm:$0xff] }
 0x510   :  { %v12087_v56 = vld [vmem:[#allocation3 + $0x40f] sm:$0xff]  ;;  %v3678_v12 = vld [vmem:[#allocation3 + $0x47] sm:$0xff] }
 0x511   :  { %3353 = vst [vmem:[#allocation3 + $0x430] sm:$0xff] %v3271_v41  ;;  %v3202_v35 = vadd.f32 %v8303_v27, %v11808_v63  ;;  %v4386_v27 = vld [vmem:[%s13509_s3 + $0x228] sm:$0xff] }
 0x512   :  { %4838 = vmatmul.mubr.f32.gmra.mrb[186].mxu1 %v12087_v56  ;;  %v2821_v0 = vpop.f32.mrb[126].mxu0  ;;  %v3680_v36 = vld [vmem:[#allocation3 + $0x67] sm:$0xff] }
 0x513   :  { %4842 = vmatprep.mubr.f32.mxu1 %v3270_v29  ;;  %v3272_v5 = vmax.f32 %v3202_v35, 0.0  ;;  %v8304_v20 = vadd.f32 %v11901_v39, %v2821_v0  ;;  %v2823_v59 = vpop.f32.mrb[127].mxu0  ;;  %v4381_v39 = vld [vmem:[%s13509_s3 + $0x200] sm:$0xff]  ;;  %v3677_v29 = vld [vmem:[#allocation3 + $0x2f] sm:$0xff] }
 0x514   :  { %v12092_v18 = vld [vmem:[#allocation3 + $0x427] sm:$0xff]  ;;  %v8098_v32 = vpack.c.bf16 %v4382_v34, %v4381_v39  ;;  %v4388_v59 = vld [vmem:[%s13509_s3 + $0x238] sm:$0xff] }
 0x515   :  { %3354 = vst [vmem:[#allocation3 + $0x448] sm:$0xff] %v3272_v5  ;;  %v3207_v17 = vadd.f32 %v8304_v20, %v11805_v52  ;;  %v3676_v52 = vld [vmem:[#allocation3 + $0x27] sm:$0xff]  ;;  %v4387_v20 = vld [vmem:[%s13509_s3 + $0x230] sm:$0xff] }
 0x516   :  { %7038 = vmatmul.mubr.msk.f32.gmra.mrb[188].mxu1 %vm7359_vm0, %v12092_v18  ;;  %v12098_v60 = vpop.f32.mrb[128].mxu0  ;;  %v8107_v34 = vpack.c.bf16 %v4388_v59, %v4387_v20  ;;  %v4393_v59 = vld [vmem:[%s13509_s3 + $0x260] sm:$0xff] }
 0x517   :  { %13618 = vst [vmem:[#allocation5_spill] sm:$0xff] %v12098_v60  ;;  %4847 = vmatprep.mubr.f32.mxu1 %v3271_v41  ;;  %v3273_v63 = vmax.f32 %v3207_v17, 0.0  ;;  %v12100_v53 = vpop.f32.mrb[129].mxu0  ;;  %v4385_v41 = vld [vmem:[%s13509_s3 + $0x220] sm:$0xff]  ;;  %v12149_v17 = vld [vmem:[#allocation3 + $0x29] sm:$0xff] }
 0x518   :  { %13619 = vst [vmem:[#allocation6_spill] sm:$0xff] %v12100_v53  ;;  %v12108_v2 = vld [vmem:[#allocation3 + $0x42f] sm:$0xff]  ;;  %v8104_v0 = vpack.c.bf16 %v4386_v27, %v4385_v41 }
 0x519   :  { %3355 = vst [vmem:[#allocation3 + $0x450] sm:$0xff] %v3273_v63  ;;  %v3679_v63 = vld [vmem:[#allocation3 + $0x4f] sm:$0xff] }
 0x51a   :  { %4848 = vmatmul.mubr.f32.gmra.mrb[190].mxu1 %v12108_v2  ;;  %v12111_v57 = vpop.f32.mrb[130].mxu0  ;;  %v12177_v41 = vld [vmem:[#allocation3 + $0x49] sm:$0xff] }
 0x51b   :  { %13620 = vst [vmem:[#allocation4_spill] sm:$0xff] %v12111_v57  ;;  %7040 = vmatprep.mubr.msk.f32.mxu1 %vm7359_vm0, %v3676_v52  ;;  %v12115_v26 = vpop.f32.mrb[131].mxu0  ;;  %v12333_v57 = vld [vmem:[#allocation3 + $0x131] sm:$0xff] }
 0x51c   :  { %13621 = vst [vmem:[#allocation16_spill] sm:$0xff] %v12115_v26 }
 0x51e   :  { %4918 = vmatmul.mubr.f32.vlgmr.msra.gmra.mrb[64].mxu1 %v3548_v37  ;;  %v12123_v1 = vpop.f32.mrb[132].mxu0  ;;  %v4389_v37 = vld [vmem:[%s13509_s3 + $0x240] sm:$0xff] }
 0x51f   :  { %13622 = vst [vmem:[#allocation17_spill] sm:$0xff] %v12123_v1  ;;  %4922 = vmatprep.mubr.f32.mxu1 %v3677_v29  ;;  %8099 = vmatpush1.bf16.msra.mxu1 %v8098_v32  ;;  %v12125_v8 = vpop.f32.mrb[133].mxu0  ;;  %v4390_v32 = vld [vmem:[%s13509_s3 + $0x248] sm:$0xff] }
 0x520   :  { %13623 = vst [vmem:[#allocation18_spill] sm:$0xff] %v12125_v8  ;;  %8100 = vmatprep.subr.bf16.mxu1 %v13577_v47  ;;  %v8110_v29 = vpack.c.bf16 %v4390_v32, %v4389_v37  ;;  %v3682_v37 = vld [vmem:[#allocation3 + $0x87] sm:$0xff] }
 0x522   :  { %7042 = vmatmul.mubr.msk.f32.gmra.mrb[66].mxu1 %vm7360_vm1, %v3549_v11  ;;  %v12136_v35 = vpop.f32.mrb[134].mxu0  ;;  %v4391_v11 = vld [vmem:[%s13509_s3 + $0x250] sm:$0xff] }
 0x523   :  { %13624 = vst [vmem:[#allocation19_spill] sm:$0xff] %v12136_v35  ;;  %7044 = vmatprep.mubr.msk.f32.mxu1 %vm7359_vm0, %v3678_v12  ;;  %8102 = vmatpush1.bf16.msra.mxu1 %v8101_v15  ;;  %v12140_v5 = vpop.f32.mrb[135].mxu0  ;;  %v4392_v15 = vld [vmem:[%s13509_s3 + $0x258] sm:$0xff]  ;;  %v3681_v12 = vld [vmem:[#allocation3 + $0x6f] sm:$0xff] }
 0x524   :  { %13625 = vst [vmem:[#allocation20_spill] sm:$0xff] %v12140_v5  ;;  %8103 = vmatprep.subr.bf16.mxu1 %v13577_v47  ;;  %v8113_v20 = vpack.c.bf16 %v4392_v15, %v4391_v11  ;;  %v12205_v11 = vld [vmem:[#allocation3 + $0x69] sm:$0xff]  ;;  %v12298_v35 = vld [vmem:[#allocation3 + $0xf1] sm:$0xff] }
 0x526   :  { %4928 = vmatmul.mubr.f32.gmra.mrb[68].mxu1 %v12149_v17  ;;  %v12152_v39 = vpop.f32.mrb[136].mxu0 }
 0x527   :  { %13626 = vst [vmem:[#allocation21_spill] sm:$0xff] %v12152_v39  ;;  %4932 = vmatprep.mubr.f32.mxu1 %v3679_v63  ;;  %8105 = vmatpush1.bf16.msra.mxu1 %v8104_v0  ;;  %v12154_v52 = vpop.f32.mrb[137].mxu0  ;;  %v4394_v63 = vld [vmem:[%s13509_s3 + $0x268] sm:$0xff]  ;;  %v12247_v39 = vld [vmem:[#allocation3 + $0x91] sm:$0xff] }
 0x528   :  { %13627 = vst [vmem:[#allocation22_spill] sm:$0xff] %v12154_v52  ;;  %8106 = vmatprep.subr.bf16.mxu1 %v13577_v47  ;;  %v8116_v32 = vpack.c.bf16 %v4394_v63, %v4393_v59  ;;  %v4397_v59 = vld [vmem:[%s13509_s3 + $0x280] sm:$0xff]  ;;  %v4398_v63 = vld [vmem:[%s13509_s3 + $0x288] sm:$0xff]  ;;  %v12263_v52 = vld [vmem:[#allocation3 + $0xb1] sm:$0xff] }
 0x52a   :  { %7046 = vmatmul.mubr.msk.f32.gmra.mrb[70].mxu1 %vm7360_vm1, %v12163_v61 }
 0x52b   :  { %7048 = vmatprep.mubr.msk.f32.mxu1 %vm7359_vm0, %v3680_v36  ;;  %8108 = vmatpush1.bf16.msra.mxu1 %v8107_v34  ;;  %v12191_v34 = vld [vmem:[#allocation3 + $0x51] sm:$0xff] }
 0x52c   :  { %8109 = vmatprep.subr.bf16.mxu1 %v13577_v47  ;;  %v4395_v36 = vld [vmem:[%s13509_s3 + $0x270] sm:$0xff] }
 0x52d   :  { %v12179_v27 = vpop.f32.mrb[138].mxu0 }
 0x52e   :  { %13628 = vst [vmem:[#allocation23_spill] sm:$0xff] %v12179_v27  ;;  %4938 = vmatmul.mubr.f32.gmra.mrb[72].mxu1 %v12177_v41  ;;  %v12182_v0 = vpop.f32.mrb[139].mxu0  ;;  %v12219_v27 = vld [vmem:[#allocation3 + $0x71] sm:$0xff] }
 0x52f   :  { %13629 = vst [vmem:[#allocation24_spill] sm:$0xff] %v12182_v0  ;;  %4942 = vmatprep.mubr.f32.mxu1 %v3681_v12  ;;  %8111 = vmatpush1.bf16.msra.mxu1 %v8110_v29  ;;  %v4396_v29 = vld [vmem:[%s13509_s3 + $0x278] sm:$0xff]  ;;  %v3683_v12 = vld [vmem:[#allocation3 + $0x8f] sm:$0xff] }
 0x530   :  { %8112 = vmatprep.subr.bf16.mxu1 %v13577_v47  ;;  %v3685_v0 = vld [vmem:[#allocation3 + $0xaf] sm:$0xff] }
 0x532   :  { %7050 = vmatmul.mubr.msk.f32.gmra.mrb[74].mxu1 %vm7360_vm1, %v12191_v34 }
 0x533   :  { %7052 = vmatprep.mubr.msk.f32.mxu1 %vm7359_vm0, %v3682_v37  ;;  %8114 = vmatpush1.bf16.msra.mxu1 %v8113_v20  ;;  %v8119_v20 = vpack.c.bf16 %v4396_v29, %v4395_v36  ;;  %v4399_v36 = vld [vmem:[%s13509_s3 + $0x290] sm:$0xff]  ;;  %v4400_v29 = vld [vmem:[%s13509_s3 + $0x298] sm:$0xff] }
 0x534   :  { %8115 = vmatprep.subr.bf16.mxu1 %v13577_v47 }
 0x535   :  { %v12207_v15 = vpop.f32.mrb[140].mxu0 }
 0x536   :  { %13630 = vst [vmem:[#allocation25_spill] sm:$0xff] %v12207_v15  ;;  %4948 = vmatmul.mubr.f32.gmra.mrb[76].mxu1 %v12205_v11  ;;  %v12210_v37 = vpop.f32.mrb[141].mxu0  ;;  %v3684_v15 = vld [vmem:[#allocation3 + $0xa7] sm:$0xff] }
 0x537   :  { %13631 = vst [vmem:[#allocation26_spill] sm:$0xff] %v12210_v37  ;;  %4952 = vmatprep.mubr.f32.mxu1 %v3683_v12  ;;  %8117 = vmatpush1.bf16.msra.mxu1 %v8116_v32  ;;  %v8122_v32 = vpack.c.bf16 %v4398_v63, %v4397_v59  ;;  %v12233_v12 = vld [vmem:[#allocation3 + $0x89] sm:$0xff]  ;;  %v4401_v59 = vld [vmem:[%s13509_s3 + $0x2a0] sm:$0xff] }
 0x538   :  { %8118 = vmatprep.subr.bf16.mxu1 %v13577_v47  ;;  %v4402_v63 = vld [vmem:[%s13509_s3 + $0x2a8] sm:$0xff] }
 0x53a   :  { %7054 = vmatmul.mubr.msk.f32.gmra.mrb[78].mxu1 %vm7360_vm1, %v12219_v27 }
 0x53b   :  { %7056 = vmatprep.mubr.msk.f32.mxu1 %vm7359_vm0, %v3684_v15  ;;  %8120 = vmatpush1.bf16.msra.mxu1 %v8119_v20  ;;  %v8125_v20 = vpack.c.bf16 %v4400_v29, %v4399_v36  ;;  %v3687_v29 = vld [vmem:[#allocation3 + $0xcf] sm:$0xff] }
 0x53c   :  { %8121 = vmatprep.subr.bf16.mxu1 %v13577_v47 }
 0x53d   :  { %v12235_v37 = vpop.f32.mrb[142].mxu0 }
 0x53e   :  { %13632 = vst [vmem:[#allocation27_spill] sm:$0xff] %v12235_v37  ;;  %4958 = vmatmul.mubr.f32.gmra.mrb[80].mxu1 %v12233_v12  ;;  %v12238_v15 = vpop.f32.mrb[143].mxu0  ;;  %v3686_v37 = vld [vmem:[#allocation3 + $0xc7] sm:$0xff] }
 0x53f   :  { %13633 = vst [vmem:[#allocation28_spill] sm:$0xff] %v12238_v15  ;;  %4962 = vmatprep.mubr.f32.mxu1 %v3685_v0  ;;  %8123 = vmatpush1.bf16.msra.mxu1 %v8122_v32  ;;  %v8128_v0 = vpack.c.bf16 %v4402_v63, %v4401_v59  ;;  %v12255_v32 = vld [vmem:[#allocation3 + $0xa9] sm:$0xff] }
 0x540   :  { %8124 = vmatprep.subr.bf16.mxu1 %v13577_v47  ;;  %v3689_v63 = vld [vmem:[#allocation3 + $0xef] sm:$0xff] }
 0x542   :  { %7058 = vmatmul.mubr.msk.f32.gmra.mrb[82].mxu1 %vm7360_vm1, %v12247_v39 }
 0x543   :  { %7060 = vmatprep.mubr.msk.f32.mxu1 %vm7359_vm0, %v3686_v37  ;;  %8126 = vmatpush1.bf16.msra.mxu1 %v8125_v20  ;;  %v3688_v37 = vld [vmem:[#allocation3 + $0xe7] sm:$0xff] }
 0x544   :  { %8127 = vmatprep.subr.bf16.mxu1 %v13577_v47  ;;  %v12270_v20 = vld [vmem:[#allocation3 + $0xc9] sm:$0xff] }
 0x545   :  { %v12257_v36 = vpop.f32.mrb[144].mxu0 }
 0x546   :  { %13634 = vst [vmem:[#allocation29_spill] sm:$0xff] %v12257_v36  ;;  %4968 = vmatmul.mubr.f32.gmra.mrb[84].mxu1 %v12255_v32  ;;  %v12260_v15 = vpop.f32.mrb[145].mxu0  ;;  %v4404_v36 = vld [vmem:[%s13509_s3 + $0x2b8] sm:$0xff] }
 0x547   :  { %13635 = vst [vmem:[#allocation30_spill] sm:$0xff] %v12260_v15  ;;  %4972 = vmatprep.mubr.f32.mxu1 %v3687_v29  ;;  %8129 = vmatpush1.bf16.msra.mxu1 %v8128_v0  ;;  %v4403_v29 = vld [vmem:[%s13509_s3 + $0x2b0] sm:$0xff] }
 0x548   :  { %8130 = vmatprep.subr.bf16.mxu1 %v13577_v47  ;;  %v8131_v15 = vpack.c.bf16 %v4404_v36, %v4403_v29  ;;  %v3691_v36 = vld [vmem:[#allocation3 + $0x10f] sm:$0xff] }
 0x54a   :  { %7062 = vmatmul.mubr.msk.f32.gmra.mrb[86].mxu1 %vm7360_vm1, %v12263_v52 }
 0x54b   :  { %7064 = vmatprep.mubr.msk.f32.mxu1 %vm7359_vm0, %v3688_v37  ;;  %v12283_v37 = vld [vmem:[#allocation3 + $0xd1] sm:$0xff]  ;;  %8132 = vmatpush1.bf16.msra.mxu1 %v8131_v15  ;;  %v12305_v15 = vld [vmem:[#allocation3 + $0x109] sm:$0xff] }
 0x54c   :  { %8133 = vmatprep.subr.bf16.mxu1 %v13577_v47 }
 0x54d   :  { %v12272_v59 = vpop.f32.mrb[146].mxu0 }
 0x54e   :  { %13636 = vst [vmem:[#allocation31_spill] sm:$0xff] %v12272_v59  ;;  %4978 = vmatmul.mubr.f32.gmra.mrb[88].mxu1 %v12270_v20  ;;  %v12275_v0 = vpop.f32.mrb[147].mxu0  ;;  %v3690_v59 = vld [vmem:[#allocation3 + $0x107] sm:$0xff] }
 0x54f   :  { %13637 = vst [vmem:[#allocation32_spill] sm:$0xff] %v12275_v0  ;;  %4982 = vmatprep.mubr.f32.mxu1 %v3689_v63  ;;  %v12291_v63 = vld [vmem:[#allocation3 + $0xe9] sm:$0xff] }
 0x552   :  { %7066 = vmatmul.mubr.msk.f32.gmra.mrb[90].mxu1 %vm7360_vm1, %v12283_v37 }
 0x553   :  { %7068 = vmatprep.mubr.msk.f32.mxu1 %vm7359_vm0, %v3690_v59  ;;  %v3692_v59 = vld [vmem:[#allocation3 + $0x127] sm:$0xff] }
 0x555   :  { %v12293_v0 = vpop.f32.mrb[148].mxu0 }
 0x556   :  { %13638 = vst [vmem:[#allocation33_spill] sm:$0xff] %v12293_v0  ;;  %4988 = vmatmul.mubr.f32.gmra.mrb[92].mxu1 %v12291_v63  ;;  %v12296_v29 = vpop.f32.mrb[149].mxu0  ;;  %v3693_v0 = vld [vmem:[#allocation3 + $0x12f] sm:$0xff] }
 0x557   :  { %13639 = vst [vmem:[#allocation34_spill] sm:$0xff] %v12296_v29  ;;  %4992 = vmatprep.mubr.f32.mxu1 %v3691_v36  ;;  %v4405_v36 = vld [vmem:[%s13509_s3 + $0x2c0] sm:$0xff]  ;;  %v4406_v29 = vld [vmem:[%s13509_s3 + $0x2c8] sm:$0xff] }
 0x558   :  { %v8134_v8 = vpack.c.bf16 %v4406_v29, %v4405_v36  ;;  %v3695_v29 = vld [vmem:[#allocation3 + $0x14f] sm:$0xff] }
 0x55a   :  { %7070 = vmatmul.mubr.msk.f32.gmra.mrb[94].mxu1 %vm7360_vm1, %v12298_v35 }
 0x55b   :  { %7072 = vmatprep.mubr.msk.f32.mxu1 %vm7359_vm0, %v3692_v59  ;;  %v12318_v59 = vld [vmem:[#allocation3 + $0x111] sm:$0xff]  ;;  %8135 = vmatpush1.bf16.msra.mxu1 %v8134_v8  ;;  %v12340_v8 = vld [vmem:[#allocation3 + $0x149] sm:$0xff] }
 0x55c   :  { %8136 = vmatprep.subr.bf16.mxu1 %v13577_v47 }
 0x55d   :  { %v12307_v5 = vpop.f32.mrb[150].mxu0 }
 0x55e   :  { %13640 = vst [vmem:[#allocation35_spill] sm:$0xff] %v12307_v5  ;;  %4998 = vmatmul.mubr.f32.gmra.mrb[96].mxu1 %v12305_v15  ;;  %v12310_v1 = vpop.f32.mrb[151].mxu0  ;;  %v3694_v5 = vld [vmem:[#allocation3 + $0x147] sm:$0xff] }
 0x55f   :  { %13641 = vst [vmem:[#allocation36_spill] sm:$0xff] %v12310_v1  ;;  %5002 = vmatprep.mubr.f32.mxu1 %v3693_v0  ;;  %v12326_v0 = vld [vmem:[#allocation3 + $0x129] sm:$0xff] }
 0x562   :  { %7074 = vmatmul.mubr.msk.f32.gmra.mrb[98].mxu1 %vm7360_vm1, %v12318_v59 }
 0x563   :  { %7076 = vmatprep.mubr.msk.f32.mxu1 %vm7359_vm0, %v3694_v5  ;;  %v3696_v5 = vld [vmem:[#allocation3 + $0x167] sm:$0xff] }
 0x565   :  { %v12328_v1 = vpop.f32.mrb[152].mxu0 }
 0x566   :  { %13642 = vst [vmem:[#allocation37_spill] sm:$0xff] %v12328_v1  ;;  %5008 = vmatmul.mubr.f32.gmra.mrb[100].mxu1 %v12326_v0  ;;  %v12331_v36 = vpop.f32.mrb[153].mxu0  ;;  %v3697_v1 = vld [vmem:[#allocation3 + $0x16f] sm:$0xff] }
 0x567   :  { %13643 = vst [vmem:[#allocation38_spill] sm:$0xff] %v12331_v36  ;;  %5012 = vmatprep.mubr.f32.mxu1 %v3695_v29  ;;  %v4407_v29 = vld [vmem:[%s13509_s3 + $0x2d0] sm:$0xff]  ;;  %v4408_v36 = vld [vmem:[%s13509_s3 + $0x2d8] sm:$0xff] }
 0x568   :  { %v8137_v53 = vpack.c.bf16 %v4408_v36, %v4407_v29  ;;  %v3699_v36 = vld [vmem:[#allocation3 + $0x18f] sm:$0xff] }
 0x56a   :  { %7078 = vmatmul.mubr.msk.f32.gmra.mrb[102].mxu1 %vm7360_vm1, %v12333_v57 }
 0x56b   :  { %7080 = vmatprep.mubr.msk.f32.mxu1 %vm7359_vm0, %v3696_v5  ;;  %v12353_v5 = vld [vmem:[#allocation3 + $0x151] sm:$0xff]  ;;  %8138 = vmatpush1.bf16.msra.mxu1 %v8137_v53 }
 0x56c   :  { %8139 = vmatprep.subr.bf16.mxu1 %v13577_v47 }
 0x56d   :  { %v12342_v26 = vpop.f32.mrb[154].mxu0 }
 0x56e   :  { %13644 = vst [vmem:[#allocation39_spill] sm:$0xff] %v12342_v26  ;;  %5018 = vmatmul.mubr.f32.gmra.mrb[104].mxu1 %v12340_v8  ;;  %v12345_v60 = vpop.f32.mrb[155].mxu0  ;;  %v3698_v26 = vld [vmem:[#allocation3 + $0x187] sm:$0xff] }
 0x56f   :  { %13645 = vst [vmem:[#allocation40_spill] sm:$0xff] %v12345_v60  ;;  %5022 = vmatprep.mubr.f32.mxu1 %v3697_v1  ;;  %v12361_v1 = vld [vmem:[#allocation3 + $0x169] sm:$0xff] }
 0x570   :  { %13646 = vst [vmem:[#allocation41_spill] sm:$0xff] %v12361_v1 }
 0x572   :  { %7082 = vmatmul.mubr.msk.f32.gmra.mrb[106].mxu1 %vm7360_vm1, %v12353_v5 }
 0x573   :  { %7084 = vmatprep.mubr.msk.f32.mxu1 %vm7359_vm0, %v3698_v26  ;;  %v3700_v26 = vld [vmem:[#allocation3 + $0x1a7] sm:$0xff] }
 0x575   :  { %v12363_v60 = vpop.f32.mrb[156].mxu0 }
 0x576   :  { %13647 = vst [vmem:[#allocation42_spill] sm:$0xff] %v12363_v60  ;;  %5028 = vmatmul.mubr.f32.gmra.mrb[108].mxu1 %v12361_v1  ;;  %v12366_v29 = vpop.f32.mrb[157].mxu0  ;;  %v12379_v60 = vld [vmem:[#allocation3 + $0x189] sm:$0xff] }
 0x577   :  { %13648 = vst [vmem:[#allocation43_spill] sm:$0xff] %v12366_v29  ;;  %5032 = vmatprep.mubr.f32.mxu1 %v3699_v36  ;;  %13652 = vst [vmem:[#allocation47_spill] sm:$0xff] %v12379_v60  ;;  %v3701_v29 = vld [vmem:[#allocation3 + $0x1af] sm:$0xff]  ;;  %v4409_v36 = vld [vmem:[%s13509_s3 + $0x2e0] sm:$0xff] }
 0x579   :  { %v12373_v53 = vpop.f32.mrb[158].mxu0 }
 0x57a   :  { %7086 = vmatmul.mubr.msk.f32.gmra.mrb[110].mxu1 %vm7360_vm1, %v12368_v46  ;;  %13650 = vst [vmem:[#allocation45_spill] sm:$0xff] %v12373_v53  ;;  %v12377_v44 = vpop.f32.mrb[159].mxu0  ;;  %v8140_v53 = vpack.c.bf16 %v4410_v49, %v4409_v36  ;;  %v12388_v46 = vld [vmem:[#allocation3 + $0x191] sm:$0xff] }
 0x57b   :  { %7088 = vmatprep.mubr.msk.f32.mxu1 %vm7359_vm0, %v3700_v26  ;;  %13651 = vst [vmem:[#allocation46_spill] sm:$0xff] %v12377_v44  ;;  %13653 = vst [vmem:[#allocation48_spill] sm:$0xff] %v12388_v46  ;;  %v3702_v26 = vld [vmem:[#allocation3 + $0x1c7] sm:$0xff]  ;;  %v3703_v49 = vld [vmem:[#allocation3 + $0x1cf] sm:$0xff] }
 0x57c   :  { %8141 = vmatpush1.bf16.msra.mxu1 %v8140_v53  ;;  %v12410_v53 = vld [vmem:[#allocation3 + $0x1c9] sm:$0xff] }
 0x57d   :  { %8142 = vmatprep.subr.bf16.mxu1 %v13577_v47  ;;  %13658 = vst [vmem:[#allocation53_spill] sm:$0xff] %v12410_v53 }
 0x57e   :  { %5038 = vmatmul.mubr.f32.gmra.mrb[112].mxu1 %v12379_v60  ;;  %v12403_v60 = vld [vmem:[#allocation3 + $0x1b1] sm:$0xff] }
 0x57f   :  { %5042 = vmatprep.mubr.f32.mxu1 %v3701_v29  ;;  %v12396_v29 = vld [vmem:[#allocation3 + $0x1a9] sm:$0xff]  ;;  %13657 = vst [vmem:[#allocation52_spill] sm:$0xff] %v12403_v60 }
 0x580   :  { %13654 = vst [vmem:[#allocation49_spill] sm:$0xff] %v12396_v29 }
 0x582   :  { %7090 = vmatmul.mubr.msk.f32.gmra.mrb[114].mxu1 %vm7360_vm1, %v12388_v46 }
 0x583   :  { %7092 = vmatprep.mubr.msk.f32.mxu1 %vm7359_vm0, %v3702_v26  ;;  %v3704_v26 = vld [vmem:[#allocation3 + $0x1e7] sm:$0xff] }
 0x585   :  { %v12398_v44 = vpop.f32.mrb[160].mxu0 }
 0x586   :  { %13655 = vst [vmem:[#allocation50_spill] sm:$0xff] %v12398_v44  ;;  %5048 = vmatmul.mubr.f32.gmra.mrb[116].mxu1 %v12396_v29  ;;  %v12401_v36 = vpop.f32.mrb[161].mxu0  ;;  %v3705_v44 = vld [vmem:[#allocation3 + $0x1ef] sm:$0xff] }
 0x587   :  { %13656 = vst [vmem:[#allocation51_spill] sm:$0xff] %v12401_v36  ;;  %5052 = vmatprep.mubr.f32.mxu1 %v3703_v49  ;;  %v4411_v49 = vld [vmem:[%s13509_s3 + $0x2f0] sm:$0xff]  ;;  %v4412_v36 = vld [vmem:[%s13509_s3 + $0x2f8] sm:$0xff] }
 0x58a   :  { %7094 = vmatmul.mubr.msk.f32.gmra.mrb[118].mxu1 %vm7360_vm1, %v12403_v60  ;;  %v8143_v60 = vpack.c.bf16 %v4412_v36, %v4411_v49  ;;  %v3707_v36 = vld [vmem:[#allocation3 + $0x20f] sm:$0xff] }
 0x58b   :  { %7096 = vmatprep.mubr.msk.f32.mxu1 %vm7359_vm0, %v3704_v26  ;;  %v12423_v26 = vld [vmem:[#allocation3 + $0x1d1] sm:$0xff] }
 0x58c   :  { %13661 = vst [vmem:[#allocation56_spill] sm:$0xff] %v12423_v26  ;;  %8144 = vmatpush1.bf16.msra.mxu1 %v8143_v60  ;;  %v3580_v60 = vld [vmem:[#allocation3 + $0x249] sm:$0xff] }
 0x58d   :  { %v12412_v46 = vpop.f32.mrb[162].mxu0  ;;  %8145 = vmatprep.subr.bf16.mxu1 %v13577_v47 }
 0x58e   :  { %13659 = vst [vmem:[#allocation54_spill] sm:$0xff] %v12412_v46  ;;  %5058 = vmatmul.mubr.f32.gmra.mrb[120].mxu1 %v12410_v53  ;;  %v12415_v29 = vpop.f32.mrb[163].mxu0  ;;  %v3706_v46 = vld [vmem:[#allocation3 + $0x207] sm:$0xff]  ;;  %v12438_v53 = vld [vmem:[#allocation3 + $0x1f1] sm:$0xff] }
 0x58f   :  { %13660 = vst [vmem:[#allocation55_spill] sm:$0xff] %v12415_v29  ;;  %5062 = vmatprep.mubr.f32.mxu1 %v3705_v44  ;;  %v12431_v44 = vld [vmem:[#allocation3 + $0x1e9] sm:$0xff]  ;;  %13665 = vst [vmem:[#allocation60_spill] sm:$0xff] %v12438_v53 }
 0x590   :  { %13662 = vst [vmem:[#allocation57_spill] sm:$0xff] %v12431_v44 }
 0x592   :  { %7098 = vmatmul.mubr.msk.f32.gmra.mrb[122].mxu1 %vm7360_vm1, %v12423_v26 }
 0x593   :  { %7100 = vmatprep.mubr.msk.f32.mxu1 %vm7359_vm0, %v3706_v46  ;;  %v3708_v46 = vld [vmem:[#allocation3 + $0x267] sm:$0xff] }
 0x595   :  { %v12433_v29 = vpop.f32.mrb[164].mxu0 }
 0x596   :  { %13663 = vst [vmem:[#allocation58_spill] sm:$0xff] %v12433_v29  ;;  %5068 = vmatmul.mubr.f32.gmra.mrb[124].mxu1 %v12431_v44  ;;  %v12436_v49 = vpop.f32.mrb[165].mxu0  ;;  %v3709_v29 = vld [vmem:[#allocation3 + $0x26f] sm:$0xff] }
 0x597   :  { %13664 = vst [vmem:[#allocation59_spill] sm:$0xff] %v12436_v49  ;;  %5072 = vmatprep.mubr.f32.mxu1 %v3707_v36  ;;  %v3581_v49 = vld [vmem:[#allocation3 + $0x251] sm:$0xff]  ;;  %v3710_v36 = vld [vmem:[#allocation3 + $0x287] sm:$0xff] }
 0x59a   :  { %7102 = vmatmul.mubr.msk.f32.gmra.mrb[126].mxu1 %vm7360_vm1, %v12438_v53  ;;  %v12453_v53 = vld [vmem:[#allocation3 + $0x269] sm:$0xff] }
 0x59b   :  { %7104 = vmatprep.mubr.msk.f32.mxu1 %vm7359_vm0, %v3708_v46  ;;  %v3711_v46 = vld [vmem:[#allocation3 + $0x28f] sm:$0xff] }
 0x59d   :  { %v12445_v26 = vpop.f32.mrb[166].mxu0 }
 0x59e   :  { %13666 = vst [vmem:[#allocation61_spill] sm:$0xff] %v12445_v26  ;;  %5078 = vmatmul.mubr.f32.gmra.mrb[128].mxu1 %v3580_v60  ;;  %v12447_v44 = vpop.f32.mrb[167].mxu0  ;;  %v12460_v26 = vld [vmem:[#allocation3 + $0x271] sm:$0xff] }
 0x59f   :  { %13667 = vst [vmem:[#allocation62_spill] sm:$0xff] %v12447_v44  ;;  %5082 = vmatprep.mubr.f32.mxu1 %v3709_v29  ;;  %13670 = vst [vmem:[#allocation65_spill] sm:$0xff] %v12460_v26  ;;  %v3712_v29 = vld [vmem:[#allocation3 + $0x2a7] sm:$0xff] }
 0x5a2   :  { %7106 = vmatmul.mubr.msk.f32.gmra.mrb[130].mxu1 %vm7360_vm1, %v3581_v49  ;;  %v12467_v49 = vld [vmem:[#allocation3 + $0x289] sm:$0xff] }
 0x5a3   :  { %7108 = vmatprep.mubr.msk.f32.mxu1 %vm7359_vm0, %v3710_v36  ;;  %13671 = vst [vmem:[#allocation66_spill] sm:$0xff] %v12467_v49 }
 0x5a5   :  { %v12455_v1 = vpop.f32.mrb[168].mxu0 }
 0x5a6   :  { %13668 = vst [vmem:[#allocation63_spill] sm:$0xff] %v12455_v1  ;;  %5088 = vmatmul.mubr.f32.gmra.mrb[132].mxu1 %v12453_v53  ;;  %v12458_v60 = vpop.f32.mrb[169].mxu0  ;;  %v3713_v1 = vld [vmem:[#allocation3 + $0x2af] sm:$0xff] }
 0x5a7   :  { %13669 = vst [vmem:[#allocation64_spill] sm:$0xff] %v12458_v60  ;;  %5092 = vmatprep.mubr.f32.mxu1 %v3711_v46  ;;  %v12474_v46 = vld [vmem:[#allocation3 + $0x291] sm:$0xff]  ;;  %v3714_v60 = vld [vmem:[#allocation3 + $0x2c7] sm:$0xff] }
 0x5a8   :  { %13674 = vst [vmem:[#allocation69_spill] sm:$0xff] %v12474_v46 }
 0x5aa   :  { %7110 = vmatmul.mubr.msk.f32.gmra.mrb[134].mxu1 %vm7360_vm1, %v12460_v26 }
 0x5ab   :  { %7112 = vmatprep.mubr.msk.f32.mxu1 %vm7359_vm0, %v3712_v29  ;;  %v12481_v29 = vld [vmem:[#allocation3 + $0x2a9] sm:$0xff] }
 0x5ac   :  { %13675 = vst [vmem:[#allocation70_spill] sm:$0xff] %v12481_v29 }
 0x5ad   :  { %v12469_v36 = vpop.f32.mrb[170].mxu0 }
 0x5ae   :  { %13672 = vst [vmem:[#allocation67_spill] sm:$0xff] %v12469_v36  ;;  %5098 = vmatmul.mubr.f32.gmra.mrb[136].mxu1 %v12467_v49  ;;  %v12472_v44 = vpop.f32.mrb[171].mxu0  ;;  %v3715_v36 = vld [vmem:[#allocation3 + $0x2cf] sm:$0xff] }
 0x5af   :  { %13673 = vst [vmem:[#allocation68_spill] sm:$0xff] %v12472_v44  ;;  %5102 = vmatprep.mubr.f32.mxu1 %v3713_v1  ;;  %v12488_v1 = vld [vmem:[#allocation3 + $0x2b1] sm:$0xff]  ;;  %v3716_v44 = vld [vmem:[#allocation3 + $0x2e7] sm:$0xff] }
 0x5b0   :  { %13678 = vst [vmem:[#allocation73_spill] sm:$0xff] %v12488_v1 }
 0x5b2   :  { %7114 = vmatmul.mubr.msk.f32.gmra.mrb[138].mxu1 %vm7360_vm1, %v12474_v46 }
 0x5b3   :  { %7116 = vmatprep.mubr.msk.f32.mxu1 %vm7359_vm0, %v3714_v60  ;;  %v12495_v60 = vld [vmem:[#allocation3 + $0x2c9] sm:$0xff] }
 0x5b5   :  { %v12483_v26 = vpop.f32.mrb[172].mxu0 }
 0x5b6   :  { %13676 = vst [vmem:[#allocation71_spill] sm:$0xff] %v12483_v26  ;;  %5108 = vmatmul.mubr.f32.gmra.mrb[140].mxu1 %v12481_v29  ;;  %v12486_v49 = vpop.f32.mrb[173].mxu0  ;;  %v3717_v26 = vld [vmem:[#allocation3 + $0x2ef] sm:$0xff] }
 0x5b7   :  { %13677 = vst [vmem:[#allocation72_spill] sm:$0xff] %v12486_v49  ;;  %5112 = vmatprep.mubr.f32.mxu1 %v3715_v36  ;;  %v12502_v36 = vld [vmem:[#allocation3 + $0x2d1] sm:$0xff]  ;;  %v3718_v49 = vld [vmem:[#allocation3 + $0x307] sm:$0xff] }
 0x5ba   :  { %7118 = vmatmul.mubr.msk.f32.gmra.mrb[142].mxu1 %vm7360_vm1, %v12488_v1 }
 0x5bb   :  { %7120 = vmatprep.mubr.msk.f32.mxu1 %vm7359_vm0, %v3716_v44  ;;  %v12509_v44 = vld [vmem:[#allocation3 + $0x2e9] sm:$0xff] }
 0x5bd   :  { %v12497_v46 = vpop.f32.mrb[174].mxu0 }
 0x5be   :  { %13679 = vst [vmem:[#allocation74_spill] sm:$0xff] %v12497_v46  ;;  %5118 = vmatmul.mubr.f32.gmra.mrb[144].mxu1 %v12495_v60  ;;  %v12500_v29 = vpop.f32.mrb[175].mxu0 }
 0x5bf   :  { %13680 = vst [vmem:[#allocation75_spill] sm:$0xff] %v12500_v29  ;;  %5122 = vmatprep.mubr.f32.mxu1 %v3717_v26  ;;  %v12517_v26 = vld [vmem:[#allocation3 + $0x2f1] sm:$0xff] }
 0x5c2   :  { %7122 = vmatmul.mubr.msk.f32.gmra.mrb[146].mxu1 %vm7360_vm1, %v12502_v36 }
 0x5c3   :  { %7124 = vmatprep.mubr.msk.f32.mxu1 %vm7359_vm0, %v3718_v49  ;;  %v12525_v49 = vld [vmem:[#allocation3 + $0x309] sm:$0xff] }
 0x5c5   :  { %v12511_v1 = vpop.f32.mrb[176].mxu0 }
 0x5c6   :  { %13681 = vst [vmem:[#allocation76_spill] sm:$0xff] %v12511_v1  ;;  %5128 = vmatmul.mubr.f32.gmra.mrb[148].mxu1 %v12509_v44  ;;  %v12514_v46 = vpop.f32.mrb[177].mxu0 }
 0x5c7   :  { %13682 = vst [vmem:[#allocation77_spill] sm:$0xff] %v12514_v46  ;;  %5132 = vmatprep.mubr.f32.mxu1 %v11936_v38  ;;  %v12533_v38 = vld [vmem:[#allocation3 + $0x311] sm:$0xff] }
 0x5ca   :  { %7126 = vmatmul.mubr.msk.f32.gmra.mrb[150].mxu1 %vm7360_vm1, %v12517_v26 }
 0x5cb   :  { %7128 = vmatprep.mubr.msk.f32.mxu1 %vm7359_vm0, %v11943_v22  ;;  %v12541_v22 = vld [vmem:[#allocation3 + $0x329] sm:$0xff] }
 0x5cd   :  { %v12527_v29 = vpop.f32.mrb[178].mxu0 }
 0x5ce   :  { %13683 = vst [vmem:[#allocation78_spill] sm:$0xff] %v12527_v29  ;;  %5138 = vmatmul.mubr.f32.gmra.mrb[152].mxu1 %v12525_v49  ;;  %v12530_v1 = vpop.f32.mrb[179].mxu0 }
 0x5cf   :  { %13684 = vst [vmem:[#allocation79_spill] sm:$0xff] %v12530_v1  ;;  %5142 = vmatprep.mubr.f32.mxu1 %v11950_v14  ;;  %v3925_v1 = vld [vmem:[#allocation3 + $0x3f1] sm:$0xff] }
 0x5d2   :  { %7130 = vmatmul.mubr.msk.f32.gmra.mrb[154].mxu1 %vm7360_vm1, %v12533_v38 }
 0x5d3   :  { %7132 = vmatprep.mubr.msk.f32.mxu1 %vm7359_vm0, %v11960_v24 }
 0x5d5   :  { %v12543_v46 = vpop.f32.mrb[180].mxu0 }
 0x5d6   :  { %13685 = vst [vmem:[#allocation80_spill] sm:$0xff] %v12543_v46  ;;  %5148 = vmatmul.mubr.f32.gmra.mrb[156].mxu1 %v12541_v22  ;;  %v12546_v29 = vpop.f32.mrb[181].mxu0  ;;  %v3923_v46 = vld [vmem:[#allocation3 + $0x3d1] sm:$0xff] }
 0x5d7   :  { %13686 = vst [vmem:[#allocation81_spill] sm:$0xff] %v12546_v29  ;;  %5152 = vmatprep.mubr.f32.mxu1 %v11969_v58  ;;  %v3738_v58 = vld [vmem:[#allocation3 + $0x447] sm:$0xff] }
 0x5d8   :  { %v3924_v29 = vld [vmem:[#allocation3 + $0x3e9] sm:$0xff] }
 0x5da   :  { %7134 = vmatmul.mubr.msk.f32.gmra.mrb[158].mxu1 %vm7360_vm1, %v11952_v42  ;;  %v12607_v42 = vld [vmem:[#allocation3 + $0x409] sm:$0xff] }
 0x5db   :  { %7136 = vmatprep.mubr.msk.f32.mxu1 %vm7359_vm0, %v11980_v6  ;;  %v3739_v6 = vld [vmem:[#allocation3 + $0x44f] sm:$0xff] }
 0x5dd   :  { %v12555_v14 = vpop.f32.mrb[182].mxu0 }
 0x5de   :  { %13687 = vst [vmem:[#allocation82_spill] sm:$0xff] %v12555_v14  ;;  %5158 = vmatmul.mubr.f32.gmra.mrb[160].mxu1 %v11967_v51  ;;  %v12558_v24 = vpop.f32.mrb[183].mxu0  ;;  %v12611_v51 = vld [vmem:[#allocation3 + $0x411] sm:$0xff] }
 0x5df   :  { %13688 = vst [vmem:[#allocation83_spill] sm:$0xff] %v12558_v24  ;;  %5162 = vmatprep.mubr.f32.mxu1 %v11989_v4  ;;  %v4414_v4 = vld [vmem:[%s13509_s3 + $0x308] sm:$0xff]  ;;  %v3921_v14 = vld [vmem:[#allocation3 + $0x3b1] sm:$0xff] }
 0x5e0   :  { %v3922_v24 = vld [vmem:[#allocation3 + $0x3c9] sm:$0xff] }
 0x5e2   :  { %7138 = vmatmul.mubr.msk.f32.gmra.mrb[162].mxu1 %vm7360_vm1, %v11971_v13  ;;  %v12618_v13 = vld [vmem:[#allocation3 + $0x429] sm:$0xff] }
 0x5e3   :  { %7140 = vmatprep.mubr.msk.f32.mxu1 %vm7359_vm0, %v12000_v48 }
 0x5e6   :  { %5168 = vmatmul.mubr.f32.gmra.mrb[164].mxu1 %v11987_v23  ;;  %v4413_v23 = vld [vmem:[%s13509_s3 + $0x300] sm:$0xff] }
 0x5e7   :  { %5172 = vmatprep.mubr.f32.mxu1 %v12009_v54  ;;  %v8146_v48 = vpack.c.bf16 %v4414_v4, %v4413_v23  ;;  %v4416_v54 = vld [vmem:[%s13509_s3 + $0x318] sm:$0xff]  ;;  %v4429_v23 = vld [vmem:[%s13509_s3 + $0x380] sm:$0xff]  ;;  %v4430_v4 = vld [vmem:[%s13509_s3 + $0x388] sm:$0xff] }
 0x5ea   :  { %7142 = vmatmul.mubr.msk.f32.gmra.mrb[166].mxu1 %vm7360_vm1, %v11991_v28  ;;  %v12627_v28 = vld [vmem:[#allocation3 + $0x431] sm:$0xff] }
 0x5eb   :  { %7144 = vmatprep.mubr.msk.f32.mxu1 %vm7359_vm0, %v12020_v7 }
 0x5ee   :  { %5178 = vmatmul.mubr.f32.gmra.mrb[168].mxu1 %v12007_v45  ;;  %v4415_v45 = vld [vmem:[%s13509_s3 + $0x310] sm:$0xff] }
 0x5ef   :  { %5182 = vmatprep.mubr.f32.mxu1 %v12029_v25  ;;  %v8149_v7 = vpack.c.bf16 %v4416_v54, %v4415_v45  ;;  %v4418_v25 = vld [vmem:[%s13509_s3 + $0x328] sm:$0xff]  ;;  %v4431_v45 = vld [vmem:[%s13509_s3 + $0x390] sm:$0xff]  ;;  %v4432_v54 = vld [vmem:[%s13509_s3 + $0x398] sm:$0xff] }
 0x5f2   :  { %7146 = vmatmul.mubr.msk.f32.gmra.mrb[170].mxu1 %vm7360_vm1, %v12011_v40  ;;  %v3804_v40 = vld [vmem:[#allocation3 + $0x28] sm:$0xff] }
 0x5f3   :  { %7148 = vmatprep.mubr.msk.f32.mxu1 %vm7359_vm0, %v12040_v3 }
 0x5f6   :  { %5188 = vmatmul.mubr.f32.gmra.mrb[172].mxu1 %v12027_v50  ;;  %v4417_v50 = vld [vmem:[%s13509_s3 + $0x320] sm:$0xff] }
 0x5f7   :  { %5192 = vmatprep.mubr.f32.mxu1 %v12049_v10  ;;  %v8152_v3 = vpack.c.bf16 %v4418_v25, %v4417_v50  ;;  %v4420_v10 = vld [vmem:[%s13509_s3 + $0x338] sm:$0xff]  ;;  %v4434_v50 = vld [vmem:[%s13509_s3 + $0x3a8] sm:$0xff]  ;;  %v12742_v25 = vld [vmem:[#allocation3 + $0xb0] sm:$0xff] }
 0x5fa   :  { %7150 = vmatmul.mubr.msk.f32.gmra.mrb[174].mxu1 %vm7360_vm1, %v12031_v16  ;;  %v3805_v16 = vld [vmem:[#allocation3 + $0x30] sm:$0xff] }
 0x5fb   :  { %7152 = vmatprep.mubr.msk.f32.mxu1 %vm7359_vm0, %v12060_v55 }
 0x5fe   :  { %5198 = vmatmul.mubr.f32.gmra.mrb[176].mxu1 %v12047_v62  ;;  %v4419_v62 = vld [vmem:[%s13509_s3 + $0x330] sm:$0xff] }
 0x5ff   :  { %5202 = vmatprep.mubr.f32.mxu1 %v12069_v30  ;;  %v8155_v55 = vpack.c.bf16 %v4420_v10, %v4419_v62  ;;  %v4422_v30 = vld [vmem:[%s13509_s3 + $0x348] sm:$0xff]  ;;  %v4436_v62 = vld [vmem:[%s13509_s3 + $0x3b8] sm:$0xff] }
 0x602   :  { %7154 = vmatmul.mubr.msk.f32.gmra.mrb[178].mxu1 %vm7360_vm1, %v12051_v21  ;;  %v12657_v21 = vld [vmem:[#allocation3 + $0x48] sm:$0xff] }
 0x603   :  { %7156 = vmatprep.mubr.msk.f32.mxu1 %vm7359_vm0, %v12080_v19 }
 0x606   :  { %5208 = vmatmul.mubr.f32.gmra.mrb[180].mxu1 %v12067_v9  ;;  %v4421_v9 = vld [vmem:[%s13509_s3 + $0x340] sm:$0xff] }
 0x607   :  { %5212 = vmatprep.mubr.f32.mxu1 %v12087_v56  ;;  %v8158_v19 = vpack.c.bf16 %v4422_v30, %v4421_v9  ;;  %v4423_v56 = vld [vmem:[%s13509_s3 + $0x350] sm:$0xff]  ;;  %v12785_v9 = vld [vmem:[#allocation3 + $0x128] sm:$0xff] }
 0x60a   :  { %7158 = vmatmul.mubr.msk.f32.gmra.mrb[182].mxu1 %vm7360_vm1, %v12071_v31  ;;  %v12670_v31 = vld [vmem:[#allocation3 + $0x50] sm:$0xff] }
 0x60b   :  { %7160 = vmatprep.mubr.msk.f32.mxu1 %vm7359_vm0, %v12092_v18  ;;  %v4424_v18 = vld [vmem:[%s13509_s3 + $0x358] sm:$0xff] }
 0x60e   :  { %5218 = vmatmul.mubr.f32.gmra.mrb[184].mxu1 %v12607_v42 }
 0x60f   :  { %5222 = vmatprep.mubr.f32.mxu1 %v12108_v2  ;;  %v12681_v2 = vld [vmem:[#allocation3 + $0x68] sm:$0xff] }
 0x612   :  { %7162 = vmatmul.mubr.msk.f32.gmra.mrb[186].mxu1 %vm7360_vm1, %v12611_v51 }
 0x613   :  { %7164 = vmatprep.mubr.msk.f32.mxu1 %vm7359_vm0, %v3738_v58  ;;  %v4428_v58 = vld [vmem:[%s13509_s3 + $0x378] sm:$0xff] }
 0x616   :  { %5228 = vmatmul.mubr.f32.gmra.mrb[188].mxu1 %v12618_v13 }
 0x617   :  { %5232 = vmatprep.mubr.f32.mxu1 %v3739_v6  ;;  %v12705_v6 = vld [vmem:[#allocation3 + $0x88] sm:$0xff] }
 0x61a   :  { %7166 = vmatmul.mubr.msk.f32.gmra.mrb[190].mxu1 %vm7360_vm1, %v12627_v28 }
 0x61b   :  { %5302 = vmatprep.mubr.f32.mxu1 %v12149_v17  ;;  %v8161_v17 = vpack.c.bf16 %v4424_v18, %v4423_v56  ;;  %v13689_v56 = vld [vmem:[#allocation41_spill] sm:$0xff] }
 0x61c   :  { %v12812_v18 = vld [vmem:[#allocation3 + $0x168] sm:$0xff] }
 0x61e   :  { %5303 = vmatmul.mubr.f32.vlgmr.msra.gmra.mrb[64].mxu1 %v3804_v40  ;;  %v12729_v40 = vld [vmem:[#allocation3 + $0xa8] sm:$0xff] }
 0x61f   :  { %7168 = vmatprep.mubr.msk.f32.mxu1 %vm7360_vm1, %v12163_v61  ;;  %8147 = vmatpush1.bf16.msra.mxu1 %v8146_v48  ;;  %v4425_v61 = vld [vmem:[%s13509_s3 + $0x360] sm:$0xff]  ;;  %v12718_v48 = vld [vmem:[#allocation3 + $0x90] sm:$0xff] }
 0x620   :  { %8148 = vmatprep.subr.bf16.mxu1 %v13577_v47 }
 0x622   :  { %5308 = vmatmul.mubr.f32.gmra.mrb[66].mxu1 %v3805_v16  ;;  %v12747_v16 = vld [vmem:[#allocation3 + $0xc8] sm:$0xff] }
 0x623   :  { %5312 = vmatprep.mubr.f32.mxu1 %v12177_v41  ;;  %8150 = vmatpush1.bf16.msra.mxu1 %v8149_v7  ;;  %v4426_v41 = vld [vmem:[%s13509_s3 + $0x368] sm:$0xff]  ;;  %v4433_v7 = vld [vmem:[%s13509_s3 + $0x3a0] sm:$0xff] }
 0x624   :  { %8151 = vmatprep.subr.bf16.mxu1 %v13577_v47 }
 0x626   :  { %5313 = vmatmul.mubr.f32.gmra.mrb[68].mxu1 %v12657_v21 }
 0x627   :  { %7170 = vmatprep.mubr.msk.f32.mxu1 %vm7360_vm1, %v12191_v34  ;;  %8153 = vmatpush1.bf16.msra.mxu1 %v8152_v3  ;;  %v12694_v34 = vld [vmem:[#allocation3 + $0x70] sm:$0xff] }
 0x628   :  { %8154 = vmatprep.subr.bf16.mxu1 %v13577_v47  ;;  %v12754_v3 = vld [vmem:[#allocation3 + $0xd0] sm:$0xff] }
 0x62a   :  { %5318 = vmatmul.mubr.f32.gmra.mrb[70].mxu1 %v12670_v31 }
 0x62b   :  { %5322 = vmatprep.mubr.f32.mxu1 %v12205_v11  ;;  %8156 = vmatpush1.bf16.msra.mxu1 %v8155_v55  ;;  %v4427_v11 = vld [vmem:[%s13509_s3 + $0x370] sm:$0xff] }
 0x62c   :  { %8157 = vmatprep.subr.bf16.mxu1 %v13577_v47  ;;  %v12770_v55 = vld [vmem:[#allocation3 + $0xf0] sm:$0xff] }
 0x62e   :  { %5323 = vmatmul.mubr.f32.gmra.mrb[72].mxu1 %v12681_v2 }
 0x62f   :  { %7172 = vmatprep.mubr.msk.f32.mxu1 %vm7360_vm1, %v12219_v27  ;;  %8159 = vmatpush1.bf16.msra.mxu1 %v8158_v19  ;;  %v8164_v27 = vpack.c.bf16 %v4426_v41, %v4425_v61  ;;  %v12797_v19 = vld [vmem:[#allocation3 + $0x130] sm:$0xff] }
 0x630   :  { %8160 = vmatprep.subr.bf16.mxu1 %v13577_v47  ;;  %v12824_v41 = vld [vmem:[#allocation3 + $0x170] sm:$0xff] }
 0x632   :  { %5328 = vmatmul.mubr.f32.gmra.mrb[74].mxu1 %v12694_v34 }
 0x633   :  { %5332 = vmatprep.mubr.f32.mxu1 %v12233_v12  ;;  %8162 = vmatpush1.bf16.msra.mxu1 %v8161_v17  ;;  %v8167_v12 = vpack.c.bf16 %v4428_v58, %v4427_v11  ;;  %v4439_v17 = vld [vmem:[%s13509_s3 + $0x3d0] sm:$0xff]  ;;  %v12829_v11 = vld [vmem:[#allocation3 + $0x188] sm:$0xff]  ;;  %v13692_v58 = vld [vmem:[#allocation48_spill] sm:$0xff] }
 0x634   :  { %8163 = vmatprep.subr.bf16.mxu1 %v13577_v47 }
 0x636   :  { %5333 = vmatmul.mubr.f32.gmra.mrb[76].mxu1 %v12705_v6 }
 0x637   :  { %7174 = vmatprep.mubr.msk.f32.mxu1 %vm7360_vm1, %v12247_v39  ;;  %8165 = vmatpush1.bf16.msra.mxu1 %v8164_v27  ;;  %v8170_v39 = vpack.c.bf16 %v4430_v4, %v4429_v23  ;;  %v13691_v27 = vld [vmem:[#allocation47_spill] sm:$0xff]  ;;  %v13693_v23 = vld [vmem:[#allocation49_spill] sm:$0xff] }
 0x638   :  { %8166 = vmatprep.subr.bf16.mxu1 %v13577_v47  ;;  %v12839_v4 = vld [vmem:[#allocation3 + $0x1a8] sm:$0xff] }
 0x63a   :  { %5338 = vmatmul.mubr.f32.gmra.mrb[78].mxu1 %v12718_v48 }
 0x63b   :  { %5342 = vmatprep.mubr.f32.mxu1 %v12255_v32  ;;  %8168 = vmatpush1.bf16.msra.mxu1 %v8167_v12  ;;  %v8173_v32 = vpack.c.bf16 %v4432_v54, %v4431_v45  ;;  %v12835_v12 = vld [vmem:[#allocation3 + $0x190] sm:$0xff]  ;;  %v4441_v45 = vld [vmem:[%s13509_s3 + $0x3e0] sm:$0xff]  ;;  %v4442_v54 = vld [vmem:[%s13509_s3 + $0x3e8] sm:$0xff] }
 0x63c   :  { %8169 = vmatprep.subr.bf16.mxu1 %v13577_v47 }
 0x63e   :  { %5343 = vmatmul.mubr.f32.gmra.mrb[80].mxu1 %v12729_v40 }
 0x63f   :  { %7176 = vmatprep.mubr.msk.f32.mxu1 %vm7360_vm1, %v12263_v52  ;;  %8171 = vmatpush1.bf16.msra.mxu1 %v8170_v39  ;;  %v8176_v52 = vpack.c.bf16 %v4434_v50, %v4433_v7  ;;  %v13694_v39 = vld [vmem:[#allocation52_spill] sm:$0xff]  ;;  %v12851_v7 = vld [vmem:[#allocation3 + $0x1b0] sm:$0xff]  ;;  %v13695_v50 = vld [vmem:[#allocation53_spill] sm:$0xff] }
 0x640   :  { %8172 = vmatprep.subr.bf16.mxu1 %v13577_v47 }
 0x642   :  { %5348 = vmatmul.mubr.f32.gmra.mrb[82].mxu1 %v12742_v25 }
 0x643   :  { %5352 = vmatprep.mubr.f32.mxu1 %v12270_v20  ;;  %8174 = vmatpush1.bf16.msra.mxu1 %v8173_v32  ;;  %v12758_v20 = vld [vmem:[#allocation3 + $0xe8] sm:$0xff]  ;;  %v8188_v32 = vpack.c.bf16 %v4442_v54, %v4441_v45  ;;  %v3837_v45 = vld [vmem:[#allocation3 + $0x270] sm:$0xff] }
 0x644   :  { %8175 = vmatprep.subr.bf16.mxu1 %v13577_v47  ;;  %v13701_v54 = vld [vmem:[#allocation66_spill] sm:$0xff] }
 0x646   :  { %5353 = vmatmul.mubr.f32.gmra.mrb[84].mxu1 %v12747_v16 }
 0x647   :  { %7178 = vmatprep.mubr.msk.f32.mxu1 %vm7360_vm1, %v12283_v37  ;;  %8177 = vmatpush1.bf16.msra.mxu1 %v8176_v52  ;;  %v4435_v37 = vld [vmem:[%s13509_s3 + $0x3b0] sm:$0xff]  ;;  %v12856_v52 = vld [vmem:[#allocation3 + $0x1c8] sm:$0xff] }
 0x648   :  { %8178 = vmatprep.subr.bf16.mxu1 %v13577_v47  ;;  %v8179_v10 = vpack.c.bf16 %v4436_v62, %v4435_v37  ;;  %v13696_v37 = vld [vmem:[#allocation56_spill] sm:$0xff]  ;;  %v12862_v62 = vld [vmem:[#allocation3 + $0x1d0] sm:$0xff] }
 0x64a   :  { %5358 = vmatmul.mubr.f32.gmra.mrb[86].mxu1 %v12754_v3 }
 0x64b   :  { %5362 = vmatprep.mubr.f32.mxu1 %v12291_v63  ;;  %8180 = vmatpush1.bf16.msra.mxu1 %v8179_v10  ;;  %v12775_v63 = vld [vmem:[#allocation3 + $0x108] sm:$0xff] }
 0x64c   :  { %8181 = vmatprep.subr.bf16.mxu1 %v13577_v47  ;;  %v13697_v10 = vld [vmem:[#allocation57_spill] sm:$0xff] }
 0x64e   :  { %5363 = vmatmul.mubr.f32.gmra.mrb[88].mxu1 %v12758_v20 }
 0x64f   :  { %7180 = vmatprep.mubr.msk.f32.mxu1 %vm7360_vm1, %v12298_v35  ;;  %v12781_v35 = vld [vmem:[#allocation3 + $0x110] sm:$0xff] }
 0x652   :  { %5368 = vmatmul.mubr.f32.gmra.mrb[90].mxu1 %v12770_v55 }
 0x653   :  { %5372 = vmatprep.mubr.f32.mxu1 %v12305_v15  ;;  %v4437_v15 = vld [vmem:[%s13509_s3 + $0x3c0] sm:$0xff] }
 0x656   :  { %5373 = vmatmul.mubr.f32.gmra.mrb[92].mxu1 %v12775_v63 }
 0x657   :  { %7182 = vmatprep.mubr.msk.f32.mxu1 %vm7360_vm1, %v12318_v59  ;;  %v4438_v59 = vld [vmem:[%s13509_s3 + $0x3c8] sm:$0xff] }
 0x658   :  { %v8182_v30 = vpack.c.bf16 %v4438_v59, %v4437_v15  ;;  %v12866_v15 = vld [vmem:[#allocation3 + $0x1e8] sm:$0xff]  ;;  %v13698_v59 = vld [vmem:[#allocation60_spill] sm:$0xff] }
 0x65a   :  { %5378 = vmatmul.mubr.f32.gmra.mrb[94].mxu1 %v12781_v35 }
 0x65b   :  { %5382 = vmatprep.mubr.f32.mxu1 %v12326_v0  ;;  %8183 = vmatpush1.bf16.msra.mxu1 %v8182_v30  ;;  %v12802_v0 = vld [vmem:[#allocation3 + $0x148] sm:$0xff]  ;;  %v4444_v30 = vld [vmem:[%s13509_s3 + $0x3f8] sm:$0xff] }
 0x65c   :  { %8184 = vmatprep.subr.bf16.mxu1 %v13577_v47 }
 0x65e   :  { %5383 = vmatmul.mubr.f32.gmra.mrb[96].mxu1 %v12785_v9 }
 0x65f   :  { %7184 = vmatprep.mubr.msk.f32.mxu1 %vm7360_vm1, %v12333_v57  ;;  %v12808_v57 = vld [vmem:[#allocation3 + $0x150] sm:$0xff] }
 0x662   :  { %5388 = vmatmul.mubr.f32.gmra.mrb[98].mxu1 %v12797_v19 }
 0x663   :  { %5392 = vmatprep.mubr.f32.mxu1 %v12340_v8  ;;  %v13690_v8 = vld [vmem:[#allocation44_spill] sm:$0xff] }
 0x666   :  { %5393 = vmatmul.mubr.f32.gmra.mrb[100].mxu1 %v12802_v0 }
 0x667   :  { %7186 = vmatprep.mubr.msk.f32.mxu1 %vm7360_vm1, %v12353_v5  ;;  %v4440_v5 = vld [vmem:[%s13509_s3 + $0x3d8] sm:$0xff] }
 0x668   :  { %v8185_v61 = vpack.c.bf16 %v4440_v5, %v4439_v17  ;;  %v3898_v17 = vld [vmem:[#allocation3 + $0x209] sm:$0xff]  ;;  %v13699_v5 = vld [vmem:[#allocation8_spill] sm:$0xff] }
 0x66a   :  { %5398 = vmatmul.mubr.f32.gmra.mrb[102].mxu1 %v12808_v57 }
 0x66b   :  { %5402 = vmatprep.mubr.f32.mxu1 %v13689_v56  ;;  %8186 = vmatpush1.bf16.msra.mxu1 %v8185_v61  ;;  %v12882_v61 = vld [vmem:[#allocation3 + $0x208] sm:$0xff] }
 0x66c   :  { %8187 = vmatprep.subr.bf16.mxu1 %v13577_v47 }
 0x66e   :  { %5403 = vmatmul.mubr.f32.gmra.mrb[104].mxu1 %v12812_v18 }
 0x66f   :  { %7188 = vmatprep.mubr.msk.f32.mxu1 %vm7360_vm1, %v13690_v8  ;;  %8189 = vmatpush1.bf16.msra.mxu1 %v8188_v32  ;;  %v12878_v8 = vld [vmem:[#allocation3 + $0x1f0] sm:$0xff]  ;;  %v12895_v32 = vld [vmem:[#allocation3 + $0x288] sm:$0xff] }
 0x670   :  { %8190 = vmatprep.subr.bf16.mxu1 %v13577_v47  ;;  %v4443_v47 = vld [vmem:[%s13509_s3 + $0x3f0] sm:$0xff] }
 0x671   :  { %v8191_v56 = vpack.c.bf16 %v4444_v30, %v4443_v47  ;;  %v12911_v47 = vld [vmem:[#allocation3 + $0x2b0] sm:$0xff]  ;;  %v12915_v30 = vld [vmem:[#allocation3 + $0x2c8] sm:$0xff] }
 0x672   :  { %5408 = vmatmul.mubr.f32.gmra.mrb[106].mxu1 %v12824_v41 }
 0x673   :  { %5412 = vmatprep.mubr.f32.mxu1 %v13691_v27  ;;  %8192 = vmatpush1.bf16.msra.mxu1 %v8191_v56  ;;  %v3899_v27 = vld [vmem:[#allocation3 + $0x211] sm:$0xff] }
 0x674   :  { %8225 = vmatprep.subr.bf16.mxu1 %v13699_v5  ;;  %v12921_v56 = vld [vmem:[#allocation3 + $0x2d0] sm:$0xff] }
 0x676   :  { %5413 = vmatmul.mubr.f32.gmra.mrb[108].mxu1 %v12829_v11 }
 0x677   :  { %7190 = vmatprep.mubr.msk.f32.mxu1 %vm7360_vm1, %v13692_v58  ;;  %v12887_v58 = vld [vmem:[#allocation3 + $0x210] sm:$0xff] }
 0x67a   :  { %5418 = vmatmul.mubr.f32.gmra.mrb[110].mxu1 %v12835_v12 }
 0x67b   :  { %5422 = vmatprep.mubr.f32.mxu1 %v13693_v23  ;;  %v3836_v23 = vld [vmem:[#allocation3 + $0x268] sm:$0xff] }
 0x67e   :  { %5423 = vmatmul.mubr.f32.gmra.mrb[112].mxu1 %v12839_v4 }
 0x67f   :  { %7192 = vmatprep.mubr.msk.f32.mxu1 %vm7360_vm1, %v13694_v39  ;;  %v13700_v39 = vld [vmem:[#allocation65_spill] sm:$0xff] }
 0x682   :  { %5428 = vmatmul.mubr.f32.gmra.mrb[114].mxu1 %v12851_v7 }
 0x683   :  { %5432 = vmatprep.mubr.f32.mxu1 %v13695_v50  ;;  %v13702_v50 = vld [vmem:[#allocation69_spill] sm:$0xff] }
 0x686   :  { %5433 = vmatmul.mubr.f32.gmra.mrb[116].mxu1 %v12856_v52 }
 0x687   :  { %7194 = vmatprep.mubr.msk.f32.mxu1 %vm7360_vm1, %v13696_v37  ;;  %v12901_v37 = vld [vmem:[#allocation3 + $0x290] sm:$0xff] }
 0x68a   :  { %5438 = vmatmul.mubr.f32.gmra.mrb[118].mxu1 %v12862_v62 }
 0x68b   :  { %5442 = vmatprep.mubr.f32.mxu1 %v13697_v10  ;;  %v12905_v10 = vld [vmem:[#allocation3 + $0x2a8] sm:$0xff] }
 0x68e   :  { %5443 = vmatmul.mubr.f32.gmra.mrb[120].mxu1 %v12866_v15 }
 0x68f   :  { %7196 = vmatprep.mubr.msk.f32.mxu1 %vm7360_vm1, %v13698_v59  ;;  %v13704_v59 = vld [vmem:[#allocation73_spill] sm:$0xff] }
 0x692   :  { %5448 = vmatmul.mubr.f32.gmra.mrb[122].mxu1 %v12878_v8 }
 0x693   :  { %5452 = vmatprep.mubr.f32.mxu1 %v3898_v17  ;;  %v12925_v17 = vld [vmem:[#allocation3 + $0x2e8] sm:$0xff] }
 0x696   :  { %5453 = vmatmul.mubr.f32.gmra.mrb[124].mxu1 %v12882_v61 }
 0x697   :  { %7198 = vmatprep.mubr.msk.f32.mxu1 %vm7360_vm1, %v3899_v27  ;;  %v3913_v27 = vld [vmem:[#allocation3 + $0x331] sm:$0xff] }
 0x69a   :  { %5458 = vmatmul.mubr.f32.gmra.mrb[126].mxu1 %v12887_v58 }
 0x69b   :  { %5462 = vmatprep.mubr.f32.mxu1 %v12453_v53  ;;  %v13703_v53 = vld [vmem:[#allocation70_spill] sm:$0xff] }
 0x69e   :  { %5463 = vmatmul.mubr.f32.gmra.mrb[128].mxu1 %v3836_v23  ;;  %v3914_v23 = vld [vmem:[#allocation3 + $0x349] sm:$0xff] }
 0x69f   :  { %7200 = vmatprep.mubr.msk.f32.mxu1 %vm7360_vm1, %v13700_v39  ;;  %v3915_v39 = vld [vmem:[#allocation3 + $0x351] sm:$0xff] }
 0x6a2   :  { %5468 = vmatmul.mubr.f32.gmra.mrb[130].mxu1 %v3837_v45  ;;  %v3916_v45 = vld [vmem:[#allocation3 + $0x369] sm:$0xff] }
 0x6a3   :  { %5472 = vmatprep.mubr.f32.mxu1 %v13701_v54  ;;  %v12961_v54 = vld [vmem:[#allocation3 + $0x368] sm:$0xff] }
 0x6a6   :  { %5473 = vmatmul.mubr.f32.gmra.mrb[132].mxu1 %v12895_v32 }
 0x6a7   :  { %7202 = vmatprep.mubr.msk.f32.mxu1 %vm7360_vm1, %v13702_v50  ;;  %v3917_v50 = vld [vmem:[#allocation3 + $0x371] sm:$0xff] }
 0x6aa   :  { %5478 = vmatmul.mubr.f32.gmra.mrb[134].mxu1 %v12901_v37 }
 0x6ab   :  { %5482 = vmatprep.mubr.f32.mxu1 %v13703_v53  ;;  %v12966_v53 = vld [vmem:[#allocation3 + $0x370] sm:$0xff] }
 0x6ae   :  { %5483 = vmatmul.mubr.f32.gmra.mrb[136].mxu1 %v12905_v10 }
 0x6af   :  { %7204 = vmatprep.mubr.msk.f32.mxu1 %vm7360_vm1, %v13704_v59  ;;  %v3918_v59 = vld [vmem:[#allocation3 + $0x389] sm:$0xff] }
 0x6b2   :  { %5488 = vmatmul.mubr.f32.gmra.mrb[138].mxu1 %v12911_v47 }
 0x6b3   :  { %5492 = vmatprep.mubr.f32.mxu1 %v12495_v60  ;;  %v12931_v60 = vld [vmem:[#allocation3 + $0x2f0] sm:$0xff] }
 0x6b6   :  { %5493 = vmatmul.mubr.f32.gmra.mrb[140].mxu1 %v12915_v30 }
 0x6b7   :  { %7206 = vmatprep.mubr.msk.f32.mxu1 %vm7360_vm1, %v12502_v36  ;;  %v12935_v36 = vld [vmem:[#allocation3 + $0x308] sm:$0xff] }
 0x6ba   :  { %5498 = vmatmul.mubr.f32.gmra.mrb[142].mxu1 %v12921_v56 }
 0x6bb   :  { %5502 = vmatprep.mubr.f32.mxu1 %v12509_v44  ;;  %v12941_v44 = vld [vmem:[#allocation3 + $0x310] sm:$0xff] }
 0x6be   :  { %5503 = vmatmul.mubr.f32.gmra.mrb[144].mxu1 %v12925_v17 }
 0x6bf   :  { %7208 = vmatprep.mubr.msk.f32.mxu1 %vm7360_vm1, %v12517_v26  ;;  %v12945_v26 = vld [vmem:[#allocation3 + $0x328] sm:$0xff] }
 0x6c2   :  { %5508 = vmatmul.mubr.f32.gmra.mrb[146].mxu1 %v12931_v60 }
 0x6c3   :  { %5512 = vmatprep.mubr.f32.mxu1 %v12525_v49  ;;  %v12950_v49 = vld [vmem:[#allocation3 + $0x330] sm:$0xff] }
 0x6c6   :  { %5513 = vmatmul.mubr.f32.gmra.mrb[148].mxu1 %v12935_v36 }
 0x6c7   :  { %7210 = vmatprep.mubr.msk.f32.mxu1 %vm7360_vm1, %v12533_v38  ;;  %v12953_v38 = vld [vmem:[#allocation3 + $0x348] sm:$0xff] }
 0x6ca   :  { %5518 = vmatmul.mubr.f32.gmra.mrb[150].mxu1 %v12941_v44 }
 0x6cb   :  { %5522 = vmatprep.mubr.f32.mxu1 %v12541_v22  ;;  %v12958_v22 = vld [vmem:[#allocation3 + $0x350] sm:$0xff] }
 0x6ce   :  { %5523 = vmatmul.mubr.f32.gmra.mrb[152].mxu1 %v12945_v26 }
 0x6cf   :  { %7212 = vmatprep.mubr.msk.f32.mxu1 %vm7360_vm1, %v3913_v27  ;;  %v12969_v27 = vld [vmem:[#allocation3 + $0x388] sm:$0xff] }
 0x6d2   :  { %5528 = vmatmul.mubr.f32.gmra.mrb[154].mxu1 %v12950_v49 }
 0x6d3   :  { %5532 = vmatprep.mubr.f32.mxu1 %v3914_v23  ;;  %v3919_v23 = vld [vmem:[#allocation3 + $0x391] sm:$0xff] }
 0x6d6   :  { %5533 = vmatmul.mubr.f32.gmra.mrb[156].mxu1 %v12953_v38 }
 0x6d7   :  { %7214 = vmatprep.mubr.msk.f32.mxu1 %vm7360_vm1, %v3915_v39  ;;  %v12974_v39 = vld [vmem:[#allocation3 + $0x390] sm:$0xff] }
 0x6da   :  { %5538 = vmatmul.mubr.f32.gmra.mrb[158].mxu1 %v12958_v22 }
 0x6db   :  { %5542 = vmatprep.mubr.f32.mxu1 %v3916_v45  ;;  %v3920_v45 = vld [vmem:[#allocation3 + $0x3a9] sm:$0xff] }
 0x6de   :  { %5543 = vmatmul.mubr.f32.gmra.mrb[160].mxu1 %v12961_v54 }
 0x6df   :  { %7216 = vmatprep.mubr.msk.f32.mxu1 %vm7360_vm1, %v3917_v50  ;;  %v12977_v50 = vld [vmem:[#allocation3 + $0x3a8] sm:$0xff] }
 0x6e2   :  { %5548 = vmatmul.mubr.f32.gmra.mrb[162].mxu1 %v12966_v53 }
 0x6e3   :  { %5552 = vmatprep.mubr.f32.mxu1 %v3918_v59  ;;  %v12982_v59 = vld [vmem:[#allocation3 + $0x3b0] sm:$0xff] }
 0x6e6   :  { %5553 = vmatmul.mubr.f32.gmra.mrb[164].mxu1 %v12969_v27 }
 0x6e7   :  { %7218 = vmatprep.mubr.msk.f32.mxu1 %vm7360_vm1, %v3919_v23  ;;  %v12985_v23 = vld [vmem:[#allocation3 + $0x3c8] sm:$0xff] }
 0x6ea   :  { %5558 = vmatmul.mubr.f32.gmra.mrb[166].mxu1 %v12974_v39 }
 0x6eb   :  { %5562 = vmatprep.mubr.f32.mxu1 %v3920_v45  ;;  %v12990_v45 = vld [vmem:[#allocation3 + $0x3d0] sm:$0xff] }
 0x6ee   :  { %5563 = vmatmul.mubr.f32.gmra.mrb[168].mxu1 %v12977_v50 }
 0x6ef   :  { %7220 = vmatprep.mubr.msk.f32.mxu1 %vm7360_vm1, %v3921_v14  ;;  %v12993_v14 = vld [vmem:[#allocation3 + $0x3e8] sm:$0xff] }
 0x6f2   :  { %5568 = vmatmul.mubr.f32.gmra.mrb[170].mxu1 %v12982_v59 }
 0x6f3   :  { %5572 = vmatprep.mubr.f32.mxu1 %v3922_v24  ;;  %v12998_v24 = vld [vmem:[#allocation3 + $0x3f0] sm:$0xff] }
 0x6f6   :  { %5573 = vmatmul.mubr.f32.gmra.mrb[172].mxu1 %v12985_v23 }
 0x6f7   :  { %7222 = vmatprep.mubr.msk.f32.mxu1 %vm7360_vm1, %v3923_v46  ;;  %v13002_v46 = vld [vmem:[#allocation3 + $0x408] sm:$0xff] }
 0x6f8   :  { %13705 = vst [vmem:[#allocation41_spill] sm:$0xff] %v13002_v46 }
 0x6fa   :  { %5578 = vmatmul.mubr.f32.gmra.mrb[174].mxu1 %v12990_v45 }
 0x6fb   :  { %5582 = vmatprep.mubr.f32.mxu1 %v3924_v29  ;;  %v13008_v29 = vld [vmem:[#allocation3 + $0x410] sm:$0xff] }
 0x6fe   :  { %5583 = vmatmul.mubr.f32.gmra.mrb[176].mxu1 %v12993_v14 }
 0x6ff   :  { %7224 = vmatprep.mubr.msk.f32.mxu1 %vm7360_vm1, %v3925_v1  ;;  %v13012_v1 = vld [vmem:[#allocation3 + $0x428] sm:$0xff] }
 0x700   :  { %13706 = vst [vmem:[#allocation44_spill] sm:$0xff] %v13012_v1 }
 0x702   :  { %5588 = vmatmul.mubr.f32.gmra.mrb[178].mxu1 %v12998_v24 }
 0x703   :  { %5592 = vmatprep.mubr.f32.mxu1 %v12607_v42  ;;  %v13018_v42 = vld [vmem:[#allocation3 + $0x430] sm:$0xff] }
 0x706   :  { %5593 = vmatmul.mubr.f32.gmra.mrb[180].mxu1 %v13002_v46  ;;  %v13021_v46 = vld [vmem:[#allocation3 + $0x449] sm:$0xff] }
 0x707   :  { %7226 = vmatprep.mubr.msk.f32.mxu1 %vm7360_vm1, %v12611_v51  ;;  %13707 = vst [vmem:[#allocation47_spill] sm:$0xff] %v13021_v46  ;;  %v13024_v51 = vld [vmem:[#allocation3 + $0x448] sm:$0xff] }
 0x708   :  { %13708 = vst [vmem:[#allocation48_spill] sm:$0xff] %v13024_v51 }
 0x70a   :  { %5598 = vmatmul.mubr.f32.gmra.mrb[182].mxu1 %v13008_v29 }
 0x70b   :  { %5602 = vmatprep.mubr.f32.mxu1 %v12618_v13  ;;  %v13027_v13 = vld [vmem:[#allocation3 + $0x451] sm:$0xff] }
 0x70c   :  { %13709 = vst [vmem:[#allocation49_spill] sm:$0xff] %v13027_v13 }
 0x70e   :  { %5603 = vmatmul.mubr.f32.gmra.mrb[184].mxu1 %v13012_v1  ;;  %v13032_v1 = vld [vmem:[#allocation3 + $0x450] sm:$0xff] }
 0x70f   :  { %7228 = vmatprep.mubr.msk.f32.mxu1 %vm7360_vm1, %v12627_v28  ;;  %v3997_v28 = vld [vmem:[#allocation3 + $0x47] sm:$0xff] }
 0x712   :  { %5608 = vmatmul.mubr.f32.gmra.mrb[186].mxu1 %v13018_v42 }
 0x713   :  { %5612 = vmatprep.mubr.f32.mxu1 %v13021_v46  ;;  %v13710_v46 = vld [vmem:[#allocation10_spill] sm:$0xff] }
 0x716   :  { %5613 = vmatmul.mubr.f32.gmra.mrb[188].mxu1 %v13024_v51  ;;  %v3998_v51 = vld [vmem:[#allocation3 + $0x4f] sm:$0xff] }
 0x717   :  { %7230 = vmatprep.mubr.msk.f32.mxu1 %vm7360_vm1, %v13027_v13  ;;  %v13711_v13 = vld [vmem:[#allocation7_spill] sm:$0xff] }
 0x71a   :  { %5618 = vmatmul.mubr.f32.gmra.mrb[190].mxu1 %v13032_v1 }
 0x71b   :  { %5687 = vmatprep.mubr.f32.mxu1 %v12657_v21  ;;  %v13712_v21 = vld [vmem:[#allocation9_spill] sm:$0xff] }
 0x71e   :  { %7232 = vmatmul.mubr.msk.f32.vlgmr.msra.gmra.mrb[64].mxu1 %vm7359_vm0, %v3997_v28  ;;  %v4008_v28 = vld [vmem:[#allocation3 + $0xef] sm:$0xff] }
 0x71f   :  { %5692 = vmatprep.mubr.f32.mxu1 %v12670_v31  ;;  %8233 = vmatpush3.bf16.msra.mxu1 %v13699_v5  ;;  %v4000_v31 = vld [vmem:[#allocation3 + $0x6f] sm:$0xff]  ;;  %v4001_v5 = vld [vmem:[#allocation3 + $0x87] sm:$0xff] }
 0x720   :  { %8226 = vmatprep.subr.bf16.mxu1 %v13710_v46 }
 0x722   :  { %5693 = vmatmul.mubr.f32.gmra.mrb[66].mxu1 %v3998_v51  ;;  %v4004_v51 = vld [vmem:[#allocation3 + $0xaf] sm:$0xff] }
 0x723   :  { %5697 = vmatprep.mubr.f32.mxu1 %v12681_v2  ;;  %8234 = vmatpush3.bf16.msra.mxu1 %v13710_v46  ;;  %v13713_v2 = vld [vmem:[#allocation11_spill] sm:$0xff]  ;;  %v4003_v46 = vld [vmem:[#allocation3 + $0xa7] sm:$0xff] }
 0x724   :  { %8227 = vmatprep.subr.bf16.mxu1 %v13711_v13 }
 0x726   :  { %7234 = vmatmul.mubr.msk.f32.gmra.mrb[68].mxu1 %vm7359_vm0, %v3999_v43  ;;  %v13714_v43 = vld [vmem:[#allocation12_spill] sm:$0xff] }
 0x727   :  { %5702 = vmatprep.mubr.f32.mxu1 %v12694_v34  ;;  %8235 = vmatpush3.bf16.msra.mxu1 %v13711_v13  ;;  %v4002_v34 = vld [vmem:[#allocation3 + $0x8f] sm:$0xff] }
 0x728   :  { %8228 = vmatprep.subr.bf16.mxu1 %v13712_v21  ;;  %v4006_v13 = vld [vmem:[#allocation3 + $0xcf] sm:$0xff] }
 0x72a   :  { %5703 = vmatmul.mubr.f32.gmra.mrb[70].mxu1 %v4000_v31  ;;  %v4031_v31 = vld [vmem:[#allocation3 + $0x2a7] sm:$0xff] }
 0x72b   :  { %5707 = vmatprep.mubr.f32.mxu1 %v12705_v6  ;;  %8236 = vmatpush3.bf16.msra.mxu1 %v13712_v21  ;;  %v13715_v6 = vld [vmem:[#allocation14_spill] sm:$0xff]  ;;  %v13110_v21 = vld [vmem:[#allocation2 + $0x8] sm:$0xff] }
 0x72c   :  { %8229 = vmatprep.subr.bf16.mxu1 %v13713_v2 }
 0x72e   :  { %7236 = vmatmul.mubr.msk.f32.gmra.mrb[72].mxu1 %vm7359_vm0, %v4001_v5  ;;  %v4050_v5 = vld [vmem:[#allocation3 + $0x3cf] sm:$0xff] }
 0x72f   :  { %5712 = vmatprep.mubr.f32.mxu1 %v12718_v48  ;;  %8237 = vmatpush3.bf16.msra.mxu1 %v13713_v2  ;;  %v13716_v48 = vld [vmem:[#allocation15_spill] sm:$0xff]  ;;  %v4032_v2 = vld [vmem:[#allocation3 + $0x2af] sm:$0xff] }
 0x730   :  { %8230 = vmatprep.subr.bf16.mxu1 %v13714_v43 }
 0x732   :  { %5713 = vmatmul.mubr.f32.gmra.mrb[74].mxu1 %v4002_v34 }
 0x733   :  { %5717 = vmatprep.mubr.f32.mxu1 %v12729_v40  ;;  %8238 = vmatpush3.bf16.msra.mxu1 %v13714_v43  ;;  %v4005_v40 = vld [vmem:[#allocation3 + $0xc7] sm:$0xff] }
 0x734   :  { %8231 = vmatprep.subr.bf16.mxu1 %v13715_v6 }
 0x736   :  { %7238 = vmatmul.mubr.msk.f32.gmra.mrb[76].mxu1 %vm7359_vm0, %v4003_v46  ;;  %v4051_v46 = vld [vmem:[#allocation3 + $0x3e7] sm:$0xff] }
 0x737   :  { %5722 = vmatprep.mubr.f32.mxu1 %v12742_v25  ;;  %8239 = vmatpush3.bf16.msra.mxu1 %v13715_v6  ;;  %v4007_v25 = vld [vmem:[#allocation3 + $0xe7] sm:$0xff] }
 0x738   :  { %8232 = vmatprep.subr.bf16.mxu1 %v13716_v48 }
 0x73a   :  { %5723 = vmatmul.mubr.f32.gmra.mrb[78].mxu1 %v4004_v51 }
 0x73b   :  { %5727 = vmatprep.mubr.f32.mxu1 %v12747_v16  ;;  %8240 = vmatpush3.bf16.msra.mxu1 %v13716_v48  ;;  %v4009_v16 = vld [vmem:[#allocation3 + $0x107] sm:$0xff] }
 0x73c   :  { %v9143_v48 = vld [vmem:[#allocation2 + $0x28] sm:$0xff] }
 0x73e   :  { %7240 = vmatmul.mubr.msk.f32.gmra.mrb[80].mxu1 %vm7359_vm0, %v4005_v40 }
 0x73f   :  { %5732 = vmatprep.mubr.f32.mxu1 %v12754_v3  ;;  %v4010_v3 = vld [vmem:[#allocation3 + $0x10f] sm:$0xff] }
 0x742   :  { %5733 = vmatmul.mubr.f32.gmra.mrb[82].mxu1 %v4006_v13 }
 0x743   :  { %5737 = vmatprep.mubr.f32.mxu1 %v12758_v20  ;;  %v4011_v20 = vld [vmem:[#allocation3 + $0x127] sm:$0xff] }
 0x746   :  { %7242 = vmatmul.mubr.msk.f32.gmra.mrb[84].mxu1 %vm7359_vm0, %v4007_v25  ;;  %v13718_v25 = vld [vmem:[#allocation5_spill] sm:$0xff] }
 0x747   :  { %5742 = vmatprep.mubr.f32.mxu1 %v12770_v55  ;;  %v4012_v55 = vld [vmem:[#allocation3 + $0x12f] sm:$0xff] }
 0x74a   :  { %5743 = vmatmul.mubr.f32.gmra.mrb[86].mxu1 %v4008_v28 }
 0x74b   :  { %5747 = vmatprep.mubr.f32.mxu1 %v12775_v63  ;;  %v4013_v63 = vld [vmem:[#allocation3 + $0x147] sm:$0xff] }
 0x74e   :  { %7244 = vmatmul.mubr.msk.f32.gmra.mrb[88].mxu1 %vm7359_vm0, %v4009_v16 }
 0x74f   :  { %5752 = vmatprep.mubr.f32.mxu1 %v12781_v35  ;;  %v4014_v35 = vld [vmem:[#allocation3 + $0x14f] sm:$0xff] }
 0x752   :  { %5753 = vmatmul.mubr.f32.gmra.mrb[90].mxu1 %v4010_v3  ;;  %v4052_v3 = vld [vmem:[#allocation3 + $0x3ef] sm:$0xff] }
 0x753   :  { %5757 = vmatprep.mubr.f32.mxu1 %v12785_v9  ;;  %v4015_v9 = vld [vmem:[#allocation3 + $0x167] sm:$0xff] }
 0x756   :  { %7246 = vmatmul.mubr.msk.f32.gmra.mrb[92].mxu1 %vm7359_vm0, %v4011_v20 }
 0x757   :  { %5762 = vmatprep.mubr.f32.mxu1 %v12797_v19  ;;  %v4016_v19 = vld [vmem:[#allocation3 + $0x16f] sm:$0xff] }
 0x75a   :  { %5763 = vmatmul.mubr.f32.gmra.mrb[94].mxu1 %v4012_v55 }
 0x75b   :  { %5767 = vmatprep.mubr.f32.mxu1 %v12802_v0  ;;  %v4017_v0 = vld [vmem:[#allocation3 + $0x187] sm:$0xff] }
 0x75e   :  { %7248 = vmatmul.mubr.msk.f32.gmra.mrb[96].mxu1 %vm7359_vm0, %v4013_v63 }
 0x75f   :  { %5772 = vmatprep.mubr.f32.mxu1 %v12808_v57  ;;  %v4018_v57 = vld [vmem:[#allocation3 + $0x18f] sm:$0xff] }
 0x762   :  { %5773 = vmatmul.mubr.f32.gmra.mrb[98].mxu1 %v4014_v35  ;;  %v13719_v35 = vld [vmem:[#allocation41_spill] sm:$0xff] }
 0x763   :  { %5777 = vmatprep.mubr.f32.mxu1 %v12812_v18  ;;  %v4019_v18 = vld [vmem:[#allocation3 + $0x1a7] sm:$0xff] }
 0x766   :  { %7250 = vmatmul.mubr.msk.f32.gmra.mrb[100].mxu1 %vm7359_vm0, %v4015_v9 }
 0x767   :  { %5782 = vmatprep.mubr.f32.mxu1 %v12824_v41  ;;  %v4020_v41 = vld [vmem:[#allocation3 + $0x1af] sm:$0xff] }
 0x76a   :  { %5783 = vmatmul.mubr.f32.gmra.mrb[102].mxu1 %v4016_v19  ;;  %v13720_v19 = vld [vmem:[#allocation16_spill] sm:$0xff] }
 0x76b   :  { %5787 = vmatprep.mubr.f32.mxu1 %v12829_v11  ;;  %v4021_v11 = vld [vmem:[#allocation3 + $0x1c7] sm:$0xff] }
 0x76e   :  { %7252 = vmatmul.mubr.msk.f32.gmra.mrb[104].mxu1 %vm7359_vm0, %v4017_v0 }
 0x76f   :  { %5792 = vmatprep.mubr.f32.mxu1 %v12835_v12  ;;  %v4022_v12 = vld [vmem:[#allocation3 + $0x1cf] sm:$0xff] }
 0x772   :  { %5793 = vmatmul.mubr.f32.gmra.mrb[106].mxu1 %v4018_v57  ;;  %v4053_v57 = vld [vmem:[#allocation3 + $0x407] sm:$0xff] }
 0x773   :  { %5797 = vmatprep.mubr.f32.mxu1 %v12839_v4  ;;  %v4023_v4 = vld [vmem:[#allocation3 + $0x1e7] sm:$0xff] }
 0x776   :  { %7254 = vmatmul.mubr.msk.f32.gmra.mrb[108].mxu1 %vm7359_vm0, %v4019_v18  ;;  %v9145_v18 = vld [vmem:[#allocation2 + $0x48] sm:$0xff] }
 0x777   :  { %5802 = vmatprep.mubr.f32.mxu1 %v12851_v7  ;;  %v4024_v7 = vld [vmem:[#allocation3 + $0x1ef] sm:$0xff] }
 0x77a   :  { %5803 = vmatmul.mubr.f32.gmra.mrb[110].mxu1 %v4020_v41 }
 0x77b   :  { %5807 = vmatprep.mubr.f32.mxu1 %v12856_v52  ;;  %v4025_v52 = vld [vmem:[#allocation3 + $0x207] sm:$0xff] }
 0x77e   :  { %7256 = vmatmul.mubr.msk.f32.gmra.mrb[112].mxu1 %vm7359_vm0, %v4021_v11 }
 0x77f   :  { %5812 = vmatprep.mubr.f32.mxu1 %v12862_v62  ;;  %v4026_v62 = vld [vmem:[#allocation3 + $0x20f] sm:$0xff] }
 0x782   :  { %5813 = vmatmul.mubr.f32.gmra.mrb[114].mxu1 %v4022_v12 }
 0x783   :  { %5817 = vmatprep.mubr.f32.mxu1 %v12866_v15  ;;  %v4027_v15 = vld [vmem:[#allocation3 + $0x227] sm:$0xff] }
 0x786   :  { %7258 = vmatmul.mubr.msk.f32.gmra.mrb[116].mxu1 %vm7359_vm0, %v4023_v4 }
 0x787   :  { %5822 = vmatprep.mubr.f32.mxu1 %v12878_v8  ;;  %v4028_v8 = vld [vmem:[#allocation3 + $0x22f] sm:$0xff] }
 0x78a   :  { %5823 = vmatmul.mubr.f32.gmra.mrb[118].mxu1 %v4024_v7  ;;  %v13721_v7 = vld [vmem:[#allocation4_spill] sm:$0xff] }
 0x78b   :  { %5827 = vmatprep.mubr.f32.mxu1 %v12882_v61  ;;  %v4029_v61 = vld [vmem:[#allocation3 + $0x287] sm:$0xff] }
 0x78e   :  { %7260 = vmatmul.mubr.msk.f32.gmra.mrb[120].mxu1 %vm7359_vm0, %v4025_v52 }
 0x78f   :  { %5832 = vmatprep.mubr.f32.mxu1 %v12887_v58  ;;  %v4030_v58 = vld [vmem:[#allocation3 + $0x28f] sm:$0xff] }
 0x792   :  { %5833 = vmatmul.mubr.f32.gmra.mrb[122].mxu1 %v4026_v62 }
 0x793   :  { %5837 = vmatprep.mubr.f32.mxu1 %v13110_v21 }
 0x796   :  { %7262 = vmatmul.mubr.msk.f32.gmra.mrb[124].mxu1 %vm7359_vm0, %v4027_v15  ;;  %v4054_v15 = vld [vmem:[#allocation3 + $0x40f] sm:$0xff] }
 0x797   :  { %5842 = vmatprep.mubr.f32.mxu1 %v13110_v21 }
 0x79a   :  { %5843 = vmatmul.mubr.f32.gmra.mrb[126].mxu1 %v4028_v8  ;;  %v9146_v8 = vld [vmem:[#allocation2 + $0x50] sm:$0xff] }
 0x79b   :  { %5847 = vmatprep.mubr.f32.mxu1 %v12895_v32  ;;  %v4033_v32 = vld [vmem:[#allocation3 + $0x2c7] sm:$0xff] }
 0x79e   :  { %7264 = vmatmul.mubr.msk.f32.gmra.mrb[128].mxu1 %vm7359_vm0, %v4029_v61 }
 0x79f   :  { %5852 = vmatprep.mubr.f32.mxu1 %v12901_v37  ;;  %v4034_v37 = vld [vmem:[#allocation3 + $0x2cf] sm:$0xff] }
 0x7a2   :  { %5853 = vmatmul.mubr.f32.gmra.mrb[130].mxu1 %v4030_v58 }
 0x7a3   :  { %5857 = vmatprep.mubr.f32.mxu1 %v12905_v10  ;;  %v4035_v10 = vld [vmem:[#allocation3 + $0x2e7] sm:$0xff] }
 0x7a6   :  { %7266 = vmatmul.mubr.msk.f32.gmra.mrb[132].mxu1 %vm7359_vm0, %v4031_v31 }
 0x7a7   :  { %5862 = vmatprep.mubr.f32.mxu1 %v12911_v47  ;;  %v4036_v47 = vld [vmem:[#allocation3 + $0x2ef] sm:$0xff] }
 0x7aa   :  { %5863 = vmatmul.mubr.f32.gmra.mrb[134].mxu1 %v4032_v2  ;;  %v13722_v2 = vld [vmem:[#allocation44_spill] sm:$0xff] }
 0x7ab   :  { %5867 = vmatprep.mubr.f32.mxu1 %v12915_v30  ;;  %v4037_v30 = vld [vmem:[#allocation3 + $0x307] sm:$0xff] }
 0x7ae   :  { %7268 = vmatmul.mubr.msk.f32.gmra.mrb[136].mxu1 %vm7359_vm0, %v4033_v32 }
 0x7af   :  { %5872 = vmatprep.mubr.f32.mxu1 %v12921_v56  ;;  %v4038_v56 = vld [vmem:[#allocation3 + $0x30f] sm:$0xff] }
 0x7b2   :  { %5873 = vmatmul.mubr.f32.gmra.mrb[138].mxu1 %v4034_v37  ;;  %v13723_v37 = vld [vmem:[#allocation18_spill] sm:$0xff] }
 0x7b3   :  { %5877 = vmatprep.mubr.f32.mxu1 %v12925_v17  ;;  %v4039_v17 = vld [vmem:[#allocation3 + $0x327] sm:$0xff] }
 0x7b6   :  { %7270 = vmatmul.mubr.msk.f32.gmra.mrb[140].mxu1 %vm7359_vm0, %v4035_v10 }
 0x7b7   :  { %5882 = vmatprep.mubr.f32.mxu1 %v12931_v60  ;;  %v4040_v60 = vld [vmem:[#allocation3 + $0x32f] sm:$0xff] }
 0x7ba   :  { %5883 = vmatmul.mubr.f32.gmra.mrb[142].mxu1 %v4036_v47  ;;  %v4055_v47 = vld [vmem:[#allocation3 + $0x427] sm:$0xff] }
 0x7bb   :  { %5887 = vmatprep.mubr.f32.mxu1 %v12935_v36  ;;  %v4041_v36 = vld [vmem:[#allocation3 + $0x347] sm:$0xff] }
 0x7be   :  { %7272 = vmatmul.mubr.msk.f32.gmra.mrb[144].mxu1 %vm7359_vm0, %v4037_v30  ;;  %v9147_v30 = vld [vmem:[#allocation2 + $0x68] sm:$0xff] }
 0x7bf   :  { %5892 = vmatprep.mubr.f32.mxu1 %v12941_v44  ;;  %v4042_v44 = vld [vmem:[#allocation3 + $0x34f] sm:$0xff] }
 0x7c2   :  { %5893 = vmatmul.mubr.f32.gmra.mrb[146].mxu1 %v4038_v56 }
 0x7c3   :  { %5897 = vmatprep.mubr.f32.mxu1 %v12945_v26  ;;  %v4043_v26 = vld [vmem:[#allocation3 + $0x367] sm:$0xff] }
 0x7c6   :  { %7274 = vmatmul.mubr.msk.f32.gmra.mrb[148].mxu1 %vm7359_vm0, %v4039_v17 }
 0x7c7   :  { %5902 = vmatprep.mubr.f32.mxu1 %v12950_v49  ;;  %v4044_v49 = vld [vmem:[#allocation3 + $0x36f] sm:$0xff] }
 0x7ca   :  { %5903 = vmatmul.mubr.f32.gmra.mrb[150].mxu1 %v4040_v60 }
 0x7cb   :  { %5907 = vmatprep.mubr.f32.mxu1 %v12953_v38  ;;  %v4045_v38 = vld [vmem:[#allocation3 + $0x387] sm:$0xff] }
 0x7ce   :  { %7276 = vmatmul.mubr.msk.f32.gmra.mrb[152].mxu1 %vm7359_vm0, %v4041_v36 }
 0x7cf   :  { %5912 = vmatprep.mubr.f32.mxu1 %v12958_v22  ;;  %v4046_v22 = vld [vmem:[#allocation3 + $0x38f] sm:$0xff] }
 0x7d2   :  { %5913 = vmatmul.mubr.f32.gmra.mrb[154].mxu1 %v4042_v44  ;;  %v13724_v44 = vld [vmem:[#allocation17_spill] sm:$0xff] }
 0x7d3   :  { %5917 = vmatprep.mubr.f32.mxu1 %v12961_v54  ;;  %v4047_v54 = vld [vmem:[#allocation3 + $0x3a7] sm:$0xff] }
 0x7d6   :  { %7278 = vmatmul.mubr.msk.f32.gmra.mrb[156].mxu1 %vm7359_vm0, %v4043_v26 }
 0x7d7   :  { %5922 = vmatprep.mubr.f32.mxu1 %v12966_v53  ;;  %v4048_v53 = vld [vmem:[#allocation3 + $0x3af] sm:$0xff] }
 0x7da   :  { %5923 = vmatmul.mubr.f32.gmra.mrb[158].mxu1 %v4044_v49 }
 0x7db   :  { %5927 = vmatprep.mubr.f32.mxu1 %v12969_v27  ;;  %v4049_v27 = vld [vmem:[#allocation3 + $0x3c7] sm:$0xff] }
 0x7de   :  { %7280 = vmatmul.mubr.msk.f32.gmra.mrb[160].mxu1 %vm7359_vm0, %v4045_v38  ;;  %v4056_v38 = vld [vmem:[#allocation3 + $0x42f] sm:$0xff] }
 0x7df   :  { %5932 = vmatprep.mubr.f32.mxu1 %v12974_v39  ;;  %v13163_v39 = vld [vmem:[%s13511_s4] ss:$0 sm:$0xff] }
 0x7e2   :  { %5933 = vmatmul.mubr.f32.gmra.mrb[162].mxu1 %v4046_v22  ;;  %v9148_v22 = vld [vmem:[#allocation2 + $0x70] sm:$0xff] }
 0x7e3   :  { %5937 = vmatprep.mubr.f32.mxu1 %v12977_v50 }
 0x7e6   :  { %7282 = vmatmul.mubr.msk.f32.gmra.mrb[164].mxu1 %vm7359_vm0, %v4047_v54 }
 0x7e7   :  { %5942 = vmatprep.mubr.f32.mxu1 %v12982_v59 }
 0x7ea   :  { %5943 = vmatmul.mubr.f32.gmra.mrb[166].mxu1 %v4048_v53 }
 0x7eb   :  { %5947 = vmatprep.mubr.f32.mxu1 %v12985_v23  ;;  %v13717_v23 = vld [vmem:[#allocation6_spill] sm:$0xff] }
 0x7ee   :  { %7284 = vmatmul.mubr.msk.f32.gmra.mrb[168].mxu1 %vm7359_vm0, %v4049_v27 }
 0x7ef   :  { %5952 = vmatprep.mubr.f32.mxu1 %v12990_v45 }
 0x7f1   :  { %v5689_v50 = vpop.f32.mrb[64].mxu1 }
 0x7f2   :  { %v8305_v43 = vadd.f32 %v13163_v39, %v5689_v50  ;;  %v5691_v59 = vpop.f32.mrb[65].mxu1  ;;  %5953 = vmatmul.mubr.f32.gmra.mrb[170].mxu1 %v4050_v5  ;;  %v13725_v50 = vld [vmem:[#allocation48_spill] sm:$0xff] }
 0x7f3   :  { %5957 = vmatprep.mubr.f32.mxu1 %v12993_v14  ;;  %v9144_v14 = vld [vmem:[#allocation2 + $0x30] sm:$0xff] }
 0x7f4   :  { %v6075_v34 = vadd.f32 %v8305_v43, %v13717_v23  ;;  %v13726_v43 = vld [vmem:[#allocation20_spill] sm:$0xff] }
 0x7f5   :  { %v5694_v6 = vpop.f32.mrb[66].mxu1  ;;  %v4057_v23 = vld [vmem:[#allocation3 + $0x447] sm:$0xff] }
 0x7f6   :  { %v6393_v51 = vadd.f32 %v9143_v48, %v6075_v34  ;;  %v8306_v45 = vadd.f32 %v13163_v39, %v5694_v6  ;;  %v5696_v40 = vpop.f32.mrb[67].mxu1  ;;  %7286 = vmatmul.mubr.msk.f32.gmra.mrb[172].mxu1 %vm7359_vm0, %v4051_v46  ;;  %v9149_v34 = vld [vmem:[#allocation2 + $0x88] sm:$0xff] }
 0x7f7   :  { %5962 = vmatprep.mubr.f32.mxu1 %v12998_v24 }
 0x7f8   :  { %v6457_v13 = vmax.f32 %v6393_v51, 0.0  ;;  %v6080_v28 = vadd.f32 %v8306_v45, %v13718_v25  ;;  %v13727_v45 = vld [vmem:[#allocation19_spill] sm:$0xff]  ;;  %v4058_v25 = vld [vmem:[#allocation3 + $0x44f] sm:$0xff] }
 0x7f9   :  { %v5699_v16 = vpop.f32.mrb[68].mxu1 }
 0x7fa   :  { %6521 = vst [vmem:[%s13512_s5] sm:$0xff] %v6457_v13  ;;  %v6394_v20 = vadd.f32 %v9144_v14, %v6080_v28  ;;  %v8307_v55 = vadd.f32 %v13163_v39, %v5699_v16  ;;  %v5701_v63 = vpop.f32.mrb[69].mxu1  ;;  %5963 = vmatmul.mubr.f32.gmra.mrb[174].mxu1 %v4052_v3  ;;  %v9150_v28 = vld [vmem:[#allocation2 + $0x90] sm:$0xff] }
 0x7fb   :  { %5967 = vmatprep.mubr.f32.mxu1 %v13719_v35 }
 0x7fc   :  { %v6458_v9 = vmax.f32 %v6394_v20, 0.0  ;;  %v6085_v24 = vadd.f32 %v8307_v55, %v13720_v19  ;;  %v4059_v20 = vld [vmem:[#allocation3 + $0x467] sm:$0xff] }
 0x7fd   :  { %v5704_v0 = vpop.f32.mrb[70].mxu1 }
 0x7fe   :  { %6522 = vst [vmem:[%s13512_s5 + $0x8] sm:$0xff] %v6458_v9  ;;  %v6395_v41 = vadd.f32 %v9145_v18, %v6085_v24  ;;  %v8308_v11 = vadd.f32 %v13163_v39, %v5704_v0  ;;  %v5706_v12 = vpop.f32.mrb[71].mxu1  ;;  %7288 = vmatmul.mubr.msk.f32.gmra.mrb[176].mxu1 %vm7359_vm0, %v4053_v57  ;;  %v9151_v9 = vld [vmem:[#allocation2 + $0xa8] sm:$0xff] }
 0x7ff   :  { %5972 = vmatprep.mubr.f32.mxu1 %v13008_v29  ;;  %v4060_v57 = vld [vmem:[#allocation3 + $0x46f] sm:$0xff] }
 0x800   :  { %v6459_v4 = vmax.f32 %v6395_v41, 0.0  ;;  %v6090_v52 = vadd.f32 %v8308_v11, %v13721_v7  ;;  %v13729_v41 = vld [vmem:[#allocation21_spill] sm:$0xff] }
 0x801   :  { %v5709_v62 = vpop.f32.mrb[72].mxu1 }
 0x802   :  { %6523 = vst [vmem:[%s13512_s5 + $0x10] sm:$0xff] %v6459_v4  ;;  %v6396_v61 = vadd.f32 %v9146_v8, %v6090_v52  ;;  %v8309_v58 = vadd.f32 %v13163_v39, %v5709_v62  ;;  %v5711_v31 = vpop.f32.mrb[73].mxu1  ;;  %5973 = vmatmul.mubr.f32.gmra.mrb[178].mxu1 %v4054_v15  ;;  %v9152_v4 = vld [vmem:[#allocation2 + $0xb0] sm:$0xff]  ;;  %v13730_v8 = vld [vmem:[#allocation24_spill] sm:$0xff] }
 0x803   :  { %5977 = vmatprep.mubr.f32.mxu1 %v13722_v2  ;;  %v4245_v15 = vld [vmem:[#allocation3 + $0x409] sm:$0xff] }
 0x804   :  { %v6460_v32 = vmax.f32 %v6396_v61, 0.0  ;;  %v6095_v29 = vadd.f32 %v8309_v58, %v13723_v37  ;;  %v4246_v58 = vld [vmem:[#allocation3 + $0x411] sm:$0xff]  ;;  %v9153_v31 = vld [vmem:[#allocation2 + $0xc8] sm:$0xff] }
 0x805   :  { %v5714_v10 = vpop.f32.mrb[74].mxu1 }
 0x806   :  { %6524 = vst [vmem:[%s13512_s5 + $0x18] sm:$0xff] %v6460_v32  ;;  %v6397_v56 = vadd.f32 %v9147_v30, %v6095_v29  ;;  %v8310_v17 = vadd.f32 %v13163_v39, %v5714_v10  ;;  %v5716_v60 = vpop.f32.mrb[75].mxu1  ;;  %7290 = vmatmul.mubr.msk.f32.gmra.mrb[180].mxu1 %vm7359_vm0, %v4055_v47  ;;  %v4247_v10 = vld [vmem:[#allocation3 + $0x429] sm:$0xff]  ;;  %v13732_v30 = vld [vmem:[#allocation23_spill] sm:$0xff] }
 0x807   :  { %5982 = vmatprep.mubr.f32.mxu1 %v13018_v42  ;;  %v4248_v60 = vld [vmem:[#allocation3 + $0x431] sm:$0xff] }
 0x808   :  { %v6461_v36 = vmax.f32 %v6397_v56, 0.0  ;;  %v6100_v26 = vadd.f32 %v8310_v17, %v13724_v44 }
 0x809   :  { %v5719_v49 = vpop.f32.mrb[76].mxu1 }
 0x80a   :  { %6525 = vst [vmem:[%s13512_s5 + $0x20] sm:$0xff] %v6461_v36  ;;  %v6398_v54 = vadd.f32 %v9148_v22, %v6100_v26  ;;  %v8311_v53 = vadd.f32 %v13163_v39, %v5719_v49  ;;  %v5721_v27 = vpop.f32.mrb[77].mxu1  ;;  %5983 = vmatmul.mubr.f32.gmra.mrb[182].mxu1 %v4056_v38  ;;  %v9154_v36 = vld [vmem:[#allocation2 + $0xd0] sm:$0xff]  ;;  %v13733_v38 = vld [vmem:[#allocation47_spill] sm:$0xff] }
 0x80b   :  { %5987 = vmatprep.mubr.f32.mxu1 %v13725_v50  ;;  %v4251_v27 = vld [vmem:[#allocation3 + $0x469] sm:$0xff] }
 0x80c   :  { %v6462_v5 = vmax.f32 %v6398_v54, 0.0  ;;  %v6105_v42 = vadd.f32 %v8311_v53, %v13726_v43  ;;  %v13734_v54 = vld [vmem:[#allocation26_spill] sm:$0xff] }
 0x80d   :  { %v5724_v59 = vpop.f32.mrb[78].mxu1 }
 0x80e   :  { %6526 = vst [vmem:[%s13512_s5 + $0x28] sm:$0xff] %v6462_v5  ;;  %v6399_v6 = vadd.f32 %v9149_v34, %v6105_v42  ;;  %v8312_v46 = vadd.f32 %v13163_v39, %v5724_v59  ;;  %v5726_v48 = vpop.f32.mrb[79].mxu1  ;;  %7292 = vmatmul.mubr.msk.f32.gmra.mrb[184].mxu1 %vm7359_vm0, %v4057_v23  ;;  %v9155_v5 = vld [vmem:[#allocation2 + $0xe8] sm:$0xff]  ;;  %v4252_v34 = vld [vmem:[#allocation3 + $0x471] sm:$0xff] }
 0x80f   :  { %5992 = vmatprep.mubr.f32.mxu1 %v13032_v1  ;;  %v13728_v1 = vld [vmem:[#allocation22_spill] sm:$0xff]  ;;  %v13735_v23 = vld [vmem:[#allocation49_spill] sm:$0xff] }
 0x810   :  { %v6463_v51 = vmax.f32 %v6399_v6, 0.0  ;;  %v6110_v40 = vadd.f32 %v8312_v46, %v13727_v45  ;;  %v13736_v46 = vld [vmem:[#allocation25_spill] sm:$0xff]  ;;  %v9156_v45 = vld [vmem:[#allocation2 + $0xf0] sm:$0xff] }
 0x811   :  { %v5729_v13 = vpop.f32.mrb[80].mxu1 }
 0x812   :  { %6527 = vst [vmem:[%s13512_s5 + $0x30] sm:$0xff] %v6463_v51  ;;  %v6400_v16 = vadd.f32 %v9150_v28, %v6110_v40  ;;  %v8313_v3 = vadd.f32 %v13163_v39, %v5729_v13  ;;  %v5731_v14 = vpop.f32.mrb[81].mxu1  ;;  %5993 = vmatmul.mubr.f32.gmra.mrb[186].mxu1 %v4058_v25 }
 0x813   :  { %5997 = vmatprep.mubr.f32.mxu1 %v13110_v21 }
 0x814   :  { %v6464_v55 = vmax.f32 %v6400_v16, 0.0  ;;  %v6115_v63 = vadd.f32 %v8313_v3, %v13728_v1  ;;  %v13737_v16 = vld [vmem:[#allocation28_spill] sm:$0xff] }
 0x815   :  { %v5734_v35 = vpop.f32.mrb[82].mxu1 }
 0x816   :  { %6528 = vst [vmem:[%s13512_s5 + $0x38] sm:$0xff] %v6464_v55  ;;  %v6401_v19 = vadd.f32 %v9151_v9, %v6115_v63  ;;  %v8314_v24 = vadd.f32 %v13163_v39, %v5734_v35  ;;  %v5736_v0 = vpop.f32.mrb[83].mxu1  ;;  %7294 = vmatmul.mubr.msk.f32.gmra.mrb[188].mxu1 %vm7359_vm0, %v4059_v20  ;;  %v9157_v20 = vld [vmem:[#allocation2 + $0x108] sm:$0xff]  ;;  %v13738_v9 = vld [vmem:[#allocation27_spill] sm:$0xff] }
 0x817   :  { %6002 = vmatprep.mubr.f32.mxu1 %v13110_v21  ;;  %v9158_v0 = vld [vmem:[#allocation2 + $0x110] sm:$0xff] }
 0x818   :  { %v6465_v18 = vmax.f32 %v6401_v19, 0.0  ;;  %v6120_v11 = vadd.f32 %v8314_v24, %v13729_v41 }
 0x819   :  { %v5739_v12 = vpop.f32.mrb[84].mxu1 }
 0x81a   :  { %6529 = vst [vmem:[%s13512_s5 + $0x40] sm:$0xff] %v6465_v18  ;;  %v6402_v7 = vadd.f32 %v9152_v4, %v6120_v11  ;;  %v8315_v52 = vadd.f32 %v13163_v39, %v5739_v12  ;;  %v5741_v62 = vpop.f32.mrb[85].mxu1  ;;  %6003 = vmatmul.mubr.f32.gmra.mrb[190].mxu1 %v4060_v57  ;;  %v13739_v12 = vld [vmem:[#allocation30_spill] sm:$0xff] }
 0x81b   :  { %7765 = vmatprep.mubr.f32.mxu1 %v4245_v15 }
 0x81c   :  { %v6466_v33 = vmax.f32 %v6402_v7, 0.0  ;;  %v6125_v21 = vadd.f32 %v8315_v52, %v13730_v8  ;;  %v9159_v52 = vld [vmem:[#allocation2 + $0x128] sm:$0xff] }
 0x81d   :  { %v5744_v61 = vpop.f32.mrb[86].mxu1 }
 0x81e   :  { %6530 = vst [vmem:[%s13512_s5 + $0x48] sm:$0xff] %v6466_v33  ;;  %v6403_v2 = vadd.f32 %v9153_v31, %v6125_v21  ;;  %v8316_v32 = vadd.f32 %v13163_v39, %v5744_v61  ;;  %v5746_v37 = vpop.f32.mrb[87].mxu1  ;;  %7766 = vmatmul.mubr.msk.f32.vlgmr.msra.gmra.mrb[192].mxu1 %vm7360_vm1, %v4246_v58  ;;  %v13740_v21 = vld [vmem:[#allocation29_spill] sm:$0xff]  ;;  %v9160_v31 = vld [vmem:[#allocation2 + $0x130] sm:$0xff] }
 0x81f   :  { %7768 = vmatprep.mubr.f32.mxu1 %v4247_v10  ;;  %v13741_v10 = vld [vmem:[#allocation32_spill] sm:$0xff] }
 0x820   :  { %v6467_v47 = vmax.f32 %v6403_v2, 0.0  ;;  %v6130_v56 = vadd.f32 %v8316_v32, %v13732_v30 }
 0x821   :  { %v5749_v17 = vpop.f32.mrb[88].mxu1 }
 0x822   :  { %6531 = vst [vmem:[%s13512_s5 + $0x50] sm:$0xff] %v6467_v47  ;;  %v6404_v44 = vadd.f32 %v9154_v36, %v6130_v56  ;;  %v8317_v26 = vadd.f32 %v13163_v39, %v5749_v17  ;;  %v5751_v49 = vpop.f32.mrb[89].mxu1  ;;  %7769 = vmatmul.mubr.msk.f32.gmra.mrb[194].mxu1 %vm7360_vm1, %v4248_v60  ;;  %v9161_v56 = vld [vmem:[#allocation2 + $0x148] sm:$0xff] }
 0x823   :  { %7771 = vmatprep.mubr.f32.mxu1 %v13733_v38 }
 0x824   :  { %v6468_v22 = vmax.f32 %v6404_v44, 0.0  ;;  %v6135_v53 = vadd.f32 %v8317_v26, %v13734_v54  ;;  %v13742_v26 = vld [vmem:[#allocation31_spill] sm:$0xff] }
 0x825   :  { %v5754_v50 = vpop.f32.mrb[90].mxu1 }
 0x826   :  { %6532 = vst [vmem:[%s13512_s5 + $0x58] sm:$0xff] %v6468_v22  ;;  %v6405_v43 = vadd.f32 %v9155_v5, %v6135_v53  ;;  %v8318_v42 = vadd.f32 %v13163_v39, %v5754_v50  ;;  %v5756_v59 = vpop.f32.mrb[91].mxu1  ;;  %7772 = vmatmul.mubr.msk.f32.gmra.mrb[196].mxu1 %vm7360_vm1, %v13735_v23  ;;  %v9162_v22 = vld [vmem:[#allocation2 + $0x150] sm:$0xff] }
 0x827   :  { %7774 = vmatprep.mubr.f32.mxu1 %v4251_v27  ;;  %v13743_v5 = vld [vmem:[#allocation34_spill] sm:$0xff]  ;;  %v9163_v59 = vld [vmem:[#allocation2 + $0x168] sm:$0xff] }
 0x828   :  { %v6469_v6 = vmax.f32 %v6405_v43, 0.0  ;;  %v6140_v48 = vadd.f32 %v8318_v42, %v13736_v46 }
 0x829   :  { %v5759_v51 = vpop.f32.mrb[92].mxu1 }
 0x82a   :  { %6533 = vst [vmem:[%s13512_s5 + $0x60] sm:$0xff] %v6469_v6  ;;  %v6406_v40 = vadd.f32 %v9156_v45, %v6140_v48  ;;  %v8319_v13 = vadd.f32 %v13163_v39, %v5759_v51  ;;  %v5761_v25 = vpop.f32.mrb[93].mxu1  ;;  %7775 = vmatmul.mubr.msk.f32.gmra.mrb[198].mxu1 %vm7360_vm1, %v4252_v34  ;;  %v13744_v48 = vld [vmem:[#allocation33_spill] sm:$0xff] }
 0x82c   :  { %v6470_v28 = vmax.f32 %v6406_v40, 0.0  ;;  %v6145_v3 = vadd.f32 %v8319_v13, %v13737_v16  ;;  %v9164_v40 = vld [vmem:[#allocation2 + $0x170] sm:$0xff] }
 0x82d   :  { %v5764_v14 = vpop.f32.mrb[94].mxu1 }
 0x82e   :  { %6534 = vst [vmem:[%s13512_s5 + $0x68] sm:$0xff] %v6470_v28  ;;  %v6407_v55 = vadd.f32 %v9157_v20, %v6145_v3  ;;  %v8320_v1 = vadd.f32 %v13163_v39, %v5764_v14  ;;  %v5766_v63 = vpop.f32.mrb[95].mxu1  ;;  %v13745_v3 = vld [vmem:[#allocation36_spill] sm:$0xff] }
 0x830   :  { %v6471_v35 = vmax.f32 %v6407_v55, 0.0  ;;  %v6150_v19 = vadd.f32 %v8320_v1, %v13738_v9  ;;  %v9165_v55 = vld [vmem:[#allocation2 + $0x188] sm:$0xff] }
 0x831   :  { %v5769_v24 = vpop.f32.mrb[96].mxu1 }
 0x832   :  { %6535 = vst [vmem:[%s13512_s5 + $0x70] sm:$0xff] %v6471_v35  ;;  %v6408_v57 = vadd.f32 %v9158_v0, %v6150_v19  ;;  %v8321_v18 = vadd.f32 %v13163_v39, %v5769_v24  ;;  %v5771_v41 = vpop.f32.mrb[97].mxu1  ;;  %v13746_v19 = vld [vmem:[#allocation35_spill] sm:$0xff] }
 0x834   :  { %v6472_v11 = vmax.f32 %v6408_v57, 0.0  ;;  %v6155_v4 = vadd.f32 %v8321_v18, %v13739_v12  ;;  %v9166_v57 = vld [vmem:[#allocation2 + $0x190] sm:$0xff] }
 0x835   :  { %v5774_v7 = vpop.f32.mrb[98].mxu1 }
 0x836   :  { %6536 = vst [vmem:[%s13512_s5 + $0x78] sm:$0xff] %v6472_v11  ;;  %v6409_v62 = vadd.f32 %v9159_v52, %v6155_v4  ;;  %v8322_v15 = vadd.f32 %v13163_v39, %v5774_v7  ;;  %v5776_v33 = vpop.f32.mrb[99].mxu1  ;;  %v13747_v4 = vld [vmem:[#allocation38_spill] sm:$0xff] }
 0x838   :  { %v6473_v8 = vmax.f32 %v6409_v62, 0.0  ;;  %v6160_v61 = vadd.f32 %v8322_v15, %v13740_v21  ;;  %v9167_v62 = vld [vmem:[#allocation2 + $0x1a8] sm:$0xff] }
 0x839   :  { %v5779_v58 = vpop.f32.mrb[100].mxu1 }
 0x83a   :  { %6537 = vst [vmem:[%s13512_s5 + $0x80] sm:$0xff] %v6473_v8  ;;  %v6410_v2 = vadd.f32 %v9160_v31, %v6160_v61  ;;  %v8323_v32 = vadd.f32 %v13163_v39, %v5779_v58  ;;  %v5781_v37 = vpop.f32.mrb[101].mxu1  ;;  %v13748_v61 = vld [vmem:[#allocation37_spill] sm:$0xff] }
 0x83c   :  { %v6474_v29 = vmax.f32 %v6410_v2, 0.0  ;;  %v6165_v47 = vadd.f32 %v8323_v32, %v13741_v10  ;;  %v9168_v2 = vld [vmem:[#allocation2 + $0x1b0] sm:$0xff] }
 0x83d   :  { %v5784_v30 = vpop.f32.mrb[102].mxu1 }
 0x83e   :  { %6538 = vst [vmem:[%s13512_s5 + $0x88] sm:$0xff] %v6474_v29  ;;  %v6411_v17 = vadd.f32 %v9161_v56, %v6165_v47  ;;  %v8324_v60 = vadd.f32 %v13163_v39, %v5784_v30  ;;  %v5786_v36 = vpop.f32.mrb[103].mxu1  ;;  %v13749_v47 = vld [vmem:[#allocation40_spill] sm:$0xff] }
 0x840   :  { %v6475_v44 = vmax.f32 %v6411_v17, 0.0  ;;  %v6170_v49 = vadd.f32 %v8324_v60, %v13742_v26  ;;  %v9169_v17 = vld [vmem:[#allocation2 + $0x1c8] sm:$0xff] }
 0x841   :  { %v5789_v38 = vpop.f32.mrb[104].mxu1 }
 0x842   :  { %6539 = vst [vmem:[%s13512_s5 + $0x90] sm:$0xff] %v6475_v44  ;;  %v6412_v54 = vadd.f32 %v9162_v22, %v6170_v49  ;;  %v8325_v53 = vadd.f32 %v13163_v39, %v5789_v38  ;;  %v5791_v27 = vpop.f32.mrb[105].mxu1  ;;  %v13750_v49 = vld [vmem:[#allocation39_spill] sm:$0xff] }
 0x844   :  { %v6476_v50 = vmax.f32 %v6412_v54, 0.0  ;;  %v6175_v43 = vadd.f32 %v8325_v53, %v13743_v5  ;;  %v9170_v54 = vld [vmem:[#allocation2 + $0x1d0] sm:$0xff] }
 0x845   :  { %v5794_v42 = vpop.f32.mrb[106].mxu1 }
 0x846   :  { %6540 = vst [vmem:[%s13512_s5 + $0x98] sm:$0xff] %v6476_v50  ;;  %v6413_v23 = vadd.f32 %v9163_v59, %v6175_v43  ;;  %v8326_v34 = vadd.f32 %v13163_v39, %v5794_v42  ;;  %v5796_v6 = vpop.f32.mrb[107].mxu1  ;;  %v13751_v43 = vld [vmem:[#allocation43_spill] sm:$0xff] }
 0x848   :  { %v6477_v46 = vmax.f32 %v6413_v23, 0.0  ;;  %v6180_v51 = vadd.f32 %v8326_v34, %v13744_v48  ;;  %v9171_v23 = vld [vmem:[#allocation2 + $0x1e8] sm:$0xff] }
 0x849   :  { %v5799_v45 = vpop.f32.mrb[108].mxu1 }
 0x84a   :  { %6541 = vst [vmem:[%s13512_s5 + $0xa0] sm:$0xff] %v6477_v46  ;;  %v6414_v13 = vadd.f32 %v9164_v40, %v6180_v51  ;;  %v8327_v25 = vadd.f32 %v13163_v39, %v5799_v45  ;;  %v5801_v28 = vpop.f32.mrb[109].mxu1  ;;  %v13752_v51 = vld [vmem:[#allocation42_spill] sm:$0xff] }
 0x84c   :  { %v6478_v16 = vmax.f32 %v6414_v13, 0.0  ;;  %v6185_v14 = vadd.f32 %v8327_v25, %v13745_v3  ;;  %v9172_v13 = vld [vmem:[#allocation2 + $0x1f0] sm:$0xff] }
 0x84d   :  { %v5804_v20 = vpop.f32.mrb[110].mxu1 }
 0x84e   :  { %6542 = vst [vmem:[%s13512_s5 + $0xa8] sm:$0xff] %v6478_v16  ;;  %v6415_v1 = vadd.f32 %v9165_v55, %v6185_v14  ;;  %v8328_v63 = vadd.f32 %v13163_v39, %v5804_v20  ;;  %v5806_v35 = vpop.f32.mrb[111].mxu1  ;;  %v13753_v14 = vld [vmem:[#allocation46_spill] sm:$0xff] }
 0x850   :  { %v6479_v9 = vmax.f32 %v6415_v1, 0.0  ;;  %v6190_v24 = vadd.f32 %v8328_v63, %v13746_v19  ;;  %v9173_v1 = vld [vmem:[#allocation2 + $0x208] sm:$0xff] }
 0x851   :  { %v5809_v0 = vpop.f32.mrb[112].mxu1 }
 0x852   :  { %6543 = vst [vmem:[%s13512_s5 + $0xb0] sm:$0xff] %v6479_v9  ;;  %v6416_v18 = vadd.f32 %v9166_v57, %v6190_v24  ;;  %v8329_v41 = vadd.f32 %v13163_v39, %v5809_v0  ;;  %v5811_v11 = vpop.f32.mrb[113].mxu1  ;;  %v13754_v24 = vld [vmem:[#allocation45_spill] sm:$0xff] }
 0x854   :  { %v6480_v12 = vmax.f32 %v6416_v18, 0.0  ;;  %v6195_v7 = vadd.f32 %v8329_v41, %v13747_v4  ;;  %v9174_v18 = vld [vmem:[#allocation2 + $0x210] sm:$0xff] }
 0x855   :  { %v5814_v52 = vpop.f32.mrb[114].mxu1 }
 0x856   :  { %6544 = vst [vmem:[%s13512_s5 + $0xb8] sm:$0xff] %v6480_v12  ;;  %v6417_v15 = vadd.f32 %v9167_v62, %v6195_v7  ;;  %v8330_v33 = vadd.f32 %v13163_v39, %v5814_v52  ;;  %v5816_v8 = vpop.f32.mrb[115].mxu1  ;;  %v13755_v7 = vld [vmem:[#allocation51_spill] sm:$0xff] }
 0x858   :  { %v6481_v21 = vmax.f32 %v6417_v15, 0.0  ;;  %v6200_v58 = vadd.f32 %v8330_v33, %v13748_v61  ;;  %v9175_v15 = vld [vmem:[#allocation2 + $0x268] sm:$0xff] }
 0x859   :  { %v5819_v31 = vpop.f32.mrb[116].mxu1 }
 0x85a   :  { %6545 = vst [vmem:[%s13512_s5 + $0xc0] sm:$0xff] %v6481_v21  ;;  %v6418_v32 = vadd.f32 %v9168_v2, %v6200_v58  ;;  %v8331_v37 = vadd.f32 %v13163_v39, %v5819_v31  ;;  %v5821_v29 = vpop.f32.mrb[117].mxu1  ;;  %v13756_v58 = vld [vmem:[#allocation50_spill] sm:$0xff] }
 0x85c   :  { %v6482_v10 = vmax.f32 %v6418_v32, 0.0  ;;  %v6205_v30 = vadd.f32 %v8331_v37, %v13749_v47  ;;  %v9176_v32 = vld [vmem:[#allocation2 + $0x270] sm:$0xff] }
 0x85d   :  { %v5824_v56 = vpop.f32.mrb[118].mxu1 }
 0x85e   :  { %6546 = vst [vmem:[%s13512_s5 + $0xc8] sm:$0xff] %v6482_v10  ;;  %v6419_v60 = vadd.f32 %v9169_v17, %v6205_v30  ;;  %v8332_v36 = vadd.f32 %v13163_v39, %v5824_v56  ;;  %v5826_v44 = vpop.f32.mrb[119].mxu1  ;;  %v13757_v30 = vld [vmem:[#allocation55_spill] sm:$0xff] }
 0x860   :  { %v6483_v26 = vmax.f32 %v6419_v60, 0.0  ;;  %v6210_v38 = vadd.f32 %v8332_v36, %v13750_v49  ;;  %v9177_v60 = vld [vmem:[#allocation2 + $0x288] sm:$0xff] }
 0x861   :  { %v5829_v22 = vpop.f32.mrb[120].mxu1 }
 0x862   :  { %6547 = vst [vmem:[%s13512_s5 + $0xd0] sm:$0xff] %v6483_v26  ;;  %v6420_v53 = vadd.f32 %v9170_v54, %v6210_v38  ;;  %v8333_v27 = vadd.f32 %v13163_v39, %v5829_v22  ;;  %v5831_v50 = vpop.f32.mrb[121].mxu1  ;;  %v13758_v38 = vld [vmem:[#allocation54_spill] sm:$0xff] }
 0x864   :  { %v6484_v5 = vmax.f32 %v6420_v53, 0.0  ;;  %v6215_v42 = vadd.f32 %v8333_v27, %v13751_v43  ;;  %v9178_v53 = vld [vmem:[#allocation2 + $0x290] sm:$0xff] }
 0x865   :  { %v5834_v59 = vpop.f32.mrb[122].mxu1 }
 0x866   :  { %6548 = vst [vmem:[%s13512_s5 + $0xd8] sm:$0xff] %v6484_v5  ;;  %v6421_v34 = vadd.f32 %v9171_v23, %v6215_v42  ;;  %v8334_v6 = vadd.f32 %v13163_v39, %v5834_v59  ;;  %v5836_v46 = vpop.f32.mrb[123].mxu1  ;;  %v13759_v42 = vld [vmem:[#allocation59_spill] sm:$0xff] }
 0x868   :  { %v6485_v48 = vmax.f32 %v6421_v34, 0.0  ;;  %v6220_v45 = vadd.f32 %v8334_v6, %v13752_v51  ;;  %v9179_v34 = vld [vmem:[#allocation2 + $0x2a8] sm:$0xff] }
 0x869   :  { %v5839_v40 = vpop.f32.mrb[124].mxu1 }
 0x86a   :  { %6549 = vst [vmem:[%s13512_s5 + $0xe0] sm:$0xff] %v6485_v48  ;;  %v6422_v25 = vadd.f32 %v9172_v13, %v6220_v45  ;;  %v8335_v28 = vadd.f32 %v13163_v39, %v5839_v40  ;;  %v5841_v16 = vpop.f32.mrb[125].mxu1  ;;  %v13760_v45 = vld [vmem:[#allocation58_spill] sm:$0xff] }
 0x86c   :  { %v6486_v3 = vmax.f32 %v6422_v25, 0.0  ;;  %v6225_v20 = vadd.f32 %v8335_v28, %v13753_v14  ;;  %v9180_v25 = vld [vmem:[#allocation2 + $0x2b0] sm:$0xff] }
 0x86d   :  { %v5844_v55 = vpop.f32.mrb[126].mxu1 }
 0x86e   :  { %6550 = vst [vmem:[%s13512_s5 + $0xe8] sm:$0xff] %v6486_v3  ;;  %v6423_v63 = vadd.f32 %v9173_v1, %v6225_v20  ;;  %v8336_v35 = vadd.f32 %v13163_v39, %v5844_v55  ;;  %v5846_v9 = vpop.f32.mrb[127].mxu1  ;;  %v13761_v20 = vld [vmem:[#allocation62_spill] sm:$0xff] }
 0x870   :  { %v6487_v19 = vmax.f32 %v6423_v63, 0.0  ;;  %v6230_v0 = vadd.f32 %v8336_v35, %v13754_v24  ;;  %v9181_v63 = vld [vmem:[#allocation2 + $0x2c8] sm:$0xff] }
 0x871   :  { %v5849_v57 = vpop.f32.mrb[128].mxu1 }
 0x872   :  { %6551 = vst [vmem:[%s13512_s5 + $0xf0] sm:$0xff] %v6487_v19  ;;  %v6424_v41 = vadd.f32 %v9174_v18, %v6230_v0  ;;  %v8337_v11 = vadd.f32 %v13163_v39, %v5849_v57  ;;  %v5851_v12 = vpop.f32.mrb[129].mxu1  ;;  %v13762_v0 = vld [vmem:[#allocation61_spill] sm:$0xff] }
 0x874   :  { %v6488_v4 = vmax.f32 %v6424_v41, 0.0  ;;  %v6235_v52 = vadd.f32 %v8337_v11, %v13755_v7  ;;  %v9182_v41 = vld [vmem:[#allocation2 + $0x2d0] sm:$0xff] }
 0x875   :  { %v5854_v62 = vpop.f32.mrb[130].mxu1 }
 0x876   :  { %6552 = vst [vmem:[%s13512_s5 + $0xf8] sm:$0xff] %v6488_v4  ;;  %v6425_v33 = vadd.f32 %v9175_v15, %v6235_v52  ;;  %v8338_v8 = vadd.f32 %v13163_v39, %v5854_v62  ;;  %v5856_v21 = vpop.f32.mrb[131].mxu1  ;;  %v13763_v52 = vld [vmem:[#allocation64_spill] sm:$0xff] }
 0x878   :  { %v6489_v61 = vmax.f32 %v6425_v33, 0.0  ;;  %v6240_v31 = vadd.f32 %v8338_v8, %v13756_v58  ;;  %v9183_v33 = vld [vmem:[#allocation2 + $0x2e8] sm:$0xff] }
 0x879   :  { %v5859_v2 = vpop.f32.mrb[132].mxu1 }
 0x87a   :  { %6553 = vst [vmem:[%s13512_s5 + $0x100] sm:$0xff] %v6489_v61  ;;  %v6426_v37 = vadd.f32 %v9176_v32, %v6240_v31  ;;  %v8339_v29 = vadd.f32 %v13163_v39, %v5859_v2  ;;  %v5861_v10 = vpop.f32.mrb[133].mxu1  ;;  %v13764_v31 = vld [vmem:[#allocation63_spill] sm:$0xff] }
 0x87c   :  { %v6490_v47 = vmax.f32 %v6426_v37, 0.0  ;;  %v6245_v56 = vadd.f32 %v8339_v29, %v13757_v30  ;;  %v9184_v37 = vld [vmem:[#allocation2 + $0x2f0] sm:$0xff] }
 0x87d   :  { %v5864_v17 = vpop.f32.mrb[134].mxu1 }
 0x87e   :  { %6554 = vst [vmem:[%s13512_s5 + $0x108] sm:$0xff] %v6490_v47  ;;  %v6427_v36 = vadd.f32 %v9177_v60, %v6245_v56  ;;  %v8340_v44 = vadd.f32 %v13163_v39, %v5864_v17  ;;  %v5866_v26 = vpop.f32.mrb[135].mxu1  ;;  %v13765_v56 = vld [vmem:[#allocation68_spill] sm:$0xff] }
 0x880   :  { %v6491_v49 = vmax.f32 %v6427_v36, 0.0  ;;  %v6250_v22 = vadd.f32 %v8340_v44, %v13758_v38  ;;  %v9185_v36 = vld [vmem:[#allocation2 + $0x308] sm:$0xff] }
 0x881   :  { %v5869_v54 = vpop.f32.mrb[136].mxu1 }
 0x882   :  { %6555 = vst [vmem:[%s13512_s5 + $0x110] sm:$0xff] %v6491_v49  ;;  %v6428_v27 = vadd.f32 %v9178_v53, %v6250_v22  ;;  %v8341_v50 = vadd.f32 %v13163_v39, %v5869_v54  ;;  %v5871_v5 = vpop.f32.mrb[137].mxu1  ;;  %v13766_v22 = vld [vmem:[#allocation67_spill] sm:$0xff] }
 0x884   :  { %v6492_v43 = vmax.f32 %v6428_v27, 0.0  ;;  %v6255_v59 = vadd.f32 %v8341_v50, %v13759_v42  ;;  %v9186_v27 = vld [vmem:[#allocation2 + $0x310] sm:$0xff] }
 0x885   :  { %v5874_v23 = vpop.f32.mrb[138].mxu1 }
 0x886   :  { %6556 = vst [vmem:[%s13512_s5 + $0x118] sm:$0xff] %v6492_v43  ;;  %v6429_v6 = vadd.f32 %v9179_v34, %v6255_v59  ;;  %v8342_v46 = vadd.f32 %v13163_v39, %v5874_v23  ;;  %v5876_v48 = vpop.f32.mrb[139].mxu1  ;;  %v13767_v59 = vld [vmem:[#allocation72_spill] sm:$0xff] }
 0x888   :  { %v6493_v51 = vmax.f32 %v6429_v6, 0.0  ;;  %v6260_v40 = vadd.f32 %v8342_v46, %v13760_v45  ;;  %v9187_v6 = vld [vmem:[#allocation2 + $0x328] sm:$0xff] }
 0x889   :  { %v5879_v13 = vpop.f32.mrb[140].mxu1 }
 0x88a   :  { %6557 = vst [vmem:[%s13512_s5 + $0x120] sm:$0xff] %v6493_v51  ;;  %v6430_v28 = vadd.f32 %v9180_v25, %v6260_v40  ;;  %v8343_v16 = vadd.f32 %v13163_v39, %v5879_v13  ;;  %v5881_v3 = vpop.f32.mrb[141].mxu1  ;;  %v13768_v40 = vld [vmem:[#allocation71_spill] sm:$0xff] }
 0x88c   :  { %v6494_v14 = vmax.f32 %v6430_v28, 0.0  ;;  %v6265_v55 = vadd.f32 %v8343_v16, %v13761_v20  ;;  %v9188_v28 = vld [vmem:[#allocation2 + $0x330] sm:$0xff] }
 0x88d   :  { %v5884_v1 = vpop.f32.mrb[142].mxu1 }
 0x88e   :  { %6558 = vst [vmem:[%s13512_s5 + $0x128] sm:$0xff] %v6494_v14  ;;  %v6431_v35 = vadd.f32 %v9181_v63, %v6265_v55  ;;  %v8344_v9 = vadd.f32 %v13163_v39, %v5884_v1  ;;  %v5886_v19 = vpop.f32.mrb[143].mxu1  ;;  %v13769_v55 = vld [vmem:[#allocation75_spill] sm:$0xff] }
 0x890   :  { %v6495_v24 = vmax.f32 %v6431_v35, 0.0  ;;  %v6270_v57 = vadd.f32 %v8344_v9, %v13762_v0  ;;  %v9189_v35 = vld [vmem:[#allocation2 + $0x348] sm:$0xff] }
 0x891   :  { %v5889_v18 = vpop.f32.mrb[144].mxu1 }
 0x892   :  { %6559 = vst [vmem:[%s13512_s5 + $0x130] sm:$0xff] %v6495_v24  ;;  %v6432_v11 = vadd.f32 %v9182_v41, %v6270_v57  ;;  %v8345_v12 = vadd.f32 %v13163_v39, %v5889_v18  ;;  %v5891_v4 = vpop.f32.mrb[145].mxu1  ;;  %v13770_v57 = vld [vmem:[#allocation74_spill] sm:$0xff] }
 0x894   :  { %v6496_v7 = vmax.f32 %v6432_v11, 0.0  ;;  %v6275_v62 = vadd.f32 %v8345_v12, %v13763_v52  ;;  %v9190_v11 = vld [vmem:[#allocation2 + $0x350] sm:$0xff] }
 0x895   :  { %v5894_v15 = vpop.f32.mrb[146].mxu1 }
 0x896   :  { %6560 = vst [vmem:[%s13512_s5 + $0x138] sm:$0xff] %v6496_v7  ;;  %v6433_v8 = vadd.f32 %v9183_v33, %v6275_v62  ;;  %v8346_v21 = vadd.f32 %v13163_v39, %v5894_v15  ;;  %v5896_v61 = vpop.f32.mrb[147].mxu1  ;;  %v13771_v62 = vld [vmem:[#allocation77_spill] sm:$0xff] }
 0x898   :  { %v6497_v58 = vmax.f32 %v6433_v8, 0.0  ;;  %v6280_v2 = vadd.f32 %v8346_v21, %v13764_v31  ;;  %v9191_v8 = vld [vmem:[#allocation2 + $0x368] sm:$0xff] }
 0x899   :  { %v5899_v32 = vpop.f32.mrb[148].mxu1 }
 0x89a   :  { %6561 = vst [vmem:[%s13512_s5 + $0x140] sm:$0xff] %v6497_v58  ;;  %v6434_v29 = vadd.f32 %v9184_v37, %v6280_v2  ;;  %v8347_v10 = vadd.f32 %v13163_v39, %v5899_v32  ;;  %v5901_v47 = vpop.f32.mrb[149].mxu1  ;;  %v13772_v2 = vld [vmem:[#allocation76_spill] sm:$0xff] }
 0x89c   :  { %v6498_v30 = vmax.f32 %v6434_v29, 0.0  ;;  %v6285_v17 = vadd.f32 %v8347_v10, %v13765_v56  ;;  %v9192_v29 = vld [vmem:[#allocation2 + $0x370] sm:$0xff] }
 0x89d   :  { %v5904_v60 = vpop.f32.mrb[150].mxu1 }
 0x89e   :  { %6562 = vst [vmem:[%s13512_s5 + $0x148] sm:$0xff] %v6498_v30  ;;  %v6435_v44 = vadd.f32 %v9185_v36, %v6285_v17  ;;  %v8348_v26 = vadd.f32 %v13163_v39, %v5904_v60  ;;  %v5906_v49 = vpop.f32.mrb[151].mxu1  ;;  %v13773_v17 = vld [vmem:[#allocation79_spill] sm:$0xff] }
 0x8a0   :  { %v6499_v38 = vmax.f32 %v6435_v44, 0.0  ;;  %v6290_v54 = vadd.f32 %v8348_v26, %v13766_v22  ;;  %v9193_v44 = vld [vmem:[#allocation2 + $0x388] sm:$0xff] }
 0x8a1   :  { %v5909_v53 = vpop.f32.mrb[152].mxu1 }
 0x8a2   :  { %6563 = vst [vmem:[%s13512_s5 + $0x150] sm:$0xff] %v6499_v38  ;;  %v6436_v50 = vadd.f32 %v9186_v27, %v6290_v54  ;;  %v8349_v5 = vadd.f32 %v13163_v39, %v5909_v53  ;;  %v5911_v43 = vpop.f32.mrb[153].mxu1  ;;  %v13774_v54 = vld [vmem:[#allocation78_spill] sm:$0xff] }
 0x8a4   :  { %v6500_v42 = vmax.f32 %v6436_v50, 0.0  ;;  %v6295_v23 = vadd.f32 %v8349_v5, %v13767_v59  ;;  %v9194_v50 = vld [vmem:[#allocation2 + $0x390] sm:$0xff] }
 0x8a5   :  { %v5914_v34 = vpop.f32.mrb[154].mxu1 }
 0x8a6   :  { %6564 = vst [vmem:[%s13512_s5 + $0x158] sm:$0xff] %v6500_v42  ;;  %v6437_v46 = vadd.f32 %v9187_v6, %v6295_v23  ;;  %v8350_v48 = vadd.f32 %v13163_v39, %v5914_v34  ;;  %v5916_v51 = vpop.f32.mrb[155].mxu1  ;;  %v13775_v23 = vld [vmem:[#allocation81_spill] sm:$0xff] }
 0x8a8   :  { %v6501_v45 = vmax.f32 %v6437_v46, 0.0  ;;  %v6300_v13 = vadd.f32 %v8350_v48, %v13768_v40  ;;  %v9195_v46 = vld [vmem:[#allocation2 + $0x3a8] sm:$0xff] }
 0x8a9   :  { %v5919_v25 = vpop.f32.mrb[156].mxu1 }
 0x8aa   :  { %6565 = vst [vmem:[%s13512_s5 + $0x160] sm:$0xff] %v6501_v45  ;;  %v6438_v16 = vadd.f32 %v9188_v28, %v6300_v13  ;;  %v8351_v3 = vadd.f32 %v13163_v39, %v5919_v25  ;;  %v5921_v14 = vpop.f32.mrb[157].mxu1  ;;  %v13776_v13 = vld [vmem:[#allocation80_spill] sm:$0xff] }
 0x8ac   :  { %v6502_v20 = vmax.f32 %v6438_v16, 0.0  ;;  %v6305_v1 = vadd.f32 %v8351_v3, %v13769_v55  ;;  %v9196_v16 = vld [vmem:[#allocation2 + $0x3b0] sm:$0xff] }
 0x8ad   :  { %v5924_v63 = vpop.f32.mrb[158].mxu1 }
 0x8ae   :  { %6566 = vst [vmem:[%s13512_s5 + $0x168] sm:$0xff] %v6502_v20  ;;  %v6439_v9 = vadd.f32 %v9189_v35, %v6305_v1  ;;  %v8352_v19 = vadd.f32 %v13163_v39, %v5924_v63  ;;  %v5926_v24 = vpop.f32.mrb[159].mxu1  ;;  %v13777_v1 = vld [vmem:[#allocation83_spill] sm:$0xff] }
 0x8b0   :  { %v6503_v0 = vmax.f32 %v6439_v9, 0.0  ;;  %v6310_v18 = vadd.f32 %v8352_v19, %v13770_v57  ;;  %v9197_v9 = vld [vmem:[#allocation2 + $0x3c8] sm:$0xff] }
 0x8b1   :  { %v5929_v41 = vpop.f32.mrb[160].mxu1 }
 0x8b2   :  { %6567 = vst [vmem:[%s13512_s5 + $0x170] sm:$0xff] %v6503_v0  ;;  %v6440_v12 = vadd.f32 %v9190_v11, %v6310_v18  ;;  %v8353_v4 = vadd.f32 %v13163_v39, %v5929_v41  ;;  %v5931_v7 = vpop.f32.mrb[161].mxu1  ;;  %v13778_v18 = vld [vmem:[#allocation82_spill] sm:$0xff] }
 0x8b4   :  { %v6504_v52 = vmax.f32 %v6440_v12, 0.0  ;;  %v6315_v15 = vadd.f32 %v8353_v4, %v13771_v62  ;;  %v9198_v12 = vld [vmem:[#allocation2 + $0x3d0] sm:$0xff] }
 0x8b5   :  { %v5934_v33 = vpop.f32.mrb[162].mxu1 }
 0x8b6   :  { %6568 = vst [vmem:[%s13512_s5 + $0x178] sm:$0xff] %v6504_v52  ;;  %v6441_v21 = vadd.f32 %v9191_v8, %v6315_v15  ;;  %v8354_v61 = vadd.f32 %v13163_v39, %v5934_v33  ;;  %v5936_v58 = vpop.f32.mrb[163].mxu1 }
 0x8b8   :  { %v6505_v31 = vmax.f32 %v6441_v21, 0.0  ;;  %v6320_v32 = vadd.f32 %v8354_v61, %v13772_v2 }
 0x8b9   :  { %v5939_v37 = vpop.f32.mrb[164].mxu1 }
 0x8ba   :  { %6569 = vst [vmem:[%s13512_s5 + $0x180] sm:$0xff] %v6505_v31  ;;  %v6442_v10 = vadd.f32 %v9192_v29, %v6320_v32  ;;  %v8355_v47 = vadd.f32 %v13163_v39, %v5939_v37  ;;  %v5941_v30 = vpop.f32.mrb[165].mxu1 }
 0x8bc   :  { %v6506_v56 = vmax.f32 %v6442_v10, 0.0  ;;  %v6325_v60 = vadd.f32 %v8355_v47, %v13773_v17 }
 0x8bd   :  { %v5944_v36 = vpop.f32.mrb[166].mxu1 }
 0x8be   :  { %6570 = vst [vmem:[%s13512_s5 + $0x188] sm:$0xff] %v6506_v56  ;;  %v6443_v26 = vadd.f32 %v9193_v44, %v6325_v60  ;;  %v8356_v49 = vadd.f32 %v13163_v39, %v5944_v36  ;;  %v5946_v38 = vpop.f32.mrb[167].mxu1 }
 0x8c0   :  { %v6507_v22 = vmax.f32 %v6443_v26, 0.0  ;;  %v6330_v53 = vadd.f32 %v8356_v49, %v13774_v54  ;;  %v9199_v49 = vld [vmem:[#allocation2 + $0x3f0] sm:$0xff]  ;;  %v9200_v54 = vld [vmem:[#allocation2 + $0x3e8] sm:$0xff] }
 0x8c1   :  { %v5949_v27 = vpop.f32.mrb[168].mxu1 }
 0x8c2   :  { %6571 = vst [vmem:[%s13512_s5 + $0x190] sm:$0xff] %v6507_v22  ;;  %v6444_v5 = vadd.f32 %v9194_v50, %v6330_v53  ;;  %v8357_v43 = vadd.f32 %v13163_v39, %v5949_v27  ;;  %v5951_v42 = vpop.f32.mrb[169].mxu1 }
 0x8c4   :  { %v6508_v59 = vmax.f32 %v6444_v5, 0.0  ;;  %v6335_v34 = vadd.f32 %v8357_v43, %v13775_v23 }
 0x8c5   :  { %v5954_v6 = vpop.f32.mrb[170].mxu1 }
 0x8c6   :  { %6572 = vst [vmem:[%s13512_s5 + $0x198] sm:$0xff] %v6508_v59  ;;  %v6445_v48 = vadd.f32 %v9195_v46, %v6335_v34  ;;  %v8358_v51 = vadd.f32 %v13163_v39, %v5954_v6  ;;  %v5956_v45 = vpop.f32.mrb[171].mxu1  ;;  %v9201_v34 = vld [vmem:[#allocation2 + $0x410] sm:$0xff] }
 0x8c8   :  { %v6509_v40 = vmax.f32 %v6445_v48, 0.0  ;;  %v6340_v25 = vadd.f32 %v8358_v51, %v13776_v13  ;;  %v9202_v48 = vld [vmem:[#allocation2 + $0x408] sm:$0xff] }
 0x8c9   :  { %v5959_v28 = vpop.f32.mrb[172].mxu1 }
 0x8ca   :  { %6573 = vst [vmem:[%s13512_s5 + $0x1a0] sm:$0xff] %v6509_v40  ;;  %v6446_v3 = vadd.f32 %v9196_v16, %v6340_v25  ;;  %v8359_v14 = vadd.f32 %v13163_v39, %v5959_v28  ;;  %v5961_v20 = vpop.f32.mrb[173].mxu1 }
 0x8cc   :  { %v6510_v55 = vmax.f32 %v6446_v3, 0.0  ;;  %v6345_v63 = vadd.f32 %v8359_v14, %v13777_v1  ;;  %v9203_v14 = vld [vmem:[#allocation2 + $0x430] sm:$0xff]  ;;  %v9204_v1 = vld [vmem:[#allocation2 + $0x428] sm:$0xff] }
 0x8cd   :  { %v5964_v35 = vpop.f32.mrb[174].mxu1 }
 0x8ce   :  { %6574 = vst [vmem:[%s13512_s5 + $0x1a8] sm:$0xff] %v6510_v55  ;;  %v6447_v19 = vadd.f32 %v9197_v9, %v6345_v63  ;;  %v8360_v24 = vadd.f32 %v13163_v39, %v5964_v35  ;;  %v5966_v0 = vpop.f32.mrb[175].mxu1 }
 0x8d0   :  { %v6511_v57 = vmax.f32 %v6447_v19, 0.0  ;;  %v6350_v41 = vadd.f32 %v8360_v24, %v13778_v18  ;;  %v9205_v18 = vld [vmem:[#allocation2 + $0x450] sm:$0xff] }
 0x8d1   :  { %v5969_v11 = vpop.f32.mrb[176].mxu1 }
 0x8d2   :  { %6575 = vst [vmem:[%s13512_s5 + $0x1b0] sm:$0xff] %v6511_v57  ;;  %v6448_v4 = vadd.f32 %v9198_v12, %v6350_v41  ;;  %v5971_v7 = vpop.f32.mrb[177].mxu1  ;;  %v8361_v56 = vadd.f32 %v13163_v39, %v5969_v11 }
 0x8d4   :  { %v6512_v52 = vmax.f32 %v6448_v4, 0.0 }
 0x8d5   :  { %v5974_v62 = vpop.f32.mrb[178].mxu1 }
 0x8d6   :  { %6576 = vst [vmem:[%s13512_s5 + $0x1b8] sm:$0xff] %v6512_v52  ;;  %v5976_v15 = vpop.f32.mrb[179].mxu1  ;;  %v8362_v30 = vadd.f32 %v13163_v39, %v5974_v62 }
 0x8d9   :  { %v5979_v33 = vpop.f32.mrb[180].mxu1 }
 0x8da   :  { %v5981_v8 = vpop.f32.mrb[181].mxu1  ;;  %v8363_v22 = vadd.f32 %v13163_v39, %v5979_v33 }
 0x8dd   :  { %v5984_v21 = vpop.f32.mrb[182].mxu1 }
 0x8de   :  { %v5986_v61 = vpop.f32.mrb[183].mxu1  ;;  %v8364_v26 = vadd.f32 %v13163_v39, %v5984_v21 }
 0x8e1   :  { %v5989_v58 = vpop.f32.mrb[184].mxu1 }
 0x8e2   :  { %v5991_v31 = vpop.f32.mrb[185].mxu1  ;;  %v8365_v46 = vadd.f32 %v13163_v39, %v5989_v58 }
 0x8e5   :  { %v5994_v2 = vpop.f32.mrb[186].mxu1 }
 0x8e6   :  { %v5996_v32 = vpop.f32.mrb[187].mxu1  ;;  %v8366_v23 = vadd.f32 %v13163_v39, %v5994_v2 }
 0x8e9   :  { %v5999_v37 = vpop.f32.mrb[188].mxu1 }
 0x8ea   :  { %v6001_v29 = vpop.f32.mrb[189].mxu1  ;;  %v8367_v55 = vadd.f32 %v13163_v39, %v5999_v37 }
 0x8ed   :  { %v6004_v10 = vpop.f32.mrb[190].mxu1 }
 0x8ee   :  { %v6006_v47 = vpop.f32.mrb[191].mxu1  ;;  %v8368_v3 = vadd.f32 %v13163_v39, %v6004_v10  ;;  %v9206_v39 = vld [vmem:[#allocation2 + $0x448] sm:$0xff] }
 0x8f1   :  { %v7767_v17 = vpop.f32.mrb[192].mxu1 }
 0x8f2   :  { %v6360_v60 = vadd.f32 %v8362_v30, %v7767_v17  ;;  %v6354_v36 = vpop.f32.mrb[193].mxu1 }
 0x8f3   :  { %v6355_v44 = vadd.f32 %v8361_v56, %v6354_v36 }
 0x8f4   :  { %v6450_v38 = vadd.f32 %v9199_v49, %v6360_v60 }
 0x8f5   :  { %v6449_v53 = vadd.f32 %v9200_v54, %v6355_v44  ;;  %v7770_v27 = vpop.f32.mrb[194].mxu1 }
 0x8f6   :  { %v6514_v50 = vmax.f32 %v6450_v38, 0.0  ;;  %v6370_v5 = vadd.f32 %v8364_v26, %v7770_v27  ;;  %v6364_v43 = vpop.f32.mrb[195].mxu1 }
 0x8f7   :  { %v6513_v42 = vmax.f32 %v6449_v53, 0.0  ;;  %v6365_v59 = vadd.f32 %v8363_v22, %v6364_v43 }
 0x8f8   :  { %6578 = vst [vmem:[%s13512_s5 + $0x1c8] sm:$0xff] %v6514_v50  ;;  %v6452_v6 = vadd.f32 %v9201_v34, %v6370_v5 }
 0x8f9   :  { %6577 = vst [vmem:[%s13512_s5 + $0x1c0] sm:$0xff] %v6513_v42  ;;  %v6451_v51 = vadd.f32 %v9202_v48, %v6365_v59  ;;  %v7773_v45 = vpop.f32.mrb[196].mxu1 }
 0x8fa   :  { %v6516_v40 = vmax.f32 %v6452_v6, 0.0  ;;  %v6380_v13 = vadd.f32 %v8366_v23, %v7773_v45  ;;  %v6374_v25 = vpop.f32.mrb[197].mxu1 }
 0x8fb   :  { %v6515_v28 = vmax.f32 %v6451_v51, 0.0  ;;  %v6375_v16 = vadd.f32 %v8365_v46, %v6374_v25 }
 0x8fc   :  { %6580 = vst [vmem:[%s13512_s5 + $0x1d8] sm:$0xff] %v6516_v40  ;;  %v6454_v20 = vadd.f32 %v9203_v14, %v6380_v13 }
 0x8fd   :  { %6579 = vst [vmem:[%s13512_s5 + $0x1d0] sm:$0xff] %v6515_v28  ;;  %v6453_v63 = vadd.f32 %v9204_v1, %v6375_v16  ;;  %v7776_v35 = vpop.f32.mrb[198].mxu1 }
 0x8fe   :  { %v6518_v9 = vmax.f32 %v6454_v20, 0.0  ;;  %v6390_v19 = vadd.f32 %v8368_v3, %v7776_v35  ;;  %v6384_v24 = vpop.f32.mrb[199].mxu1 }
 0x8ff   :  { %v6517_v0 = vmax.f32 %v6453_v63, 0.0  ;;  %v6385_v57 = vadd.f32 %v8367_v55, %v6384_v24 }
 0x900   :  { %6582 = vst [vmem:[%s13512_s5 + $0x1e8] sm:$0xff] %v6518_v9  ;;  %v6456_v41 = vadd.f32 %v9205_v18, %v6390_v19 }
 0x901   :  { %6581 = vst [vmem:[%s13512_s5 + $0x1e0] sm:$0xff] %v6517_v0  ;;  %v6455_v11 = vadd.f32 %v9206_v39, %v6385_v57 }
 0x902   :  { %v6520_v12 = vmax.f32 %v6456_v41, 0.0 }
 0x903   :  { %v6519_v4 = vmax.f32 %v6455_v11, 0.0 }
 0x904   :  { %6584 = vst [vmem:[%s13512_s5 + $0x1f8] sm:$0xff] %v6520_v12 }
 0x905   :  { %6583 = vst [vmem:[%s13512_s5 + $0x1f0] sm:$0xff] %v6519_v4 }

</bundles_post_ra>
